<compile_context>
chip_gen: v6e
topology: v6e:2x2x1
jax: 0.10.0
libtpu: 0.0.40
codegen_flags: <defaults>
</compile_context>

<pallas_src>
import numpy as np
import jax
import jax.numpy as jnp
from jax import lax
from jax.experimental import pallas as pl
from jax.experimental.pallas import tpu as pltpu


def _round_up(x, m):
    return ((x + m - 1) // m) * m


# ----------------------------------------------------------------------------
# Pallas kernel (one grid step == one padded chunk of graphs)
# ----------------------------------------------------------------------------
def make_kernel(depth, half, compute_dtype):
    cd = compute_dtype
    f32 = jnp.float32
    prec = lax.Precision.HIGHEST if cd == jnp.float32 else None

    def kernel(
        # per-chunk graph data
        atom_ref, ef_ref, src_ref, dst_ref, ew_ref, revw_ref, n2g_ref,
        # parameters ([in, out] layout, zero-padded to 128 lanes)
        wi_a_ref, wi_b_ref, wm_ref, bm_ref, wn_a_ref, wn_b_ref, bn_ref,
        nh_w1_ref, nh_b1_ref, nh_w2_ref, nh_b2_ref,
        eh_w1_ref, eh_b1_ref, eh_w2_ref, eh_b2_ref,
        gh_w1_ref, gh_b1_ref, gh_w2_ref, gh_b2_ref,
        # per-chunk outputs
        pred_node_ref, pred_edge_ref, pred_graph_ref,
        graph_emb_ref, node_repr_ref, hidden_ref,
    ):
        def dot(a, b):
            return jnp.dot(a, b, preferred_element_type=f32, precision=prec)

        def cast(x):
            return x.astype(cd)

        atom = atom_ref[...]                      # [N_blk, A_pad]  compute dtype
        ef = ef_ref[...]                          # [E_blk, Bf_pad]
        revw = revw_ref[...]                      # [E_blk, 1] f32 (0 if no reverse edge)

        N_blk = atom.shape[0]
        E_blk = ef.shape[0]
        H_pad = wm_ref.shape[1]
        G_blk = graph_emb_ref.shape[0]

        one = jnp.ones((), cd)
        zero = jnp.zeros((), cd)

        # --- rebuild structural matrices from index vectors (no O(E*N) HBM) ---
        # gather:   gsrc[p, n]   = 1      iff edge_src[p] == n
        src = src_ref[...]                        # [E_blk, 1] int32, -1 for padding
        iota_en = lax.broadcasted_iota(jnp.int32, (E_blk, N_blk), 1)
        gsrc = jnp.where(iota_en == src, one, zero)

        # weighted scatter: sdst_w[n, p] = ew[p]  iff edge_dst[p] == n (ew folded in)
        dst = dst_ref[...]                        # [1, E_blk] int32, -1 for padding
        ew = ew_ref[...]                          # [1, E_blk] f32
        iota_ne = lax.broadcasted_iota(jnp.int32, (N_blk, E_blk), 0)
        sdst_w = cast(jnp.where(iota_ne == dst, ew, 0.0))

        # pool:     pg[g, n]     = 1      iff node_to_graph_local[n] == g
        n2g = n2g_ref[...]                        # [1, N_blk] int32, -1 for padding
        iota_gn = lax.broadcasted_iota(jnp.int32, (G_blk, N_blk), 0)
        pg = jnp.where(iota_gn == n2g, one, zero)

        # hoisted loop invariants
        wm = wm_ref[...]
        bm_full = jnp.broadcast_to(bm_ref[...], (E_blk, H_pad))

        # hidden_edges = relu(atom[edge_src] @ Wi_a + edge_feats @ Wi_b)   (no bias)
        pre = dot(atom, wi_a_ref[...])                           # [N_blk, H] f32
        hidden = jnp.maximum(dot(gsrc, cast(pre)) + dot(ef, wi_b_ref[...]), 0.0)
        # dropout (eval mode) -> identity

        # message passing (depth is a small static int -> unrolled)
        for _ in range(depth):
            h_c = cast(hidden)                                   # one cast per iter
            M = dot(sdst_w, h_c)                                 # [N_blk, H] weighted scatter
            # reverse-edge gather == structural half-swap of the edge axis
            rev = jnp.concatenate([h_c[half:, :], h_c[:half, :]], axis=0)
            msg = dot(gsrc, cast(M)) - revw * rev                # M[edge_src] - w_rev*h_rev
            hidden = jnp.maximum(dot(cast(msg), wm) + bm_full, 0.0)

        # node representation
        node_sum = dot(sdst_w, cast(hidden))                     # [N_blk, H]
        node_repr = jnp.maximum(
            dot(atom, wn_a_ref[...]) + dot(cast(node_sum), wn_b_ref[...]) + bn_ref[...],
            0.0)

        # graph embeddings (pool over each graph's nodes)
        nr_c = cast(node_repr)
        graph_emb = dot(pg, nr_c)                                # [G_blk, H]

        # heads: Linear -> ReLU -> Linear   (lane-padded, lane-dense stores)
        nh = jnp.maximum(dot(nr_c, nh_w1_ref[...]) + nh_b1_ref[...], 0.0)
        pred_node_ref[...] = (dot(cast(nh), nh_w2_ref[...])
                              + nh_b2_ref[...]).astype(pred_node_ref.dtype)

        h_fin = cast(hidden)
        eh = jnp.maximum(dot(h_fin, eh_w1_ref[...]) + eh_b1_ref[...], 0.0)
        pred_edge_ref[...] = (dot(cast(eh), eh_w2_ref[...])
                              + eh_b2_ref[...]).astype(pred_edge_ref.dtype)

        gh = jnp.maximum(dot(cast(graph_emb), gh_w1_ref[...]) + gh_b1_ref[...], 0.0)
        pred_graph_ref[...] = (dot(cast(gh), gh_w2_ref[...])
                               + gh_b2_ref[...]).astype(pred_graph_ref.dtype)

        graph_emb_ref[...] = graph_emb.astype(graph_emb_ref.dtype)
        node_repr_ref[...] = node_repr.astype(node_repr_ref.dtype)
        hidden_ref[...] = hidden.astype(hidden_ref.dtype)

    return kernel


# ----------------------------------------------------------------------------
# Host-side index glue: chunk the batch of disjoint molecular graphs.
# ----------------------------------------------------------------------------
def preprocess_batch(atom_feats, edge_src, edge_dst, edge_feats, edge_weights,
                     b2rev, node_to_graph, batch_size, graphs_per_block=2):
    """Partition graphs into fixed-size padded chunks; lay each chunk's directed
    edges out as (forward-half | reverse-half) so the reverse gather is a
    half-swap.  Only O(E + N) int32/f32 index vectors are shipped per chunk;
    the dense gather/scatter/pool matrices are rebuilt inside the kernel."""
    atom_feats = np.asarray(atom_feats, np.float32)
    edge_feats = np.asarray(edge_feats, np.float32)
    edge_weights = np.asarray(edge_weights, np.float32)
    edge_src = np.asarray(edge_src, np.int64)
    edge_dst = np.asarray(edge_dst, np.int64)
    b2rev = np.asarray(b2rev, np.int64)
    node_to_graph = np.asarray(node_to_graph, np.int64)

    N, A = atom_feats.shape
    E, Bf = edge_feats.shape
    B = int(batch_size)
    GPB = int(graphs_per_block)
    C = -(-B // GPB)                 # keep C even when growing GPB (v7x has 2 TCs)
    GPB_pad = _round_up(GPB, 16)
    A_pad = _round_up(A, 128)
    Bf_pad = _round_up(Bf, 128)

    graph_chunk = np.arange(B) // GPB
    node_chunk = graph_chunk[node_to_graph]
    edge_chunk = node_chunk[edge_src]

    node_lists = [np.where(node_chunk == c)[0] for c in range(C)]
    N_max = _round_up(max(1, max(len(l) for l in node_lists)), 16)
    node_local = np.zeros(N, np.int64)
    node_pos = np.zeros(N, np.int64)
    for c, l in enumerate(node_lists):
        node_local[l] = np.arange(len(l))
        node_pos[l] = c * N_max + np.arange(len(l))

    edge_lists = [np.where(edge_chunk == c)[0] for c in range(C)]
    # E_max % 32 == 0 keeps the half-swap slices (16,128)-tile aligned in bf16.
    E_max = _round_up(max(2, max(len(l) for l in edge_lists)), 32)
    half = E_max // 2

    # pair layout: position p < half holds a forward edge, p + half its reverse.
    edge_perm = np.full((C, E_max), -1, np.int64)
    for c, el in enumerate(edge_lists):
        in_chunk = set(int(e) for e in el)
        firsts, seconds, unpaired = [], [], []
        seen = set()
        for e in el:
            e = int(e)
            if e in seen:
                continue
            r = int(b2rev[e])
            if r >= 0:
                # wD-MPNN reverse edges form a same-graph involution
                assert r != e and r in in_chunk and int(b2rev[r]) == e, \
                    "b2rev must be a same-graph involution"
                firsts.append(e); seconds.append(r)
                seen.add(e); seen.add(r)
            else:
                unpaired.append(e); seen.add(e)
        P = len(firsts)
        u1 = unpaired[: half - P]
        u2 = unpaired[half - P:]
        edge_perm[c, : P + len(u1)] = firsts + u1
        edge_perm[c, half: half + P] = seconds
        edge_perm[c, half + P: half + P + len(u2)] = u2

    atom_p = np.zeros((C, N_max, A_pad), np.float32)
    n2g_loc = np.full((C, 1, N_max), -1, np.int32)
    for c, l in enumerate(node_lists):
        atom_p[c, : len(l), :A] = atom_feats[l]
        n2g_loc[c, 0, : len(l)] = (node_to_graph[l] - c * GPB).astype(np.int32)

    edge_feats_p = np.zeros((C, E_max, Bf_pad), np.float32)
    src_idx = np.full((C, E_max, 1), -1, np.int32)
    dst_idx = np.full((C, 1, E_max), -1, np.int32)
    ew_row = np.zeros((C, 1, E_max), np.float32)
    revw = np.zeros((C, E_max, 1), np.float32)
    edge_pos = np.zeros(E, np.int64)
    for c in range(C):
        for p in range(E_max):
            e = int(edge_perm[c, p])
            if e < 0:
                continue
            edge_pos[e] = c * E_max + p
            edge_feats_p[c, p, :Bf] = edge_feats[e]
            src_idx[c, p, 0] = node_local[edge_src[e]]
            dst_idx[c, 0, p] = node_local[edge_dst[e]]
            ew_row[c, 0, p] = edge_weights[e]
            r = int(b2rev[e])
            if r >= 0:
                revw[c, p, 0] = edge_weights[r]

    meta = dict(C=C, N_max=N_max, E_max=E_max, half=half, GPB=GPB, GPB_pad=GPB_pad,
                A=A, Bf=Bf, A_pad=A_pad, Bf_pad=Bf_pad, B=B)
    return dict(meta=meta, atom=atom_p, edge_feats=edge_feats_p,
                src_idx=src_idx, dst_idx=dst_idx, ew=ew_row, revw=revw,
                n2g=n2g_loc, node_pos=node_pos, edge_pos=edge_pos)


def _pad_params(params, A, Bf, H, A_pad, Bf_pad, H_pad, G_pad):
    def p2(w, r, c):
        w = np.asarray(w, np.float32)
        out = np.zeros((r, c), np.float32)
        out[: w.shape[0], : w.shape[1]] = w
        return out

    def row(b, c):
        b = np.asarray(b, np.float32).reshape(1, -1)
        out = np.zeros((1, c), np.float32)
        out[:, : b.shape[1]] = b
        return out

    wi = np.asarray(params["W_initial"], np.float32).T      # [(A+Bf), H]
    wn = np.asarray(params["W_node"], np.float32).T         # [(A+H), H]
    return dict(
        wi_a=p2(wi[:A], A_pad, H_pad), wi_b=p2(wi[A:], Bf_pad, H_pad),
        wm=p2(np.asarray(params["W_message"], np.float32).T, H_pad, H_pad),
        bm=row(params["b_message"], H_pad),
        wn_a=p2(wn[:A], A_pad, H_pad), wn_b=p2(wn[A:], H_pad, H_pad),
        bn=row(params["b_node"], H_pad),
        nh_w1=p2(np.asarray(params["node_w1"], np.float32).T, H_pad, H_pad),
        nh_b1=row(params["node_b1"], H_pad),
        nh_w2=p2(np.asarray(params["node_w2"], np.float32).T, H_pad, A_pad),
        nh_b2=row(params["node_b2"], A_pad),
        eh_w1=p2(np.asarray(params["edge_w1"], np.float32).T, H_pad, H_pad),
        eh_b1=row(params["edge_b1"], H_pad),
        eh_w2=p2(np.asarray(params["edge_w2"], np.float32).T, H_pad, Bf_pad),
        eh_b2=row(params["edge_b2"], Bf_pad),
        gh_w1=p2(np.asarray(params["graph_w1"], np.float32).T, H_pad, H_pad),
        gh_b1=row(params["graph_b1"], H_pad),
        gh_w2=p2(np.asarray(params["graph_w2"], np.float32).T, H_pad, G_pad),
        gh_b2=row(params["graph_b2"], G_pad),
    )


def _vmem_limit_bytes():
    """Per-generation VMEM budget: ~3/4 of physical (64 MiB v7x, 128 MiB v5e/v6e)."""
    cap = None
    try:
        cap = getattr(pltpu.get_tpu_info(), "vmem_capacity_bytes", None)
    except Exception:
        cap = None
    if not cap:
        cap = 64 * 1024 * 1024
    return int(min(cap * 3 // 4, 110 * 1024 * 1024))


def _estimate_cost(inputs, out_shape, C, N_max, E_max, GPB_pad,
                   A_pad, Bf_pad, H_pad, G_pad, depth):
    per_chunk = (
        2 * N_max * A_pad * H_pad                         # pre = atom @ Wi_a
        + 2 * E_max * N_max * H_pad                       # gsrc @ pre
        + 2 * E_max * Bf_pad * H_pad                      # ef @ Wi_b
        + depth * (2 * N_max * E_max * H_pad              # weighted scatter
                   + 2 * E_max * N_max * H_pad            # gather
                   + 2 * E_max * H_pad * H_pad)           # W_message
        + 2 * N_max * E_max * H_pad                       # node_sum
        + 2 * N_max * (A_pad + H_pad) * H_pad             # W_node
        + 2 * GPB_pad * N_max * H_pad                     # pool
        + 2 * N_max * (H_pad * H_pad + H_pad * A_pad)     # node head
        + 2 * E_max * (H_pad * H_pad + H_pad * Bf_pad)    # edge head
        + 2 * GPB_pad * (H_pad * H_pad + H_pad * G_pad)   # graph head
    )
    flops = int(C * per_chunk)
    bytes_in = sum(int(np.prod(a.shape)) * int(a.dtype.itemsize) for a in inputs)
    bytes_out = sum(int(np.prod(s.shape)) * int(np.dtype(s.dtype).itemsize)
                    for s in out_shape)
    return flops, int(bytes_in + bytes_out)


# ----------------------------------------------------------------------------
# Wrapper: casts, specs, pallas_call, inverse permutation
# ----------------------------------------------------------------------------
def ssl_forward(params, batch, depth, hidden_size, compute_dtype=jnp.bfloat16):
    cd = compute_dtype
    f32 = jnp.float32
    i32 = jnp.int32
    m = batch["meta"]
    C, N_max, E_max, half = m["C"], m["N_max"], m["E_max"], m["half"]
    GPB, GPB_pad, B = m["GPB"], m["GPB_pad"], m["B"]
    A, Bf, A_pad, Bf_pad = m["A"], m["Bf"], m["A_pad"], m["Bf_pad"]
    H = hidden_size
    H_pad = _round_up(H, 128)
    G_pad = 128

    pp = _pad_params(params, A, Bf, H, A_pad, Bf_pad, H_pad, G_pad)

    chunk_inputs = [
        jnp.asarray(batch["atom"], cd),         # [C, N_max, A_pad]
        jnp.asarray(batch["edge_feats"], cd),   # [C, E_max, Bf_pad]
        jnp.asarray(batch["src_idx"], i32),     # [C, E_max, 1]
        jnp.asarray(batch["dst_idx"], i32),     # [C, 1, E_max]
        jnp.asarray(batch["ew"], f32),          # [C, 1, E_max]
        jnp.asarray(batch["revw"], f32),        # [C, E_max, 1]
        jnp.asarray(batch["n2g"], i32),         # [C, 1, N_max]
    ]
    wkeys = ["wi_a", "wi_b", "wm", "bm", "wn_a", "wn_b", "bn",
             "nh_w1", "nh_b1", "nh_w2", "nh_b2",
             "eh_w1", "eh_b1", "eh_w2", "eh_b2",
             "gh_w1", "gh_b1", "gh_w2", "gh_b2"]
    bias_keys = {"bm", "bn", "nh_b1", "nh_b2", "eh_b1", "eh_b2", "gh_b1", "gh_b2"}
    weights = [jnp.asarray(pp[k], f32 if k in bias_keys else cd) for k in wkeys]

    inputs = chunk_inputs + weights

    def chunk_spec(a):
        return pl.BlockSpec((None,) + tuple(a.shape[1:]), lambda i: (i, 0, 0))

    def weight_spec(a):
        return pl.BlockSpec(tuple(a.shape), lambda i: (0, 0))

    in_specs = [chunk_spec(a) for a in chunk_inputs] + [weight_spec(w) for w in weights]

    # Outputs: lane-padded to 128 and stored in the compute dtype (bf16 halves
    # output HBM writeback + double-buffered output VMEM).
    out_shape = [
        jax.ShapeDtypeStruct((C, N_max, A_pad), cd),     # pred_node
        jax.ShapeDtypeStruct((C, E_max, Bf_pad), cd),    # pred_edge
        jax.ShapeDtypeStruct((C, GPB_pad, G_pad), cd),   # pred_graph
        jax.ShapeDtypeStruct((C, GPB_pad, H_pad), cd),   # graph_embeds
        jax.ShapeDtypeStruct((C, N_max, H_pad), cd),     # node_repr
        jax.ShapeDtypeStruct((C, E_max, H_pad), cd),     # hidden_edges
    ]
    out_specs = [pl.BlockSpec((None,) + tuple(s.shape[1:]), lambda i: (i, 0, 0))
                 for s in out_shape]

    flops, bytes_accessed = _estimate_cost(inputs, out_shape, C, N_max, E_max,
                                           GPB_pad, A_pad, Bf_pad, H_pad, G_pad, depth)

    outs = pl.pallas_call(
        make_kernel(depth, half, cd),
        grid=(C,),
        in_specs=in_specs,
        out_specs=out_specs,
        out_shape=out_shape,
        compiler_params=pltpu.CompilerParams(
            dimension_semantics=("parallel",),          # chunks shard across v7x's 2 TCs
            vmem_limit_bytes=_vmem_limit_bytes(),       # per-generation budget
        ),
        cost_estimate=pl.CostEstimate(flops=flops, transcendentals=0,
                                      bytes_accessed=bytes_accessed),
    )(*inputs)

    pred_node_c, pred_edge_c, pred_graph_c, graph_emb_c, node_repr_c, hidden_c = outs

    node_pos = jnp.asarray(batch["node_pos"], jnp.int32)
    edge_pos = jnp.asarray(batch["edge_pos"], jnp.int32)
    g = jnp.arange(B, dtype=jnp.int32)
    graph_pos = (g // GPB) * GPB_pad + (g % GPB)

    pred_node = pred_node_c.reshape(C * N_max, A_pad)[node_pos][:, :A].astype(f32)
    node_repr = node_repr_c.reshape(C * N_max, H_pad)[node_pos][:, :H].astype(f32)
    pred_edge = pred_edge_c.reshape(C * E_max, Bf_pad)[edge_pos][:, :Bf].astype(f32)
    hidden = hidden_c.reshape(C * E_max, H_pad)[edge_pos][:, :H].astype(f32)
    graph_emb = graph_emb_c.reshape(C * GPB_pad, H_pad)[graph_pos][:, :H].astype(f32)
    pred_graph = pred_graph_c.reshape(C * GPB_pad, G_pad)[graph_pos][:, 0].astype(f32)

    return pred_node, pred_edge, pred_graph, graph_emb, node_repr, hidden


# ----------------------------------------------------------------------------
# Pure-JAX reference (mirrors the PyTorch forward, eval mode)
# ----------------------------------------------------------------------------
def reference_forward(params, atom_feats, edge_src, edge_dst, edge_feats,
                      edge_weights, b2rev, node_to_graph, depth, batch_size):
    relu = jax.nn.relu
    hidden = relu(jnp.concatenate([atom_feats[edge_src], edge_feats], axis=1)
                  @ params["W_initial"].T)
    N = atom_feats.shape[0]
    H = params["W_message"].shape[0]
    valid = b2rev >= 0
    safe = jnp.where(valid, b2rev, 0)
    for _ in range(depth):
        M = jnp.zeros((N, H), jnp.float32).at[edge_dst].add(edge_weights[:, None] * hidden)
        rev_hidden = jnp.where(valid[:, None], hidden[safe], 0.0)
        rev_w = jnp.where(valid, edge_weights[safe], 0.0)
        msg = M[edge_src] - rev_w[:, None] * rev_hidden
        hidden = relu(msg @ params["W_message"].T + params["b_message"])
    node_sum = jnp.zeros((N, H), jnp.float32).at[edge_dst].add(edge_weights[:, None] * hidden)
    node_repr = relu(jnp.concatenate([atom_feats, node_sum], 1) @ params["W_node"].T
                     + params["b_node"])
    graph_emb = jnp.zeros((batch_size, H), jnp.float32).at[node_to_graph].add(node_repr)
    pred_node = (relu(node_repr @ params["node_w1"].T + params["node_b1"])
                 @ params["node_w2"].T + params["node_b2"])
    pred_edge = (relu(hidden @ params["edge_w1"].T + params["edge_b1"])
                 @ params["edge_w2"].T + params["edge_b2"])
    pred_graph = (relu(graph_emb @ params["graph_w1"].T + params["graph_b1"])
                  @ params["graph_w2"].T + params["graph_b2"])[:, 0]
    return pred_node, pred_edge, pred_graph, graph_emb, node_repr, hidden


# ----------------------------------------------------------------------------
# Deterministic parameter init (torch layout: Linear weight is [out, in])
# ----------------------------------------------------------------------------
def init_params(key, A, Bf, H):
    ks = jax.random.split(key, 20)

    def W(k, o, i):
        return (jax.random.normal(k, (o, i), jnp.float32) / np.sqrt(i)).astype(jnp.float32)

    def b(k, o):
        return (jax.random.normal(k, (o,), jnp.float32) * 0.01).astype(jnp.float32)

    p = {}
    p["W_initial"] = W(ks[0], H, A + Bf)
    p["W_message"] = W(ks[1], H, H); p["b_message"] = b(ks[2], H)
    p["W_node"] = W(ks[3], H, A + H); p["b_node"] = b(ks[4], H)
    p["node_w1"] = W(ks[5], H, H); p["node_b1"] = b(ks[6], H)
    p["node_w2"] = W(ks[7], A, H); p["node_b2"] = b(ks[8], A)
    p["edge_w1"] = W(ks[9], H, H); p["edge_b1"] = b(ks[10], H)
    p["edge_w2"] = W(ks[11], Bf, H); p["edge_b2"] = b(ks[12], Bf)
    p["graph_w1"] = W(ks[13], H, H); p["graph_b1"] = b(ks[14], H)
    p["graph_w2"] = W(ks[15], 1, H); p["graph_b2"] = b(ks[16], 1)
    return p


# ----------------------------------------------------------------------------
if __name__ == "__main__":
    # Stable f32 reference / check path (TPU default f32 matmul is reduced precision).
    jax.config.update("jax_default_matmul_precision", "highest")

    A, Bf, H, depth = 16, 8, 32, 3   # dropout: identity (eval mode)

    key = jax.random.PRNGKey(0)
    k_param, k_atom, k_edge, k_w = jax.random.split(key, 4)
    params = init_params(k_param, A, Bf, H)

    # four molecules of different sizes; each undirected bond -> two directed edges;
    # graph 1 additionally has one directed-only edge (b2rev = -1).
    graphs = [
        (4, [(0, 1), (1, 2), (2, 3), (0, 2)], []),
        (3, [(0, 1), (1, 2)], [(2, 0)]),
        (5, [(0, 1), (1, 2), (2, 3), (3, 4), (4, 0)], []),
        (2, [(0, 1)], []),
    ]
    edge_src, edge_dst, b2rev, node_to_graph = [], [], [], []
    off = 0
    for g, (na, bonds, extra) in enumerate(graphs):
        node_to_graph += [g] * na
        for (u, v) in bonds:
            i = len(edge_src)
            edge_src += [u + off, v + off]
            edge_dst += [v + off, u + off]
            b2rev += [i + 1, i]
        for (u, v) in extra:
            edge_src.append(u + off); edge_dst.append(v + off); b2rev.append(-1)
        off += na

    edge_src = np.array(edge_src, np.int32)
    edge_dst = np.array(edge_dst, np.int32)
    b2rev = np.array(b2rev, np.int32)
    node_to_graph = np.array(node_to_graph, np.int32)
    N, E = off, len(edge_src)
    batch_size = int(node_to_graph.max()) + 1

    atom_feats = jax.random.normal(k_atom, (N, A), jnp.float32)
    edge_feats = jax.random.normal(k_edge, (E, Bf), jnp.float32)
    edge_weights = jax.random.uniform(k_w, (E,), jnp.float32, 0.5, 1.5)

    batch = preprocess_batch(np.asarray(atom_feats), edge_src, edge_dst,
                             np.asarray(edge_feats), np.asarray(edge_weights),
                             b2rev, node_to_graph, batch_size, graphs_per_block=2)

    refs = reference_forward(params, atom_feats, jnp.asarray(edge_src),
                             jnp.asarray(edge_dst), edge_feats, edge_weights,
                             jnp.asarray(b2rev), jnp.asarray(node_to_graph),
                             depth, batch_size)

    # f32 path: tight check of chunking / pair-swap / index-rebuild / padding logic
    outs_f32 = jax.block_until_ready(
        ssl_forward(params, batch, depth, H, compute_dtype=jnp.float32))
    for o, r in zip(outs_f32, refs):
        np.testing.assert_allclose(np.asarray(o), np.asarray(r), rtol=1e-3, atol=1e-3)

    # bf16 path (production config: bf16 MXU operands + bf16 outputs, f32 accumulation)
    outs_bf16 = jax.block_until_ready(
        ssl_forward(params, batch, depth, H, compute_dtype=jnp.bfloat16))
    for o, r in zip(outs_bf16, refs):
        np.testing.assert_allclose(np.asarray(o), np.asarray(r), rtol=1.5e-1, atol=1.5e-1)

    print("KERNEL_OK")
</pallas_src>

<mosaic_0001>
module attributes {stable_mosaic.version = 11 : i64} {
  func.func @kernel(%arg0: i32, %arg1: memref<1x16x128xf32, #tpu.memory_space<vmem>>, %arg2: memref<1x32x128xf32, #tpu.memory_space<vmem>>, %arg3: memref<1x32x1xi32, #tpu.memory_space<vmem>>, %arg4: memref<1x1x32xi32, #tpu.memory_space<vmem>>, %arg5: memref<1x1x32xf32, #tpu.memory_space<vmem>>, %arg6: memref<1x32x1xf32, #tpu.memory_space<vmem>>, %arg7: memref<1x1x16xi32, #tpu.memory_space<vmem>>, %arg8: memref<128x128xf32, #tpu.memory_space<vmem>>, %arg9: memref<128x128xf32, #tpu.memory_space<vmem>>, %arg10: memref<128x128xf32, #tpu.memory_space<vmem>>, %arg11: memref<1x128xf32, #tpu.memory_space<vmem>>, %arg12: memref<128x128xf32, #tpu.memory_space<vmem>>, %arg13: memref<128x128xf32, #tpu.memory_space<vmem>>, %arg14: memref<1x128xf32, #tpu.memory_space<vmem>>, %arg15: memref<128x128xf32, #tpu.memory_space<vmem>>, %arg16: memref<1x128xf32, #tpu.memory_space<vmem>>, %arg17: memref<128x128xf32, #tpu.memory_space<vmem>>, %arg18: memref<1x128xf32, #tpu.memory_space<vmem>>, %arg19: memref<128x128xf32, #tpu.memory_space<vmem>>, %arg20: memref<1x128xf32, #tpu.memory_space<vmem>>, %arg21: memref<128x128xf32, #tpu.memory_space<vmem>>, %arg22: memref<1x128xf32, #tpu.memory_space<vmem>>, %arg23: memref<128x128xf32, #tpu.memory_space<vmem>>, %arg24: memref<1x128xf32, #tpu.memory_space<vmem>>, %arg25: memref<128x128xf32, #tpu.memory_space<vmem>>, %arg26: memref<1x128xf32, #tpu.memory_space<vmem>>, %arg27: memref<1x16x128xf32, #tpu.memory_space<vmem>>, %arg28: memref<1x32x128xf32, #tpu.memory_space<vmem>>, %arg29: memref<1x16x128xf32, #tpu.memory_space<vmem>>, %arg30: memref<1x16x128xf32, #tpu.memory_space<vmem>>, %arg31: memref<1x16x128xf32, #tpu.memory_space<vmem>>, %arg32: memref<1x32x128xf32, #tpu.memory_space<vmem>>) attributes {dimension_semantics = [#tpu.dimension_semantics<parallel>], iteration_bounds = array<i64: 2>, scalar_prefetch = 0 : i64, scratch_operands = 0 : i64, tpu.core_type = #tpu.core_type<tc>, window_params = [{transform_indices = @transform_0, window_bounds = array<i64: 1, 16, 128>}, {transform_indices = @transform_1, window_bounds = array<i64: 1, 32, 128>}, {transform_indices = @transform_2, window_bounds = array<i64: 1, 32, 1>}, {transform_indices = @transform_3, window_bounds = array<i64: 1, 1, 32>}, {transform_indices = @transform_4, window_bounds = array<i64: 1, 1, 32>}, {transform_indices = @transform_5, window_bounds = array<i64: 1, 32, 1>}, {transform_indices = @transform_6, window_bounds = array<i64: 1, 1, 16>}, {pipeline_mode = #tpu.pipeline_mode<synchronous>, transform_indices = @transform_7, window_bounds = array<i64: 128, 128>}, {pipeline_mode = #tpu.pipeline_mode<synchronous>, transform_indices = @transform_8, window_bounds = array<i64: 128, 128>}, {pipeline_mode = #tpu.pipeline_mode<synchronous>, transform_indices = @transform_9, window_bounds = array<i64: 128, 128>}, {pipeline_mode = #tpu.pipeline_mode<synchronous>, transform_indices = @transform_10, window_bounds = array<i64: 1, 128>}, {pipeline_mode = #tpu.pipeline_mode<synchronous>, transform_indices = @transform_11, window_bounds = array<i64: 128, 128>}, {pipeline_mode = #tpu.pipeline_mode<synchronous>, transform_indices = @transform_12, window_bounds = array<i64: 128, 128>}, {pipeline_mode = #tpu.pipeline_mode<synchronous>, transform_indices = @transform_13, window_bounds = array<i64: 1, 128>}, {pipeline_mode = #tpu.pipeline_mode<synchronous>, transform_indices = @transform_14, window_bounds = array<i64: 128, 128>}, {pipeline_mode = #tpu.pipeline_mode<synchronous>, transform_indices = @transform_15, window_bounds = array<i64: 1, 128>}, {pipeline_mode = #tpu.pipeline_mode<synchronous>, transform_indices = @transform_16, window_bounds = array<i64: 128, 128>}, {pipeline_mode = #tpu.pipeline_mode<synchronous>, transform_indices = @transform_17, window_bounds = array<i64: 1, 128>}, {pipeline_mode = #tpu.pipeline_mode<synchronous>, transform_indices = @transform_18, window_bounds = array<i64: 128, 128>}, {pipeline_mode = #tpu.pipeline_mode<synchronous>, transform_indices = @transform_19, window_bounds = array<i64: 1, 128>}, {pipeline_mode = #tpu.pipeline_mode<synchronous>, transform_indices = @transform_20, window_bounds = array<i64: 128, 128>}, {pipeline_mode = #tpu.pipeline_mode<synchronous>, transform_indices = @transform_21, window_bounds = array<i64: 1, 128>}, {pipeline_mode = #tpu.pipeline_mode<synchronous>, transform_indices = @transform_22, window_bounds = array<i64: 128, 128>}, {pipeline_mode = #tpu.pipeline_mode<synchronous>, transform_indices = @transform_23, window_bounds = array<i64: 1, 128>}, {pipeline_mode = #tpu.pipeline_mode<synchronous>, transform_indices = @transform_24, window_bounds = array<i64: 128, 128>}, {pipeline_mode = #tpu.pipeline_mode<synchronous>, transform_indices = @transform_25, window_bounds = array<i64: 1, 128>}, {transform_indices = @transform_26, window_bounds = array<i64: 1, 16, 128>}, {transform_indices = @transform_27, window_bounds = array<i64: 1, 32, 128>}, {transform_indices = @transform_28, window_bounds = array<i64: 1, 16, 128>}, {transform_indices = @transform_29, window_bounds = array<i64: 1, 16, 128>}, {transform_indices = @transform_30, window_bounds = array<i64: 1, 16, 128>}, {transform_indices = @transform_31, window_bounds = array<i64: 1, 32, 128>}]} {
    %c0 = arith.constant 0 : index
    %c0_0 = arith.constant 0 : index
    %c0_1 = arith.constant 0 : index
    %0 = vector.load %arg1[%c0, %c0_0, %c0_1] : memref<1x16x128xf32, #tpu.memory_space<vmem>>, vector<1x16x128xf32>
    %1 = vector.shape_cast %0 : vector<1x16x128xf32> to vector<16x128xf32>
    %c0_2 = arith.constant 0 : index
    %c0_3 = arith.constant 0 : index
    %c0_4 = arith.constant 0 : index
    %2 = vector.load %arg2[%c0_2, %c0_3, %c0_4] : memref<1x32x128xf32, #tpu.memory_space<vmem>>, vector<1x32x128xf32>
    %3 = vector.shape_cast %2 : vector<1x32x128xf32> to vector<32x128xf32>
    %c0_5 = arith.constant 0 : index
    %c0_6 = arith.constant 0 : index
    %c0_7 = arith.constant 0 : index
    %4 = vector.load %arg6[%c0_5, %c0_6, %c0_7] : memref<1x32x1xf32, #tpu.memory_space<vmem>>, vector<1x32x1xf32>
    %5 = vector.shape_cast %4 : vector<1x32x1xf32> to vector<32x1xf32>
    %c0_8 = arith.constant 0 : index
    %c0_9 = arith.constant 0 : index
    %c0_10 = arith.constant 0 : index
    %6 = vector.load %arg3[%c0_8, %c0_9, %c0_10] : memref<1x32x1xi32, #tpu.memory_space<vmem>>, vector<1x32x1xi32>
    %7 = vector.shape_cast %6 : vector<1x32x1xi32> to vector<32x1xi32>
    %8 = tpu.iota {dimensions = array<i32: 1>} : vector<32x16xi32>
    %9 = vector.broadcast %7 : vector<32x1xi32> to vector<32x16xi32>
    %10 = arith.cmpi eq, %8, %9 : vector<32x16xi32>
    %cst = arith.constant 1.000000e+00 : f32
    %cst_11 = arith.constant 0.000000e+00 : f32
    %11 = vector.broadcast %cst : f32 to vector<32x16xf32>
    %12 = vector.broadcast %cst_11 : f32 to vector<32x16xf32>
    %13 = arith.select %10, %11, %12 : vector<32x16xi1>, vector<32x16xf32>
    %c0_12 = arith.constant 0 : index
    %c0_13 = arith.constant 0 : index
    %c0_14 = arith.constant 0 : index
    %14 = vector.load %arg4[%c0_12, %c0_13, %c0_14] : memref<1x1x32xi32, #tpu.memory_space<vmem>>, vector<1x1x32xi32>
    %15 = vector.shape_cast %14 : vector<1x1x32xi32> to vector<1x32xi32>
    %c0_15 = arith.constant 0 : index
    %c0_16 = arith.constant 0 : index
    %c0_17 = arith.constant 0 : index
    %16 = vector.load %arg5[%c0_15, %c0_16, %c0_17] : memref<1x1x32xf32, #tpu.memory_space<vmem>>, vector<1x1x32xf32>
    %17 = vector.shape_cast %16 : vector<1x1x32xf32> to vector<1x32xf32>
    %18 = tpu.iota {dimensions = array<i32: 0>} : vector<16x32xi32>
    %19 = vector.broadcast %15 : vector<1x32xi32> to vector<16x32xi32>
    %20 = arith.cmpi eq, %18, %19 : vector<16x32xi32>
    %cst_18 = arith.constant 0.000000e+00 : f32
    %21 = vector.shape_cast %17 : vector<1x32xf32> to vector<1x32xf32>
    %22 = vector.broadcast %21 : vector<1x32xf32> to vector<16x32xf32>
    %23 = vector.broadcast %cst_18 : f32 to vector<16x32xf32>
    %24 = arith.select %20, %22, %23 : vector<16x32xi1>, vector<16x32xf32>
    %c0_19 = arith.constant 0 : index
    %c0_20 = arith.constant 0 : index
    %c0_21 = arith.constant 0 : index
    %25 = vector.load %arg7[%c0_19, %c0_20, %c0_21] : memref<1x1x16xi32, #tpu.memory_space<vmem>>, vector<1x1x16xi32>
    %26 = vector.shape_cast %25 : vector<1x1x16xi32> to vector<1x16xi32>
    %27 = tpu.iota {dimensions = array<i32: 0>} : vector<16x16xi32>
    %28 = vector.broadcast %26 : vector<1x16xi32> to vector<16x16xi32>
    %29 = arith.cmpi eq, %27, %28 : vector<16x16xi32>
    %cst_22 = arith.constant 1.000000e+00 : f32
    %cst_23 = arith.constant 0.000000e+00 : f32
    %30 = vector.broadcast %cst_22 : f32 to vector<16x16xf32>
    %31 = vector.broadcast %cst_23 : f32 to vector<16x16xf32>
    %32 = arith.select %29, %30, %31 : vector<16x16xi1>, vector<16x16xf32>
    %c0_24 = arith.constant 0 : index
    %c0_25 = arith.constant 0 : index
    %33 = vector.load %arg10[%c0_24, %c0_25] : memref<128x128xf32, #tpu.memory_space<vmem>>, vector<128x128xf32>
    %c0_26 = arith.constant 0 : index
    %c0_27 = arith.constant 0 : index
    %34 = vector.load %arg11[%c0_26, %c0_27] : memref<1x128xf32, #tpu.memory_space<vmem>>, vector<1x128xf32>
    %35 = vector.shape_cast %34 : vector<1x128xf32> to vector<1x128xf32>
    %36 = vector.broadcast %35 : vector<1x128xf32> to vector<32x128xf32>
    %c0_28 = arith.constant 0 : index
    %c0_29 = arith.constant 0 : index
    %37 = vector.load %arg8[%c0_28, %c0_29] : memref<128x128xf32, #tpu.memory_space<vmem>>, vector<128x128xf32>
    %cst_30 = arith.constant dense<0.000000e+00> : vector<16x128xf32>
    %38 = tpu.matmul %1, %37, %cst_30 {dimension_numbers = #tpu.dot_dimension_numbers<[1], [0], [0], [1], [0, 0, 1, 1], [], []>, precision = #tpu.contract_precision<fp32>} : vector<16x128xf32>, vector<128x128xf32>, vector<16x128xf32> -> vector<16x128xf32>
    %cst_31 = arith.constant dense<0.000000e+00> : vector<32x128xf32>
    %39 = tpu.matmul %13, %38, %cst_31 {dimension_numbers = #tpu.dot_dimension_numbers<[1], [0], [0], [1], [0, 0, 1, 1], [], []>, precision = #tpu.contract_precision<fp32>} : vector<32x16xf32>, vector<16x128xf32>, vector<32x128xf32> -> vector<32x128xf32>
    %c0_32 = arith.constant 0 : index
    %c0_33 = arith.constant 0 : index
    %40 = vector.load %arg9[%c0_32, %c0_33] : memref<128x128xf32, #tpu.memory_space<vmem>>, vector<128x128xf32>
    %cst_34 = arith.constant dense<0.000000e+00> : vector<32x128xf32>
    %41 = tpu.matmul %3, %40, %cst_34 {dimension_numbers = #tpu.dot_dimension_numbers<[1], [0], [0], [1], [0, 0, 1, 1], [], []>, precision = #tpu.contract_precision<fp32>} : vector<32x128xf32>, vector<128x128xf32>, vector<32x128xf32> -> vector<32x128xf32>
    %42 = arith.addf %39, %41 : vector<32x128xf32>
    %cst_35 = arith.constant 0.000000e+00 : f32
    %43 = vector.broadcast %cst_35 : f32 to vector<32x128xf32>
    %44 = arith.maximumf %42, %43 : vector<32x128xf32>
    %cst_36 = arith.constant dense<0.000000e+00> : vector<16x128xf32>
    %45 = tpu.matmul %24, %44, %cst_36 {dimension_numbers = #tpu.dot_dimension_numbers<[1], [0], [0], [1], [0, 0, 1, 1], [], []>, precision = #tpu.contract_precision<fp32>} : vector<16x32xf32>, vector<32x128xf32>, vector<16x128xf32> -> vector<16x128xf32>
    %46 = vector.extract_strided_slice %44 {offsets = [16, 0], sizes = [16, 128], strides = [1, 1]} : vector<32x128xf32> to vector<16x128xf32>
    %47 = vector.extract_strided_slice %44 {offsets = [0, 0], sizes = [16, 128], strides = [1, 1]} : vector<32x128xf32> to vector<16x128xf32>
    %48 = tpu.concatenate %46, %47 in 0 : vector<16x128xf32>, vector<16x128xf32> -> vector<32x128xf32>
    %cst_37 = arith.constant dense<0.000000e+00> : vector<32x128xf32>
    %49 = tpu.matmul %13, %45, %cst_37 {dimension_numbers = #tpu.dot_dimension_numbers<[1], [0], [0], [1], [0, 0, 1, 1], [], []>, precision = #tpu.contract_precision<fp32>} : vector<32x16xf32>, vector<16x128xf32>, vector<32x128xf32> -> vector<32x128xf32>
    %50 = vector.broadcast %5 : vector<32x1xf32> to vector<32x128xf32>
    %51 = arith.mulf %50, %48 : vector<32x128xf32>
    %52 = arith.subf %49, %51 : vector<32x128xf32>
    %cst_38 = arith.constant dense<0.000000e+00> : vector<32x128xf32>
    %53 = tpu.matmul %52, %33, %cst_38 {dimension_numbers = #tpu.dot_dimension_numbers<[1], [0], [0], [1], [0, 0, 1, 1], [], []>, precision = #tpu.contract_precision<fp32>} : vector<32x128xf32>, vector<128x128xf32>, vector<32x128xf32> -> vector<32x128xf32>
    %54 = arith.addf %53, %36 : vector<32x128xf32>
    %cst_39 = arith.constant 0.000000e+00 : f32
    %55 = vector.broadcast %cst_39 : f32 to vector<32x128xf32>
    %56 = arith.maximumf %54, %55 : vector<32x128xf32>
    %cst_40 = arith.constant dense<0.000000e+00> : vector<16x128xf32>
    %57 = tpu.matmul %24, %56, %cst_40 {dimension_numbers = #tpu.dot_dimension_numbers<[1], [0], [0], [1], [0, 0, 1, 1], [], []>, precision = #tpu.contract_precision<fp32>} : vector<16x32xf32>, vector<32x128xf32>, vector<16x128xf32> -> vector<16x128xf32>
    %58 = vector.extract_strided_slice %56 {offsets = [16, 0], sizes = [16, 128], strides = [1, 1]} : vector<32x128xf32> to vector<16x128xf32>
    %59 = vector.extract_strided_slice %56 {offsets = [0, 0], sizes = [16, 128], strides = [1, 1]} : vector<32x128xf32> to vector<16x128xf32>
    %60 = tpu.concatenate %58, %59 in 0 : vector<16x128xf32>, vector<16x128xf32> -> vector<32x128xf32>
    %cst_41 = arith.constant dense<0.000000e+00> : vector<32x128xf32>
    %61 = tpu.matmul %13, %57, %cst_41 {dimension_numbers = #tpu.dot_dimension_numbers<[1], [0], [0], [1], [0, 0, 1, 1], [], []>, precision = #tpu.contract_precision<fp32>} : vector<32x16xf32>, vector<16x128xf32>, vector<32x128xf32> -> vector<32x128xf32>
    %62 = vector.broadcast %5 : vector<32x1xf32> to vector<32x128xf32>
    %63 = arith.mulf %62, %60 : vector<32x128xf32>
    %64 = arith.subf %61, %63 : vector<32x128xf32>
    %cst_42 = arith.constant dense<0.000000e+00> : vector<32x128xf32>
    %65 = tpu.matmul %64, %33, %cst_42 {dimension_numbers = #tpu.dot_dimension_numbers<[1], [0], [0], [1], [0, 0, 1, 1], [], []>, precision = #tpu.contract_precision<fp32>} : vector<32x128xf32>, vector<128x128xf32>, vector<32x128xf32> -> vector<32x128xf32>
    %66 = arith.addf %65, %36 : vector<32x128xf32>
    %cst_43 = arith.constant 0.000000e+00 : f32
    %67 = vector.broadcast %cst_43 : f32 to vector<32x128xf32>
    %68 = arith.maximumf %66, %67 : vector<32x128xf32>
    %cst_44 = arith.constant dense<0.000000e+00> : vector<16x128xf32>
    %69 = tpu.matmul %24, %68, %cst_44 {dimension_numbers = #tpu.dot_dimension_numbers<[1], [0], [0], [1], [0, 0, 1, 1], [], []>, precision = #tpu.contract_precision<fp32>} : vector<16x32xf32>, vector<32x128xf32>, vector<16x128xf32> -> vector<16x128xf32>
    %70 = vector.extract_strided_slice %68 {offsets = [16, 0], sizes = [16, 128], strides = [1, 1]} : vector<32x128xf32> to vector<16x128xf32>
    %71 = vector.extract_strided_slice %68 {offsets = [0, 0], sizes = [16, 128], strides = [1, 1]} : vector<32x128xf32> to vector<16x128xf32>
    %72 = tpu.concatenate %70, %71 in 0 : vector<16x128xf32>, vector<16x128xf32> -> vector<32x128xf32>
    %cst_45 = arith.constant dense<0.000000e+00> : vector<32x128xf32>
    %73 = tpu.matmul %13, %69, %cst_45 {dimension_numbers = #tpu.dot_dimension_numbers<[1], [0], [0], [1], [0, 0, 1, 1], [], []>, precision = #tpu.contract_precision<fp32>} : vector<32x16xf32>, vector<16x128xf32>, vector<32x128xf32> -> vector<32x128xf32>
    %74 = vector.broadcast %5 : vector<32x1xf32> to vector<32x128xf32>
    %75 = arith.mulf %74, %72 : vector<32x128xf32>
    %76 = arith.subf %73, %75 : vector<32x128xf32>
    %cst_46 = arith.constant dense<0.000000e+00> : vector<32x128xf32>
    %77 = tpu.matmul %76, %33, %cst_46 {dimension_numbers = #tpu.dot_dimension_numbers<[1], [0], [0], [1], [0, 0, 1, 1], [], []>, precision = #tpu.contract_precision<fp32>} : vector<32x128xf32>, vector<128x128xf32>, vector<32x128xf32> -> vector<32x128xf32>
    %78 = arith.addf %77, %36 : vector<32x128xf32>
    %cst_47 = arith.constant 0.000000e+00 : f32
    %79 = vector.broadcast %cst_47 : f32 to vector<32x128xf32>
    %80 = arith.maximumf %78, %79 : vector<32x128xf32>
    %cst_48 = arith.constant dense<0.000000e+00> : vector<16x128xf32>
    %81 = tpu.matmul %24, %80, %cst_48 {dimension_numbers = #tpu.dot_dimension_numbers<[1], [0], [0], [1], [0, 0, 1, 1], [], []>, precision = #tpu.contract_precision<fp32>} : vector<16x32xf32>, vector<32x128xf32>, vector<16x128xf32> -> vector<16x128xf32>
    %c0_49 = arith.constant 0 : index
    %c0_50 = arith.constant 0 : index
    %82 = vector.load %arg12[%c0_49, %c0_50] : memref<128x128xf32, #tpu.memory_space<vmem>>, vector<128x128xf32>
    %cst_51 = arith.constant dense<0.000000e+00> : vector<16x128xf32>
    %83 = tpu.matmul %1, %82, %cst_51 {dimension_numbers = #tpu.dot_dimension_numbers<[1], [0], [0], [1], [0, 0, 1, 1], [], []>, precision = #tpu.contract_precision<fp32>} : vector<16x128xf32>, vector<128x128xf32>, vector<16x128xf32> -> vector<16x128xf32>
    %c0_52 = arith.constant 0 : index
    %c0_53 = arith.constant 0 : index
    %84 = vector.load %arg13[%c0_52, %c0_53] : memref<128x128xf32, #tpu.memory_space<vmem>>, vector<128x128xf32>
    %cst_54 = arith.constant dense<0.000000e+00> : vector<16x128xf32>
    %85 = tpu.matmul %81, %84, %cst_54 {dimension_numbers = #tpu.dot_dimension_numbers<[1], [0], [0], [1], [0, 0, 1, 1], [], []>, precision = #tpu.contract_precision<fp32>} : vector<16x128xf32>, vector<128x128xf32>, vector<16x128xf32> -> vector<16x128xf32>
    %86 = arith.addf %83, %85 : vector<16x128xf32>
    %c0_55 = arith.constant 0 : index
    %c0_56 = arith.constant 0 : index
    %87 = vector.load %arg14[%c0_55, %c0_56] : memref<1x128xf32, #tpu.memory_space<vmem>>, vector<1x128xf32>
    %88 = vector.broadcast %87 : vector<1x128xf32> to vector<16x128xf32>
    %89 = arith.addf %86, %88 : vector<16x128xf32>
    %cst_57 = arith.constant 0.000000e+00 : f32
    %90 = vector.broadcast %cst_57 : f32 to vector<16x128xf32>
    %91 = arith.maximumf %89, %90 : vector<16x128xf32>
    %cst_58 = arith.constant dense<0.000000e+00> : vector<16x128xf32>
    %92 = tpu.matmul %32, %91, %cst_58 {dimension_numbers = #tpu.dot_dimension_numbers<[1], [0], [0], [1], [0, 0, 1, 1], [], []>, precision = #tpu.contract_precision<fp32>} : vector<16x16xf32>, vector<16x128xf32>, vector<16x128xf32> -> vector<16x128xf32>
    %c0_59 = arith.constant 0 : index
    %c0_60 = arith.constant 0 : index
    %93 = vector.load %arg15[%c0_59, %c0_60] : memref<128x128xf32, #tpu.memory_space<vmem>>, vector<128x128xf32>
    %cst_61 = arith.constant dense<0.000000e+00> : vector<16x128xf32>
    %94 = tpu.matmul %91, %93, %cst_61 {dimension_numbers = #tpu.dot_dimension_numbers<[1], [0], [0], [1], [0, 0, 1, 1], [], []>, precision = #tpu.contract_precision<fp32>} : vector<16x128xf32>, vector<128x128xf32>, vector<16x128xf32> -> vector<16x128xf32>
    %c0_62 = arith.constant 0 : index
    %c0_63 = arith.constant 0 : index
    %95 = vector.load %arg16[%c0_62, %c0_63] : memref<1x128xf32, #tpu.memory_space<vmem>>, vector<1x128xf32>
    %96 = vector.broadcast %95 : vector<1x128xf32> to vector<16x128xf32>
    %97 = arith.addf %94, %96 : vector<16x128xf32>
    %cst_64 = arith.constant 0.000000e+00 : f32
    %98 = vector.broadcast %cst_64 : f32 to vector<16x128xf32>
    %99 = arith.maximumf %97, %98 : vector<16x128xf32>
    %c0_65 = arith.constant 0 : index
    %c0_66 = arith.constant 0 : index
    %100 = vector.load %arg17[%c0_65, %c0_66] : memref<128x128xf32, #tpu.memory_space<vmem>>, vector<128x128xf32>
    %cst_67 = arith.constant dense<0.000000e+00> : vector<16x128xf32>
    %101 = tpu.matmul %99, %100, %cst_67 {dimension_numbers = #tpu.dot_dimension_numbers<[1], [0], [0], [1], [0, 0, 1, 1], [], []>, precision = #tpu.contract_precision<fp32>} : vector<16x128xf32>, vector<128x128xf32>, vector<16x128xf32> -> vector<16x128xf32>
    %c0_68 = arith.constant 0 : index
    %c0_69 = arith.constant 0 : index
    %102 = vector.load %arg18[%c0_68, %c0_69] : memref<1x128xf32, #tpu.memory_space<vmem>>, vector<1x128xf32>
    %103 = vector.broadcast %102 : vector<1x128xf32> to vector<16x128xf32>
    %104 = arith.addf %101, %103 : vector<16x128xf32>
    %c0_70 = arith.constant 0 : index
    %c0_71 = arith.constant 0 : index
    %c0_72 = arith.constant 0 : index
    %105 = vector.load %arg27[%c0_70, %c0_71, %c0_72] : memref<1x16x128xf32, #tpu.memory_space<vmem>>, vector<1x16x128xf32>
    %106 = vector.shape_cast %105 : vector<1x16x128xf32> to vector<16x128xf32>
    %107 = vector.shape_cast %104 : vector<16x128xf32> to vector<1x16x128xf32>
    tpu.vector_store %arg27[%c0_70, %c0_71, %c0_72], %107 {strides = array<i32>} : memref<1x16x128xf32, #tpu.memory_space<vmem>>, vector<1x16x128xf32>,
    %c0_73 = arith.constant 0 : index
    %c0_74 = arith.constant 0 : index
    %108 = vector.load %arg19[%c0_73, %c0_74] : memref<128x128xf32, #tpu.memory_space<vmem>>, vector<128x128xf32>
    %cst_75 = arith.constant dense<0.000000e+00> : vector<32x128xf32>
    %109 = tpu.matmul %80, %108, %cst_75 {dimension_numbers = #tpu.dot_dimension_numbers<[1], [0], [0], [1], [0, 0, 1, 1], [], []>, precision = #tpu.contract_precision<fp32>} : vector<32x128xf32>, vector<128x128xf32>, vector<32x128xf32> -> vector<32x128xf32>
    %c0_76 = arith.constant 0 : index
    %c0_77 = arith.constant 0 : index
    %110 = vector.load %arg20[%c0_76, %c0_77] : memref<1x128xf32, #tpu.memory_space<vmem>>, vector<1x128xf32>
    %111 = vector.broadcast %110 : vector<1x128xf32> to vector<32x128xf32>
    %112 = arith.addf %109, %111 : vector<32x128xf32>
    %cst_78 = arith.constant 0.000000e+00 : f32
    %113 = vector.broadcast %cst_78 : f32 to vector<32x128xf32>
    %114 = arith.maximumf %112, %113 : vector<32x128xf32>
    %c0_79 = arith.constant 0 : index
    %c0_80 = arith.constant 0 : index
    %115 = vector.load %arg21[%c0_79, %c0_80] : memref<128x128xf32, #tpu.memory_space<vmem>>, vector<128x128xf32>
    %cst_81 = arith.constant dense<0.000000e+00> : vector<32x128xf32>
    %116 = tpu.matmul %114, %115, %cst_81 {dimension_numbers = #tpu.dot_dimension_numbers<[1], [0], [0], [1], [0, 0, 1, 1], [], []>, precision = #tpu.contract_precision<fp32>} : vector<32x128xf32>, vector<128x128xf32>, vector<32x128xf32> -> vector<32x128xf32>
    %c0_82 = arith.constant 0 : index
    %c0_83 = arith.constant 0 : index
    %117 = vector.load %arg22[%c0_82, %c0_83] : memref<1x128xf32, #tpu.memory_space<vmem>>, vector<1x128xf32>
    %118 = vector.broadcast %117 : vector<1x128xf32> to vector<32x128xf32>
    %119 = arith.addf %116, %118 : vector<32x128xf32>
    %c0_84 = arith.constant 0 : index
    %c0_85 = arith.constant 0 : index
    %c0_86 = arith.constant 0 : index
    %120 = vector.load %arg28[%c0_84, %c0_85, %c0_86] : memref<1x32x128xf32, #tpu.memory_space<vmem>>, vector<1x32x128xf32>
    %121 = vector.shape_cast %120 : vector<1x32x128xf32> to vector<32x128xf32>
    %122 = vector.shape_cast %119 : vector<32x128xf32> to vector<1x32x128xf32>
    tpu.vector_store %arg28[%c0_84, %c0_85, %c0_86], %122 {strides = array<i32>} : memref<1x32x128xf32, #tpu.memory_space<vmem>>, vector<1x32x128xf32>,
    %c0_87 = arith.constant 0 : index
    %c0_88 = arith.constant 0 : index
    %123 = vector.load %arg23[%c0_87, %c0_88] : memref<128x128xf32, #tpu.memory_space<vmem>>, vector<128x128xf32>
    %cst_89 = arith.constant dense<0.000000e+00> : vector<16x128xf32>
    %124 = tpu.matmul %92, %123, %cst_89 {dimension_numbers = #tpu.dot_dimension_numbers<[1], [0], [0], [1], [0, 0, 1, 1], [], []>, precision = #tpu.contract_precision<fp32>} : vector<16x128xf32>, vector<128x128xf32>, vector<16x128xf32> -> vector<16x128xf32>
    %c0_90 = arith.constant 0 : index
    %c0_91 = arith.constant 0 : index
    %125 = vector.load %arg24[%c0_90, %c0_91] : memref<1x128xf32, #tpu.memory_space<vmem>>, vector<1x128xf32>
    %126 = vector.broadcast %125 : vector<1x128xf32> to vector<16x128xf32>
    %127 = arith.addf %124, %126 : vector<16x128xf32>
    %cst_92 = arith.constant 0.000000e+00 : f32
    %128 = vector.broadcast %cst_92 : f32 to vector<16x128xf32>
    %129 = arith.maximumf %127, %128 : vector<16x128xf32>
    %c0_93 = arith.constant 0 : index
    %c0_94 = arith.constant 0 : index
    %130 = vector.load %arg25[%c0_93, %c0_94] : memref<128x128xf32, #tpu.memory_space<vmem>>, vector<128x128xf32>
    %cst_95 = arith.constant dense<0.000000e+00> : vector<16x128xf32>
    %131 = tpu.matmul %129, %130, %cst_95 {dimension_numbers = #tpu.dot_dimension_numbers<[1], [0], [0], [1], [0, 0, 1, 1], [], []>, precision = #tpu.contract_precision<fp32>} : vector<16x128xf32>, vector<128x128xf32>, vector<16x128xf32> -> vector<16x128xf32>
    %c0_96 = arith.constant 0 : index
    %c0_97 = arith.constant 0 : index
    %132 = vector.load %arg26[%c0_96, %c0_97] : memref<1x128xf32, #tpu.memory_space<vmem>>, vector<1x128xf32>
    %133 = vector.broadcast %132 : vector<1x128xf32> to vector<16x128xf32>
    %134 = arith.addf %131, %133 : vector<16x128xf32>
    %c0_98 = arith.constant 0 : index
    %c0_99 = arith.constant 0 : index
    %c0_100 = arith.constant 0 : index
    %135 = vector.load %arg29[%c0_98, %c0_99, %c0_100] : memref<1x16x128xf32, #tpu.memory_space<vmem>>, vector<1x16x128xf32>
    %136 = vector.shape_cast %135 : vector<1x16x128xf32> to vector<16x128xf32>
    %137 = vector.shape_cast %134 : vector<16x128xf32> to vector<1x16x128xf32>
    tpu.vector_store %arg29[%c0_98, %c0_99, %c0_100], %137 {strides = array<i32>} : memref<1x16x128xf32, #tpu.memory_space<vmem>>, vector<1x16x128xf32>,
    %c0_101 = arith.constant 0 : index
    %c0_102 = arith.constant 0 : index
    %c0_103 = arith.constant 0 : index
    %138 = vector.load %arg30[%c0_101, %c0_102, %c0_103] : memref<1x16x128xf32, #tpu.memory_space<vmem>>, vector<1x16x128xf32>
    %139 = vector.shape_cast %138 : vector<1x16x128xf32> to vector<16x128xf32>
    %140 = vector.shape_cast %92 : vector<16x128xf32> to vector<1x16x128xf32>
    tpu.vector_store %arg30[%c0_101, %c0_102, %c0_103], %140 {strides = array<i32>} : memref<1x16x128xf32, #tpu.memory_space<vmem>>, vector<1x16x128xf32>,
    %c0_104 = arith.constant 0 : index
    %c0_105 = arith.constant 0 : index
    %c0_106 = arith.constant 0 : index
    %141 = vector.load %arg31[%c0_104, %c0_105, %c0_106] : memref<1x16x128xf32, #tpu.memory_space<vmem>>, vector<1x16x128xf32>
    %142 = vector.shape_cast %141 : vector<1x16x128xf32> to vector<16x128xf32>
    %143 = vector.shape_cast %91 : vector<16x128xf32> to vector<1x16x128xf32>
    tpu.vector_store %arg31[%c0_104, %c0_105, %c0_106], %143 {strides = array<i32>} : memref<1x16x128xf32, #tpu.memory_space<vmem>>, vector<1x16x128xf32>,
    %c0_107 = arith.constant 0 : index
    %c0_108 = arith.constant 0 : index
    %c0_109 = arith.constant 0 : index
    %144 = vector.load %arg32[%c0_107, %c0_108, %c0_109] : memref<1x32x128xf32, #tpu.memory_space<vmem>>, vector<1x32x128xf32>
    %145 = vector.shape_cast %144 : vector<1x32x128xf32> to vector<32x128xf32>
    %146 = vector.shape_cast %80 : vector<32x128xf32> to vector<1x32x128xf32>
    tpu.vector_store %arg32[%c0_107, %c0_108, %c0_109], %146 {strides = array<i32>} : memref<1x32x128xf32, #tpu.memory_space<vmem>>, vector<1x32x128xf32>,
    return
  }
  func.func @transform_0(%arg0: i32) -> (i32, i32, i32) {
    %c0_i32 = arith.constant 0 : i32
    %c0_i32_0 = arith.constant 0 : i32
    %c0_i32_1 = arith.constant 0 : i32
    return %arg0, %c0_i32, %c0_i32_0 : i32, i32, i32
  }
  func.func @transform_1(%arg0: i32) -> (i32, i32, i32) {
    %c0_i32 = arith.constant 0 : i32
    %c0_i32_0 = arith.constant 0 : i32
    %c0_i32_1 = arith.constant 0 : i32
    return %arg0, %c0_i32, %c0_i32_0 : i32, i32, i32
  }
  func.func @transform_2(%arg0: i32) -> (i32, i32, i32) {
    %c0_i32 = arith.constant 0 : i32
    %c0_i32_0 = arith.constant 0 : i32
    %c0_i32_1 = arith.constant 0 : i32
    return %arg0, %c0_i32, %c0_i32_0 : i32, i32, i32
  }
  func.func @transform_3(%arg0: i32) -> (i32, i32, i32) {
    %c0_i32 = arith.constant 0 : i32
    %c0_i32_0 = arith.constant 0 : i32
    %c0_i32_1 = arith.constant 0 : i32
    return %arg0, %c0_i32, %c0_i32_0 : i32, i32, i32
  }
  func.func @transform_4(%arg0: i32) -> (i32, i32, i32) {
    %c0_i32 = arith.constant 0 : i32
    %c0_i32_0 = arith.constant 0 : i32
    %c0_i32_1 = arith.constant 0 : i32
    return %arg0, %c0_i32, %c0_i32_0 : i32, i32, i32
  }
  func.func @transform_5(%arg0: i32) -> (i32, i32, i32) {
    %c0_i32 = arith.constant 0 : i32
    %c0_i32_0 = arith.constant 0 : i32
    %c0_i32_1 = arith.constant 0 : i32
    return %arg0, %c0_i32, %c0_i32_0 : i32, i32, i32
  }
  func.func @transform_6(%arg0: i32) -> (i32, i32, i32) {
    %c0_i32 = arith.constant 0 : i32
    %c0_i32_0 = arith.constant 0 : i32
    %c0_i32_1 = arith.constant 0 : i32
    return %arg0, %c0_i32, %c0_i32_0 : i32, i32, i32
  }
  func.func @transform_7(%arg0: i32) -> (i32, i32) {
    %c0_i32 = arith.constant 0 : i32
    %c0_i32_0 = arith.constant 0 : i32
    %c0_i32_1 = arith.constant 0 : i32
    return %c0_i32, %c0_i32_0 : i32, i32
  }
  func.func @transform_8(%arg0: i32) -> (i32, i32) {
    %c0_i32 = arith.constant 0 : i32
    %c0_i32_0 = arith.constant 0 : i32
    %c0_i32_1 = arith.constant 0 : i32
    return %c0_i32, %c0_i32_0 : i32, i32
  }
  func.func @transform_9(%arg0: i32) -> (i32, i32) {
    %c0_i32 = arith.constant 0 : i32
    %c0_i32_0 = arith.constant 0 : i32
    %c0_i32_1 = arith.constant 0 : i32
    return %c0_i32, %c0_i32_0 : i32, i32
  }
  func.func @transform_10(%arg0: i32) -> (i32, i32) {
    %c0_i32 = arith.constant 0 : i32
    %c0_i32_0 = arith.constant 0 : i32
    %c0_i32_1 = arith.constant 0 : i32
    return %c0_i32, %c0_i32_0 : i32, i32
  }
  func.func @transform_11(%arg0: i32) -> (i32, i32) {
    %c0_i32 = arith.constant 0 : i32
    %c0_i32_0 = arith.constant 0 : i32
    %c0_i32_1 = arith.constant 0 : i32
    return %c0_i32, %c0_i32_0 : i32, i32
  }
  func.func @transform_12(%arg0: i32) -> (i32, i32) {
    %c0_i32 = arith.constant 0 : i32
    %c0_i32_0 = arith.constant 0 : i32
    %c0_i32_1 = arith.constant 0 : i32
    return %c0_i32, %c0_i32_0 : i32, i32
  }
  func.func @transform_13(%arg0: i32) -> (i32, i32) {
    %c0_i32 = arith.constant 0 : i32
    %c0_i32_0 = arith.constant 0 : i32
    %c0_i32_1 = arith.constant 0 : i32
    return %c0_i32, %c0_i32_0 : i32, i32
  }
  func.func @transform_14(%arg0: i32) -> (i32, i32) {
    %c0_i32 = arith.constant 0 : i32
    %c0_i32_0 = arith.constant 0 : i32
    %c0_i32_1 = arith.constant 0 : i32
    return %c0_i32, %c0_i32_0 : i32, i32
  }
  func.func @transform_15(%arg0: i32) -> (i32, i32) {
    %c0_i32 = arith.constant 0 : i32
    %c0_i32_0 = arith.constant 0 : i32
    %c0_i32_1 = arith.constant 0 : i32
    return %c0_i32, %c0_i32_0 : i32, i32
  }
  func.func @transform_16(%arg0: i32) -> (i32, i32) {
    %c0_i32 = arith.constant 0 : i32
    %c0_i32_0 = arith.constant 0 : i32
    %c0_i32_1 = arith.constant 0 : i32
    return %c0_i32, %c0_i32_0 : i32, i32
  }
  func.func @transform_17(%arg0: i32) -> (i32, i32) {
    %c0_i32 = arith.constant 0 : i32
    %c0_i32_0 = arith.constant 0 : i32
    %c0_i32_1 = arith.constant 0 : i32
    return %c0_i32, %c0_i32_0 : i32, i32
  }
  func.func @transform_18(%arg0: i32) -> (i32, i32) {
    %c0_i32 = arith.constant 0 : i32
    %c0_i32_0 = arith.constant 0 : i32
    %c0_i32_1 = arith.constant 0 : i32
    return %c0_i32, %c0_i32_0 : i32, i32
  }
  func.func @transform_19(%arg0: i32) -> (i32, i32) {
    %c0_i32 = arith.constant 0 : i32
    %c0_i32_0 = arith.constant 0 : i32
    %c0_i32_1 = arith.constant 0 : i32
    return %c0_i32, %c0_i32_0 : i32, i32
  }
  func.func @transform_20(%arg0: i32) -> (i32, i32) {
    %c0_i32 = arith.constant 0 : i32
    %c0_i32_0 = arith.constant 0 : i32
    %c0_i32_1 = arith.constant 0 : i32
    return %c0_i32, %c0_i32_0 : i32, i32
  }
  func.func @transform_21(%arg0: i32) -> (i32, i32) {
    %c0_i32 = arith.constant 0 : i32
    %c0_i32_0 = arith.constant 0 : i32
    %c0_i32_1 = arith.constant 0 : i32
    return %c0_i32, %c0_i32_0 : i32, i32
  }
  func.func @transform_22(%arg0: i32) -> (i32, i32) {
    %c0_i32 = arith.constant 0 : i32
    %c0_i32_0 = arith.constant 0 : i32
    %c0_i32_1 = arith.constant 0 : i32
    return %c0_i32, %c0_i32_0 : i32, i32
  }
  func.func @transform_23(%arg0: i32) -> (i32, i32) {
    %c0_i32 = arith.constant 0 : i32
    %c0_i32_0 = arith.constant 0 : i32
    %c0_i32_1 = arith.constant 0 : i32
    return %c0_i32, %c0_i32_0 : i32, i32
  }
  func.func @transform_24(%arg0: i32) -> (i32, i32) {
    %c0_i32 = arith.constant 0 : i32
    %c0_i32_0 = arith.constant 0 : i32
    %c0_i32_1 = arith.constant 0 : i32
    return %c0_i32, %c0_i32_0 : i32, i32
  }
  func.func @transform_25(%arg0: i32) -> (i32, i32) {
    %c0_i32 = arith.constant 0 : i32
    %c0_i32_0 = arith.constant 0 : i32
    %c0_i32_1 = arith.constant 0 : i32
    return %c0_i32, %c0_i32_0 : i32, i32
  }
  func.func @transform_26(%arg0: i32) -> (i32, i32, i32) {
    %c0_i32 = arith.constant 0 : i32
    %c0_i32_0 = arith.constant 0 : i32
    %c0_i32_1 = arith.constant 0 : i32
    return %arg0, %c0_i32, %c0_i32_0 : i32, i32, i32
  }
  func.func @transform_27(%arg0: i32) -> (i32, i32, i32) {
    %c0_i32 = arith.constant 0 : i32
    %c0_i32_0 = arith.constant 0 : i32
    %c0_i32_1 = arith.constant 0 : i32
    return %arg0, %c0_i32, %c0_i32_0 : i32, i32, i32
  }
  func.func @transform_28(%arg0: i32) -> (i32, i32, i32) {
    %c0_i32 = arith.constant 0 : i32
    %c0_i32_0 = arith.constant 0 : i32
    %c0_i32_1 = arith.constant 0 : i32
    return %arg0, %c0_i32, %c0_i32_0 : i32, i32, i32
  }
  func.func @transform_29(%arg0: i32) -> (i32, i32, i32) {
    %c0_i32 = arith.constant 0 : i32
    %c0_i32_0 = arith.constant 0 : i32
    %c0_i32_1 = arith.constant 0 : i32
    return %arg0, %c0_i32, %c0_i32_0 : i32, i32, i32
  }
  func.func @transform_30(%arg0: i32) -> (i32, i32, i32) {
    %c0_i32 = arith.constant 0 : i32
    %c0_i32_0 = arith.constant 0 : i32
    %c0_i32_1 = arith.constant 0 : i32
    return %arg0, %c0_i32, %c0_i32_0 : i32, i32, i32
  }
  func.func @transform_31(%arg0: i32) -> (i32, i32, i32) {
    %c0_i32 = arith.constant 0 : i32
    %c0_i32_0 = arith.constant 0 : i32
    %c0_i32_1 = arith.constant 0 : i32
    return %arg0, %c0_i32, %c0_i32_0 : i32, i32, i32
  }
}

</mosaic_0001>

<bundles_post_ra>
// kernel: tpu_custom_call.1
= control target key start
LH: loop header
LB: loop body
LE: loop exit
PB: predicated region body
PF: predicated region fallthrough
CT: control target
= control target key end

     0   :  { %s22699_s6 = smov 1   ;;  %s22700_s10 = smov 2   ;;  %s28597_s0 = inlined_call_operand.smem [shape: u32[32], index: -1, kind: input, shape index: {}] }
   0x1   :  { %s22762_s5 = sld [smem:[%s28597_s0]]   ;;  %s22701_s14 = smov 3  }
   0x2   :  { %s22767_s9 = sld [smem:[%s28597_s0 + %s22699_s6]]   ;;  %s22702_s18 = smov 4  }
   0x3   :  { %s22772_s13 = sld [smem:[%s28597_s0 + %s22700_s10]]   ;;  %s22703_s22 = smov 5  }
   0x4   :  { %s22777_s17 = sld [smem:[%s28597_s0 + %s22701_s14]]   ;;  %s22704_s26 = smov 6  }
   0x5   :  { %s22782_s21 = sld [smem:[%s28597_s0 + %s22702_s18]]   ;;  %s22705_s30 = smov 7  }
   0x6   :  { %s22787_s25 = sld [smem:[%s28597_s0 + %s22703_s22]]   ;;  %s22706_s4 = smov 8  }
   0x7   :  { %28959 = sst [smem:[#allocation43_spill]] %s22762_s5  ;;  %s22707_s10 = smov 9  }
   0x8   :  { %28960 = sst [smem:[#allocation44_spill]] %s22767_s9  ;;  %s22708_s15 = smov 10  }
   0x9   :  { %28961 = sst [smem:[#allocation45_spill]] %s22772_s13  ;;  %s22709_s20 = smov 11  }
   0xa   :  { %28962 = sst [smem:[#allocation46_spill]] %s22777_s17  ;;  %s22711_s1 = smov 13  }
   0xb   :  { %28963 = sst [smem:[#allocation47_spill]] %s22782_s21  ;;  %s22712_s7 = smov 14  }
   0xc   :  { %28964 = sst [smem:[#allocation48_spill]] %s22787_s25  ;;  %s22714_s22 = smov 16  }
   0xd   :  { %s22792_s29 = sld [smem:[%s28597_s0 + %s22704_s26]]   ;;  %s22710_s26 = smov 12  }
   0xe   :  { %s22797_s3 = sld [smem:[%s28597_s0 + %s22705_s30]]   ;;  %s22715_s28 = smov 17  }
   0xf   :  { %s22802_s8 = sld [smem:[%s28597_s0 + %s22706_s4]]  }
  0x10   :  { %s22807_s14 = sld [smem:[%s28597_s0 + %s22707_s10]]  }
  0x11   :  { %s22812_s19 = sld [smem:[%s28597_s0 + %s22708_s15]]   ;;  %s22713_s15 = smov 15  }
  0x12   :  { %s22817_s24 = sld [smem:[%s28597_s0 + %s22709_s20]]  }
  0x13   :  { %28965 = sst [smem:[#allocation49_spill]] %s22792_s29 }
  0x14   :  { %28966 = sst [smem:[#allocation50_spill]] %s22797_s3 }
  0x15   :  { %28967 = sst [smem:[#allocation51_spill]] %s22802_s8 }
  0x16   :  { %28968 = sst [smem:[#allocation52_spill]] %s22807_s14 }
  0x17   :  { %28969 = sst [smem:[#allocation53_spill]] %s22812_s19 }
  0x18   :  { %28970 = sst [smem:[#allocation54_spill]] %s22817_s24 }
  0x19   :  { %s22822_s30 = sld [smem:[%s28597_s0 + %s22710_s26]]  }
  0x1a   :  { %s22827_s6 = sld [smem:[%s28597_s0 + %s22711_s1]]  }
  0x1b   :  { %s22832_s12 = sld [smem:[%s28597_s0 + %s22712_s7]]   ;;  %s22716_s7 = smov 18  }
  0x1c   :  { %s22837_s20 = sld [smem:[%s28597_s0 + %s22713_s15]]   ;;  %s22717_s15 = smov 19  }
  0x1d   :  { %s22842_s27 = sld [smem:[%s28597_s0 + %s22714_s22]]   ;;  %s22718_s22 = smov 20  }
  0x1e   :  { %s22847_s4 = sld [smem:[%s28597_s0 + %s22715_s28]]   ;;  %s22719_s28 = smov 21  }
  0x1f   :  { %28971 = sst [smem:[#allocation55_spill]] %s22822_s30 }
  0x20   :  { %28972 = sst [smem:[#allocation56_spill]] %s22827_s6 }
  0x21   :  { %28973 = sst [smem:[#allocation57_spill]] %s22832_s12 }
  0x22   :  { %28974 = sst [smem:[#allocation58_spill]] %s22837_s20 }
  0x23   :  { %28975 = sst [smem:[#allocation59_spill]] %s22842_s27 }
  0x24   :  { %28976 = sst [smem:[#allocation60_spill]] %s22847_s4 }
  0x25   :  { %s22852_s6 = sld [smem:[%s28597_s0 + %s22716_s7]]   ;;  %s22720_s7 = smov 22  }
  0x26   :  { %s22857_s20 = sld [smem:[%s28597_s0 + %s22717_s15]]   ;;  %s22721_s15 = smov 23  }
  0x27   :  { %s22862_s29 = sld [smem:[%s28597_s0 + %s22718_s22]]   ;;  %s22722_s22 = smov 24  }
  0x28   :  { %s22867_s4 = sld [smem:[%s28597_s0 + %s22719_s28]]   ;;  %s22723_s28 = smov 25  }
  0x29   :  { %s22872_s19 = sld [smem:[%s28597_s0 + %s22720_s7]]   ;;  %s22724_s7 = smov 26  }
  0x2a   :  { %s22882_s21 = sld [smem:[%s28597_s0 + %s22722_s22]]   ;;  %s22726_s22 = smov 28  }
  0x2b   :  { %28977 = sst [smem:[#allocation61_spill]] %s22852_s6 }
  0x2c   :  { %28978 = sst [smem:[#allocation62_spill]] %s22857_s20 }
  0x2d   :  { %28979 = sst [smem:[#allocation63_spill]] %s22862_s29 }
  0x2e   :  { %28980 = sst [smem:[#allocation64_spill]] %s22867_s4 }
  0x2f   :  { %28981 = sst [smem:[#allocation65_spill]] %s22872_s19 }
  0x30   :  { %s22877_s20 = sld [smem:[%s28597_s0 + %s22721_s15]]   ;;  %s22725_s15 = smov 27  }
  0x31   :  { %28983 = sst [smem:[#allocation67_spill]] %s22882_s21 }
  0x32   :  { %s22887_s4 = sld [smem:[%s28597_s0 + %s22723_s28]]   ;;  %s22727_s28 = smov 29  }
  0x33   :  { %s22892_s17 = sld [smem:[%s28597_s0 + %s22724_s7]]   ;;  %s22728_s7 = smov 30  }
  0x34   :  { %s22902_s25 = sld [smem:[%s28597_s0 + %s22726_s22]]  }
  0x36   :  { %28982 = sst [smem:[#allocation66_spill]] %s22877_s20 }
  0x37   :  { %s22897_s20 = sld [smem:[%s28597_s0 + %s22725_s15]]   ;;  %s22729_s15 = smov 31  }
  0x38   :  { %28984 = sst [smem:[#allocation68_spill]] %s22887_s4 }
  0x39   :  { %28985 = sst [smem:[#allocation69_spill]] %s22892_s17 }
  0x3a   :  { %28987 = sst [smem:[#allocation71_spill]] %s22902_s25 }
  0x3b   :  { %s22907_s4 = sld [smem:[%s28597_s0 + %s22727_s28]]  }
  0x3c   :  { %s22912_s17 = sld [smem:[%s28597_s0 + %s22728_s7]]  }
  0x3d   :  { %28986 = sst [smem:[#allocation70_spill]] %s22897_s20 }
  0x3e   :  { %s22917_s20 = sld [smem:[%s28597_s0 + %s22729_s15]]  }
  0x41   :  { %28988 = sst [smem:[#allocation72_spill]] %s22907_s4 }
  0x44   :  { %28989 = sst [smem:[#allocation73_spill]] %s22917_s20 }
  0x45   :  { %69 = vsyncpa [#allocation3], 0 }
  0x46   :  { %71 = vsyncpa [#allocation3 + $0x1], 0 }
  0x47   :  { %72 = vsyncpa [#allocation6], 0 }
  0x48   :  { %74 = vsyncpa [#allocation6 + $0x1], 0 }
  0x49   :  { %75 = vsyncpa [#allocation9], 0 }
  0x4a   :  { %76 = vsyncpa [#allocation12], 0 }
  0x4b   :  { %77 = vsyncpa [#allocation15], 0 }
  0x4c   :  { %78 = vsyncpa [#allocation18], 0 }
  0x4d   :  { %79 = vsyncpa [#allocation21], 0 }
  0x4e   :  { %80 = vsyncpa [#allocation4], 0 }
  0x4f   :  { %82 = vsyncpa [#allocation4 + $0x1], 0 }
  0x50   :  { %83 = vsyncpa [#allocation24], 0 }
  0x51   :  { %85 = vsyncpa [#allocation24 + $0x1], 0 }
  0x52   :  { %86 = vsyncpa [#allocation27], 0 }
  0x53   :  { %88 = vsyncpa [#allocation27 + $0x1], 0 }
  0x54   :  { %89 = vsyncpa [#allocation30], 0 }
  0x55   :  { %91 = vsyncpa [#allocation30 + $0x1], 0  ;;  %s22919_s22 = smov 0   ;;  %s22921_s0 = smov 0  }
  0x56   :  { %s22923_s23 = smov 0   ;;  %s22925_s26 = smov 0  }
  0x57 LB: > { %s28990_s4 = sld [smem:[#allocation72_spill]]  ;;  %s22730_s28 = smov [#allocation7]   ;;  %s22697_s26 = sphi %s22925_s26, %s29444_s26   ;;  %s22693_s23 = sphi %s22923_s23, %s29443_s23   ;;  %s22689_s0 = sphi %s22921_s0, %s29442_s0   ;;  %s22685_s22 = sphi %s22919_s22, %s29441_s22  }
  0x58   : > { %s28991_s9 = sld [smem:[#allocation44_spill]]  ;;  %s854_s1 = sshll.u32 %s22730_s28, 4  ;;  %s855_s1 = int_to_ptr.vmem [resolvable:$true] %s854_s1 }
  0x59   : > { %s28992_s3 = sld [smem:[#allocation50_spill]]  ;;  %s22940_s2 = sadd.s32 4294967295, %s22697_s26  }
  0x5a   : > { %s28993_s5 = sld [smem:[#allocation43_spill]]  ;;  %p16620_p0 = scmp.ge.s32.totalorder %s22697_s26, 1 }
  0x5b   : > { %p28603_p1 = scmp.eq.s32.totalorder %s22940_s2, 0  ;;  %p839_p2 = scmp.lt.s32.totalorder %s22697_s26, 3 }
  0x5c   : > { %s22731_s10 = smov [#allocation8]   ;;  %s22732_s16 = smov [#allocation11]  }
  0x5d   : > { %p22945_p3 = pnand %p16620_p0, %p839_p2  ;;  %s867_s11 = sshll.u32 %s22731_s10, 4  ;;  %s22958_s11 = int_to_ptr.vmem [resolvable:$true] %s867_s11 }
  0x5e   : > { %s896_s18 = sshll.u32 %s22732_s16, 4  ;;  %s22158_s25 = scalar_lea.vmem %s855_s1, 2048  ;;  %s22960_s18 = int_to_ptr.vmem [resolvable:$true] %s896_s18 }
  0x5f   : > { %p21984_p5 = pneg %p22945_p3  ;;  %p22159_p8 = scmp.ne.s32.totalorder %s855_s1, %s22158_s25 }
  0x60   : > { %p22166_p11 = scmp.lt.s32.totalorder %s855_s1, %s855_s1  ;;  %p22167_p12 = scmp.lt.s32.totalorder %s22158_s25, %s22158_s25 }
  0x61   : > { %p22954_p6 = pnand %p21984_p5, %p28603_p1 }
  0x62   : > { %p22168_p13 = por %p22167_p12, %p22166_p11 }
  0x63   : > { %p22964_p7 = pneg %p22954_p6 }
  0x65   : > { %p22161_p9 = pnand %p22159_p8, %p22964_p7 }
  0x67   : > { %p22162_p10 = pneg %p22161_p9 }
  0x69   : > { %p22169_p0 = pnand %p22168_p13, %p22162_p10 }
  0x6b   : > { %22172 = shalt.err (!%p22169_p0)
}
  0x6c   : > { %s28604_s10 = smov 128   ;;  %s28997_s8 = sld [smem:[#allocation51_spill]] }
  0x6d   : > { %s28606_s16 = smov 8   ;;  %s22184_s20 = scalar_lea.vmem %s22958_s11, 2048 }
  0x6e   : > { %p22185_p2 = scmp.ne.s32.totalorder %s22958_s11, %s22184_s20  ;;  %p22192_p9 = scmp.lt.s32.totalorder %s22958_s11, %s22958_s11 }
  0x6f   : > { %p22193_p10 = scmp.lt.s32.totalorder %s22184_s20, %s22184_s20 }
  0x70   : > { %p22187_p5 = pnand %p22185_p2, %p22964_p7 }
  0x71   : > { %p22194_p11 = por %p22193_p10, %p22192_p9 }
  0x72   : > { %21987 = dma.hbm_to_vmem [thread:$0]  (!%p22954_p6), %s28997_s8, 2048, %s855_s1, [#allocation6], %s28604_s10, %s28604_s10, %s28606_s16  }
  0x73   : > { %p22188_p8 = pneg %p22187_p5 }
  0x75   : > { %p22195_p12 = pnand %p22194_p11, %p22188_p8 }
  0x77   : > { %22198 = shalt.err (!%p22195_p12)
}
  0x78   : > { %s28998_s14 = sld [smem:[#allocation52_spill]]  ;;  %s22210_s25 = scalar_lea.vmem %s22960_s18, 2048 }
  0x79   : > { %p22211_p13 = scmp.ne.s32.totalorder %s22960_s18, %s22210_s25  ;;  %p22218_p5 = scmp.lt.s32.totalorder %s22960_s18, %s22960_s18 }
  0x7a   : > { %p22219_p8 = scmp.lt.s32.totalorder %s22210_s25, %s22210_s25 }
  0x7b   : > { %p22213_p0 = pnand %p22211_p13, %p22964_p7 }
  0x7c   : > { %p22220_p9 = por %p22219_p8, %p22218_p5 }
  0x7d   : > { %p22214_p2 = pneg %p22213_p0 }
  0x7e   : > { %21990 = dma.hbm_to_vmem [thread:$0]  (!%p22954_p6), %s28998_s14, 2048, %s22958_s11, [#allocation9], %s28604_s10, %s28604_s10, %s28606_s16  }
  0x7f   : > { %p22221_p10 = pnand %p22220_p9, %p22214_p2 }
  0x81   : > { %22224 = shalt.err (!%p22221_p10)
}
  0x82   : > { %s28999_s30 = sld [smem:[#allocation55_spill]]  ;;  %s22735_s20 = smov [#allocation14]  }
  0x83   : > { %s928_s1 = sshll.u32 %s22735_s20, 4  ;;  %s22736_s11 = smov [#allocation17]   ;;  %s929_s1 = int_to_ptr.vmem [resolvable:$true] %s928_s1 }
  0x84   : > { %s960_s8 = sshll.u32 %s22736_s11, 4  ;;  %s22236_s14 = scalar_lea.vmem %s929_s1, 2048  ;;  %s961_s8 = int_to_ptr.vmem [resolvable:$true] %s960_s8 }
  0x85   : > { %p22237_p11 = scmp.ne.s32.totalorder %s929_s1, %s22236_s14  ;;  %p22244_p0 = scmp.lt.s32.totalorder %s929_s1, %s929_s1 }
  0x86   : > { %p22245_p2 = scmp.lt.s32.totalorder %s22236_s14, %s22236_s14 }
  0x87   : > { %p22239_p12 = pnand %p22237_p11, %p22964_p7 }
  0x88   : > { %21996 = dma.hbm_to_vmem [thread:$0]  (!%p22954_p6), %s28999_s30, 2048, %s22960_s18, [#allocation12], %s28604_s10, %s28604_s10, %s28606_s16  }
  0x89   : > { %p22240_p13 = pneg %p22239_p12  ;;  %p22246_p5 = por %p22245_p2, %p22244_p0 }
  0x8b   : > { %p22247_p8 = pnand %p22246_p5, %p22240_p13 }
  0x8d   : > { %22250 = shalt.err (!%p22247_p8)
}
  0x8e   : > { %s29000_s27 = sld [smem:[#allocation59_spill]]  ;;  %s22262_s18 = scalar_lea.vmem %s961_s8, 2048 }
  0x8f   : > { %p22263_p9 = scmp.ne.s32.totalorder %s961_s8, %s22262_s18  ;;  %p22270_p12 = scmp.lt.s32.totalorder %s961_s8, %s961_s8 }
  0x90   : > { %p22271_p4 = scmp.lt.s32.totalorder %s22262_s18, %s22262_s18 }
  0x91   : > { %p22265_p10 = pnand %p22263_p9, %p22964_p7 }
  0x92   : > { %p22272_p1 = por %p22271_p4, %p22270_p12 }
  0x93   : > { %p22266_p11 = pneg %p22265_p10 }
  0x94   : > { %22002 = dma.hbm_to_vmem [thread:$0]  (!%p22954_p6), %s29000_s27, 2048, %s929_s1, [#allocation15], %s28604_s10, %s28604_s10, %s28606_s16  }
  0x95   : > { %p22273_p0 = pnand %p22272_p1, %p22266_p11 }
  0x97   : > { %22276 = shalt.err (!%p22273_p0)
}
  0x98   : > { %s29001_s29 = sld [smem:[#allocation63_spill]]  ;;  %s22737_s14 = smov [#allocation10]  }
  0x99   : > { %s883_s25 = sshll.u32 %s22737_s14, 4  ;;  %s22738_s20 = smov [#allocation13]   ;;  %s884_s25 = int_to_ptr.vmem [resolvable:$true] %s883_s25 }
  0x9a   : > { %s912_s1 = sshll.u32 %s22738_s20, 4  ;;  %s22288_s11 = scalar_lea.vmem %s884_s25, 2048  ;;  %s913_s1 = int_to_ptr.vmem [resolvable:$true] %s912_s1 }
  0x9b   : > { %p22289_p13 = scmp.ne.s32.totalorder %s884_s25, %s22288_s11  ;;  %p22296_p1 = scmp.lt.s32.totalorder %s884_s25, %s884_s25 }
  0x9c   : > { %p22297_p5 = scmp.lt.s32.totalorder %s22288_s11, %s22288_s11 }
  0x9d   : > { %p22291_p2 = pnand %p22289_p13, %p22964_p7 }
  0x9e   : > { %22008 = dma.hbm_to_vmem [thread:$0]  (!%p22954_p6), %s29001_s29, 2048, %s961_s8, [#allocation18], %s28604_s10, %s28604_s10, %s28606_s16  }
  0x9f   : > { %p22292_p4 = pneg %p22291_p2  ;;  %p22298_p8 = por %p22297_p5, %p22296_p1 }
  0xa1   : > { %p22299_p9 = pnand %p22298_p8, %p22292_p4 }
  0xa3   : > { %22302 = shalt.err (!%p22299_p9)
}
  0xa4   : > { %s29002_s24 = sld [smem:[#allocation54_spill]]  ;;  %s22314_s8 = scalar_lea.vmem %s913_s1, 2048 }
  0xa5   : > { %p22315_p10 = scmp.ne.s32.totalorder %s913_s1, %s22314_s8  ;;  %p22322_p0 = scmp.lt.s32.totalorder %s913_s1, %s913_s1 }
  0xa6   : > { %p22323_p13 = scmp.lt.s32.totalorder %s22314_s8, %s22314_s8 }
  0xa7   : > { %p22317_p11 = pnand %p22315_p10, %p22964_p7 }
  0xa8   : > { %p22324_p2 = por %p22323_p13, %p22322_p0 }
  0xa9   : > { %p22318_p12 = pneg %p22317_p11 }
  0xaa   : > { %21993 = dma.hbm_to_vmem [thread:$0]  (!%p22954_p6), %s29002_s24, 2048, %s884_s25, [#allocation9], %s28604_s10, %s28604_s10, %s28606_s16  }
  0xab   : > { %p22325_p1 = pnand %p22324_p2, %p22318_p12 }
  0xad   : > { %22328 = shalt.err (!%p22325_p1)
}
  0xae   : > { %s29003_s12 = sld [smem:[#allocation57_spill]]  ;;  %s22739_s18 = smov [#allocation16]  }
  0xaf   : > { %s944_s14 = sshll.u32 %s22739_s18, 4  ;;  %s22740_s25 = smov [#allocation19]   ;;  %s945_s14 = int_to_ptr.vmem [resolvable:$true] %s944_s14 }
  0xb0   : > { %s976_s20 = sshll.u32 %s22740_s25, 4  ;;  %s22340_s11 = scalar_lea.vmem %s945_s14, 2048  ;;  %s977_s20 = int_to_ptr.vmem [resolvable:$true] %s976_s20 }
  0xb1   : > { %p22341_p4 = scmp.ne.s32.totalorder %s945_s14, %s22340_s11  ;;  %p22348_p9 = scmp.lt.s32.totalorder %s945_s14, %s945_s14 }
  0xb2   : > { %p22349_p10 = scmp.lt.s32.totalorder %s22340_s11, %s22340_s11 }
  0xb3   : > { %p22343_p5 = pnand %p22341_p4, %p22964_p7 }
  0xb4   : > { %21999 = dma.hbm_to_vmem [thread:$0]  (!%p22954_p6), %s29003_s12, 2048, %s913_s1, [#allocation12], %s28604_s10, %s28604_s10, %s28606_s16  }
  0xb5   : > { %p22344_p8 = pneg %p22343_p5  ;;  %p22350_p11 = por %p22349_p10, %p22348_p9 }
  0xb7   : > { %p22351_p12 = pnand %p22350_p11, %p22344_p8 }
  0xb9   : > { %22354 = shalt.err (!%p22351_p12)
}
  0xba   : > { %s29004_s6 = sld [smem:[#allocation61_spill]]  ;;  %s22366_s1 = scalar_lea.vmem %s977_s20, 2048 }
  0xbb   : > { %p22367_p0 = scmp.ne.s32.totalorder %s977_s20, %s22366_s1  ;;  %p22374_p1 = scmp.lt.s32.totalorder %s977_s20, %s977_s20 }
  0xbc   : > { %p22375_p4 = scmp.lt.s32.totalorder %s22366_s1, %s22366_s1 }
  0xbd   : > { %p22369_p13 = pnand %p22367_p0, %p22964_p7 }
  0xbe   : > { %p22376_p5 = por %p22375_p4, %p22374_p1 }
  0xbf   : > { %p22370_p2 = pneg %p22369_p13 }
  0xc0   : > { %22005 = dma.hbm_to_vmem [thread:$0]  (!%p22954_p6), %s29004_s6, 2048, %s945_s14, [#allocation15], %s28604_s10, %s28604_s10, %s28606_s16  }
  0xc1   : > { %p22377_p9 = pnand %p22376_p5, %p22370_p2 }
  0xc3   : > { %22380 = shalt.err (!%p22377_p9)
}
  0xc4   : > { %s29005_s19 = sld [smem:[#allocation65_spill]]  ;;  %s22741_s8 = smov [#allocation20]  }
  0xc5   : > { %s992_s18 = sshll.u32 %s22741_s8, 4  ;;  %s993_s18 = int_to_ptr.vmem [resolvable:$true] %s992_s18 }
  0xc6   : > { %s22392_s14 = scalar_lea.vmem %s993_s18, 2048  ;;  %p22400_p12 = scmp.lt.s32.totalorder %s993_s18, %s993_s18 }
  0xc7   : > { %p22393_p8 = scmp.ne.s32.totalorder %s993_s18, %s22392_s14  ;;  %p22401_p0 = scmp.lt.s32.totalorder %s22392_s14, %s22392_s14 }
  0xc9   : > { %p22395_p10 = pnand %p22393_p8, %p22964_p7  ;;  %p22402_p13 = por %p22401_p0, %p22400_p12 }
  0xca   : > { %22011 = dma.hbm_to_vmem [thread:$0]  (!%p22954_p6), %s29005_s19, 2048, %s977_s20, [#allocation18], %s28604_s10, %s28604_s10, %s28606_s16  }
  0xcb   : > { %p22396_p11 = pneg %p22395_p10 }
  0xcd   : > { %p22403_p2 = pnand %p22402_p13, %p22396_p11 }
  0xcf   : > { %22406 = shalt.err (!%p22403_p2)
}
  0xd0   : > { %s29006_s21 = sld [smem:[#allocation67_spill]]  ;;  %s28608_s15 = sadd.s32 4294967294, %s22697_s26  }
  0xd1   : > { %s23060_s28 = sadd.s32 1, %s22697_s26   ;;  %s104_s20 = sadd.s32 1, %s22693_s23 }
  0xd2   : > { %s101_s25 = ssub.s32 %s22697_s26, %s23060_s28  ;;  %p111_p1 = scmp.ne.s32.totalorder %s22693_s23, %s22689_s0 }
  0xd3   : > { %p102_p7 = scmp.eq.s32.totalorder %s101_s25, 0  ;;  %p112_p4 = scmp.eq.s32.totalorder %s22697_s26, 0 }
  0xd4   : > { %p117_p5 = scmp.ne.s32.totalorder %s22689_s0, %s22685_s22  ;;  %p696_p10 = scmp.eq.s32.totalorder %s22940_s2, 1 }
  0xd5   : > { %s23071_s11 = scalar_select %p102_p7, %s22693_s23, %s104_s20  }
  0xd6   : > { %22014 = dma.hbm_to_vmem [thread:$0]  (!%p22954_p6), %s29006_s21, 2048, %s993_s18, [#allocation21], %s28604_s10, %s28604_s10, %s28606_s16  }
  0xd7   : > { %p23073_p9 = por %p112_p4, %p111_p1  ;;  %p29008_p6 = scmp.eq.s32.totalorder %s22940_s2, 0 }
  0xd8   : > { %p702_p11 = scmp.eq.s32.totalorder %s28608_s15, 1  ;;  %p22051_p12 = scmp.lt.s32.totalorder %s22697_s26, 2 }
  0xd9   : > { %p23079_p8 = por %p29008_p6, %p117_p5  ;;  %s23088_s18 = sand.u32 1, %s22693_s23  }
  0xda   : > { %p23090_p0 = por %p696_p10, %p111_p1  ;;  %p23094_p13 = por %p702_p11, %p117_p5 }
  0xdb   : > { %s29009_s8 = scalar_select %p23079_p8, 1, 0 }
  0xdc   : > { %s29010_s14 = scalar_select %p23090_p0, 1, 0 }
  0xdd   : > { %s29011_s25 = scalar_select %p23094_p13, 1, 0 }
  0xde   : > { %s16632_s20 = sshll.u32 %s23088_s18, 4  ;;  %s16746_s10 = sshll.u32 %s22697_s26, 8 }
  0xdf   : > { %s23101_s16 = scalar_lea.hbm %s28993_s5, %s16746_s10  ;;  %s1013_s15 = scalar_lea.vmem [#allocation2], %s16632_s20 }
  0xe0   : > { %s1020_s6 = sshll.u32 %s1013_s15, 4  ;;  %p23107_p2 = pnand %p22051_p12, %p23073_p9  ;;  %s23103_s6 = int_to_ptr.vmem [resolvable:$true] %s1020_s6 }
  0xe1   : > { %s16635_s21 = sshll.u32 %s23088_s18, 5  ;;  %s1010_s24 = scalar_lea.sflag [#allocation3], %s23088_s18 }
  0xe2   : > { %s22407_s27 = scalar_lea.hbm %s23101_s16, 256  ;;  %p22409_p1 = pneg %p23107_p2 }
  0xe3   : > { %p22408_p7 = scmp.ne.s32.totalorder %s23101_s16, %s22407_s27  ;;  %s22412_s10 = scalar_lea.hbm %s28993_s5, 512 }
  0xe4   : > { %p22413_p6 = scmp.lt.s32.totalorder %s23101_s16, %s28993_s5  ;;  %p22414_p10 = scmp.lt.s32.totalorder %s22412_s10, %s22407_s27 }
  0xe5   : > { %p22410_p4 = pnand %p22409_p1, %p22408_p7 }
  0xe6   : > { %p22415_p9 = por %p22414_p10, %p22413_p6 }
  0xe7   : > { %p22411_p5 = pneg %p22410_p4 }
  0xe9   : > { %p22416_p11 = pnand %p22415_p9, %p22411_p5 }
  0xeb   : > { %22419 = shalt.err (!%p22416_p11)
}
  0xec   : > { %s22420_s15 = scalar_lea.vmem %s23103_s6, 256  ;;  %s22742_s1 = smov [#allocation2]  }
  0xed   : > { %p22421_p12 = scmp.ne.s32.totalorder %s23103_s6, %s22420_s15  ;;  %s22425_s20 = sshll.u32 %s22742_s1, 4  ;;  %s22426_s20 = int_to_ptr.vmem [resolvable:$false] %s22425_s20 }
  0xee   : > { %s22427_s19 = scalar_lea.vmem %s22426_s20, 512  ;;  %p22428_p7 = scmp.lt.s32.totalorder %s23103_s6, %s22426_s20 }
  0xef   : > { %p22423_p13 = pnand %p22421_p12, %p22409_p1  ;;  %p22429_p4 = scmp.lt.s32.totalorder %s22427_s19, %s22420_s15 }
  0xf1   : > { %p22424_p0 = pneg %p22423_p13  ;;  %p22430_p8 = por %p22429_p4, %p22428_p7 }
  0xf3   : > { %p22431_p6 = pnand %p22430_p8, %p22424_p0 }
  0xf5   : > { %22434 = shalt.err (!%p22431_p6)
}
  0xf6   : > { %s29013_s27 = smov 8   ;;  %s29014_s10 = smov 128  }
  0xf7   : > { %22018 = dma.hbm_to_vmem [thread:$0]  (!%p23107_p2), %s23101_s16, 256, %s23103_s6, %s1010_s24, %s29014_s10, %s29014_s10, %s29013_s27  }
  0xf8   : > { %s16747_s19 = sshll.u32 %s22697_s26, 9  ;;  %s1034_s1 = scalar_lea.vmem [#allocation5], %s16635_s21 }
  0xf9   : > { %s23141_s15 = scalar_lea.hbm %s28991_s9, %s16747_s19  ;;  %s1041_s20 = sshll.u32 %s1034_s1, 4  ;;  %s23145_s20 = int_to_ptr.vmem [resolvable:$true] %s1041_s20 }
  0xfa   : > { %s29015_s5 = sand.u32 1, %s22697_s26   ;;  %s22435_s30 = scalar_lea.hbm %s23141_s15, 512 }
  0xfb   : > { %s1031_s29 = scalar_lea.sflag [#allocation6], %s29015_s5  ;;  %p22436_p8 = scmp.ne.s32.totalorder %s23141_s15, %s22435_s30 }
  0xfc   : > { %s22440_s24 = scalar_lea.hbm %s28991_s9, 1024  ;;  %p22441_p5 = scmp.lt.s32.totalorder %s23141_s15, %s28991_s9 }
  0xfd   : > { %p22438_p0 = pnand %p22436_p8, %p22409_p1  ;;  %p22442_p10 = scmp.lt.s32.totalorder %s22440_s24, %s22435_s30 }
  0xff   : > { %p22439_p13 = pneg %p22438_p0  ;;  %p22443_p9 = por %p22442_p10, %p22441_p5 }
 0x101   : > { %p22444_p11 = pnand %p22443_p9, %p22439_p13 }
 0x103   : > { %22447 = shalt.err (!%p22444_p11)
}
 0x104   : > { %s22448_s21 = scalar_lea.vmem %s23145_s20, 512  ;;  %s22743_s5 = smov [#allocation5]  }
 0x105   : > { %p22449_p12 = scmp.ne.s32.totalorder %s23145_s20, %s22448_s21  ;;  %s22453_s6 = sshll.u32 %s22743_s5, 4  ;;  %s22454_s6 = int_to_ptr.vmem [resolvable:$false] %s22453_s6 }
 0x106   : > { %s22455_s16 = scalar_lea.vmem %s22454_s6, 1024  ;;  %p22456_p6 = scmp.lt.s32.totalorder %s23145_s20, %s22454_s6 }
 0x107   : > { %p22451_p7 = pnand %p22449_p12, %p22409_p1  ;;  %p22457_p8 = scmp.lt.s32.totalorder %s22455_s16, %s22448_s21 }
 0x109   : > { %p22452_p4 = pneg %p22451_p7  ;;  %p22458_p0 = por %p22457_p8, %p22456_p6 }
 0x10b   : > { %p22459_p5 = pnand %p22458_p0, %p22452_p4 }
 0x10d   : > { %22462 = shalt.err (!%p22459_p5)
}
 0x10e   : > { %22021 = dma.hbm_to_vmem [thread:$0]  (!%p23107_p2), %s23141_s15, 512, %s23145_s20, %s1031_s29, %s29014_s10, %s29014_s10, %s29013_s27  }
 0x10f   : > { %1087 = sbr.rel (%p22945_p3) target bundleno = 5077 (0x13d5), region = 124 }
 0x114   : > { %s23173_s30 = sand.u32 1, %s22689_s0   ;;  %p29016_p1 = scmp.ne.s32.totalorder %s29009_s8, 0 }
 0x115   : > { %s23176_s18 = sshll.u32 %s23173_s30, 4  ;;  %s1090_s19 = scalar_lea.sflag [#allocation3], %s23173_s30 }
 0x116   : > { %s1093_s12 = scalar_lea.vmem [#allocation2], %s23176_s18 }
 0x117   : > { %22636 = dma.done.wait (%p29016_p1), %s1090_s19, 256  }
 0x118   : > { %22638 = vsyncadd (%p29016_p1), %s1090_s19, 4294967040  ;;  %s23185_s29 = sand.u32 1, %s22940_s2   ;;  %s23188_s7 = sshll.u32 %s23173_s30, 5 }
 0x119   : > { %s1099_s27 = scalar_lea.sflag [#allocation6], %s23185_s29  ;;  %s23192_s10 = scalar_lea.vmem [#allocation5], %s23188_s7 }
 0x11a   : > { %22640 = dma.done.wait (%p29016_p1), %s1099_s27, 512  }
 0x11b   : > { %22642 = vsyncadd (%p29016_p1), %s1099_s27, 4294966784  ;;  %p29017_p3 = scmp.eq.s32.totalorder %s22940_s2, 0 }
 0x11d   : > { %22644 = dma.done.wait (%p29017_p3), [#allocation6], 2048   ;;  %p29018_p2 = pmov %p29017_p3 }
 0x11f   : > { %22646 = vsyncadd (%p29018_p2), [#allocation6], 4294965248  ;;  %p29019_p13 = pmov %p29018_p2 }
 0x120   : > { %p29020_p10 = pmov %p29018_p2 }
 0x121   : > { %22648 = dma.done.wait (%p29019_p13), [#allocation9], 4096  }
 0x122   : > { %22650 = vsyncadd (%p29020_p10), [#allocation9], 4294963200  ;;  %p29021_p9 = pmov %p29018_p2 }
 0x123   : > { %p29022_p11 = pmov %p29018_p2 }
 0x124   : > { %22652 = dma.done.wait (%p29021_p9), [#allocation12], 4096  }
 0x125   : > { %22654 = vsyncadd (%p29022_p11), [#allocation12], 4294963200  ;;  %p29023_p12 = pmov %p29018_p2 }
 0x126   : > { %p29024_p7 = pmov %p29018_p2 }
 0x127   : > { %22656 = dma.done.wait (%p29023_p12), [#allocation15], 4096  }
 0x128   : > { %22658 = vsyncadd (%p29024_p7), [#allocation15], 4294963200  ;;  %p29025_p4 = pmov %p29018_p2 }
 0x129   : > { %p29026_p6 = pmov %p29018_p2 }
 0x12a   : > { %22660 = dma.done.wait (%p29025_p4), [#allocation18], 4096  }
 0x12b   : > { %22662 = vsyncadd (%p29026_p6), [#allocation18], 4294963200  ;;  %p29027_p8 = pmov %p29018_p2 }
 0x12c   : > { %p29028_p0 = pmov %p29018_p2 }
 0x12d   : > { %22664 = dma.done.wait (%p29027_p8), [#allocation21], 2048  }
 0x12e   : > { %22666 = vsyncadd (%p29028_p0), [#allocation21], 4294965248  ;;  %v22744_v0 = vmov 0   ;;  %p1270_p5 = scmp.lt.s32.totalorder %s22940_s2, 1  ;;  %v1391_v1 = vld [vmem:[%s28992_s3 + $0x78] sm:$0xff]  ;;  %v1390_v2 = vld [vmem:[%s28992_s3 + $0x70] sm:$0xff] }
 0x12f   : > { %22142 = vset.pattern.permute.xlu0 %v22744_v0  ;;  %22143 = vset.pattern.permute.xlu1 %v22744_v0  ;;  %v1389_v3 = vld [vmem:[%s28992_s3 + $0x68] sm:$0xff]  ;;  %v23229_v4 = vand.u32 4294901760, %v1391_v1  ;;  %v23231_v5 = vand.u32 4294901760, %v1390_v2  ;;  %v1388_v7 = vld [vmem:[%s28992_s3 + $0x60] sm:$0xff]  ;;  %v1387_v8 = vld [vmem:[%s28992_s3 + $0x58] sm:$0xff]  ;;  %s29029_s13 = sld [smem:[#allocation45_spill]] }
 0x130   : > { %s23224_s8 = scalar_select %p1270_p5, %s22940_s2, 1  ;;  %v23233_v6 = vand.u32 4294901760, %v1389_v3  ;;  %v1386_v9 = vld [vmem:[%s28992_s3 + $0x50] sm:$0xff]  ;;  %v23238_v10 = vand.u32 4294901760, %v1388_v7  ;;  %v23240_v11 = vand.u32 4294901760, %v1387_v8  ;;  %v1385_v13 = vld [vmem:[%s28992_s3 + $0x48] sm:$0xff] }
 0x131   : > { %v23242_v12 = vand.u32 4294901760, %v1386_v9  ;;  %v1384_v14 = vld [vmem:[%s28992_s3 + $0x40] sm:$0xff]  ;;  %18544 = vmatprep.subr.mxu0 %v23229_v4  ;;  %v23249_v15 = vsub.f32 %v1391_v1, %v23229_v4  ;;  %v23252_v16 = vsub.f32 %v1390_v2, %v23231_v5  ;;  %v23254_v17 = vand.u32 4294901760, %v1385_v13  ;;  %v1383_v19 = vld [vmem:[%s28992_s3 + $0x38] sm:$0xff]  ;;  %v1382_v26 = vld [vmem:[%s28992_s3 + $0x30] sm:$0xff]  ;;  %s29040_s20 = sld [smem:[#allocation48_spill]] }
 0x132   : > { %s16748_s15 = sshll.u32 %s23224_s8, 5  ;;  %v23257_v18 = vsub.f32 %v1389_v3, %v23233_v6  ;;  %18545 = vmatpush3.msra.mxu0 %v23229_v4  ;;  %v23262_v20 = vsub.f32 %v1388_v7, %v23238_v10  ;;  %v23265_v21 = vsub.f32 %v1387_v8, %v23240_v11  ;;  %v23277_v25 = vand.u32 4294901760, %v1384_v14  ;;  %v1381_v36 = vld [vmem:[%s28992_s3 + $0x28] sm:$0xff]  ;;  %v1380_v42 = vld [vmem:[%s28992_s3 + $0x20] sm:$0xff]  ;;  %v1379_v51 = vld [vmem:[%s28992_s3 + $0x18] sm:$0xff]  ;;  %s29043_s21 = sld [smem:[#allocation46_spill]] }
 0x133   : > { %18546 = vmatprep.subr.mxu0 %v23231_v5  ;;  %v23269_v22 = vand.u32 4294901760, %v23249_v15  ;;  %v23272_v23 = vand.u32 4294901760, %v23252_v16  ;;  %v23289_v28 = vand.u32 4294901760, %v1383_v19  ;;  %v23295_v30 = vsub.f32 %v1386_v9, %v23242_v12  ;;  %v1289_v52 = vld [vmem:[%s1093_s12] sm:$0xff]  ;;  %v1290_v57 = vld [vmem:[%s1093_s12 + $0x8] sm:$0xff]  ;;  %s29044_s5 = sld [smem:[#allocation47_spill]] }
 0x134   : > { %v23275_v24 = vand.u32 4294901760, %v23257_v18  ;;  %18547 = vmatpush3.msra.mxu0 %v23231_v5  ;;  %v23287_v27 = vand.u32 4294901760, %v23262_v20  ;;  %v23292_v29 = vand.u32 4294901760, %v23265_v21  ;;  %v23305_v34 = vsub.f32 %v1385_v13, %v23254_v17  ;;  %v1378_v62 = vld [vmem:[%s28992_s3 + $0x10] sm:$0xff]  ;;  %v1377_v8 = vld [vmem:[%s28992_s3 + $0x8] sm:$0xff]  ;;  %s29132_s19 = sld [smem:[#allocation53_spill]] }
 0x135   : > { %s23283_s1 = scalar_lea.vmem %s29029_s13, %s16748_s15  ;;  %18548 = vmatprep.subr.mxu0 %v23233_v6  ;;  %v1497_v31 = vsub.f32 %v23249_v15, %v23269_v22  ;;  %v1504_v32 = vsub.f32 %v23252_v16, %v23272_v23  ;;  %v23308_v35 = vand.u32 4294901760, %v1382_v26  ;;  %v23316_v41 = vand.u32 4294901760, %v23295_v30  ;;  %s25424_s12 = scalar_lea.vmem [#allocation29], %s23188_s7 }
 0x136   : > { %v1511_v33 = vsub.f32 %v23257_v18, %v23275_v24  ;;  %18549 = vmatpush3.msra.mxu0 %v23233_v6  ;;  %v1299_v37 = vld [vmem:[%s23283_s1] sm:$0xff]  ;;  %v1518_v40 = vsub.f32 %v23262_v20, %v23287_v27  ;;  %v1301_v43 = vld [vmem:[%s23283_s1 + $0x10] sm:$0xff]  ;;  %v1525_v44 = vsub.f32 %v23265_v21, %v23292_v29  ;;  %v23324_v45 = vand.u32 4294901760, %v23305_v34  ;;  %s29306_s27 = sld [smem:[#allocation49_spill]]  ;;  %p29429_p3 = scmp.ne.s32.totalorder %s29010_s14, 0 }
 0x137   : > { %18550 = vmatprep.subr.mxu0 %v23238_v10  ;;  %v1498_v38 = vand.u32 4294901760, %v1497_v31  ;;  %v1505_v39 = vand.u32 4294901760, %v1504_v32  ;;  %1306 = vperm.xlu0 %22142, %v1299_v37   ;;  %v23327_v46 = vsub.f32 %v1384_v14, %v23277_v25  ;;  %v23330_v48 = vand.u32 4294901760, %v1381_v36  ;;  %v1376_v31 = vld [vmem:[%s28992_s3] sm:$0xff]  ;;  %s23752_s24 = scalar_lea.vmem %s29040_s20, %s16748_s15  ;;  %s26239_s15 = scalar_lea.vmem [#allocation28], %s23176_s18 }
 0x138   : > { %18551 = vmatpush3.msra.mxu0 %v23238_v10  ;;  %1312 = vperm.xlu1 %22143, %v1301_v43   ;;  %v1512_v47 = vand.u32 4294901760, %v1511_v33  ;;  %v23333_v49 = vsub.f32 %v1383_v19, %v23289_v28  ;;  %v23336_v50 = vand.u32 4294901760, %v1380_v42  ;;  %v1519_v53 = vand.u32 4294901760, %v1518_v40  ;;  %s1277_s6 = scalar_lea.vmem %s29043_s21, %s23224_s8  ;;  %s26827_s20 = scalar_lea.vmem [#allocation26], %s23176_s18 }
 0x139   : > { %18552 = vmatprep.subr.mxu0 %v23240_v11  ;;  %18579 = vmatprep.subr.mxu1 %v1498_v38  ;;  %v1532_v54 = vsub.f32 %v23295_v30, %v23316_v41  ;;  %v23345_v55 = vand.u32 4294901760, %v23327_v46  ;;  %v23348_v56 = vsub.f32 %v1382_v26, %v23308_v35  ;;  %v1526_v58 = vand.u32 4294901760, %v1525_v44  ;;  %s1280_s16 = scalar_lea.vmem %s29044_s5, %s23224_s8  ;;  %s29370_s21 = sld [smem:[#allocation62_spill]] }
 0x13a   : > { %18553 = vmatpush3.msra.mxu0 %v23240_v11  ;;  %18580 = vmatpush3.msra.mxu1 %v1498_v38  ;;  %v1539_v59 = vsub.f32 %v23305_v34, %v23324_v45  ;;  %v23356_v60 = vand.u32 4294901760, %v1379_v51  ;;  %v23359_v61 = vand.u32 4294901760, %v23333_v49  ;;  %v23363_v63 = vsub.f32 %v1381_v36, %v23330_v48  ;;  %s27519_s5 = scalar_lea.vmem [#allocation22], %s23176_s18 }
 0x13b   : > { %18554 = vmatprep.subr.mxu0 %v23242_v12  ;;  %18581 = vmatprep.subr.mxu1 %v1505_v39  ;;  %v23365_v0 = vand.u32 4294901760, %v1289_v52  ;;  %v23368_v1 = vand.u32 4294901760, %v1290_v57  ;;  %v1533_v2 = vand.u32 4294901760, %v1532_v54  ;;  %v1546_v3 = vsub.f32 %v23327_v46, %v23345_v55 }
 0x13c   : > { %18555 = vmatpush3.msra.mxu0 %v23242_v12  ;;  %18582 = vmatpush3.msra.mxu1 %v1505_v39  ;;  %v23374_v7 = vand.u32 4294901760, %v23348_v56  ;;  %v23378_v9 = vsub.f32 %v1380_v42, %v23336_v50  ;;  %v1540_v13 = vand.u32 4294901760, %v1539_v59  ;;  %v23381_v14 = vand.u32 4294901760, %v1378_v62 }
 0x13d   : > { %18556 = vmatprep.subr.mxu0 %v23254_v17  ;;  %18583 = vmatprep.subr.mxu1 %v1512_v47  ;;  %29030 = vst [vmem:[#allocation74_spill] sm:$0xff] %v23365_v0  ;;  %29031 = vst [vmem:[#allocation75_spill] sm:$0xff] %v23368_v1  ;;  %v1553_v19 = vsub.f32 %v23333_v49, %v23359_v61  ;;  %v23387_v26 = vand.u32 4294901760, %v23363_v63  ;;  %v23391_v32 = vsub.f32 %v1289_v52, %v23365_v0  ;;  %vm3467_vm0 = vcmask 261120  }
 0x13e   : > { %18557 = vmatpush3.msra.mxu0 %v23254_v17  ;;  %18584 = vmatpush3.msra.mxu1 %v1512_v47  ;;  %v23394_v33 = vsub.f32 %v1379_v51, %v23356_v60  ;;  %v23397_v36 = vand.u32 4294901760, %v1377_v8  ;;  %v23400_v37 = vsub.f32 %v1290_v57, %v23368_v1  ;;  %v1547_v38 = vand.u32 4294901760, %v1546_v3 }
 0x13f   : > { %18558 = vmatprep.subr.mxu0 %v23277_v25  ;;  %18585 = vmatprep.subr.mxu1 %v1519_v53  ;;  %29032 = vst [vmem:[#allocation76_spill] sm:$0xff] %v23391_v32  ;;  %v1560_v39 = vsub.f32 %v23348_v56, %v23374_v7  ;;  %v23406_v40 = vand.u32 4294901760, %v23378_v9  ;;  %v23409_v42 = vand.u32 4294901760, %v1376_v31  ;;  %v23412_v43 = vsub.f32 %v1378_v62, %v23381_v14 }
 0x140   : > { %18559 = vmatpush3.msra.mxu0 %v23277_v25  ;;  %18586 = vmatpush3.msra.mxu1 %v1519_v53  ;;  %29033 = vst [vmem:[#allocation77_spill] sm:$0xff] %v23400_v37  ;;  %v1554_v44 = vand.u32 4294901760, %v1553_v19  ;;  %v1567_v47 = vsub.f32 %v23363_v63, %v23387_v26  ;;  %v23418_v51 = vand.u32 4294901760, %v23391_v32  ;;  %v23421_v52 = vand.u32 4294901760, %v23394_v33 }
 0x141   : > { %18560 = vmatprep.subr.mxu0 %v23289_v28  ;;  %18587 = vmatprep.subr.mxu1 %v1526_v58  ;;  %v23425_v53 = vand.u32 4294901760, %v23400_v37  ;;  %v23428_v54 = vsub.f32 %v1377_v8, %v23397_v36  ;;  %v1561_v57 = vand.u32 4294901760, %v1560_v39  ;;  %v23435_v59 = vand.u32 4294901760, %v23412_v43 }
 0x142   : > { %18561 = vmatpush3.msra.mxu0 %v23289_v28  ;;  %18588 = vmatpush3.msra.mxu1 %v1526_v58  ;;  %29034 = vst [vmem:[#allocation78_spill] sm:$0xff] %v23418_v51  ;;  %29035 = vst [vmem:[#allocation79_spill] sm:$0xff] %v23421_v52  ;;  %v1574_v58 = vsub.f32 %v23378_v9, %v23406_v40  ;;  %v23438_v62 = vsub.f32 %v1376_v31, %v23409_v42  ;;  %vm2862_vm3 = vcmask 130048  }
 0x143   : > { %18562 = vmatprep.subr.mxu0 %v23308_v35  ;;  %18589 = vmatprep.subr.mxu1 %v1533_v2  ;;  %29036 = vst [vmem:[#allocation80_spill] sm:$0xff] %v23425_v53  ;;  %v1476_v3 = vsub.f32 %v23391_v32, %v23418_v51  ;;  %v1581_v8 = vsub.f32 %v23394_v33, %v23421_v52  ;;  %v23449_v19 = vand.u32 4294901760, %v23428_v54 }
 0x144   : > { %18563 = vmatpush3.msra.mxu0 %v23308_v35  ;;  %18590 = vmatpush3.msra.mxu1 %v1533_v2  ;;  %v1568_v2 = vand.u32 4294901760, %v1567_v47  ;;  %v1575_v31 = vand.u32 4294901760, %v1574_v58  ;;  %v23456_v39 = vand.u32 4294901760, %v23438_v62 }
 0x145   : > { %18564 = vmatprep.subr.mxu0 %v23330_v48  ;;  %18591 = vmatprep.subr.mxu1 %v1540_v13  ;;  %v1582_v47 = vand.u32 4294901760, %v1581_v8 }
 0x146   : > { %18565 = vmatpush3.msra.mxu0 %v23330_v48  ;;  %18592 = vmatpush3.msra.mxu1 %v1540_v13  ;;  %v1486_v13 = vsub.f32 %v23400_v37, %v23425_v53 }
 0x147   : > { %18566 = vmatprep.subr.mxu0 %v23336_v50  ;;  %18593 = vmatprep.subr.mxu1 %v1547_v38 }
 0x148   : > { %18567 = vmatpush3.msra.mxu0 %v23336_v50  ;;  %18594 = vmatpush3.msra.mxu1 %v1547_v38  ;;  %v1588_v38 = vsub.f32 %v23412_v43, %v23435_v59  ;;  %v23462_v52 = vand.u32 4294901760, %v1486_v13 }
 0x149   : > { %18568 = vmatprep.subr.mxu0 %v23356_v60  ;;  %18595 = vmatprep.subr.mxu1 %v1554_v44 }
 0x14a   : > { %18569 = vmatpush3.msra.mxu0 %v23356_v60  ;;  %18596 = vmatpush3.msra.mxu1 %v1554_v44  ;;  %v23459_v44 = vand.u32 4294901760, %v1476_v3  ;;  %29038 = vst [vmem:[#allocation82_spill] sm:$0xff] %v23462_v52  ;;  %v1589_v58 = vand.u32 4294901760, %v1588_v38  ;;  %v1602_v3 = vsub.f32 %v23438_v62, %v23456_v39  ;;  %v2080_v38 = vld [vmem:[#allocation7 + $0x20] sm:$0xff] }
 0x14b   : > { %18570 = vmatprep.subr.mxu0 %v23381_v14  ;;  %18597 = vmatprep.subr.mxu1 %v1561_v57 }
 0x14c   : > { %18571 = vmatpush3.msra.mxu0 %v23381_v14  ;;  %18598 = vmatpush3.msra.mxu1 %v1561_v57  ;;  %29037 = vst [vmem:[#allocation81_spill] sm:$0xff] %v23459_v44  ;;  %v1595_v57 = vsub.f32 %v23428_v54, %v23449_v19  ;;  %v1603_v8 = vand.u32 4294901760, %v1602_v3  ;;  %v23708_v3 = vand.u32 4294901760, %v2080_v38 }
 0x14d   : > { %18572 = vmatprep.subr.mxu0 %v23397_v36  ;;  %18599 = vmatprep.subr.mxu1 %v1568_v2 }
 0x14e   : > { %18573 = vmatpush3.msra.mxu0 %v23397_v36  ;;  %18600 = vmatpush3.msra.mxu1 %v1568_v2  ;;  %v1596_v2 = vand.u32 4294901760, %v1595_v57 }
 0x14f   : > { %18574 = vmatprep.subr.mxu0 %v23409_v42  ;;  %18601 = vmatprep.subr.mxu1 %v1575_v31 }
 0x150   : > { %18575 = vmatpush3.msra.mxu0 %v23409_v42  ;;  %18602 = vmatpush3.msra.mxu1 %v1575_v31 }
 0x151   : > { %18576 = vmatprep.mubr.f32.mxu0 %v23459_v44  ;;  %18603 = vmatprep.subr.mxu1 %v1582_v47 }
 0x152   : > { %18614 = vmatprep.subr.mxu0 %v23249_v15  ;;  %18577 = vmatmul.mubr.f32.vlgmr.msra.gmra.mxu0 %v23462_v52 }
 0x153   : > { %18604 = vmatpush3.msra.mxu1 %v1582_v47  ;;  %18615 = vmatpush3.msra.mxu0 %v23249_v15 }
 0x154   : > { %18605 = vmatprep.subr.mxu1 %v1589_v58  ;;  %18616 = vmatprep.subr.mxu0 %v23252_v16 }
 0x155   : > { %18606 = vmatpush3.msra.mxu1 %v1589_v58  ;;  %18617 = vmatpush3.msra.mxu0 %v23252_v16  ;;  %v2088_v16 = vld [vmem:[#allocation7 + $0x60] sm:$0xff]  ;;  %v2079_v58 = vld [vmem:[#allocation7 + $0x18] sm:$0xff] }
 0x156   : > { %18607 = vmatprep.subr.mxu1 %v1596_v2  ;;  %18618 = vmatprep.subr.mxu0 %v23257_v18 }
 0x157   : > { %18608 = vmatpush3.msra.mxu1 %v1596_v2  ;;  %18619 = vmatpush3.msra.mxu0 %v23257_v18 }
 0x158   : > { %18609 = vmatprep.subr.mxu1 %v1603_v8  ;;  %18620 = vmatprep.subr.mxu0 %v23262_v20 }
 0x159   : > { %18610 = vmatpush3.msra.mxu1 %v1603_v8  ;;  %18611 = vmatprep.mubr.f32.mxu1 %v23365_v0 }
 0x15a   : > { %18621 = vmatpush3.msra.mxu0 %v23262_v20  ;;  %18612 = vmatmul.mubr.f32.vlgmr.msra.gmra.mxu1 %v23368_v1  ;;  %v2087_v20 = vld [vmem:[#allocation7 + $0x58] sm:$0xff] }
 0x15b   : > { %18622 = vmatprep.subr.mxu0 %v23265_v21  ;;  %18649 = vmatprep.subr.mxu1 %v23229_v4 }
 0x15c   : > { %18623 = vmatpush3.msra.mxu0 %v23265_v21  ;;  %18650 = vmatpush3.msra.mxu1 %v23229_v4  ;;  %v23602_v21 = vand.u32 4294901760, %v2088_v16 }
 0x15d   : > { %18624 = vmatprep.subr.mxu0 %v23295_v30  ;;  %18651 = vmatprep.subr.mxu1 %v23231_v5 }
 0x15e   : > { %18625 = vmatpush3.msra.mxu0 %v23295_v30  ;;  %18652 = vmatpush3.msra.mxu1 %v23231_v5 }
 0x15f   : > { %18626 = vmatprep.subr.mxu0 %v23305_v34  ;;  %18653 = vmatprep.subr.mxu1 %v23233_v6 }
 0x160   : > { %18627 = vmatpush3.msra.mxu0 %v23305_v34  ;;  %18654 = vmatpush3.msra.mxu1 %v23233_v6 }
 0x161   : > { %18628 = vmatprep.subr.mxu0 %v23327_v46  ;;  %18655 = vmatprep.subr.mxu1 %v23238_v10 }
 0x162   : > { %18629 = vmatpush3.msra.mxu0 %v23327_v46  ;;  %18656 = vmatpush3.msra.mxu1 %v23238_v10 }
 0x163   : > { %18630 = vmatprep.subr.mxu0 %v23333_v49  ;;  %18657 = vmatprep.subr.mxu1 %v23240_v11 }
 0x164   : > { %18631 = vmatpush3.msra.mxu0 %v23333_v49  ;;  %18658 = vmatpush3.msra.mxu1 %v23240_v11  ;;  %v2083_v49 = vld [vmem:[#allocation7 + $0x38] sm:$0xff] }
 0x165   : > { %18632 = vmatprep.subr.mxu0 %v23348_v56  ;;  %18659 = vmatprep.subr.mxu1 %v23242_v12 }
 0x166   : > { %18633 = vmatpush3.msra.mxu0 %v23348_v56  ;;  %18660 = vmatpush3.msra.mxu1 %v23242_v12 }
 0x167   : > { %18634 = vmatprep.subr.mxu0 %v23363_v63  ;;  %18661 = vmatprep.subr.mxu1 %v23254_v17 }
 0x168   : > { %18635 = vmatpush3.msra.mxu0 %v23363_v63  ;;  %18662 = vmatpush3.msra.mxu1 %v23254_v17 }
 0x169   : > { %18636 = vmatprep.subr.mxu0 %v23378_v9  ;;  %18663 = vmatprep.subr.mxu1 %v23277_v25 }
 0x16a   : > { %18637 = vmatpush3.msra.mxu0 %v23378_v9  ;;  %18664 = vmatpush3.msra.mxu1 %v23277_v25 }
 0x16b   : > { %18638 = vmatprep.subr.mxu0 %v23394_v33  ;;  %18665 = vmatprep.subr.mxu1 %v23289_v28 }
 0x16c   : > { %18639 = vmatpush3.msra.mxu0 %v23394_v33  ;;  %18666 = vmatpush3.msra.mxu1 %v23289_v28  ;;  %v2081_v33 = vld [vmem:[#allocation7 + $0x28] sm:$0xff] }
 0x16d   : > { %18640 = vmatprep.subr.mxu0 %v23412_v43  ;;  %18667 = vmatprep.subr.mxu1 %v23308_v35  ;;  %v23695_v31 = vand.u32 4294901760, %v2081_v33 }
 0x16e   : > { %18641 = vmatpush3.msra.mxu0 %v23412_v43  ;;  %18668 = vmatpush3.msra.mxu1 %v23308_v35 }
 0x16f   : > { %18642 = vmatprep.subr.mxu0 %v23428_v54  ;;  %18669 = vmatprep.subr.mxu1 %v23330_v48 }
 0x170   : > { %18643 = vmatpush3.msra.mxu0 %v23428_v54  ;;  %18670 = vmatpush3.msra.mxu1 %v23330_v48 }
 0x171   : > { %18644 = vmatprep.subr.mxu0 %v23438_v62  ;;  %18671 = vmatprep.subr.mxu1 %v23336_v50 }
 0x172   : > { %18645 = vmatpush3.msra.mxu0 %v23438_v62  ;;  %18646 = vmatprep.mubr.f32.mxu0 %v23391_v32 }
 0x173   : > { %18672 = vmatpush3.msra.mxu1 %v23336_v50  ;;  %18647 = vmatmul.mubr.f32.vlgmr.msra.gmra.mxu0 %v23400_v37 }
 0x174   : > { %18673 = vmatprep.subr.mxu1 %v23356_v60  ;;  %18684 = vmatprep.subr.mxu0 %v23269_v22 }
 0x175   : > { %18674 = vmatpush3.msra.mxu1 %v23356_v60  ;;  %18685 = vmatpush3.msra.mxu0 %v23269_v22 }
 0x176   : > { %18675 = vmatprep.subr.mxu1 %v23381_v14  ;;  %18686 = vmatprep.subr.mxu0 %v23272_v23 }
 0x177   : > { %18676 = vmatpush3.msra.mxu1 %v23381_v14  ;;  %18687 = vmatpush3.msra.mxu0 %v23272_v23  ;;  %v2086_v23 = vld [vmem:[#allocation7 + $0x50] sm:$0xff] }
 0x178   : > { %18677 = vmatprep.subr.mxu1 %v23397_v36  ;;  %18688 = vmatprep.subr.mxu0 %v23275_v24  ;;  %v23626_v30 = vand.u32 4294901760, %v2086_v23 }
 0x179   : > { %18678 = vmatpush3.msra.mxu1 %v23397_v36  ;;  %18689 = vmatpush3.msra.mxu0 %v23275_v24 }
 0x17a   : > { %18679 = vmatprep.subr.mxu1 %v23409_v42  ;;  %18690 = vmatprep.subr.mxu0 %v23287_v27 }
 0x17b   : > { %18680 = vmatpush3.msra.mxu1 %v23409_v42  ;;  %18681 = vmatprep.mubr.f32.mxu1 %v23418_v51 }
 0x17c   : > { %18691 = vmatpush3.msra.mxu0 %v23287_v27  ;;  %18682 = vmatmul.mubr.f32.vlgmr.msra.gmra.mxu1 %v23425_v53  ;;  %v1295_v53 = vld [vmem:[%s23752_s24] sm:$0xff] }
 0x17d   : > { %18692 = vmatprep.subr.mxu0 %v23292_v29  ;;  %18719 = vmatprep.subr.mxu1 %v23229_v4 }
 0x17e   : > { %18693 = vmatpush3.msra.mxu0 %v23292_v29  ;;  %18720 = vmatpush3.msra.mxu1 %v23229_v4  ;;  %v2091_v4 = vld [vmem:[#allocation7 + $0x78] sm:$0xff]  ;;  %v23624_v29 = vsub.f32 %v2088_v16, %v23602_v21 }
 0x17f   : > { %18694 = vmatprep.subr.mxu0 %v23316_v41  ;;  %18721 = vmatprep.subr.mxu1 %v23231_v5 }
 0x180   : > { %18695 = vmatpush3.msra.mxu0 %v23316_v41  ;;  %18722 = vmatpush3.msra.mxu1 %v23231_v5  ;;  %v2090_v5 = vld [vmem:[#allocation7 + $0x70] sm:$0xff] }
 0x181   : > { %18696 = vmatprep.subr.mxu0 %v23324_v45  ;;  %18723 = vmatprep.subr.mxu1 %v23233_v6 }
 0x182   : > { %18697 = vmatpush3.msra.mxu0 %v23324_v45  ;;  %18724 = vmatpush3.msra.mxu1 %v23233_v6  ;;  %v23578_v6 = vand.u32 4294901760, %v2091_v4 }
 0x183   : > { %18698 = vmatprep.subr.mxu0 %v23345_v55  ;;  %18725 = vmatprep.subr.mxu1 %v23238_v10 }
 0x184   : > { %18699 = vmatpush3.msra.mxu0 %v23345_v55  ;;  %18726 = vmatpush3.msra.mxu1 %v23238_v10  ;;  %v2089_v10 = vld [vmem:[#allocation7 + $0x68] sm:$0xff]  ;;  %v23652_v55 = vsub.f32 %v2086_v23, %v23626_v30 }
 0x185   : > { %18700 = vmatprep.subr.mxu0 %v23359_v61  ;;  %18727 = vmatprep.subr.mxu1 %v23240_v11  ;;  %v23588_v15 = vand.u32 4294901760, %v2089_v10 }
 0x186   : > { %18701 = vmatpush3.msra.mxu0 %v23359_v61  ;;  %18728 = vmatpush3.msra.mxu1 %v23240_v11  ;;  %v23582_v11 = vand.u32 4294901760, %v2090_v5  ;;  %v2082_v61 = vld [vmem:[#allocation7 + $0x30] sm:$0xff]  ;;  %v23677_v43 = vand.u32 4294901760, %v23652_v55 }
 0x187   : > { %18702 = vmatprep.subr.mxu0 %v23374_v7  ;;  %18729 = vmatprep.subr.mxu1 %v23242_v12  ;;  %v23607_v22 = vsub.f32 %v2089_v10, %v23588_v15  ;;  %v2078_v10 = vld [vmem:[#allocation7 + $0x10] sm:$0xff] }
 0x188   : > { %18703 = vmatpush3.msra.mxu0 %v23374_v7  ;;  %18730 = vmatpush3.msra.mxu1 %v23242_v12  ;;  %v29039_v12 = vld [vmem:[#allocation79_spill] sm:$0xff]  ;;  %v23598_v18 = vsub.f32 %v2090_v5, %v23582_v11  ;;  %v23717_v5 = vsub.f32 %v2081_v33, %v23695_v31 }
 0x189   : > { %18704 = vmatprep.subr.mxu0 %v23387_v26  ;;  %18731 = vmatprep.subr.mxu1 %v23254_v17  ;;  %v23631_v34 = vand.u32 4294901760, %v23607_v22 }
 0x18a   : > { %18705 = vmatpush3.msra.mxu0 %v23387_v26  ;;  %18732 = vmatpush3.msra.mxu1 %v23254_v17  ;;  %v23593_v17 = vsub.f32 %v2091_v4, %v23578_v6  ;;  %v23619_v27 = vand.u32 4294901760, %v23598_v18  ;;  %v23668_v26 = vand.u32 4294901760, %v2083_v49 }
 0x18b   : > { %18706 = vmatprep.subr.mxu0 %v23406_v40  ;;  %18733 = vmatprep.subr.mxu1 %v23277_v25 }
 0x18c   : > { %18707 = vmatpush3.msra.mxu0 %v23406_v40  ;;  %18734 = vmatpush3.msra.mxu1 %v23277_v25  ;;  %v23612_v24 = vand.u32 4294901760, %v23593_v17  ;;  %v23614_v25 = vand.u32 4294901760, %v2087_v20 }
 0x18d   : > { %18708 = vmatprep.subr.mxu0 %v29039_v12  ;;  %18735 = vmatprep.subr.mxu1 %v23289_v28 }
 0x18e   : > { %18709 = vmatpush3.msra.mxu0 %v29039_v12  ;;  %18736 = vmatpush3.msra.mxu1 %v23289_v28  ;;  %v2085_v28 = vld [vmem:[#allocation7 + $0x48] sm:$0xff]  ;;  %v2217_v41 = vsub.f32 %v23593_v17, %v23612_v24  ;;  %v23638_v45 = vsub.f32 %v2087_v20, %v23614_v25  ;;  %v23720_v12 = vand.u32 4294901760, %v2079_v58 }
 0x18f   : > { %18710 = vmatprep.subr.mxu0 %v23435_v59  ;;  %18737 = vmatprep.subr.mxu1 %v23308_v35  ;;  %v23640_v46 = vand.u32 4294901760, %v2085_v28 }
 0x190   : > { %18711 = vmatpush3.msra.mxu0 %v23435_v59  ;;  %18738 = vmatpush3.msra.mxu1 %v23308_v35  ;;  %v2084_v35 = vld [vmem:[#allocation7 + $0x40] sm:$0xff]  ;;  %v2218_v63 = vand.u32 4294901760, %v2217_v41  ;;  %v23663_v7 = vand.u32 4294901760, %v23638_v45  ;;  %v23682_v59 = vand.u32 4294901760, %v2082_v61  ;;  %v23731_v41 = vsub.f32 %v2080_v38, %v23708_v3 }
 0x191   : > { %18712 = vmatprep.subr.mxu0 %v23449_v19  ;;  %18739 = vmatprep.subr.mxu1 %v23330_v48  ;;  %v23654_v56 = vand.u32 4294901760, %v2084_v35  ;;  %v23666_v9 = vsub.f32 %v2085_v28, %v23640_v46  ;;  %v2077_v28 = vld [vmem:[#allocation7 + $0x8] sm:$0xff]  ;;  %v23744_v33 = vsub.f32 %v2079_v58, %v23720_v12 }
 0x192   : > { %18713 = vmatpush3.msra.mxu0 %v23449_v19  ;;  %18740 = vmatpush3.msra.mxu1 %v23330_v48  ;;  %v2224_v48 = vsub.f32 %v23598_v18, %v23619_v27  ;;  %v2245_v62 = vsub.f32 %v23638_v45, %v23663_v7  ;;  %v23693_v19 = vsub.f32 %v2083_v49, %v23668_v26 }
 0x193   : > { %18714 = vmatprep.subr.mxu0 %v23456_v39  ;;  %18741 = vmatprep.subr.mxu1 %v23336_v50  ;;  %v23680_v54 = vsub.f32 %v2084_v35, %v23654_v56  ;;  %v23690_v13 = vand.u32 4294901760, %v23666_v9  ;;  %v23705_v57 = vsub.f32 %v2082_v61, %v23682_v59  ;;  %v1300_v35 = vld [vmem:[%s23283_s1 + $0x8] sm:$0xff]  ;;  %v23739_v61 = vand.u32 4294901760, %v23717_v5 }
 0x194   : > { %18715 = vmatpush3.msra.mxu0 %v23456_v39  ;;  %18716 = vmatprep.mubr.f32.mxu0 %v23365_v0  ;;  %v2252_v39 = vsub.f32 %v23652_v55, %v23677_v43  ;;  %v2246_v2 = vand.u32 4294901760, %v2245_v62  ;;  %v23714_v4 = vand.u32 4294901760, %v23693_v19 }
 0x195   : > { %18742 = vmatpush3.msra.mxu1 %v23336_v50  ;;  %18717 = vmatmul.mubr.f32.vlgmr.msra.gmra.mxu0 %v23368_v1  ;;  %v23649_v50 = vand.u32 4294901760, %v23624_v29  ;;  %v23702_v47 = vand.u32 4294901760, %v23680_v54  ;;  %v2259_v8 = vsub.f32 %v23666_v9, %v23690_v13  ;;  %v23726_v23 = vand.u32 4294901760, %v23705_v57 }
 0x196   : > { %18743 = vmatprep.subr.mxu1 %v23356_v60  ;;  %18751 = vmatprep.mubr.f32.mxu1 %v23365_v0  ;;  %v2253_v16 = vand.u32 4294901760, %v2252_v39 }
 0x197   : > { %18744 = vmatpush3.msra.mxu1 %v23356_v60  ;;  %18754 = vmatprep.subr.mxu0 %v23578_v6  ;;  %v2231_v60 = vsub.f32 %v23607_v22, %v23631_v34  ;;  %v2238_v40 = vsub.f32 %v23624_v29, %v23649_v50  ;;  %v2266_v20 = vsub.f32 %v23680_v54, %v23702_v47  ;;  %v2260_v49 = vand.u32 4294901760, %v2259_v8 }
 0x198   : > { %18745 = vmatprep.subr.mxu1 %v23381_v14  ;;  %18755 = vmatpush3.msra.mxu0 %v23578_v6  ;;  %v2280_v38 = vsub.f32 %v23705_v57, %v23726_v23 }
 0x199   : > { %18746 = vmatpush3.msra.mxu1 %v23381_v14  ;;  %18756 = vmatprep.subr.mxu0 %v23582_v11  ;;  %v2225_v14 = vand.u32 4294901760, %v2224_v48  ;;  %v23733_v48 = vand.u32 4294901760, %v2078_v10  ;;  %v2267_v62 = vand.u32 4294901760, %v2266_v20  ;;  %v1302_v20 = vld [vmem:[%s23283_s1 + $0x18] sm:$0xff]  ;;  %s29322_s1 = sld [smem:[#allocation58_spill]] }
 0x19a   : > { %18747 = vmatprep.subr.mxu1 %v23397_v36  ;;  %18757 = vmatpush3.msra.mxu0 %v23582_v11 }
 0x19b   : > { %18748 = vmatpush3.msra.mxu1 %v23397_v36  ;;  %18758 = vmatprep.subr.mxu0 %v23588_v15  ;;  %v2232_v36 = vand.u32 4294901760, %v2231_v60  ;;  %v2273_v60 = vsub.f32 %v23693_v19, %v23714_v4  ;;  %v23761_v39 = vsub.f32 %v2078_v10, %v23733_v48  ;;  %v23776_v10 = vand.u32 4294901760, %v23744_v33 }
 0x19c   : > { %18749 = vmatprep.subr.mxu1 %v23409_v42  ;;  %18759 = vmatpush3.msra.mxu0 %v23588_v15 }
 0x19d   : > { %18750 = vmatpush3.msra.mxu1 %v23409_v42  ;;  %18760 = vmatprep.subr.mxu0 %v23602_v21  ;;  %v2239_v42 = vand.u32 4294901760, %v2238_v40  ;;  %v23746_v40 = vand.u32 4294901760, %v2077_v28  ;;  %v2274_v8 = vand.u32 4294901760, %v2273_v60  ;;  %v2281_v60 = vand.u32 4294901760, %v2280_v38 }
 0x19e   : > { %18752 = vmatmul.mubr.f32.vlgmr.msra.gmra.mxu1 %v23368_v1  ;;  %18792 = vmatprep.subr.mxu1 %v2218_v63  ;;  %v2301_v38 = vsub.f32 %v23744_v33, %v23776_v10 }
 0x19f   : > { %18793 = vmatpush3.msra.mxu1 %v2218_v63  ;;  %18761 = vmatpush3.msra.mxu0 %v23602_v21  ;;  %v2076_v63 = vld [vmem:[#allocation7] sm:$0xff]  ;;  %v23779_v51 = vsub.f32 %v2077_v28, %v23746_v40 }
 0x1a0   : > { %18794 = vmatprep.subr.mxu1 %v2225_v14  ;;  %18762 = vmatprep.subr.mxu0 %v23614_v25  ;;  %v23763_v58 = vand.u32 4294901760, %v2076_v63 }
 0x1a1   : > { %18795 = vmatpush3.msra.mxu1 %v2225_v14  ;;  %18763 = vmatpush3.msra.mxu0 %v23614_v25  ;;  %v1291_v14 = vld [vmem:[%s23192_s10] sm:$0xff] }
 0x1a2   : > { %18796 = vmatprep.subr.mxu1 %v2232_v36  ;;  %18764 = vmatprep.subr.mxu0 %v23626_v30  ;;  %v23791_v28 = vsub.f32 %v2076_v63, %v23763_v58  ;;  %v1296_v63 = vld [vmem:[%s23752_s24 + $0x8] sm:$0xff] }
 0x1a3   : > { %18797 = vmatpush3.msra.mxu1 %v2232_v36  ;;  %18765 = vmatpush3.msra.mxu0 %v23626_v30  ;;  %v1292_v36 = vld [vmem:[%s23192_s10 + $0x8] sm:$0xff] }
 0x1a4   : > { %18798 = vmatprep.subr.mxu1 %v2239_v42  ;;  %18766 = vmatprep.subr.mxu0 %v23640_v46 }
 0x1a5   : > { %18799 = vmatpush3.msra.mxu1 %v2239_v42  ;;  %18767 = vmatpush3.msra.mxu0 %v23640_v46  ;;  %v23758_v42 = vand.u32 4294901760, %v23731_v41 }
 0x1a6   : > { %18800 = vmatprep.subr.mxu1 %v2246_v2  ;;  %18768 = vmatprep.subr.mxu0 %v23654_v56 }
 0x1a7   : > { %18801 = vmatpush3.msra.mxu1 %v2246_v2  ;;  %18769 = vmatpush3.msra.mxu0 %v23654_v56  ;;  %v23765_v2 = vand.u32 4294901760, %v1291_v14  ;;  %v2294_v37 = vsub.f32 %v23731_v41, %v23758_v42 }
 0x1a8   : > { %18802 = vmatprep.subr.mxu1 %v2253_v16  ;;  %1309 = vperm.xlu0 %22142, %v1300_v35   ;;  %v23771_v35 = vand.u32 4294901760, %v1292_v36 }
 0x1a9   : > { %18803 = vmatpush3.msra.mxu1 %v2253_v16  ;;  %18770 = vmatprep.subr.mxu0 %v23668_v26  ;;  %v2287_v16 = vsub.f32 %v23717_v5, %v23739_v61  ;;  %v23788_v32 = vsub.f32 %v1291_v14, %v23765_v2  ;;  %v2295_v14 = vand.u32 4294901760, %v2294_v37  ;;  %v1298_v37 = vld [vmem:[%s23752_s24 + $0x18] sm:$0xff] }
 0x1aa   : > { %18804 = vmatprep.subr.mxu1 %v2260_v49  ;;  %18771 = vmatpush3.msra.mxu0 %v23668_v26 }
 0x1ab   : > { %18805 = vmatpush3.msra.mxu1 %v2260_v49  ;;  %18772 = vmatprep.subr.mxu0 %v23682_v59  ;;  %v23785_v49 = vand.u32 4294901760, %v23761_v39  ;;  %v2288_v52 = vand.u32 4294901760, %v2287_v16  ;;  %v23810_v16 = vand.u32 4294901760, %v23791_v28  ;;  %v29042_v44 = vand.u32 4294901760, %v23788_v32 }
 0x1ac   : > { %18806 = vmatprep.subr.mxu1 %v2267_v62  ;;  %18773 = vmatpush3.msra.mxu0 %v23682_v59 }
 0x1ad   : > { %18807 = vmatpush3.msra.mxu1 %v2267_v62  ;;  %1315 = vperm.xlu1 %22143, %v1302_v20   ;;  %29041 = vst [vmem:[#allocation79_spill] sm:$0xff] %v23785_v49  ;;  %v23794_v62 = vsub.f32 %v1292_v36, %v23771_v35  ;;  %v23800_v20 = vand.u32 4294901760, %v23779_v51  ;;  %v2308_v36 = vsub.f32 %v23761_v39, %v23785_v49 }
 0x1ae   : > { %18808 = vmatprep.subr.mxu1 %v2274_v8  ;;  %4592 = vperm.xlu0 %22142, %v1295_v53   ;;  %v1297_v53 = vld [vmem:[%s23752_s24 + $0x10] sm:$0xff]  ;;  %v2176_v49 = vsub.f32 %v23788_v32, %v29042_v44  ;;  %s29368_s24 = sld [smem:[#allocation60_spill]] }
 0x1af   : > { %18809 = vmatpush3.msra.mxu1 %v2274_v8  ;;  %18774 = vmatprep.subr.mxu0 %v23695_v31  ;;  %v2185_v1 = vand.u32 4294901760, %v23794_v62  ;;  %v2315_v0 = vsub.f32 %v23779_v51, %v23800_v20  ;;  %v2309_v8 = vand.u32 4294901760, %v2308_v36  ;;  %v23852_v36 = vld [vmem:[%s1280_s16] ss:$0 sm:$0xff]  ;;  %s29409_s16 = sld [smem:[#allocation66_spill]] }
 0x1b0   : > { %18810 = vmatprep.subr.mxu1 %v2281_v60  ;;  %18775 = vmatpush3.msra.mxu0 %v23695_v31  ;;  %v2177_v44 = vand.u32 4294901760, %v2176_v49 }
 0x1b1   : > { %18811 = vmatpush3.msra.mxu1 %v2281_v60  ;;  %18776 = vmatprep.subr.mxu0 %v23708_v3  ;;  %v2302_v60 = vand.u32 4294901760, %v2301_v38  ;;  %v2186_v38 = vsub.f32 %v23794_v62, %v2185_v1 }
 0x1b2   : > { %18812 = vmatprep.subr.mxu1 %v2288_v52  ;;  %18777 = vmatpush3.msra.mxu0 %v23708_v3 }
 0x1b3   : > { %18813 = vmatpush3.msra.mxu1 %v2288_v52  ;;  %4597 = vperm.xlu1 %22143, %v1296_v63   ;;  %v2322_v52 = vsub.f32 %v23791_v28, %v23810_v16  ;;  %v2316_v63 = vand.u32 4294901760, %v2315_v0  ;;  %v1303_v0 = vlaneseq }
 0x1b4   : > { %4602 = vperm.xlu0 %22142, %v1297_v53   ;;  %18778 = vmatprep.subr.mxu0 %v23720_v12 }
 0x1b5   : > { %18814 = vmatprep.subr.mxu1 %v2295_v14  ;;  %18779 = vmatpush3.msra.mxu0 %v23720_v12  ;;  %v2323_v53 = vand.u32 4294901760, %v2322_v52  ;;  %v23844_v49 = vshrl.u32 %v1303_v0, 7 }
 0x1b6   : > { %18815 = vmatpush3.msra.mxu1 %v2295_v14  ;;  %18780 = vmatprep.subr.mxu0 %v23733_v48  ;;  %v2187_v14 = vand.u32 4294901760, %v2186_v38 }
 0x1b7   : > { %18816 = vmatprep.subr.mxu1 %v2302_v60  ;;  %18781 = vmatpush3.msra.mxu0 %v23733_v48  ;;  %29045 = vst [vmem:[#allocation83_spill] sm:$0xff] %v23844_v49 }
 0x1b8   : > { %18817 = vmatpush3.msra.mxu1 %v2302_v60  ;;  %4607 = vperm.xlu1 %22143, %v1298_v37   ;;  %v1293_v60 = vld [vmem:[%s23192_s10 + $0x10] sm:$0xff] }
 0x1b9   : > { %18782 = vmatprep.subr.mxu0 %v23746_v40  ;;  %18818 = vmatprep.subr.mxu1 %v2309_v8 }
 0x1ba   : > { %18783 = vmatpush3.msra.mxu0 %v23746_v40  ;;  %18819 = vmatpush3.msra.mxu1 %v2309_v8  ;;  %v23855_v8 = vadd.s32 8, %v23844_v49 }
 0x1bb   : > { %18784 = vmatprep.subr.mxu0 %v23763_v58  ;;  %18820 = vmatprep.subr.mxu1 %v2316_v63 }
 0x1bc   : > { %18785 = vmatpush3.msra.mxu0 %v23763_v58  ;;  %18821 = vmatpush3.msra.mxu1 %v2316_v63  ;;  %29046 = vst [vmem:[#allocation84_spill] sm:$0xff] %v23855_v8 }
 0x1bd   : > { %18786 = vmatprep.mubr.f32.mxu0 %v2177_v44  ;;  %18822 = vmatprep.subr.mxu1 %v2323_v53 }
 0x1be   : > { %18830 = vmatprep.subr.mxu0 %v23593_v17  ;;  %18787 = vmatmul.mubr.f32.vlgmr.msra.gmra.mxu0 %v2187_v14 }
 0x1bf   : > { %18823 = vmatpush3.msra.mxu1 %v2323_v53  ;;  %18831 = vmatpush3.msra.mxu0 %v23593_v17  ;;  %v23848_v17 = vld [vmem:[%s1277_s6] ss:$0 sm:$0xff]  ;;  %s29408_s6 = sld [smem:[#allocation64_spill]] }
 0x1c0   : > { %18824 = vmatprep.mubr.f32.mxu1 %v23765_v2  ;;  %18832 = vmatprep.subr.mxu0 %v23598_v18  ;;  %vm1335_vm1 = vcmp.eq.s32.totalorder %v23855_v8, %v23848_v17  ;;  %vm1334_vm7 = vcmp.eq.s32.totalorder %v23844_v49, %v23848_v17 }
 0x1c1   : > { %18868 = vmatprep.subr.mxu1 %v23578_v6  ;;  %18825 = vmatmul.mubr.f32.vlgmr.msra.gmra.mxu1 %v23771_v35  ;;  %v1343_v37 = vsel %vm1335_vm1, %v23852_v36, 0.0 }
 0x1c2   : > { %18833 = vmatpush3.msra.mxu0 %v23598_v18  ;;  %18869 = vmatpush3.msra.mxu1 %v23578_v6  ;;  %v1294_v18 = vld [vmem:[%s23192_s10 + $0x18] sm:$0xff]  ;;  %v23873_v52 = vsel %vm3467_vm0, %v1343_v37, 0  ;;  %s1288_s10 = scalar_lea.vmem %s29306_s27, %s23224_s8  ;;  %s29310_s8 = sld [smem:[#allocation56_spill]] }
 0x1c3   : > { %18834 = vmatprep.subr.mxu0 %v23607_v22  ;;  %18870 = vmatprep.subr.mxu1 %v23582_v11  ;;  %v23877_v38 = vand.u32 4294901760, %v1294_v18  ;;  %s28252_s27 = scalar_lea.vmem [#allocation23], %s23188_s7  ;;  %s29427_s7 = sld [smem:[#allocation70_spill]] }
 0x1c4   : > { %18835 = vmatpush3.msra.mxu0 %v23607_v22  ;;  %18871 = vmatpush3.msra.mxu1 %v23582_v11  ;;  %v23870_v22 = vand.u32 4294901760, %v1293_v60 }
 0x1c5   : > { %18836 = vmatprep.subr.mxu0 %v23624_v29  ;;  %18872 = vmatprep.subr.mxu1 %v23588_v15 }
 0x1c6   : > { %18837 = vmatpush3.msra.mxu0 %v23624_v29  ;;  %18873 = vmatpush3.msra.mxu1 %v23588_v15  ;;  %v23886_v29 = vsub.f32 %v1293_v60, %v23870_v22 }
 0x1c7   : > { %18838 = vmatprep.subr.mxu0 %v23638_v45  ;;  %18874 = vmatprep.subr.mxu1 %v23602_v21 }
 0x1c8   : > { %18839 = vmatpush3.msra.mxu0 %v23638_v45  ;;  %18875 = vmatpush3.msra.mxu1 %v23602_v21  ;;  %v23891_v45 = vsub.f32 %v1294_v18, %v23877_v38 }
 0x1c9   : > { %18840 = vmatprep.subr.mxu0 %v23652_v55  ;;  %18876 = vmatprep.subr.mxu1 %v23614_v25 }
 0x1ca   : > { %18841 = vmatpush3.msra.mxu0 %v23652_v55  ;;  %18877 = vmatpush3.msra.mxu1 %v23614_v25  ;;  %v2195_v55 = vand.u32 4294901760, %v23886_v29 }
 0x1cb   : > { %18842 = vmatprep.subr.mxu0 %v23666_v9  ;;  %18878 = vmatprep.subr.mxu1 %v23626_v30 }
 0x1cc   : > { %18843 = vmatpush3.msra.mxu0 %v23666_v9  ;;  %18879 = vmatpush3.msra.mxu1 %v23626_v30  ;;  %v2205_v9 = vand.u32 4294901760, %v23891_v45 }
 0x1cd   : > { %18844 = vmatprep.subr.mxu0 %v23680_v54  ;;  %18880 = vmatprep.subr.mxu1 %v23640_v46 }
 0x1ce   : > { %18845 = vmatpush3.msra.mxu0 %v23680_v54  ;;  %18881 = vmatpush3.msra.mxu1 %v23640_v46  ;;  %v2196_v54 = vsub.f32 %v23886_v29, %v2195_v55 }
 0x1cf   : > { %18846 = vmatprep.subr.mxu0 %v23693_v19  ;;  %18882 = vmatprep.subr.mxu1 %v23654_v56 }
 0x1d0   : > { %18847 = vmatpush3.msra.mxu0 %v23693_v19  ;;  %18883 = vmatpush3.msra.mxu1 %v23654_v56  ;;  %v2206_v19 = vsub.f32 %v23891_v45, %v2205_v9 }
 0x1d1   : > { %18848 = vmatprep.subr.mxu0 %v23705_v57  ;;  %18884 = vmatprep.subr.mxu1 %v23668_v26 }
 0x1d2   : > { %18849 = vmatpush3.msra.mxu0 %v23705_v57  ;;  %18885 = vmatpush3.msra.mxu1 %v23668_v26  ;;  %v2197_v57 = vand.u32 4294901760, %v2196_v54 }
 0x1d3   : > { %18850 = vmatprep.subr.mxu0 %v23717_v5  ;;  %18886 = vmatprep.subr.mxu1 %v23682_v59 }
 0x1d4   : > { %18851 = vmatpush3.msra.mxu0 %v23717_v5  ;;  %18887 = vmatpush3.msra.mxu1 %v23682_v59  ;;  %v2207_v5 = vand.u32 4294901760, %v2206_v19 }
 0x1d5   : > { %18852 = vmatprep.subr.mxu0 %v23731_v41  ;;  %18888 = vmatprep.subr.mxu1 %v23695_v31 }
 0x1d6   : > { %18853 = vmatpush3.msra.mxu0 %v23731_v41  ;;  %18889 = vmatpush3.msra.mxu1 %v23695_v31 }
 0x1d7   : > { %18854 = vmatprep.subr.mxu0 %v23744_v33  ;;  %18890 = vmatprep.subr.mxu1 %v23708_v3 }
 0x1d8   : > { %18855 = vmatpush3.msra.mxu0 %v23744_v33  ;;  %18891 = vmatpush3.msra.mxu1 %v23708_v3 }
 0x1d9   : > { %18856 = vmatprep.subr.mxu0 %v23761_v39  ;;  %18892 = vmatprep.subr.mxu1 %v23720_v12 }
 0x1da   : > { %18857 = vmatpush3.msra.mxu0 %v23761_v39  ;;  %18893 = vmatpush3.msra.mxu1 %v23720_v12 }
 0x1db   : > { %18789 = vmatprep.mubr.f32.mxu0 %v2197_v57  ;;  %18858 = vmatprep.subr.mxu0 %v23779_v51 }
 0x1dc   : > { %18894 = vmatprep.subr.mxu1 %v23733_v48  ;;  %18790 = vmatmul.mubr.f32.gmra.mxu0 %v2207_v5 }
 0x1dd   : > { %18859 = vmatpush3.msra.mxu0 %v23779_v51  ;;  %18895 = vmatpush3.msra.mxu1 %v23733_v48  ;;  %v29047_v51 = vand.u32 4294901760, %v23788_v32 }
 0x1de   : > { %18827 = vmatprep.mubr.f32.mxu1 %v23870_v22  ;;  %18860 = vmatprep.subr.mxu0 %v23791_v28 }
 0x1df   : > { %18896 = vmatprep.subr.mxu1 %v23746_v40  ;;  %18828 = vmatmul.mubr.f32.gmra.mxu1 %v23877_v38 }
 0x1e0   : > { %18861 = vmatpush3.msra.mxu0 %v23791_v28  ;;  %18897 = vmatpush3.msra.mxu1 %v23746_v40 }
 0x1e1   : > { %18862 = vmatprep.mubr.f32.mxu0 %v23788_v32  ;;  %18898 = vmatprep.subr.mxu1 %v23763_v58  ;;  %v1307_v32 = vpop.permute.xlu0 %1306 }
 0x1e2   : > { %18906 = vmatprep.subr.mxu0 %v23612_v24  ;;  %18863 = vmatmul.mubr.f32.vlgmr.msra.gmra.mxu0 %v23794_v62 }
 0x1e3   : > { %18899 = vmatpush3.msra.mxu1 %v23763_v58  ;;  %18907 = vmatpush3.msra.mxu0 %v23612_v24  ;;  %v29050_v24 = vld [vmem:[#allocation79_spill] sm:$0xff] }
 0x1e4   : > { %18900 = vmatprep.mubr.f32.mxu1 %v29047_v51  ;;  %18908 = vmatprep.subr.mxu0 %v23619_v27 }
 0x1e5   : > { %18944 = vmatprep.subr.mxu1 %v23578_v6  ;;  %18901 = vmatmul.mubr.f32.vlgmr.msra.gmra.mxu1 %v2185_v1  ;;  %v23968_v1 = vand.u32 127, %v1303_v0 }
 0x1e6   : > { %18909 = vmatpush3.msra.mxu0 %v23619_v27  ;;  %18945 = vmatpush3.msra.mxu1 %v23578_v6  ;;  %v28626_v6 = vmov 0.0  }
 0x1e7   : > { %18910 = vmatprep.subr.mxu0 %v23631_v34  ;;  %18946 = vmatprep.subr.mxu1 %v23582_v11  ;;  %vm1317_vm2 = vcmp.eq.s32.totalorder %v23968_v1, %v1307_v32 }
 0x1e8   : > { %18911 = vmatpush3.msra.mxu0 %v23631_v34  ;;  %18947 = vmatpush3.msra.mxu1 %v23582_v11  ;;  %v23986_v11 = vsel %vm1317_vm2, 1.0, %v28626_v6  ;;  %v1313_v34 = vpop.permute.xlu1 %1312 }
 0x1e9   : > { %18912 = vmatprep.subr.mxu0 %v23649_v50  ;;  %18948 = vmatprep.subr.mxu1 %v23588_v15  ;;  %29048 = vst [vmem:[#allocation85_spill] sm:$0xff] %v23986_v11  ;;  %vm1319_vm5 = vcmp.eq.s32.totalorder %v23968_v1, %v1313_v34 }
 0x1ea   : > { %18913 = vmatpush3.msra.mxu0 %v23649_v50  ;;  %18949 = vmatpush3.msra.mxu1 %v23588_v15  ;;  %v2864_v15 = vsel %vm2862_vm3, %v23986_v11, 0 }
 0x1eb   : > { %18914 = vmatprep.subr.mxu0 %v23663_v7  ;;  %18950 = vmatprep.subr.mxu1 %v23602_v21 }
 0x1ec   : > { %18915 = vmatpush3.msra.mxu0 %v23663_v7  ;;  %18951 = vmatpush3.msra.mxu1 %v23602_v21  ;;  %v24002_v21 = vsub.f32 %v2864_v15, %v2864_v15 }
 0x1ed   : > { %18916 = vmatprep.subr.mxu0 %v23677_v43  ;;  %18952 = vmatprep.subr.mxu1 %v23614_v25 }
 0x1ee   : > { %18917 = vmatpush3.msra.mxu0 %v23677_v43  ;;  %18953 = vmatpush3.msra.mxu1 %v23614_v25  ;;  %29049 = vst [vmem:[#allocation86_spill] sm:$0xff] %v24002_v21  ;;  %v24013_v25 = vand.u32 4294901760, %v24002_v21 }
 0x1ef   : > { %18918 = vmatprep.subr.mxu0 %v23690_v13  ;;  %18954 = vmatprep.subr.mxu1 %v23626_v30 }
 0x1f0   : > { %18919 = vmatpush3.msra.mxu0 %v23690_v13  ;;  %18955 = vmatpush3.msra.mxu1 %v23626_v30  ;;  %29051 = vst [vmem:[#allocation79_spill] sm:$0xff] %v24013_v25  ;;  %v2945_v27 = vsub.f32 %v24002_v21, %v24013_v25  ;;  %v24052_v13 = vsel %vm1319_vm5, 1.0, %v28626_v6 }
 0x1f1   : > { %18920 = vmatprep.subr.mxu0 %v23702_v47  ;;  %18956 = vmatprep.subr.mxu1 %v23640_v46  ;;  %29054 = vst [vmem:[#allocation89_spill] sm:$0xff] %v24052_v13 }
 0x1f2   : > { %18921 = vmatpush3.msra.mxu0 %v23702_v47  ;;  %18957 = vmatpush3.msra.mxu1 %v23640_v46  ;;  %v24035_v30 = vand.u32 4294901760, %v2945_v27  ;;  %v1342_v27 = vsel %vm1334_vm7, %v23852_v36, 0.0 }
 0x1f3   : > { %18922 = vmatprep.subr.mxu0 %v23714_v4  ;;  %18958 = vmatprep.subr.mxu1 %v23654_v56  ;;  %v3469_v34 = vsel %vm3467_vm0, %v1342_v27, 0 }
 0x1f4   : > { %18923 = vmatpush3.msra.mxu0 %v23714_v4  ;;  %18959 = vmatpush3.msra.mxu1 %v23654_v56  ;;  %29052 = vst [vmem:[#allocation87_spill] sm:$0xff] %v24035_v30  ;;  %v2870_v4 = vsel %vm2862_vm3, %v24052_v13, 0  ;;  %v24126_v17 = vand.u32 4294901760, %v3469_v34 }
 0x1f5   : > { %18924 = vmatprep.subr.mxu0 %v23726_v23  ;;  %18960 = vmatprep.subr.mxu1 %v23668_v26  ;;  %v24064_v33 = vsub.f32 %v2870_v4, %v2870_v4 }
 0x1f6   : > { %18925 = vmatpush3.msra.mxu0 %v23726_v23  ;;  %18961 = vmatpush3.msra.mxu1 %v23668_v26  ;;  %29065 = vst [vmem:[#allocation100_spill] sm:$0xff] %v24126_v17  ;;  %v24132_v36 = vsub.f32 %v3469_v34, %v24126_v17 }
 0x1f7   : > { %18926 = vmatprep.subr.mxu0 %v23739_v61  ;;  %18962 = vmatprep.subr.mxu1 %v23682_v59  ;;  %29057 = vst [vmem:[#allocation92_spill] sm:$0xff] %v24064_v33 }
 0x1f8   : > { %18927 = vmatpush3.msra.mxu0 %v23739_v61  ;;  %18963 = vmatpush3.msra.mxu1 %v23682_v59  ;;  %29066 = vst [vmem:[#allocation101_spill] sm:$0xff] %v24132_v36 }
 0x1f9   : > { %18928 = vmatprep.subr.mxu0 %v23758_v42  ;;  %18964 = vmatprep.subr.mxu1 %v23695_v31 }
 0x1fa   : > { %18929 = vmatpush3.msra.mxu0 %v23758_v42  ;;  %18965 = vmatpush3.msra.mxu1 %v23695_v31 }
 0x1fb   : > { %18930 = vmatprep.subr.mxu0 %v23776_v10  ;;  %18966 = vmatprep.subr.mxu1 %v23708_v3 }
 0x1fc   : > { %18931 = vmatpush3.msra.mxu0 %v23776_v10  ;;  %18967 = vmatpush3.msra.mxu1 %v23708_v3 }
 0x1fd   : > { %18932 = vmatprep.subr.mxu0 %v29050_v24  ;;  %18968 = vmatprep.subr.mxu1 %v23720_v12 }
 0x1fe   : > { %18865 = vmatprep.mubr.f32.mxu0 %v23886_v29  ;;  %18933 = vmatpush3.msra.mxu0 %v29050_v24 }
 0x1ff   : > { %18969 = vmatpush3.msra.mxu1 %v23720_v12  ;;  %18866 = vmatmul.mubr.f32.gmra.mxu0 %v23891_v45 }
 0x200   : > { %18934 = vmatprep.subr.mxu0 %v23800_v20  ;;  %18970 = vmatprep.subr.mxu1 %v23733_v48 }
 0x201   : > { %18903 = vmatprep.mubr.f32.mxu1 %v2195_v55  ;;  %18935 = vmatpush3.msra.mxu0 %v23800_v20  ;;  %v24074_v20 = vand.u32 4294901760, %v24064_v33 }
 0x202   : > { %18971 = vmatpush3.msra.mxu1 %v23733_v48  ;;  %18936 = vmatprep.subr.mxu0 %v23810_v16 }
 0x203   : > { %18904 = vmatmul.mubr.f32.gmra.mxu1 %v2205_v9  ;;  %18972 = vmatprep.subr.mxu1 %v23746_v40  ;;  %29060 = vst [vmem:[#allocation95_spill] sm:$0xff] %v24074_v20  ;;  %v2965_v37 = vsub.f32 %v24064_v33, %v24074_v20 }
 0x204   : > { %18937 = vmatpush3.msra.mxu0 %v23810_v16  ;;  %18938 = vmatprep.mubr.f32.mxu0 %v23765_v2 }
 0x205   : > { %18973 = vmatpush3.msra.mxu1 %v23746_v40  ;;  %18939 = vmatmul.mubr.f32.vlgmr.msra.gmra.mxu0 %v23771_v35  ;;  %v24087_v54 = vand.u32 4294901760, %v2965_v37 }
 0x206   : > { %18974 = vmatprep.subr.mxu1 %v23763_v58  ;;  %18976 = vmatprep.mubr.f32.mxu1 %v23765_v2 }
 0x207   : > { %18975 = vmatpush3.msra.mxu1 %v23763_v58  ;;  %18941 = vmatprep.mubr.f32.mxu0 %v23870_v22  ;;  %29063 = vst [vmem:[#allocation98_spill] sm:$0xff] %v24087_v54 }
 0x208   : > { %18977 = vmatmul.mubr.f32.vlgmr.msra.gmra.mxu1 %v23771_v35 }
 0x209   : > { %18942 = vmatmul.mubr.f32.gmra.mxu0 %v23877_v38  ;;  %18979 = vmatprep.mubr.f32.mxu1 %v23870_v22 }
 0x20a   : > { %18986 = vmatprep.mubr.f32.mxu0 %v24035_v30 }
 0x20c   : > { %18980 = vmatmul.mubr.f32.gmra.mxu1 %v23877_v38 }
 0x20d   : > { %18996 = vmatprep.mubr.msk.f32.mxu1 %vm2862_vm3, %v23986_v11 }
 0x212   : > { %v18578_v46 = vpop.f32.mrf.mxu0 }
 0x214   : > { %v1479_v56 = vpop.f32.mrf.mxu0 }
 0x21a   : > { %v18613_v7 = vpop.f32.mrf.mxu1 }
 0x21b   : > { %v1647_v41 = vadd.f32 %v18613_v7, %v18578_v46  ;;  %v24135_v46 = vand.u32 4294901760, %v24132_v36 }
 0x21c   : > { %v1640_v31 = vpop.f32.mrf.mxu1 }
 0x21d   : > { %v1641_v42 = vadd.f32 %v1640_v31, %v1479_v56  ;;  %29067 = vst [vmem:[#allocation102_spill] sm:$0xff] %v24135_v46 }
 0x223   : > { %v1310_v50 = vpop.permute.xlu0 %1309 }
 0x224   : > { %vm1318_vm4 = vcmp.eq.s32.totalorder %v23968_v1, %v1310_v50  ;;  %v3546_v50 = vsub.f32 %v24132_v36, %v24135_v46 }
 0x225   : > { %v24049_v26 = vsel %vm1318_vm4, 1.0, %v28626_v6 }
 0x226   : > { %29053 = vst [vmem:[#allocation88_spill] sm:$0xff] %v24049_v26  ;;  %v2867_v47 = vsel %vm2862_vm3, %v24049_v26, 0  ;;  %v24139_v56 = vand.u32 4294901760, %v3546_v50 }
 0x227   : > { %v24062_v48 = vsub.f32 %v2867_v47, %v2867_v47 }
 0x228   : > { %v1316_v43 = vpop.permute.xlu1 %1315  ;;  %29068 = vst [vmem:[#allocation103_spill] sm:$0xff] %v24139_v56 }
 0x229   : > { %vm1320_vm6 = vcmp.eq.s32.totalorder %v23968_v1, %v1316_v43  ;;  %29056 = vst [vmem:[#allocation91_spill] sm:$0xff] %v24062_v48  ;;  %v24069_v10 = vand.u32 4294901760, %v24062_v48 }
 0x22a   : > { %v24058_v3 = vsel %vm1320_vm6, 1.0, %v28626_v6  ;;  %v1359_v6 = vld [vmem:[#allocation8 + $0x30] sm:$0xff] }
 0x22b   : > { %29055 = vst [vmem:[#allocation90_spill] sm:$0xff] %v24058_v3  ;;  %v2873_v40 = vsel %vm2862_vm3, %v24058_v3, 0  ;;  %29058 = vst [vmem:[#allocation93_spill] sm:$0xff] %v24069_v10  ;;  %v2955_v0 = vsub.f32 %v24062_v48, %v24069_v10 }
 0x22c   : > { %v24071_v28 = vsub.f32 %v2873_v40, %v2873_v40 }
 0x22d   : > { %v24083_v55 = vand.u32 4294901760, %v2955_v0 }
 0x22e   : > { %29059 = vst [vmem:[#allocation94_spill] sm:$0xff] %v24071_v28  ;;  %v24079_v60 = vand.u32 4294901760, %v24071_v28 }
 0x22f   : > { %29062 = vst [vmem:[#allocation97_spill] sm:$0xff] %v24083_v55 }
 0x230   : > { %29061 = vst [vmem:[#allocation96_spill] sm:$0xff] %v24079_v60  ;;  %v2975_v9 = vsub.f32 %v24071_v28, %v24079_v60 }
 0x232   : > { %v24090_v5 = vand.u32 4294901760, %v2975_v9 }
 0x233   : > { %v18648_v59 = vpop.f32.mrf.mxu0 }
 0x234   : > { %v1758_v39 = vadd.f32 %v18648_v59, %v1647_v41  ;;  %29064 = vst [vmem:[#allocation99_spill] sm:$0xff] %v24090_v5 }
 0x235   : > { %v1750_v12 = vpop.f32.mrf.mxu0 }
 0x236   : > { %v1751_v2 = vadd.f32 %v1750_v12, %v1641_v42 }
 0x23c   : > { %v18683_v23 = vpop.f32.mrf.mxu1 }
 0x23d   : > { %v1855_v35 = vadd.f32 %v18683_v23, %v1758_v39 }
 0x23e   : > { %v1846_v58 = vpop.f32.mrf.mxu1 }
 0x23f   : > { %v1847_v16 = vadd.f32 %v1846_v58, %v1751_v2 }
 0x255   : > { %v18718_v61 = vpop.f32.mrf.mxu0 }
 0x256   : > { %v1980_v63 = vadd.f32 %v18718_v61, %v1855_v35 }
 0x257   : > { %v1973_v62 = vpop.f32.mrf.mxu0 }
 0x258   : > { %v1974_v53 = vadd.f32 %v1973_v62, %v1847_v16 }
 0x25e   : > { %v18753_v44 = vpop.f32.mrf.mxu1 }
 0x25f   : > { %v2073_v14 = vadd.f32 %v18753_v44, %v1980_v63 }
 0x260   : > { %v2066_v18 = vpop.f32.mrf.mxu1 }
 0x261   : > { %v2904_v22 = vand.u32 4294901760, %v2073_v14  ;;  %v2067_v38 = vadd.f32 %v2066_v18, %v1974_v53 }
 0x263   : > { %v3012_v29 = vsub.f32 %v2073_v14, %v2904_v22  ;;  %v2907_v45 = vand.u32 4294901760, %v2067_v38  ;;  %18982 = vmatprep.subr.mxu0 %v2904_v22 }
 0x264   : > { %18983 = vmatpush3.msra.mxu0 %v2904_v22 }
 0x265   : > { %v3019_v19 = vsub.f32 %v2067_v38, %v2907_v45  ;;  %18984 = vmatprep.subr.mxu0 %v2907_v45  ;;  %v3013_v57 = vand.u32 4294901760, %v3012_v29 }
 0x266   : > { %18985 = vmatpush3.msra.mxu0 %v2907_v45 }
 0x267   : > { %18987 = vmatmul.mubr.f32.vlgmr.msra.gmra.mxu0 %v24083_v55  ;;  %19002 = vmatprep.subr.mxu0 %v3012_v29  ;;  %v3014_v51 = vsub.f32 %v3012_v29, %v3013_v57  ;;  %v3020_v1 = vand.u32 4294901760, %v3019_v19 }
 0x268   : > { %19003 = vmatpush3.msra.mxu0 %v3012_v29  ;;  %18989 = vmatprep.mubr.f32.mxu0 %v24087_v54 }
 0x269   : > { %19004 = vmatprep.subr.mxu0 %v3019_v19  ;;  %v3015_v32 = vand.u32 4294901760, %v3014_v51  ;;  %v3021_v15 = vsub.f32 %v3019_v19, %v3020_v1 }
 0x26a   : > { %19005 = vmatpush3.msra.mxu0 %v3019_v19 }
 0x26b   : > { %18990 = vmatmul.mubr.f32.gmra.mxu0 %v24090_v5  ;;  %18992 = vmatprep.subr.mxu1 %v3015_v32  ;;  %v3022_v24 = vand.u32 4294901760, %v3021_v15 }
 0x26c   : > { %19022 = vmatprep.subr.mxu0 %v3013_v57  ;;  %18993 = vmatpush3.msra.mxu1 %v3015_v32 }
 0x26d   : > { %19006 = vmatprep.mubr.f32.mxu0 %v24002_v21  ;;  %18994 = vmatprep.subr.mxu1 %v3022_v24 }
 0x26e   : > { %18995 = vmatpush3.msra.mxu1 %v3022_v24 }
 0x26f   : > { %18997 = vmatmul.mubr.msk.f32.vlgmr.msra.gmra.mxu1 %vm2862_vm3, %v24049_v26  ;;  %19007 = vmatmul.mubr.f32.vlgmr.msra.gmra.mxu0 %v24062_v48 }
 0x270   : > { %19012 = vmatprep.subr.mxu1 %v2904_v22  ;;  %19023 = vmatpush3.msra.mxu0 %v3013_v57 }
 0x271   : > { %18999 = vmatprep.mubr.msk.f32.mxu1 %vm2862_vm3, %v24052_v13  ;;  %19009 = vmatprep.mubr.f32.mxu0 %v24064_v33 }
 0x272   : > { %19013 = vmatpush3.msra.mxu1 %v2904_v22  ;;  %19024 = vmatprep.subr.mxu0 %v3020_v1 }
 0x273   : > { %19014 = vmatprep.subr.mxu1 %v2907_v45  ;;  %19025 = vmatpush3.msra.mxu0 %v3020_v1 }
 0x274   : > { %19015 = vmatpush3.msra.mxu1 %v2907_v45  ;;  %19010 = vmatmul.mubr.f32.gmra.mxu0 %v24071_v28 }
 0x275   : > { %19000 = vmatmul.mubr.msk.f32.gmra.mxu1 %vm2862_vm3, %v24058_v3  ;;  %19032 = vmatprep.subr.mxu1 %v2904_v22 }
 0x276   : > { %19016 = vmatprep.mubr.f32.mxu1 %v24013_v25  ;;  %19026 = vmatprep.mubr.msk.f32.mxu0 %vm2862_vm3, %v23986_v11 }
 0x278   : > { %19027 = vmatmul.mubr.msk.f32.vlgmr.msra.gmra.mxu0 %vm2862_vm3, %v24049_v26 }
 0x279   : > { %19017 = vmatmul.mubr.f32.vlgmr.msra.gmra.mxu1 %v24069_v10  ;;  %19029 = vmatprep.mubr.msk.f32.mxu0 %vm2862_vm3, %v24052_v13 }
 0x27a   : > { %19033 = vmatpush3.msra.mxu1 %v2904_v22  ;;  %19019 = vmatprep.mubr.f32.mxu1 %v24074_v20 }
 0x27b   : > { %19034 = vmatprep.subr.mxu1 %v2907_v45 }
 0x27c   : > { %19035 = vmatpush3.msra.mxu1 %v2907_v45  ;;  %19030 = vmatmul.mubr.msk.f32.gmra.mxu0 %vm2862_vm3, %v24058_v3 }
 0x27d   : > { %19020 = vmatmul.mubr.f32.gmra.mxu1 %v24079_v60  ;;  %19050 = vmatprep.mubr.f32.mxu0 %v24139_v56 }
 0x27e   : > { %19036 = vmatprep.mubr.msk.f32.mxu1 %vm2862_vm3, %v23986_v11  ;;  %v18788_v7 = vpop.f32.mrf.mxu0 }
 0x280   : > { %v2179_v43 = vpop.f32.mrf.mxu0 }
 0x281   : > { %19037 = vmatmul.mubr.msk.f32.vlgmr.msra.gmra.mxu1 %vm2862_vm3, %v24049_v26  ;;  %v18826_v59 = vpop.f32.mrf.mxu1 }
 0x282   : > { %19039 = vmatprep.mubr.msk.f32.mxu1 %vm2862_vm3, %v24052_v13  ;;  %v2367_v44 = vadd.f32 %v18826_v59, %v18788_v7 }
 0x283   : > { %v2360_v47 = vpop.f32.mrf.mxu1 }
 0x284   : > { %v2361_v14 = vadd.f32 %v2360_v47, %v2179_v43 }
 0x285   : > { %19040 = vmatmul.mubr.msk.f32.gmra.mxu1 %vm2862_vm3, %v24058_v3 }
 0x286   : > { %19061 = vmatprep.mubr.f32.mxu1 %v24126_v17 }
 0x29c   : > { %v18791_v31 = vpop.f32.mrf.mxu0 }
 0x29e   : > { %v2199_v4 = vpop.f32.mrf.mxu0 }
 0x29f   : > { %v18829_v12 = vpop.f32.mrf.mxu1 }
 0x2a0   : > { %v2379_v18 = vadd.f32 %v18829_v12, %v18791_v31 }
 0x2a1   : > { %v2372_v41 = vpop.f32.mrf.mxu1 }
 0x2a2   : > { %v18864_v23 = vpop.f32.mrf.mxu0  ;;  %v2373_v29 = vadd.f32 %v2372_v41, %v2199_v4 }
 0x2a3   : > { %v2490_v37 = vadd.f32 %v18864_v23, %v2367_v44 }
 0x2a4   : > { %v2482_v61 = vpop.f32.mrf.mxu0 }
 0x2a5   : > { %v18902_v40 = vpop.f32.mrf.mxu1  ;;  %v2483_v45 = vadd.f32 %v2482_v61, %v2361_v14 }
 0x2a6   : > { %v2601_v57 = vadd.f32 %v18902_v40, %v2490_v37 }
 0x2a7   : > { %v2592_v39 = vpop.f32.mrf.mxu1 }
 0x2a8   : > { %v2593_v32 = vadd.f32 %v2592_v39, %v2483_v45 }
 0x2bf   : > { %v18867_v42 = vpop.f32.mrf.mxu0 }
 0x2c0   : > { %v2504_v51 = vadd.f32 %v18867_v42, %v2379_v18 }
 0x2c1   : > { %v2496_v58 = vpop.f32.mrf.mxu0 }
 0x2c2   : > { %v2497_v15 = vadd.f32 %v2496_v58, %v2373_v29 }
 0x2c3   : > { %v18905_v2 = vpop.f32.mrf.mxu1 }
 0x2c4   : > { %v2617_v34 = vadd.f32 %v18905_v2, %v2504_v51 }
 0x2c5   : > { %v18940_v35 = vpop.f32.mrf.mxu0  ;;  %v2608_v62 = vpop.f32.mrf.mxu1 }
 0x2c6   : > { %v2742_v50 = vadd.f32 %v18940_v35, %v2601_v57  ;;  %v2609_v59 = vadd.f32 %v2608_v62, %v2497_v15 }
 0x2c7   : > { %v2735_v16 = vpop.f32.mrf.mxu0 }
 0x2c8   : > { %v18978_v53 = vpop.f32.mrf.mxu1  ;;  %v2736_v31 = vadd.f32 %v2735_v16, %v2593_v32 }
 0x2c9   : > { %v18943_v63 = vpop.f32.mrf.mxu0  ;;  %v2847_v23 = vadd.f32 %v18978_v53, %v2742_v50 }
 0x2ca   : > { %v2840_v22 = vpop.f32.mrf.mxu1  ;;  %v2754_v4 = vadd.f32 %v18943_v63, %v2617_v34 }
 0x2cb   : > { %v2747_v0 = vpop.f32.mrf.mxu0  ;;  %v2841_v41 = vadd.f32 %v2840_v22, %v2736_v31 }
 0x2cc   : > { %v18981_v9 = vpop.f32.mrf.mxu1  ;;  %v2748_v61 = vadd.f32 %v2747_v0, %v2609_v59 }
 0x2cd   : > { %v2859_v14 = vadd.f32 %v18981_v9, %v2754_v4 }
 0x2ce   : > { %v2852_v24 = vpop.f32.mrf.mxu1 }
 0x2cf   : > { %v2853_v2 = vadd.f32 %v2852_v24, %v2748_v61 }
 0x327   : > { %v18988_v38 = vpop.f32.mrf.mxu0 }
 0x328   : > { %v2959_v44 = vadd.f32 %v18988_v38, %v2847_v23 }
 0x329   : > { %v2948_v19 = vpop.f32.mrf.mxu0 }
 0x32a   : > { %v2949_v39 = vadd.f32 %v2948_v19, %v2841_v41 }
 0x32b   : > { %v18991_v1 = vpop.f32.mrf.mxu0 }
 0x32c   : > { %v2979_v35 = vadd.f32 %v18991_v1, %v2859_v14  ;;  %v24143_v1 = vand.u32 4294901760, %v23873_v52 }
 0x32d   : > { %v2968_v27 = vpop.f32.mrf.mxu0 }
 0x32e   : > { %v2969_v16 = vadd.f32 %v2968_v27, %v2853_v2  ;;  %29069 = vst [vmem:[#allocation104_spill] sm:$0xff] %v24143_v1  ;;  %v24149_v41 = vsub.f32 %v23873_v52, %v24143_v1 }
 0x32f   : > { %v18998_v7 = vpop.f32.mrf.mxu1  ;;  %v19008_v43 = vpop.f32.mrf.mxu0 }
 0x330   : > { %v3066_v58 = vadd.f32 %v18998_v7, %v2959_v44  ;;  %29070 = vst [vmem:[#allocation105_spill] sm:$0xff] %v24149_v41 }
 0x331   : > { %v3059_v47 = vpop.f32.mrf.mxu1  ;;  %v3153_v12 = vpop.f32.mrf.mxu0 }
 0x332   : > { %v3060_v29 = vadd.f32 %v3059_v47, %v2949_v39  ;;  %v3161_v57 = vadd.f32 %v19008_v43, %v3066_v58 }
 0x334   : > { %v19011_v40 = vpop.f32.mrf.mxu0  ;;  %v3154_v63 = vadd.f32 %v3153_v12, %v3060_v29 }
 0x335   : > { %v19001_v42 = vpop.f32.mrf.mxu1 }
 0x336   : > { %v3167_v18 = vpop.f32.mrf.mxu0  ;;  %v3078_v51 = vadd.f32 %v19001_v42, %v2979_v35  ;;  %v24162_v35 = vand.u32 4294901760, %v24149_v41 }
 0x337   : > { %v3071_v37 = vpop.f32.mrf.mxu1 }
 0x338   : > { %v19028_v62 = vpop.f32.mrf.mxu0  ;;  %v3072_v22 = vadd.f32 %v3071_v37, %v2969_v16  ;;  %v3175_v15 = vadd.f32 %v19011_v40, %v3078_v51  ;;  %29071 = vst [vmem:[#allocation106_spill] sm:$0xff] %v24162_v35  ;;  %v3556_v51 = vsub.f32 %v24149_v41, %v24162_v35 }
 0x339   : > { %v19018_v45 = vpop.f32.mrf.mxu1 }
 0x33a   : > { %v3258_v0 = vadd.f32 %v19018_v45, %v3161_v57  ;;  %v3350_v38 = vpop.f32.mrf.mxu0  ;;  %v3168_v34 = vadd.f32 %v3167_v18, %v3072_v22 }
 0x33b   : > { %v3249_v53 = vpop.f32.mrf.mxu1 }
 0x33c   : > { %v3250_v9 = vadd.f32 %v3249_v53, %v3154_v63  ;;  %v3357_v50 = vadd.f32 %v19028_v62, %v3258_v0  ;;  %v19031_v24 = vpop.f32.mrf.mxu0 }
 0x33d   : > { %v19021_v32 = vpop.f32.mrf.mxu1 }
 0x33e   : > { %v3274_v7 = vadd.f32 %v19021_v32, %v3175_v15  ;;  %v3351_v27 = vadd.f32 %v3350_v38, %v3250_v9  ;;  %v3362_v61 = vpop.f32.mrf.mxu0  ;;  %v24188_v15 = vand.u32 4294901760, %v3556_v51 }
 0x33f   : > { %v3265_v19 = vpop.f32.mrf.mxu1 }
 0x340   : > { %v3266_v43 = vadd.f32 %v3265_v19, %v3168_v34  ;;  %v3369_v12 = vadd.f32 %v19031_v24, %v3274_v7  ;;  %29072 = vst [vmem:[#allocation107_spill] sm:$0xff] %v24188_v15 }
 0x341   : > { %v19038_v59 = vpop.f32.mrf.mxu1 }
 0x342   : > { %v3448_v31 = vadd.f32 %v19038_v59, %v3357_v50  ;;  %v3363_v40 = vadd.f32 %v3362_v61, %v3266_v43 }
 0x343   : > { %v3441_v47 = vpop.f32.mrf.mxu1 }
 0x344   : > { %v24145_v23 = vmax.f32 %v3448_v31, 0.0  ;;  %v3442_v4 = vadd.f32 %v3441_v47, %v3351_v27 }
 0x345   : > { %v19041_v44 = vpop.f32.mrf.mxu1 }
 0x346   : > { %v24152_v42 = vand.u32 4294901760, %v24145_v23  ;;  %v24154_v14 = vmax.f32 %v3442_v4, 0.0  ;;  %v3460_v39 = vadd.f32 %v19041_v44, %v3369_v12 }
 0x347   : > { %v3453_v58 = vpop.f32.mrf.mxu1 }
 0x348   : > { %v24157_v18 = vand.u32 4294901760, %v24154_v14  ;;  %v24159_v37 = vmax.f32 %v3460_v39, 0.0  ;;  %v3454_v2 = vadd.f32 %v3453_v58, %v3363_v40  ;;  %v3603_v52 = vsub.f32 %v24145_v23, %v24152_v42 }
 0x34a   : > { %v24167_v29 = vand.u32 4294901760, %v24159_v37  ;;  %v24169_v45 = vmax.f32 %v3454_v2, 0.0  ;;  %v3610_v62 = vsub.f32 %v24154_v14, %v24157_v18  ;;  %v3604_v22 = vand.u32 4294901760, %v3603_v52 }
 0x34c   : > { %v3589_v16 = vsub.f32 %v24159_v37, %v24167_v29  ;;  %v24176_v57 = vand.u32 4294901760, %v24169_v45  ;;  %19042 = vmatprep.subr.mxu0 %v24167_v29  ;;  %v3611_v32 = vand.u32 4294901760, %v3610_v62  ;;  %v3605_v34 = vsub.f32 %v3603_v52, %v3604_v22 }
 0x34d   : > { %19043 = vmatpush3.msra.mxu0 %v24167_v29 }
 0x34e   : > { %v3596_v53 = vsub.f32 %v24169_v45, %v24176_v57  ;;  %19044 = vmatprep.subr.mxu0 %v24176_v57  ;;  %v3590_v63 = vand.u32 4294901760, %v3589_v16  ;;  %v3612_v7 = vsub.f32 %v3610_v62, %v3611_v32  ;;  %v3606_v24 = vand.u32 4294901760, %v3605_v34 }
 0x34f   : > { %19045 = vmatpush3.msra.mxu0 %v24176_v57 }
 0x350   : > { %19046 = vmatprep.subr.mxu0 %v24152_v42  ;;  %v3591_v0 = vsub.f32 %v3589_v16, %v3590_v63  ;;  %v3597_v38 = vand.u32 4294901760, %v3596_v53  ;;  %v3613_v59 = vand.u32 4294901760, %v3612_v7 }
 0x351   : > { %19047 = vmatpush3.msra.mxu0 %v24152_v42 }
 0x352   : > { %19048 = vmatprep.subr.mxu0 %v24157_v18  ;;  %v3592_v9 = vand.u32 4294901760, %v3591_v0  ;;  %v3598_v19 = vsub.f32 %v3596_v53, %v3597_v38 }
 0x353   : > { %19049 = vmatpush3.msra.mxu0 %v24157_v18 }
 0x354   : > { %19053 = vmatprep.subr.mxu1 %v3592_v9  ;;  %19064 = vmatprep.subr.mxu0 %v3589_v16  ;;  %v3599_v50 = vand.u32 4294901760, %v3598_v19 }
 0x355   : > { %19051 = vmatmul.mubr.f32.vlgmr.msra.gmra.mxu0 %v24188_v15  ;;  %19054 = vmatpush3.msra.mxu1 %v3592_v9 }
 0x356   : > { %19065 = vmatpush3.msra.mxu0 %v3589_v16  ;;  %19055 = vmatprep.subr.mxu1 %v3599_v50 }
 0x357   : > { %19066 = vmatprep.subr.mxu0 %v3596_v53  ;;  %19056 = vmatpush3.msra.mxu1 %v3599_v50 }
 0x358   : > { %19067 = vmatpush3.msra.mxu0 %v3596_v53  ;;  %19057 = vmatprep.subr.mxu1 %v3606_v24 }
 0x359   : > { %19068 = vmatprep.subr.mxu0 %v3603_v52  ;;  %19058 = vmatpush3.msra.mxu1 %v3606_v24 }
 0x35a   : > { %19069 = vmatpush3.msra.mxu0 %v3603_v52  ;;  %19059 = vmatprep.subr.mxu1 %v3613_v59 }
 0x35b   : > { %19070 = vmatprep.subr.mxu0 %v3610_v62  ;;  %19060 = vmatpush3.msra.mxu1 %v3613_v59  ;;  %v1368_v59 = vld [vmem:[#allocation8 + $0x78] sm:$0xff] }
 0x35c   : > { %19071 = vmatpush3.msra.mxu0 %v3610_v62  ;;  %19072 = vmatprep.mubr.f32.mxu0 %v24132_v36 }
 0x35d   : > { %19075 = vmatprep.subr.mxu1 %v24167_v29  ;;  %19086 = vmatprep.subr.mxu0 %v3590_v63 }
 0x35e   : > { %19062 = vmatmul.mubr.f32.vlgmr.msra.gmra.mxu1 %v24143_v1  ;;  %19073 = vmatmul.mubr.f32.vlgmr.msra.gmra.mxu0 %v24149_v41 }
 0x35f   : > { %19076 = vmatpush3.msra.mxu1 %v24167_v29  ;;  %19087 = vmatpush3.msra.mxu0 %v3590_v63 }
 0x360   : > { %19077 = vmatprep.subr.mxu1 %v24176_v57  ;;  %19088 = vmatprep.subr.mxu0 %v3597_v38 }
 0x361   : > { %19078 = vmatpush3.msra.mxu1 %v24176_v57  ;;  %19089 = vmatpush3.msra.mxu0 %v3597_v38 }
 0x362   : > { %19079 = vmatprep.subr.mxu1 %v24152_v42  ;;  %19090 = vmatprep.subr.mxu0 %v3604_v22 }
 0x363   : > { %19080 = vmatpush3.msra.mxu1 %v24152_v42  ;;  %19091 = vmatpush3.msra.mxu0 %v3604_v22 }
 0x364   : > { %19081 = vmatprep.subr.mxu1 %v24157_v18  ;;  %19092 = vmatprep.subr.mxu0 %v3611_v32 }
 0x365   : > { %19082 = vmatpush3.msra.mxu1 %v24157_v18  ;;  %19083 = vmatprep.mubr.f32.mxu1 %v24135_v46 }
 0x366   : > { %19093 = vmatpush3.msra.mxu0 %v3611_v32  ;;  %19094 = vmatprep.mubr.f32.mxu0 %v24126_v17 }
 0x367   : > { %19084 = vmatmul.mubr.f32.vlgmr.msra.gmra.mxu1 %v24162_v35  ;;  %19095 = vmatmul.mubr.f32.vlgmr.msra.gmra.mxu0 %v24143_v1 }
 0x368   : > { %19097 = vmatprep.subr.mxu1 %v24167_v29  ;;  %19112 = vmatprep.mubr.f32.mxu0 %v24035_v30 }
 0x369   : > { %19098 = vmatpush3.msra.mxu1 %v24167_v29  ;;  %19105 = vmatprep.mubr.f32.mxu1 %v24126_v17 }
 0x36a   : > { %19099 = vmatprep.subr.mxu1 %v24176_v57 }
 0x36b   : > { %19100 = vmatpush3.msra.mxu1 %v24176_v57 }
 0x36c   : > { %19101 = vmatprep.subr.mxu1 %v24152_v42 }
 0x36d   : > { %19102 = vmatpush3.msra.mxu1 %v24152_v42 }
 0x36e   : > { %19103 = vmatprep.subr.mxu1 %v24157_v18 }
 0x36f   : > { %19104 = vmatpush3.msra.mxu1 %v24157_v18 }
 0x370   : > { %19106 = vmatmul.mubr.f32.vlgmr.msra.gmra.mxu1 %v24143_v1 }
 0x371   : > { %19122 = vmatprep.mubr.msk.f32.mxu1 %vm2862_vm3, %v23986_v11 }
 0x415   : > { %v19052_v27 = vpop.f32.mrf.mxu0 }
 0x417   : > { %v3549_v43 = vpop.f32.mrf.mxu0 }
 0x41e   : > { %v19063_v31 = vpop.f32.mrf.mxu1  ;;  %v19074_v12 = vpop.f32.mrf.mxu0 }
 0x41f   : > { %v3657_v4 = vadd.f32 %v19063_v31, %v19052_v27  ;;  %v24254_v27 = vand.u32 4294901760, %v1368_v59 }
 0x420   : > { %v3650_v47 = vpop.f32.mrf.mxu1  ;;  %v3736_v40 = vpop.f32.mrf.mxu0 }
 0x421   : > { %v3651_v61 = vadd.f32 %v3650_v47, %v3549_v43  ;;  %v3744_v39 = vadd.f32 %v19074_v12, %v3657_v4  ;;  %v1367_v43 = vld [vmem:[#allocation8 + $0x70] sm:$0xff]  ;;  %v24257_v31 = vsub.f32 %v1368_v59, %v24254_v27  ;;  %v1366_v12 = vld [vmem:[#allocation8 + $0x68] sm:$0xff] }
 0x422   : > { %v24259_v47 = vand.u32 4294901760, %v1367_v43 }
 0x423   : > { %v3737_v2 = vadd.f32 %v3736_v40, %v3651_v61  ;;  %v24264_v4 = vand.u32 4294901760, %v24257_v31  ;;  %v1365_v40 = vld [vmem:[#allocation8 + $0x60] sm:$0xff] }
 0x424   : > { %v24267_v61 = vsub.f32 %v1367_v43, %v24259_v47 }
 0x425   : > { %29073 = vst [vmem:[#allocation108_spill] sm:$0xff] %v24264_v4 }
 0x427   : > { %v19085_v44 = vpop.f32.mrf.mxu1  ;;  %v19096_v58 = vpop.f32.mrf.mxu0 }
 0x428   : > { %v3829_v52 = vadd.f32 %v19085_v44, %v3744_v39  ;;  %v24269_v44 = vand.u32 4294901760, %v1366_v12  ;;  %v4743_v39 = vsub.f32 %v24257_v31, %v24264_v4 }
 0x429   : > { %v3820_v42 = vpop.f32.mrf.mxu1  ;;  %v3911_v29 = vpop.f32.mrf.mxu0 }
 0x42a   : > { %v3821_v18 = vadd.f32 %v3820_v42, %v3737_v2  ;;  %v3918_v62 = vadd.f32 %v19096_v58, %v3829_v52  ;;  %v24276_v42 = vand.u32 4294901760, %v24267_v61  ;;  %v24279_v58 = vsub.f32 %v1366_v12, %v24269_v44  ;;  %v1364_v52 = vld [vmem:[#allocation8 + $0x58] sm:$0xff] }
 0x42b   : > { %v24281_v2 = vand.u32 4294901760, %v1365_v40 }
 0x42c   : > { %v3912_v57 = vadd.f32 %v3911_v29, %v3821_v18  ;;  %29074 = vst [vmem:[#allocation109_spill] sm:$0xff] %v24276_v42  ;;  %v24285_v18 = vand.u32 4294901760, %v4743_v39  ;;  %v4750_v29 = vsub.f32 %v24267_v61, %v24276_v42 }
 0x42e   : > { %29075 = vst [vmem:[#allocation110_spill] sm:$0xff] %v24285_v18 }
 0x430   : > { %v19107_v16 = vpop.f32.mrf.mxu1 }
 0x431   : > { %v3999_v51 = vadd.f32 %v19107_v16, %v3918_v62  ;;  %v24290_v62 = vand.u32 4294901760, %v24279_v58  ;;  %v24293_v16 = vsub.f32 %v1365_v40, %v24281_v2 }
 0x432   : > { %v3992_v53 = vpop.f32.mrf.mxu1 }
 0x433   : > { %v4031_v63 = vand.u32 4294901760, %v3999_v51  ;;  %v3993_v22 = vadd.f32 %v3992_v53, %v3912_v57  ;;  %29076 = vst [vmem:[#allocation111_spill] sm:$0xff] %v24290_v62  ;;  %v24296_v57 = vand.u32 4294901760, %v1364_v52  ;;  %v24300_v53 = vand.u32 4294901760, %v4750_v29 }
 0x435   : > { %v4139_v0 = vsub.f32 %v3999_v51, %v4031_v63  ;;  %v4034_v38 = vand.u32 4294901760, %v3993_v22  ;;  %19108 = vmatprep.subr.mxu0 %v4031_v63  ;;  %v1363_v51 = vld [vmem:[#allocation8 + $0x50] sm:$0xff]  ;;  %29077 = vst [vmem:[#allocation112_spill] sm:$0xff] %v24300_v53 }
 0x436   : > { %19109 = vmatpush3.msra.mxu0 %v4031_v63 }
 0x437   : > { %v4146_v32 = vsub.f32 %v3993_v22, %v4034_v38  ;;  %19110 = vmatprep.subr.mxu0 %v4034_v38  ;;  %v4140_v9 = vand.u32 4294901760, %v4139_v0  ;;  %v24305_v22 = vand.u32 4294901760, %v24293_v16 }
 0x438   : > { %19111 = vmatpush3.msra.mxu0 %v4034_v38 }
 0x439   : > { %19113 = vmatmul.mubr.f32.vlgmr.msra.gmra.mxu0 %v24083_v55  ;;  %19128 = vmatprep.subr.mxu0 %v4139_v0  ;;  %v4141_v19 = vsub.f32 %v4139_v0, %v4140_v9  ;;  %v4147_v34 = vand.u32 4294901760, %v4146_v32  ;;  %29078 = vst [vmem:[#allocation113_spill] sm:$0xff] %v24305_v22  ;;  %v1353_v55 = vld [vmem:[#allocation8] sm:$0xff] }
 0x43a   : > { %19115 = vmatprep.mubr.f32.mxu0 %v24087_v54  ;;  %19129 = vmatpush3.msra.mxu0 %v4139_v0  ;;  %v24307_v0 = vand.u32 4294901760, %v1363_v51 }
 0x43b   : > { %19130 = vmatprep.subr.mxu0 %v4146_v32  ;;  %v4142_v50 = vand.u32 4294901760, %v4141_v19  ;;  %v4148_v7 = vsub.f32 %v4146_v32, %v4147_v34  ;;  %v4764_v19 = vsub.f32 %v24293_v16, %v24305_v22  ;;  %v24512_v22 = vpop.permute.xlu1 %4597 }
 0x43c   : > { %19131 = vmatpush3.msra.mxu0 %v4146_v32  ;;  %v1362_v32 = vld [vmem:[#allocation8 + $0x48] sm:$0xff] }
 0x43d   : > { %19116 = vmatmul.mubr.f32.gmra.mxu0 %v24090_v5  ;;  %19118 = vmatprep.subr.mxu1 %v4142_v50  ;;  %v4149_v24 = vand.u32 4294901760, %v4148_v7  ;;  %v24331_v59 = vand.u32 4294901760, %v4764_v19 }
 0x43e   : > { %19148 = vmatprep.subr.mxu0 %v4140_v9  ;;  %19119 = vmatpush3.msra.mxu1 %v4142_v50  ;;  %v24322_v50 = vand.u32 4294901760, %v1362_v32 }
 0x43f   : > { %19132 = vmatprep.mubr.f32.mxu0 %v24002_v21  ;;  %19120 = vmatprep.subr.mxu1 %v4149_v24  ;;  %29081 = vst [vmem:[#allocation116_spill] sm:$0xff] %v24331_v59  ;;  %v1354_v21 = vld [vmem:[#allocation8 + $0x8] sm:$0xff] }
 0x440   : > { %19121 = vmatpush3.msra.mxu1 %v4149_v24  ;;  %v1361_v24 = vld [vmem:[#allocation8 + $0x40] sm:$0xff]  ;;  %v24337_v12 = vsub.f32 %v1362_v32, %v24322_v50 }
 0x441   : > { %19123 = vmatmul.mubr.msk.f32.vlgmr.msra.gmra.mxu1 %vm2862_vm3, %v24049_v26  ;;  %19133 = vmatmul.mubr.f32.vlgmr.msra.gmra.mxu0 %v24062_v48  ;;  %v24339_v40 = vand.u32 4294901760, %v1361_v24 }
 0x442   : > { %19138 = vmatprep.subr.mxu1 %v4031_v63  ;;  %19149 = vmatpush3.msra.mxu0 %v4140_v9 }
 0x443   : > { %19125 = vmatprep.mubr.msk.f32.mxu1 %vm2862_vm3, %v24052_v13  ;;  %19135 = vmatprep.mubr.f32.mxu0 %v24064_v33 }
 0x444   : > { %19139 = vmatpush3.msra.mxu1 %v4031_v63  ;;  %19150 = vmatprep.subr.mxu0 %v4147_v34 }
 0x445   : > { %19140 = vmatprep.subr.mxu1 %v4034_v38  ;;  %19151 = vmatpush3.msra.mxu0 %v4147_v34  ;;  %v24320_v34 = vsub.f32 %v1363_v51, %v24307_v0  ;;  %v24350_v51 = vand.u32 4294901760, %v24337_v12 }
 0x446   : > { %19141 = vmatpush3.msra.mxu1 %v4034_v38  ;;  %19136 = vmatmul.mubr.f32.gmra.mxu0 %v24071_v28 }
 0x447   : > { %19126 = vmatmul.mubr.msk.f32.gmra.mxu1 %vm2862_vm3, %v24058_v3  ;;  %19158 = vmatprep.subr.mxu1 %v4031_v63  ;;  %v24334_v43 = vand.u32 4294901760, %v24320_v34  ;;  %29083 = vst [vmem:[#allocation118_spill] sm:$0xff] %v24350_v51  ;;  %v4785_v49 = vsub.f32 %v24337_v12, %v24350_v51 }
 0x448   : > { %19142 = vmatprep.mubr.f32.mxu1 %v24013_v25  ;;  %19152 = vmatprep.mubr.msk.f32.mxu0 %vm2862_vm3, %v23986_v11 }
 0x449   : > { %19168 = vmatprep.subr.mxu0 %v24254_v27  ;;  %29082 = vst [vmem:[#allocation117_spill] sm:$0xff] %v24334_v43  ;;  %v4778_v29 = vsub.f32 %v24320_v34, %v24334_v43 }
 0x44a   : > { %19153 = vmatmul.mubr.msk.f32.vlgmr.msra.gmra.mxu0 %vm2862_vm3, %v24049_v26 }
 0x44b   : > { %19143 = vmatmul.mubr.f32.vlgmr.msra.gmra.mxu1 %v24069_v10  ;;  %19155 = vmatprep.mubr.msk.f32.mxu0 %vm2862_vm3, %v24052_v13  ;;  %v24362_v8 = vand.u32 4294901760, %v4778_v29  ;;  %v24378_v29 = vand.u32 4294901760, %v4785_v49 }
 0x44c   : > { %19159 = vmatpush3.msra.mxu1 %v4031_v63  ;;  %19145 = vmatprep.mubr.f32.mxu1 %v24074_v20  ;;  %v4757_v63 = vsub.f32 %v24279_v58, %v24290_v62  ;;  %v1357_v20 = vld [vmem:[#allocation8 + $0x20] sm:$0xff] }
 0x44d   : > { %19160 = vmatprep.subr.mxu1 %v4034_v38  ;;  %19169 = vmatpush3.msra.mxu0 %v24254_v27  ;;  %29085 = vst [vmem:[#allocation120_spill] sm:$0xff] %v24362_v8  ;;  %29088 = vst [vmem:[#allocation123_spill] sm:$0xff] %v24378_v29  ;;  %v24401_v25 = vand.u32 4294901760, %v1357_v20 }
 0x44e   : > { %19161 = vmatpush3.msra.mxu1 %v4034_v38  ;;  %19156 = vmatmul.mubr.msk.f32.gmra.mxu0 %vm2862_vm3, %v24058_v3  ;;  %v24311_v38 = vsub.f32 %v1364_v52, %v24296_v57  ;;  %v24315_v9 = vand.u32 4294901760, %v4757_v63  ;;  %v1360_v52 = vld [vmem:[#allocation8 + $0x38] sm:$0xff]  ;;  %v24353_v63 = vsub.f32 %v1361_v24, %v24339_v40 }
 0x44f   : > { %19146 = vmatmul.mubr.f32.gmra.mxu1 %v24079_v60  ;;  %19170 = vmatprep.subr.mxu0 %v24259_v47  ;;  %v24355_v32 = vand.u32 4294901760, %v1360_v52 }
 0x450   : > { %19162 = vmatprep.mubr.msk.f32.mxu1 %vm2862_vm3, %v23986_v11  ;;  %19171 = vmatpush3.msra.mxu0 %v24259_v47  ;;  %29079 = vst [vmem:[#allocation114_spill] sm:$0xff] %v24315_v9  ;;  %v24327_v7 = vand.u32 4294901760, %v24311_v38 }
 0x451   : > { %19172 = vmatprep.subr.mxu0 %v24269_v44  ;;  %19206 = vmatprep.subr.mxu1 %v24285_v18  ;;  %v24370_v24 = vsub.f32 %v1360_v52, %v24355_v32 }
 0x452   : > { %19173 = vmatpush3.msra.mxu0 %v24269_v44  ;;  %29080 = vst [vmem:[#allocation115_spill] sm:$0xff] %v24327_v7  ;;  %v4771_v39 = vsub.f32 %v24311_v38, %v24327_v7 }
 0x453   : > { %19163 = vmatmul.mubr.msk.f32.vlgmr.msra.gmra.mxu1 %vm2862_vm3, %v24049_v26  ;;  %19174 = vmatprep.subr.mxu0 %v24281_v2  ;;  %29087 = vst [vmem:[#allocation122_spill] sm:$0xff] %v24370_v24 }
 0x454   : > { %19165 = vmatprep.mubr.msk.f32.mxu1 %vm2862_vm3, %v24052_v13  ;;  %19175 = vmatpush3.msra.mxu0 %v24281_v2  ;;  %v24359_v19 = vand.u32 4294901760, %v4771_v39  ;;  %v24374_v39 = vand.u32 4294901760, %v1359_v6  ;;  %v1355_v13 = vld [vmem:[#allocation8 + $0x10] sm:$0xff] }
 0x455   : > { %19207 = vmatpush3.msra.mxu1 %v24285_v18  ;;  %19176 = vmatprep.subr.mxu0 %v24296_v57  ;;  %v24383_v18 = vand.u32 4294901760, %v24370_v24  ;;  %v24434_v48 = vand.u32 4294901760, %v1355_v13 }
 0x456   : > { %19208 = vmatprep.subr.mxu1 %v24300_v53  ;;  %19177 = vmatpush3.msra.mxu0 %v24296_v57  ;;  %29084 = vst [vmem:[#allocation119_spill] sm:$0xff] %v24359_v19  ;;  %v24390_v60 = vsub.f32 %v1359_v6, %v24374_v39 }
 0x457   : > { %19166 = vmatmul.mubr.msk.f32.gmra.mxu1 %vm2862_vm3, %v24058_v3  ;;  %19178 = vmatprep.subr.mxu0 %v24307_v0  ;;  %29089 = vst [vmem:[#allocation124_spill] sm:$0xff] %v24383_v18  ;;  %v1356_v3 = vld [vmem:[#allocation8 + $0x18] sm:$0xff]  ;;  %v24450_v54 = vsub.f32 %v1355_v13, %v24434_v48  ;;  %v24465_v13 = vand.u32 4294901760, %v1353_v55 }
 0x458   : > { %19209 = vmatpush3.msra.mxu1 %v24300_v53  ;;  %19179 = vmatpush3.msra.mxu0 %v24307_v0  ;;  %29090 = vst [vmem:[#allocation125_spill] sm:$0xff] %v24390_v60  ;;  %v24406_v6 = vand.u32 4294901760, %v24390_v60  ;;  %v24418_v28 = vand.u32 4294901760, %v1356_v3 }
 0x459   : > { %19210 = vmatprep.subr.mxu1 %v24315_v9  ;;  %19180 = vmatprep.subr.mxu0 %v24322_v50  ;;  %29102 = vst [vmem:[#allocation137_spill] sm:$0xff] %v24450_v54  ;;  %v24463_v11 = vand.u32 4294901760, %v24450_v54  ;;  %v24479_v35 = vsub.f32 %v1353_v55, %v24465_v13 }
 0x45a   : > { %19211 = vmatpush3.msra.mxu1 %v24315_v9  ;;  %19181 = vmatpush3.msra.mxu0 %v24322_v50  ;;  %v24367_v9 = vand.u32 4294901760, %v24353_v63  ;;  %29093 = vst [vmem:[#allocation128_spill] sm:$0xff] %v24406_v6  ;;  %v4806_v33 = vsub.f32 %v24390_v60, %v24406_v6 }
 0x45b   : > { %19212 = vmatprep.subr.mxu1 %v24331_v59  ;;  %19182 = vmatprep.subr.mxu0 %v24339_v40  ;;  %29104 = vst [vmem:[#allocation139_spill] sm:$0xff] %v24463_v11  ;;  %29107 = vst [vmem:[#allocation142_spill] sm:$0xff] %v24479_v35 }
 0x45c   : > { %19213 = vmatpush3.msra.mxu1 %v24331_v59  ;;  %29086 = vst [vmem:[#allocation121_spill] sm:$0xff] %v24367_v9  ;;  %19183 = vmatpush3.msra.mxu0 %v24339_v40  ;;  %v1358_v59 = vld [vmem:[#allocation8 + $0x28] sm:$0xff]  ;;  %v4792_v53 = vsub.f32 %v24353_v63, %v24367_v9  ;;  %v24438_v26 = vand.u32 4294901760, %v4806_v33  ;;  %v24454_v33 = vand.u32 4294901760, %v1354_v21 }
 0x45d   : > { %19214 = vmatprep.subr.mxu1 %v24359_v19  ;;  %19184 = vmatprep.subr.mxu0 %v24355_v32  ;;  %v24385_v52 = vand.u32 4294901760, %v1358_v59 }
 0x45e   : > { %19215 = vmatpush3.msra.mxu1 %v24359_v19  ;;  %19185 = vmatpush3.msra.mxu0 %v24355_v32  ;;  %v24394_v49 = vand.u32 4294901760, %v4792_v53  ;;  %v4799_v19 = vsub.f32 %v24370_v24, %v24383_v18  ;;  %29099 = vst [vmem:[#allocation134_spill] sm:$0xff] %v24438_v26  ;;  %v24470_v30 = vsub.f32 %v1354_v21, %v24454_v33 }
 0x45f   : > { %19216 = vmatprep.subr.mxu1 %v24362_v8  ;;  %19186 = vmatprep.subr.mxu0 %v24374_v39  ;;  %v24399_v10 = vsub.f32 %v1358_v59, %v24385_v52  ;;  %v24416_v59 = vsub.f32 %v1357_v20, %v24401_v25 }
 0x460   : > { %19217 = vmatpush3.msra.mxu1 %v24362_v8  ;;  %29091 = vst [vmem:[#allocation126_spill] sm:$0xff] %v24394_v49  ;;  %19187 = vmatpush3.msra.mxu0 %v24374_v39  ;;  %v24410_v53 = vand.u32 4294901760, %v4799_v19  ;;  %29105 = vst [vmem:[#allocation140_spill] sm:$0xff] %v24470_v30  ;;  %v24484_v46 = vand.u32 4294901760, %v24470_v30 }
 0x461   : > { %29092 = vst [vmem:[#allocation127_spill] sm:$0xff] %v24399_v10  ;;  %19218 = vmatprep.subr.mxu1 %v24378_v29  ;;  %19188 = vmatprep.subr.mxu0 %v24385_v52  ;;  %v24413_v8 = vand.u32 4294901760, %v24399_v10  ;;  %29096 = vst [vmem:[#allocation131_spill] sm:$0xff] %v24416_v59  ;;  %v24429_v20 = vand.u32 4294901760, %v24416_v59 }
 0x462   : > { %19219 = vmatpush3.msra.mxu1 %v24378_v29  ;;  %29094 = vst [vmem:[#allocation129_spill] sm:$0xff] %v24410_v53  ;;  %19189 = vmatpush3.msra.mxu0 %v24385_v52  ;;  %v24432_v29 = vsub.f32 %v1356_v3, %v24418_v28  ;;  %29108 = vst [vmem:[#allocation143_spill] sm:$0xff] %v24484_v46  ;;  %v4841_v55 = vsub.f32 %v24470_v30, %v24484_v46 }
 0x463   : > { %29095 = vst [vmem:[#allocation130_spill] sm:$0xff] %v24413_v8  ;;  %19220 = vmatprep.subr.mxu1 %v24394_v49  ;;  %19190 = vmatprep.subr.mxu0 %v24401_v25  ;;  %v4813_v19 = vsub.f32 %v24399_v10, %v24413_v8  ;;  %29097 = vst [vmem:[#allocation132_spill] sm:$0xff] %v24429_v20  ;;  %v4820_v5 = vsub.f32 %v24416_v59, %v24429_v20 }
 0x464   : > { %19221 = vmatpush3.msra.mxu1 %v24394_v49  ;;  %29098 = vst [vmem:[#allocation133_spill] sm:$0xff] %v24432_v29  ;;  %19191 = vmatpush3.msra.mxu0 %v24401_v25  ;;  %v24447_v3 = vand.u32 4294901760, %v24432_v29 }
 0x465   : > { %19222 = vmatprep.subr.mxu1 %v24410_v53  ;;  %19192 = vmatprep.subr.mxu0 %v24418_v28  ;;  %v24442_v49 = vand.u32 4294901760, %v4813_v19  ;;  %v24458_v19 = vand.u32 4294901760, %v4820_v5 }
 0x466   : > { %19223 = vmatpush3.msra.mxu1 %v24410_v53  ;;  %29101 = vst [vmem:[#allocation136_spill] sm:$0xff] %v24447_v3  ;;  %19193 = vmatpush3.msra.mxu0 %v24418_v28  ;;  %v4827_v53 = vsub.f32 %v24432_v29, %v24447_v3 }
 0x467   : > { %29100 = vst [vmem:[#allocation135_spill] sm:$0xff] %v24442_v49  ;;  %19224 = vmatprep.subr.mxu1 %v24438_v26  ;;  %19194 = vmatprep.subr.mxu0 %v24434_v48  ;;  %29103 = vst [vmem:[#allocation138_spill] sm:$0xff] %v24458_v19 }
 0x468   : > { %19225 = vmatpush3.msra.mxu1 %v24438_v26  ;;  %19195 = vmatpush3.msra.mxu0 %v24434_v48  ;;  %v24474_v5 = vand.u32 4294901760, %v4827_v53  ;;  %v4834_v26 = vsub.f32 %v24450_v54, %v24463_v11  ;;  %v24491_v53 = vand.u32 4294901760, %v24479_v35 }
 0x469   : > { %19226 = vmatprep.subr.mxu1 %v24442_v49  ;;  %19196 = vmatprep.subr.mxu0 %v24454_v33 }
 0x46a   : > { %19227 = vmatpush3.msra.mxu1 %v24442_v49  ;;  %29106 = vst [vmem:[#allocation141_spill] sm:$0xff] %v24474_v5  ;;  %19197 = vmatpush3.msra.mxu0 %v24454_v33  ;;  %v24488_v21 = vand.u32 4294901760, %v4834_v26  ;;  %29110 = vst [vmem:[#allocation145_spill] sm:$0xff] %v24491_v53  ;;  %v4848_v49 = vsub.f32 %v24479_v35, %v24491_v53  ;;  %v24502_v26 = vand.u32 4294901760, %v4841_v55  ;;  %v24514_v35 = vpop.permute.xlu0 %4592 }
 0x46b   : > { %19228 = vmatprep.subr.mxu1 %v24458_v19  ;;  %19198 = vmatprep.subr.mxu0 %v24465_v13 }
 0x46c   : > { %19229 = vmatpush3.msra.mxu1 %v24458_v19  ;;  %29109 = vst [vmem:[#allocation144_spill] sm:$0xff] %v24488_v21  ;;  %19199 = vmatpush3.msra.mxu0 %v24465_v13  ;;  %29111 = vst [vmem:[#allocation146_spill] sm:$0xff] %v24502_v26  ;;  %v24505_v19 = vand.u32 4294901760, %v4848_v49 }
 0x46d   : > { %19230 = vmatprep.subr.mxu1 %v24474_v5  ;;  %19244 = vmatprep.subr.mxu0 %v24257_v31 }
 0x46e   : > { %19231 = vmatpush3.msra.mxu1 %v24474_v5  ;;  %29112 = vst [vmem:[#allocation147_spill] sm:$0xff] %v24505_v19 }
 0x46f   : > { %19232 = vmatprep.subr.mxu1 %v24488_v21 }
 0x470   : > { %19233 = vmatpush3.msra.mxu1 %v24488_v21 }
 0x471   : > { %19234 = vmatprep.subr.mxu1 %v24502_v26 }
 0x472   : > { %19235 = vmatpush3.msra.mxu1 %v24502_v26 }
 0x473   : > { %19236 = vmatprep.subr.mxu1 %v24505_v19 }
 0x474   : > { %19237 = vmatpush3.msra.mxu1 %v24505_v19 }
 0x475   : > { %19282 = vmatprep.subr.mxu1 %v24254_v27 }
 0x4f9   : > { %v19114_v5 = vpop.f32.mrf.mxu0 }
 0x4fb   : > { %v4075_v41 = vpop.f32.mrf.mxu0 }
 0x4fd   : > { %v19117_v1 = vpop.f32.mrf.mxu0 }
 0x4ff   : > { %v4095_v36 = vpop.f32.mrf.mxu0 }
 0x501   : > { %v19124_v55 = vpop.f32.mrf.mxu1  ;;  %v19134_v15 = vpop.f32.mrf.mxu0 }
 0x502   : > { %v4193_v53 = vadd.f32 %v19124_v55, %v19114_v5 }
 0x503   : > { %v4186_v56 = vpop.f32.mrf.mxu1  ;;  %v4280_v21 = vpop.f32.mrf.mxu0 }
 0x504   : > { %v4187_v26 = vadd.f32 %v4186_v56, %v4075_v41  ;;  %v4288_v8 = vadd.f32 %v19134_v15, %v4193_v53 }
 0x506   : > { %v19137_v49 = vpop.f32.mrf.mxu0  ;;  %v4281_v18 = vadd.f32 %v4280_v21, %v4187_v26 }
 0x507   : > { %v19127_v17 = vpop.f32.mrf.mxu1 }
 0x508   : > { %v4294_v46 = vpop.f32.mrf.mxu0  ;;  %v4205_v19 = vadd.f32 %v19127_v17, %v19117_v1 }
 0x509   : > { %v4198_v11 = vpop.f32.mrf.mxu1 }
 0x50a   : > { %v19154_v20 = vpop.f32.mrf.mxu0  ;;  %v4199_v9 = vadd.f32 %v4198_v11, %v4095_v36  ;;  %v4302_v62 = vadd.f32 %v19137_v49, %v4205_v19  ;;  %v24518_v36 = vpop.permute.xlu1 %4607 }
 0x50b   : > { %v19144_v3 = vpop.f32.mrf.mxu1 }
 0x50c   : > { %v4385_v51 = vadd.f32 %v19144_v3, %v4288_v8  ;;  %v4477_v43 = vpop.f32.mrf.mxu0  ;;  %v4295_v5 = vadd.f32 %v4294_v46, %v4199_v9  ;;  %v4611_v8 = vmul.f32 %v24512_v22, %v24159_v37 }
 0x50d   : > { %v4376_v6 = vpop.f32.mrf.mxu1 }
 0x50e   : > { %v4377_v42 = vadd.f32 %v4376_v6, %v4281_v18  ;;  %v4484_v55 = vadd.f32 %v19154_v20, %v4385_v51  ;;  %v19157_v41 = vpop.f32.mrf.mxu0  ;;  %v4610_v6 = vmul.f32 %v24514_v35, %v24169_v45 }
 0x50f   : > { %v19147_v7 = vpop.f32.mrf.mxu1 }
 0x510   : > { %v4401_v56 = vadd.f32 %v19147_v7, %v4302_v62  ;;  %v4478_v15 = vadd.f32 %v4477_v43, %v4377_v42  ;;  %v4489_v46 = vpop.f32.mrf.mxu0  ;;  %v4613_v62 = vmul.f32 %v24518_v36, %v24145_v23  ;;  %v24524_v42 = vpop.permute.xlu0 %4602 }
 0x511   : > { %v4392_v4 = vpop.f32.mrf.mxu1  ;;  %v4612_v51 = vmul.f32 %v24524_v42, %v24154_v14 }
 0x512   : > { %v4393_v17 = vadd.f32 %v4392_v4, %v4295_v5  ;;  %v4496_v3 = vadd.f32 %v19157_v41, %v4401_v56 }
 0x513   : > { %v19164_v30 = vpop.f32.mrf.mxu1 }
 0x514   : > { %v4575_v1 = vadd.f32 %v19164_v30, %v4484_v55  ;;  %v4490_v30 = vadd.f32 %v4489_v46, %v4393_v17 }
 0x515   : > { %v4568_v11 = vpop.f32.mrf.mxu1 }
 0x516   : > { %v4615_v19 = vsub.f32 %v4575_v1, %v4611_v8  ;;  %v4569_v18 = vadd.f32 %v4568_v11, %v4478_v15 }
 0x517   : > { %v19167_v9 = vpop.f32.mrf.mxu1 }
 0x518   : > { %v24526_v4 = vand.u32 4294901760, %v4615_v19  ;;  %v4614_v37 = vsub.f32 %v4569_v18, %v4610_v6  ;;  %v4587_v7 = vadd.f32 %v19167_v9, %v4496_v3  ;;  %v29113_v9 = vld [vmem:[#allocation140_spill] sm:$0xff] }
 0x519   : > { %v4580_v43 = vpop.f32.mrf.mxu1 }
 0x51a   : > { %v24531_v20 = vsub.f32 %v4615_v19, %v24526_v4  ;;  %v24533_v45 = vand.u32 4294901760, %v4614_v37  ;;  %v4617_v21 = vsub.f32 %v4587_v7, %v4613_v62  ;;  %v4581_v53 = vadd.f32 %v4580_v43, %v4490_v30  ;;  %v29114_v62 = vld [vmem:[#allocation142_spill] sm:$0xff]  ;;  %v29115_v30 = vld [vmem:[#allocation108_spill] sm:$0xff]  ;;  %v29117_v7 = vld [vmem:[#allocation111_spill] sm:$0xff] }
 0x51b   : > { %v29118_v43 = vld [vmem:[#allocation113_spill] sm:$0xff] }
 0x51c   : > { %v4711_v23 = vand.u32 4294901760, %v24531_v20  ;;  %v4700_v26 = vsub.f32 %v4614_v37, %v24533_v45  ;;  %v24537_v49 = vand.u32 4294901760, %v4617_v21  ;;  %v4616_v5 = vsub.f32 %v4581_v53, %v4612_v51  ;;  %19238 = vmatprep.mubr.f32.mxu1 %v24533_v45  ;;  %v29116_v37 = vld [vmem:[#allocation109_spill] sm:$0xff]  ;;  %v29119_v51 = vld [vmem:[#allocation115_spill] sm:$0xff]  ;;  %v29123_v53 = vld [vmem:[#allocation124_spill] sm:$0xff] }
 0x51d   : > { %19239 = vmatmul.mubr.f32.vlgmr.msra.gmra.mxu1 %v24526_v4 }
 0x51e   : > { %v24542_v14 = vsub.f32 %v4617_v21, %v24537_v49  ;;  %v24544_v55 = vand.u32 4294901760, %v4616_v5  ;;  %19283 = vmatpush3.msra.mxu1 %v24254_v27  ;;  %v4701_v56 = vand.u32 4294901760, %v4700_v26  ;;  %v4712_v41 = vsub.f32 %v24531_v20, %v4711_v23  ;;  %v29122_v21 = vld [vmem:[#allocation121_spill] sm:$0xff] }
 0x51f   : > { %19284 = vmatprep.subr.mxu1 %v24259_v47 }
 0x520   : > { %v24552_v15 = vsub.f32 %v4616_v5, %v24544_v55  ;;  %19285 = vmatpush3.msra.mxu1 %v24259_v47  ;;  %19241 = vmatprep.mubr.f32.mxu1 %v24544_v55  ;;  %v4702_v17 = vsub.f32 %v4700_v26, %v4701_v56  ;;  %v4731_v1 = vand.u32 4294901760, %v24542_v14  ;;  %v4713_v3 = vand.u32 4294901760, %v4712_v41  ;;  %v29126_v5 = vld [vmem:[#allocation132_spill] sm:$0xff]  ;;  %v29129_v41 = vld [vmem:[#allocation143_spill] sm:$0xff] }
 0x521   : > { %19286 = vmatprep.subr.mxu1 %v24269_v44  ;;  %19242 = vmatmul.mubr.f32.gmra.mxu1 %v24537_v49 }
 0x522   : > { %19287 = vmatpush3.msra.mxu1 %v24269_v44  ;;  %19314 = vmatprep.mubr.f32.mxu1 %v4701_v56  ;;  %v4703_v8 = vand.u32 4294901760, %v4702_v17  ;;  %v4721_v11 = vand.u32 4294901760, %v24552_v15  ;;  %v4732_v18 = vsub.f32 %v24542_v14, %v4731_v1  ;;  %v29128_v56 = vld [vmem:[#allocation139_spill] sm:$0xff]  ;;  %v29131_v17 = vld [vmem:[#allocation100_spill] sm:$0xff] }
 0x523   : > { %19288 = vmatprep.subr.mxu1 %v24281_v2 }
 0x524   : > { %19289 = vmatpush3.msra.mxu1 %v24281_v2  ;;  %19200 = vmatprep.mubr.f32.mxu0 %v4703_v8  ;;  %v4722_v19 = vsub.f32 %v24552_v15, %v4721_v11  ;;  %v4733_v46 = vand.u32 4294901760, %v4732_v18 }
 0x525   : > { %19290 = vmatprep.subr.mxu1 %v24296_v57  ;;  %19201 = vmatmul.mubr.f32.vlgmr.msra.gmra.mxu0 %v4713_v3 }
 0x526   : > { %19245 = vmatpush3.msra.mxu0 %v24257_v31  ;;  %19291 = vmatpush3.msra.mxu1 %v24296_v57  ;;  %v4723_v6 = vand.u32 4294901760, %v4722_v19 }
 0x527   : > { %19246 = vmatprep.subr.mxu0 %v24267_v61  ;;  %19292 = vmatprep.subr.mxu1 %v24307_v0 }
 0x528   : > { %19247 = vmatpush3.msra.mxu0 %v24267_v61  ;;  %19293 = vmatpush3.msra.mxu1 %v24307_v0 }
 0x529   : > { %19203 = vmatprep.mubr.f32.mxu0 %v4723_v6  ;;  %19248 = vmatprep.subr.mxu0 %v24279_v58 }
 0x52a   : > { %19294 = vmatprep.subr.mxu1 %v24322_v50  ;;  %19204 = vmatmul.mubr.f32.gmra.mxu0 %v4733_v46 }
 0x52b   : > { %19249 = vmatpush3.msra.mxu0 %v24279_v58  ;;  %19295 = vmatpush3.msra.mxu1 %v24322_v50 }
 0x52c   : > { %19250 = vmatprep.subr.mxu0 %v24293_v16  ;;  %19276 = vmatprep.mubr.f32.mxu0 %v4700_v26  ;;  %v29125_v26 = vld [vmem:[#allocation130_spill] sm:$0xff] }
 0x52d   : > { %19296 = vmatprep.subr.mxu1 %v24339_v40  ;;  %19251 = vmatpush3.msra.mxu0 %v24293_v16 }
 0x52e   : > { %19297 = vmatpush3.msra.mxu1 %v24339_v40  ;;  %19252 = vmatprep.subr.mxu0 %v24311_v38 }
 0x52f   : > { %19298 = vmatprep.subr.mxu1 %v24355_v32  ;;  %19253 = vmatpush3.msra.mxu0 %v24311_v38 }
 0x530   : > { %19299 = vmatpush3.msra.mxu1 %v24355_v32  ;;  %19254 = vmatprep.subr.mxu0 %v24320_v34 }
 0x531   : > { %19300 = vmatprep.subr.mxu1 %v24374_v39  ;;  %19255 = vmatpush3.msra.mxu0 %v24320_v34 }
 0x532   : > { %19301 = vmatpush3.msra.mxu1 %v24374_v39  ;;  %19256 = vmatprep.subr.mxu0 %v24337_v12 }
 0x533   : > { %19302 = vmatprep.subr.mxu1 %v24385_v52  ;;  %19257 = vmatpush3.msra.mxu0 %v24337_v12 }
 0x534   : > { %19303 = vmatpush3.msra.mxu1 %v24385_v52  ;;  %19258 = vmatprep.subr.mxu0 %v24353_v63 }
 0x535   : > { %19304 = vmatprep.subr.mxu1 %v24401_v25  ;;  %19259 = vmatpush3.msra.mxu0 %v24353_v63 }
 0x536   : > { %19305 = vmatpush3.msra.mxu1 %v24401_v25  ;;  %19260 = vmatprep.subr.mxu0 %v24370_v24 }
 0x537   : > { %19306 = vmatprep.subr.mxu1 %v24418_v28  ;;  %19261 = vmatpush3.msra.mxu0 %v24370_v24 }
 0x538   : > { %19307 = vmatpush3.msra.mxu1 %v24418_v28  ;;  %19262 = vmatprep.subr.mxu0 %v24390_v60 }
 0x539   : > { %19308 = vmatprep.subr.mxu1 %v24434_v48  ;;  %19263 = vmatpush3.msra.mxu0 %v24390_v60 }
 0x53a   : > { %19309 = vmatpush3.msra.mxu1 %v24434_v48  ;;  %19264 = vmatprep.subr.mxu0 %v24399_v10 }
 0x53b   : > { %19310 = vmatprep.subr.mxu1 %v24454_v33  ;;  %19265 = vmatpush3.msra.mxu0 %v24399_v10 }
 0x53c   : > { %19311 = vmatpush3.msra.mxu1 %v24454_v33  ;;  %19266 = vmatprep.subr.mxu0 %v24416_v59 }
 0x53d   : > { %19312 = vmatprep.subr.mxu1 %v24465_v13  ;;  %19267 = vmatpush3.msra.mxu0 %v24416_v59 }
 0x53e   : > { %19313 = vmatpush3.msra.mxu1 %v24465_v13  ;;  %19268 = vmatprep.subr.mxu0 %v24432_v29 }
 0x53f   : > { %19315 = vmatmul.mubr.f32.vlgmr.msra.gmra.mxu1 %v4711_v23  ;;  %19358 = vmatprep.subr.mxu1 %v24254_v27  ;;  %v29124_v23 = vld [vmem:[#allocation128_spill] sm:$0xff] }
 0x540   : > { %19269 = vmatpush3.msra.mxu0 %v24432_v29  ;;  %19317 = vmatprep.mubr.f32.mxu1 %v4721_v11 }
 0x541   : > { %19359 = vmatpush3.msra.mxu1 %v24254_v27  ;;  %19270 = vmatprep.subr.mxu0 %v24450_v54 }
 0x542   : > { %19360 = vmatprep.subr.mxu1 %v24259_v47  ;;  %19271 = vmatpush3.msra.mxu0 %v24450_v54 }
 0x543   : > { %19361 = vmatpush3.msra.mxu1 %v24259_v47  ;;  %19272 = vmatprep.subr.mxu0 %v29113_v9 }
 0x544   : > { %19318 = vmatmul.mubr.f32.gmra.mxu1 %v4731_v1  ;;  %19362 = vmatprep.subr.mxu1 %v24269_v44  ;;  %v29133_v1 = vld [vmem:[#allocation103_spill] sm:$0xff] }
 0x545   : > { %19273 = vmatpush3.msra.mxu0 %v29113_v9  ;;  %19363 = vmatpush3.msra.mxu1 %v24269_v44 }
 0x546   : > { %19390 = vmatprep.mubr.f32.mxu1 %v24533_v45  ;;  %19274 = vmatprep.subr.mxu0 %v29114_v62 }
 0x547   : > { %19364 = vmatprep.subr.mxu1 %v24281_v2  ;;  %19275 = vmatpush3.msra.mxu0 %v29114_v62 }
 0x548   : > { %19365 = vmatpush3.msra.mxu1 %v24281_v2  ;;  %19277 = vmatmul.mubr.f32.vlgmr.msra.gmra.mxu0 %v24531_v20  ;;  %v29120_v20 = vld [vmem:[#allocation117_spill] sm:$0xff] }
 0x549   : > { %19320 = vmatprep.subr.mxu0 %v29115_v30  ;;  %19366 = vmatprep.subr.mxu1 %v24296_v57 }
 0x54a   : > { %19279 = vmatprep.mubr.f32.mxu0 %v24552_v15  ;;  %19321 = vmatpush3.msra.mxu0 %v29115_v30  ;;  %v29130_v15 = vld [vmem:[#allocation145_spill] sm:$0xff] }
 0x54b   : > { %19367 = vmatpush3.msra.mxu1 %v24296_v57  ;;  %19322 = vmatprep.subr.mxu0 %v29116_v37 }
 0x54c   : > { %19368 = vmatprep.subr.mxu1 %v24307_v0  ;;  %19323 = vmatpush3.msra.mxu0 %v29116_v37 }
 0x54d   : > { %19369 = vmatpush3.msra.mxu1 %v24307_v0  ;;  %19280 = vmatmul.mubr.f32.gmra.mxu0 %v24542_v14  ;;  %v29127_v14 = vld [vmem:[#allocation136_spill] sm:$0xff] }
 0x54e   : > { %19324 = vmatprep.subr.mxu0 %v29117_v7  ;;  %19370 = vmatprep.subr.mxu1 %v24322_v50 }
 0x54f   : > { %19325 = vmatpush3.msra.mxu0 %v29117_v7  ;;  %19352 = vmatprep.mubr.f32.mxu0 %v24533_v45  ;;  %v29121_v45 = vld [vmem:[#allocation118_spill] sm:$0xff] }
 0x550   : > { %19371 = vmatpush3.msra.mxu1 %v24322_v50  ;;  %19326 = vmatprep.subr.mxu0 %v29118_v43 }
 0x551   : > { %19372 = vmatprep.subr.mxu1 %v24339_v40  ;;  %19327 = vmatpush3.msra.mxu0 %v29118_v43 }
 0x552   : > { %19373 = vmatpush3.msra.mxu1 %v24339_v40  ;;  %19328 = vmatprep.subr.mxu0 %v29119_v51 }
 0x553   : > { %19374 = vmatprep.subr.mxu1 %v24355_v32  ;;  %19329 = vmatpush3.msra.mxu0 %v29119_v51 }
 0x554   : > { %19375 = vmatpush3.msra.mxu1 %v24355_v32  ;;  %19330 = vmatprep.subr.mxu0 %v29120_v20 }
 0x555   : > { %19376 = vmatprep.subr.mxu1 %v24374_v39  ;;  %19331 = vmatpush3.msra.mxu0 %v29120_v20 }
 0x556   : > { %19377 = vmatpush3.msra.mxu1 %v24374_v39  ;;  %19332 = vmatprep.subr.mxu0 %v29121_v45 }
 0x557   : > { %19378 = vmatprep.subr.mxu1 %v24385_v52  ;;  %19333 = vmatpush3.msra.mxu0 %v29121_v45 }
 0x558   : > { %19379 = vmatpush3.msra.mxu1 %v24385_v52  ;;  %19334 = vmatprep.subr.mxu0 %v29122_v21 }
 0x559   : > { %19380 = vmatprep.subr.mxu1 %v24401_v25  ;;  %19335 = vmatpush3.msra.mxu0 %v29122_v21 }
 0x55a   : > { %19381 = vmatpush3.msra.mxu1 %v24401_v25  ;;  %19336 = vmatprep.subr.mxu0 %v29123_v53 }
 0x55b   : > { %19382 = vmatprep.subr.mxu1 %v24418_v28  ;;  %19337 = vmatpush3.msra.mxu0 %v29123_v53 }
 0x55c   : > { %19383 = vmatpush3.msra.mxu1 %v24418_v28  ;;  %19338 = vmatprep.subr.mxu0 %v29124_v23 }
 0x55d   : > { %19384 = vmatprep.subr.mxu1 %v24434_v48  ;;  %19339 = vmatpush3.msra.mxu0 %v29124_v23 }
 0x55e   : > { %19385 = vmatpush3.msra.mxu1 %v24434_v48  ;;  %19340 = vmatprep.subr.mxu0 %v29125_v26 }
 0x55f   : > { %19386 = vmatprep.subr.mxu1 %v24454_v33  ;;  %19341 = vmatpush3.msra.mxu0 %v29125_v26 }
 0x560   : > { %19387 = vmatpush3.msra.mxu1 %v24454_v33  ;;  %19342 = vmatprep.subr.mxu0 %v29126_v5 }
 0x561   : > { %19388 = vmatprep.subr.mxu1 %v24465_v13  ;;  %19343 = vmatpush3.msra.mxu0 %v29126_v5 }
 0x562   : > { %19389 = vmatpush3.msra.mxu1 %v24465_v13  ;;  %19344 = vmatprep.subr.mxu0 %v29127_v14 }
 0x563   : > { %19391 = vmatmul.mubr.f32.vlgmr.msra.gmra.mxu1 %v24526_v4  ;;  %19345 = vmatpush3.msra.mxu0 %v29127_v14  ;;  %v24708_v14 = vld [vmem:[%s29132_s19] ss:$0 sm:$0xff] }
 0x564   : > { %19393 = vmatprep.mubr.f32.mxu1 %v24544_v55  ;;  %19346 = vmatprep.subr.mxu0 %v29128_v56  ;;  %29134 = vst [vmem:[#allocation100_spill] sm:$0xff] %v24708_v14 }
 0x565   : > { %19347 = vmatpush3.msra.mxu0 %v29128_v56 }
 0x566   : > { %19348 = vmatprep.subr.mxu0 %v29129_v41 }
 0x567   : > { %19394 = vmatmul.mubr.f32.gmra.mxu1 %v24537_v49  ;;  %19349 = vmatpush3.msra.mxu0 %v29129_v41 }
 0x568   : > { %19350 = vmatprep.subr.mxu0 %v29130_v15  ;;  %19415 = vmatprep.mubr.f32.mxu1 %v29131_v17 }
 0x569   : > { %19351 = vmatpush3.msra.mxu0 %v29130_v15 }
 0x56a   : > { %19353 = vmatmul.mubr.f32.vlgmr.msra.gmra.mxu0 %v24526_v4 }
 0x56b   : > { %19355 = vmatprep.mubr.f32.mxu0 %v24544_v55 }
 0x56e   : > { %19356 = vmatmul.mubr.f32.gmra.mxu0 %v24537_v49 }
 0x56f   : > { %19404 = vmatprep.mubr.f32.mxu0 %v29133_v1 }
 0x5dd   : > { %v19240_v8 = vpop.f32.mrf.mxu1 }
 0x5df   : > { %v4886_v11 = vpop.f32.mrf.mxu1 }
 0x5e1   : > { %v19243_v19 = vpop.f32.mrf.mxu1 }
 0x5e3   : > { %v4898_v6 = vpop.f32.mrf.mxu1 }
 0x5e5   : > { %v19202_v3 = vpop.f32.mrf.mxu0 }
 0x5e6   : > { %v4716_v4 = vadd.f32 %v19202_v3, %v24708_v14 }
 0x5e7   : > { %v4705_v18 = vpop.f32.mrf.mxu0 }
 0x5e8   : > { %v4706_v49 = vadd.f32 %v24708_v14, %v4705_v18  ;;  %v4893_v23 = vadd.f32 %v19240_v8, %v4716_v4 }
 0x5ea   : > { %v19205_v46 = vpop.f32.mrf.mxu0  ;;  %v4887_v51 = vadd.f32 %v4886_v11, %v4706_v49 }
 0x5eb   : > { %v4736_v1 = vadd.f32 %v19205_v46, %v24708_v14 }
 0x5ec   : > { %v4725_v56 = vpop.f32.mrf.mxu0 }
 0x5ed   : > { %v4726_v45 = vadd.f32 %v24708_v14, %v4725_v56  ;;  %v4905_v37 = vadd.f32 %v19243_v19, %v4736_v1 }
 0x5ef   : > { %v4899_v9 = vadd.f32 %v4898_v6, %v4726_v45 }
 0x5ff   : > { %v19316_v41 = vpop.f32.mrf.mxu1 }
 0x601   : > { %v5118_v15 = vpop.f32.mrf.mxu1 }
 0x604   : > { %v19319_v55 = vpop.f32.mrf.mxu1 }
 0x606   : > { %v5134_v53 = vpop.f32.mrf.mxu1 }
 0x608   : > { %v19278_v5 = vpop.f32.mrf.mxu0 }
 0x609   : > { %v5016_v20 = vadd.f32 %v19278_v5, %v4893_v23 }
 0x60a   : > { %v5008_v26 = vpop.f32.mrf.mxu0 }
 0x60b   : > { %v5009_v7 = vadd.f32 %v5008_v26, %v4887_v51  ;;  %v5127_v3 = vadd.f32 %v19316_v41, %v5016_v20 }
 0x60d   : > { %v19281_v21 = vpop.f32.mrf.mxu0  ;;  %v5119_v10 = vadd.f32 %v5118_v15, %v5009_v7 }
 0x60e   : > { %v5030_v62 = vadd.f32 %v19281_v21, %v4905_v37 }
 0x60f   : > { %v5022_v30 = vpop.f32.mrf.mxu0 }
 0x610   : > { %v5023_v59 = vadd.f32 %v5022_v30, %v4899_v9  ;;  %v5143_v60 = vadd.f32 %v19319_v55, %v5030_v62 }
 0x612   : > { %v5135_v26 = vadd.f32 %v5134_v53, %v5023_v59 }
 0x623   : > { %v19392_v43 = vpop.f32.mrf.mxu1 }
 0x625   : > { %v5366_v54 = vpop.f32.mrf.mxu1 }
 0x627   : > { %v19395_v24 = vpop.f32.mrf.mxu1 }
 0x629   : > { %v5378_v30 = vpop.f32.mrf.mxu1 }
 0x62a   : > { %v19354_v29 = vpop.f32.mrf.mxu0 }
 0x62b   : > { %v5268_v18 = vadd.f32 %v19354_v29, %v5127_v3 }
 0x62c   : > { %v5261_v46 = vpop.f32.mrf.mxu0 }
 0x62d   : > { %v5373_v8 = vadd.f32 %v19392_v43, %v5268_v18  ;;  %v5262_v4 = vadd.f32 %v5261_v46, %v5119_v10  ;;  %v29135_v46 = vld [vmem:[#allocation107_spill] sm:$0xff] }
 0x62e   : > { %v19357_v56 = vpop.f32.mrf.mxu0 }
 0x62f   : > { %v24714_v23 = vmax.f32 %v5373_v8, 0.0  ;;  %v5367_v5 = vadd.f32 %v5366_v54, %v5262_v4  ;;  %v5280_v51 = vadd.f32 %v19357_v56, %v5143_v60  ;;  %v29136_v56 = vld [vmem:[#allocation101_spill] sm:$0xff] }
 0x630   : > { %v5273_v1 = vpop.f32.mrf.mxu0 }
 0x631   : > { %v24717_v37 = vand.u32 4294901760, %v24714_v23  ;;  %v24719_v20 = vmax.f32 %v5367_v5, 0.0  ;;  %v5385_v9 = vadd.f32 %v19395_v24, %v5280_v51  ;;  %v5274_v29 = vadd.f32 %v5273_v1, %v5135_v26  ;;  %v29137_v5 = vld [vmem:[#allocation104_spill] sm:$0xff]  ;;  %v29138_v51 = vld [vmem:[#allocation105_spill] sm:$0xff]  ;;  %v29139_v26 = vld [vmem:[#allocation102_spill] sm:$0xff] }
 0x632   : > { %v29140_v1 = vld [vmem:[#allocation106_spill] sm:$0xff] }
 0x633   : > { %v24722_v7 = vand.u32 4294901760, %v24719_v20  ;;  %v24724_v10 = vmax.f32 %v5385_v9, 0.0  ;;  %v5379_v62 = vadd.f32 %v5378_v30, %v5274_v29  ;;  %v5521_v54 = vsub.f32 %v24714_v23, %v24717_v37  ;;  %v29141_v9 = vld [vmem:[#allocation87_spill] sm:$0xff]  ;;  %v29142_v29 = vld [vmem:[#allocation85_spill] sm:$0xff] }
 0x635   : > { %v24729_v60 = vand.u32 4294901760, %v24724_v10  ;;  %v24731_v59 = vmax.f32 %v5379_v62, 0.0  ;;  %v5528_v43 = vsub.f32 %v24719_v20, %v24722_v7  ;;  %v5522_v41 = vand.u32 4294901760, %v5521_v54 }
 0x637   : > { %v5507_v24 = vsub.f32 %v24724_v10, %v24729_v60  ;;  %v24738_v45 = vand.u32 4294901760, %v24731_v59  ;;  %19396 = vmatprep.subr.mxu0 %v24729_v60  ;;  %v5529_v19 = vand.u32 4294901760, %v5528_v43  ;;  %v5523_v49 = vsub.f32 %v5521_v54, %v5522_v41 }
 0x638   : > { %19397 = vmatpush3.msra.mxu0 %v24729_v60 }
 0x639   : > { %v5514_v21 = vsub.f32 %v24731_v59, %v24738_v45  ;;  %19398 = vmatprep.subr.mxu0 %v24738_v45  ;;  %v5508_v53 = vand.u32 4294901760, %v5507_v24  ;;  %v5530_v18 = vsub.f32 %v5528_v43, %v5529_v19  ;;  %v5524_v8 = vand.u32 4294901760, %v5523_v49 }
 0x63a   : > { %19399 = vmatpush3.msra.mxu0 %v24738_v45 }
 0x63b   : > { %19400 = vmatprep.subr.mxu0 %v24717_v37  ;;  %v5509_v15 = vsub.f32 %v5507_v24, %v5508_v53  ;;  %v5515_v11 = vand.u32 4294901760, %v5514_v21  ;;  %v5531_v4 = vand.u32 4294901760, %v5530_v18 }
 0x63c   : > { %19401 = vmatpush3.msra.mxu0 %v24717_v37 }
 0x63d   : > { %19402 = vmatprep.subr.mxu0 %v24722_v7  ;;  %v5510_v6 = vand.u32 4294901760, %v5509_v15  ;;  %v5516_v55 = vsub.f32 %v5514_v21, %v5515_v11 }
 0x63e   : > { %19403 = vmatpush3.msra.mxu0 %v24722_v7 }
 0x63f   : > { %19407 = vmatprep.subr.mxu1 %v5510_v6  ;;  %19418 = vmatprep.subr.mxu0 %v5507_v24  ;;  %v5517_v3 = vand.u32 4294901760, %v5516_v55 }
 0x640   : > { %19405 = vmatmul.mubr.f32.vlgmr.msra.gmra.mxu0 %v29135_v46  ;;  %19408 = vmatpush3.msra.mxu1 %v5510_v6 }
 0x641   : > { %19419 = vmatpush3.msra.mxu0 %v5507_v24  ;;  %19409 = vmatprep.subr.mxu1 %v5517_v3 }
 0x642   : > { %19420 = vmatprep.subr.mxu0 %v5514_v21  ;;  %19410 = vmatpush3.msra.mxu1 %v5517_v3 }
 0x643   : > { %19421 = vmatpush3.msra.mxu0 %v5514_v21  ;;  %19411 = vmatprep.subr.mxu1 %v5524_v8 }
 0x644   : > { %19422 = vmatprep.subr.mxu0 %v5521_v54  ;;  %19412 = vmatpush3.msra.mxu1 %v5524_v8 }
 0x645   : > { %19423 = vmatpush3.msra.mxu0 %v5521_v54  ;;  %19413 = vmatprep.subr.mxu1 %v5531_v4 }
 0x646   : > { %19424 = vmatprep.subr.mxu0 %v5528_v43  ;;  %19414 = vmatpush3.msra.mxu1 %v5531_v4 }
 0x647   : > { %19425 = vmatpush3.msra.mxu0 %v5528_v43  ;;  %19426 = vmatprep.mubr.f32.mxu0 %v29136_v56 }
 0x648   : > { %19429 = vmatprep.subr.mxu1 %v24729_v60  ;;  %19440 = vmatprep.subr.mxu0 %v5508_v53 }
 0x649   : > { %19416 = vmatmul.mubr.f32.vlgmr.msra.gmra.mxu1 %v29137_v5  ;;  %19427 = vmatmul.mubr.f32.vlgmr.msra.gmra.mxu0 %v29138_v51 }
 0x64a   : > { %19430 = vmatpush3.msra.mxu1 %v24729_v60  ;;  %19441 = vmatpush3.msra.mxu0 %v5508_v53 }
 0x64b   : > { %19431 = vmatprep.subr.mxu1 %v24738_v45  ;;  %19442 = vmatprep.subr.mxu0 %v5515_v11 }
 0x64c   : > { %19432 = vmatpush3.msra.mxu1 %v24738_v45  ;;  %19443 = vmatpush3.msra.mxu0 %v5515_v11 }
 0x64d   : > { %19433 = vmatprep.subr.mxu1 %v24717_v37  ;;  %19444 = vmatprep.subr.mxu0 %v5522_v41 }
 0x64e   : > { %19434 = vmatpush3.msra.mxu1 %v24717_v37  ;;  %19445 = vmatpush3.msra.mxu0 %v5522_v41 }
 0x64f   : > { %19435 = vmatprep.subr.mxu1 %v24722_v7  ;;  %19446 = vmatprep.subr.mxu0 %v5529_v19 }
 0x650   : > { %19436 = vmatpush3.msra.mxu1 %v24722_v7  ;;  %19437 = vmatprep.mubr.f32.mxu1 %v29139_v26 }
 0x651   : > { %19447 = vmatpush3.msra.mxu0 %v5529_v19  ;;  %19448 = vmatprep.mubr.f32.mxu0 %v29131_v17 }
 0x652   : > { %19438 = vmatmul.mubr.f32.vlgmr.msra.gmra.mxu1 %v29140_v1  ;;  %19449 = vmatmul.mubr.f32.vlgmr.msra.gmra.mxu0 %v29137_v5 }
 0x653   : > { %19451 = vmatprep.subr.mxu1 %v24729_v60  ;;  %19466 = vmatprep.mubr.f32.mxu0 %v29141_v9 }
 0x654   : > { %19452 = vmatpush3.msra.mxu1 %v24729_v60  ;;  %19459 = vmatprep.mubr.f32.mxu1 %v29131_v17 }
 0x655   : > { %19453 = vmatprep.subr.mxu1 %v24738_v45 }
 0x656   : > { %19454 = vmatpush3.msra.mxu1 %v24738_v45 }
 0x657   : > { %19455 = vmatprep.subr.mxu1 %v24717_v37 }
 0x658   : > { %19456 = vmatpush3.msra.mxu1 %v24717_v37 }
 0x659   : > { %19457 = vmatprep.subr.mxu1 %v24722_v7 }
 0x65a   : > { %19458 = vmatpush3.msra.mxu1 %v24722_v7 }
 0x65b   : > { %19460 = vmatmul.mubr.f32.vlgmr.msra.gmra.mxu1 %v29137_v5 }
 0x65c   : > { %19476 = vmatprep.mubr.msk.f32.mxu1 %vm2862_vm3, %v29142_v29 }
 0x700   : > { %v19406_v30 = vpop.f32.mrf.mxu0 }
 0x702   : > { %v5467_v62 = vpop.f32.mrf.mxu0 }
 0x709   : > { %v19417_v54 = vpop.f32.mrf.mxu1  ;;  %v19428_v43 = vpop.f32.mrf.mxu0 }
 0x70a   : > { %v5575_v24 = vadd.f32 %v19417_v54, %v19406_v30  ;;  %v29143_v54 = vld [vmem:[#allocation97_spill] sm:$0xff] }
 0x70b   : > { %v5568_v60 = vpop.f32.mrf.mxu1  ;;  %v5654_v53 = vpop.f32.mrf.mxu0 }
 0x70c   : > { %v5569_v45 = vadd.f32 %v5568_v60, %v5467_v62  ;;  %v5662_v41 = vadd.f32 %v19428_v43, %v5575_v24  ;;  %v29144_v24 = vld [vmem:[#allocation98_spill] sm:$0xff] }
 0x70e   : > { %v5655_v11 = vadd.f32 %v5654_v53, %v5569_v45  ;;  %v29145_v53 = vld [vmem:[#allocation99_spill] sm:$0xff] }
 0x712   : > { %v19439_v21 = vpop.f32.mrf.mxu1  ;;  %v19450_v15 = vpop.f32.mrf.mxu0 }
 0x713   : > { %v5747_v19 = vadd.f32 %v19439_v21, %v5662_v41 }
 0x714   : > { %v5738_v37 = vpop.f32.mrf.mxu1  ;;  %v5829_v6 = vpop.f32.mrf.mxu0 }
 0x715   : > { %v5739_v7 = vadd.f32 %v5738_v37, %v5655_v11  ;;  %v5836_v55 = vadd.f32 %v19450_v15, %v5747_v19  ;;  %v29147_v37 = vld [vmem:[#allocation88_spill] sm:$0xff]  ;;  %v29148_v15 = vld [vmem:[#allocation91_spill] sm:$0xff]  ;;  %v29151_v19 = vld [vmem:[#allocation94_spill] sm:$0xff] }
 0x716   : > { %v29150_v11 = vld [vmem:[#allocation92_spill] sm:$0xff] }
 0x717   : > { %v5830_v3 = vadd.f32 %v5829_v6, %v5739_v7  ;;  %v29152_v7 = vld [vmem:[#allocation90_spill] sm:$0xff]  ;;  %v29153_v6 = vld [vmem:[#allocation79_spill] sm:$0xff] }
 0x71b   : > { %v19461_v49 = vpop.f32.mrf.mxu1 }
 0x71c   : > { %v5917_v18 = vadd.f32 %v19461_v49, %v5836_v55  ;;  %v29154_v55 = vld [vmem:[#allocation93_spill] sm:$0xff]  ;;  %v29155_v49 = vld [vmem:[#allocation95_spill] sm:$0xff] }
 0x71d   : > { %v5910_v8 = vpop.f32.mrf.mxu1 }
 0x71e   : > { %v5949_v4 = vand.u32 4294901760, %v5917_v18  ;;  %v5911_v9 = vadd.f32 %v5910_v8, %v5830_v3  ;;  %v29156_v3 = vld [vmem:[#allocation96_spill] sm:$0xff]  ;;  %v29159_v8 = vld [vmem:[#allocation114_spill] sm:$0xff] }
 0x720   : > { %v6057_v1 = vsub.f32 %v5917_v18, %v5949_v4  ;;  %v5952_v26 = vand.u32 4294901760, %v5911_v9  ;;  %19462 = vmatprep.subr.mxu0 %v5949_v4  ;;  %v29157_v18 = vld [vmem:[#allocation110_spill] sm:$0xff] }
 0x721   : > { %19463 = vmatpush3.msra.mxu0 %v5949_v4 }
 0x722   : > { %v6064_v30 = vsub.f32 %v5911_v9, %v5952_v26  ;;  %19464 = vmatprep.subr.mxu0 %v5952_v26  ;;  %v6058_v62 = vand.u32 4294901760, %v6057_v1  ;;  %v29146_v9 = vld [vmem:[#allocation86_spill] sm:$0xff] }
 0x723   : > { %19465 = vmatpush3.msra.mxu0 %v5952_v26 }
 0x724   : > { %19467 = vmatmul.mubr.f32.vlgmr.msra.gmra.mxu0 %v29143_v54  ;;  %19482 = vmatprep.subr.mxu0 %v6057_v1  ;;  %v6059_v60 = vsub.f32 %v6057_v1, %v6058_v62  ;;  %v6065_v43 = vand.u32 4294901760, %v6064_v30 }
 0x725   : > { %19469 = vmatprep.mubr.f32.mxu0 %v29144_v24  ;;  %19483 = vmatpush3.msra.mxu0 %v6057_v1  ;;  %v29149_v1 = vld [vmem:[#allocation89_spill] sm:$0xff] }
 0x726   : > { %19484 = vmatprep.subr.mxu0 %v6064_v30  ;;  %v6060_v45 = vand.u32 4294901760, %v6059_v60  ;;  %v6066_v21 = vsub.f32 %v6064_v30, %v6065_v43  ;;  %v29163_v60 = vld [vmem:[#allocation123_spill] sm:$0xff] }
 0x727   : > { %19485 = vmatpush3.msra.mxu0 %v6064_v30  ;;  %v29161_v30 = vld [vmem:[#allocation119_spill] sm:$0xff] }
 0x728   : > { %19470 = vmatmul.mubr.f32.gmra.mxu0 %v29145_v53  ;;  %19472 = vmatprep.subr.mxu1 %v6060_v45  ;;  %v6067_v41 = vand.u32 4294901760, %v6066_v21  ;;  %v29166_v21 = vld [vmem:[#allocation134_spill] sm:$0xff] }
 0x729   : > { %19502 = vmatprep.subr.mxu0 %v6058_v62  ;;  %19473 = vmatpush3.msra.mxu1 %v6060_v45  ;;  %v29165_v45 = vld [vmem:[#allocation129_spill] sm:$0xff] }
 0x72a   : > { %19486 = vmatprep.mubr.f32.mxu0 %v29146_v9  ;;  %19474 = vmatprep.subr.mxu1 %v6067_v41 }
 0x72b   : > { %19475 = vmatpush3.msra.mxu1 %v6067_v41  ;;  %v29167_v41 = vld [vmem:[#allocation135_spill] sm:$0xff] }
 0x72c   : > { %19477 = vmatmul.mubr.msk.f32.vlgmr.msra.gmra.mxu1 %vm2862_vm3, %v29147_v37  ;;  %19487 = vmatmul.mubr.f32.vlgmr.msra.gmra.mxu0 %v29148_v15 }
 0x72d   : > { %19492 = vmatprep.subr.mxu1 %v5949_v4  ;;  %19503 = vmatpush3.msra.mxu0 %v6058_v62  ;;  %v29162_v62 = vld [vmem:[#allocation120_spill] sm:$0xff] }
 0x72e   : > { %19479 = vmatprep.mubr.msk.f32.mxu1 %vm2862_vm3, %v29149_v1  ;;  %19489 = vmatprep.mubr.f32.mxu0 %v29150_v11 }
 0x72f   : > { %19493 = vmatpush3.msra.mxu1 %v5949_v4  ;;  %19504 = vmatprep.subr.mxu0 %v6065_v43 }
 0x730   : > { %19494 = vmatprep.subr.mxu1 %v5952_v26  ;;  %19505 = vmatpush3.msra.mxu0 %v6065_v43  ;;  %v29164_v43 = vld [vmem:[#allocation126_spill] sm:$0xff] }
 0x731   : > { %19495 = vmatpush3.msra.mxu1 %v5952_v26  ;;  %19490 = vmatmul.mubr.f32.gmra.mxu0 %v29151_v19 }
 0x732   : > { %19480 = vmatmul.mubr.msk.f32.gmra.mxu1 %vm2862_vm3, %v29152_v7  ;;  %19512 = vmatprep.subr.mxu1 %v5949_v4 }
 0x733   : > { %19496 = vmatprep.mubr.f32.mxu1 %v29153_v6  ;;  %19506 = vmatprep.mubr.msk.f32.mxu0 %vm2862_vm3, %v29142_v29 }
 0x734   : > { %19522 = vmatprep.subr.mxu0 %v24254_v27 }
 0x735   : > { %19507 = vmatmul.mubr.msk.f32.vlgmr.msra.gmra.mxu0 %vm2862_vm3, %v29147_v37 }
 0x736   : > { %19497 = vmatmul.mubr.f32.vlgmr.msra.gmra.mxu1 %v29154_v55  ;;  %19509 = vmatprep.mubr.msk.f32.mxu0 %vm2862_vm3, %v29149_v1 }
 0x737   : > { %19513 = vmatpush3.msra.mxu1 %v5949_v4  ;;  %19499 = vmatprep.mubr.f32.mxu1 %v29155_v49  ;;  %v29160_v4 = vld [vmem:[#allocation116_spill] sm:$0xff] }
 0x738   : > { %19514 = vmatprep.subr.mxu1 %v5952_v26  ;;  %19523 = vmatpush3.msra.mxu0 %v24254_v27 }
 0x739   : > { %19515 = vmatpush3.msra.mxu1 %v5952_v26  ;;  %19510 = vmatmul.mubr.msk.f32.gmra.mxu0 %vm2862_vm3, %v29152_v7  ;;  %v29158_v26 = vld [vmem:[#allocation112_spill] sm:$0xff] }
 0x73a   : > { %19500 = vmatmul.mubr.f32.gmra.mxu1 %v29156_v3  ;;  %19560 = vmatprep.subr.mxu1 %v29157_v18 }
 0x73b   : > { %19516 = vmatprep.mubr.msk.f32.mxu1 %vm2862_vm3, %v29142_v29  ;;  %19524 = vmatprep.subr.mxu0 %v24259_v47 }
 0x73c   : > { %19525 = vmatpush3.msra.mxu0 %v24259_v47 }
 0x73d   : > { %19526 = vmatprep.subr.mxu0 %v24269_v44 }
 0x73e   : > { %19517 = vmatmul.mubr.msk.f32.vlgmr.msra.gmra.mxu1 %vm2862_vm3, %v29147_v37  ;;  %19527 = vmatpush3.msra.mxu0 %v24269_v44 }
 0x73f   : > { %19519 = vmatprep.mubr.msk.f32.mxu1 %vm2862_vm3, %v29149_v1  ;;  %19561 = vmatpush3.msra.mxu1 %v29157_v18 }
 0x740   : > { %19562 = vmatprep.subr.mxu1 %v29158_v26  ;;  %19528 = vmatprep.subr.mxu0 %v24281_v2 }
 0x741   : > { %19563 = vmatpush3.msra.mxu1 %v29158_v26  ;;  %19529 = vmatpush3.msra.mxu0 %v24281_v2 }
 0x742   : > { %19520 = vmatmul.mubr.msk.f32.gmra.mxu1 %vm2862_vm3, %v29152_v7  ;;  %19564 = vmatprep.subr.mxu1 %v29159_v8 }
 0x743   : > { %19565 = vmatpush3.msra.mxu1 %v29159_v8  ;;  %19530 = vmatprep.subr.mxu0 %v24296_v57 }
 0x744   : > { %19566 = vmatprep.subr.mxu1 %v29160_v4  ;;  %19531 = vmatpush3.msra.mxu0 %v24296_v57 }
 0x745   : > { %19567 = vmatpush3.msra.mxu1 %v29160_v4  ;;  %19532 = vmatprep.subr.mxu0 %v24307_v0 }
 0x746   : > { %19568 = vmatprep.subr.mxu1 %v29161_v30  ;;  %19533 = vmatpush3.msra.mxu0 %v24307_v0 }
 0x747   : > { %19569 = vmatpush3.msra.mxu1 %v29161_v30  ;;  %19534 = vmatprep.subr.mxu0 %v24322_v50 }
 0x748   : > { %19570 = vmatprep.subr.mxu1 %v29162_v62  ;;  %19535 = vmatpush3.msra.mxu0 %v24322_v50 }
 0x749   : > { %19571 = vmatpush3.msra.mxu1 %v29162_v62  ;;  %19536 = vmatprep.subr.mxu0 %v24339_v40 }
 0x74a   : > { %19572 = vmatprep.subr.mxu1 %v29163_v60  ;;  %19537 = vmatpush3.msra.mxu0 %v24339_v40 }
 0x74b   : > { %19573 = vmatpush3.msra.mxu1 %v29163_v60  ;;  %19538 = vmatprep.subr.mxu0 %v24355_v32 }
 0x74c   : > { %19574 = vmatprep.subr.mxu1 %v29164_v43  ;;  %19539 = vmatpush3.msra.mxu0 %v24355_v32 }
 0x74d   : > { %19575 = vmatpush3.msra.mxu1 %v29164_v43  ;;  %19540 = vmatprep.subr.mxu0 %v24374_v39  ;;  %v29168_v43 = vld [vmem:[#allocation138_spill] sm:$0xff] }
 0x74e   : > { %19576 = vmatprep.subr.mxu1 %v29165_v45  ;;  %19541 = vmatpush3.msra.mxu0 %v24374_v39 }
 0x74f   : > { %19577 = vmatpush3.msra.mxu1 %v29165_v45  ;;  %19542 = vmatprep.subr.mxu0 %v24385_v52  ;;  %v29169_v45 = vld [vmem:[#allocation141_spill] sm:$0xff] }
 0x750   : > { %19578 = vmatprep.subr.mxu1 %v29166_v21  ;;  %19543 = vmatpush3.msra.mxu0 %v24385_v52 }
 0x751   : > { %19579 = vmatpush3.msra.mxu1 %v29166_v21  ;;  %19544 = vmatprep.subr.mxu0 %v24401_v25  ;;  %v29170_v21 = vld [vmem:[#allocation144_spill] sm:$0xff] }
 0x752   : > { %19580 = vmatprep.subr.mxu1 %v29167_v41  ;;  %19545 = vmatpush3.msra.mxu0 %v24401_v25 }
 0x753   : > { %19581 = vmatpush3.msra.mxu1 %v29167_v41  ;;  %19546 = vmatprep.subr.mxu0 %v24418_v28  ;;  %v29171_v41 = vld [vmem:[#allocation146_spill] sm:$0xff] }
 0x754   : > { %19582 = vmatprep.subr.mxu1 %v29168_v43  ;;  %19547 = vmatpush3.msra.mxu0 %v24418_v28 }
 0x755   : > { %19583 = vmatpush3.msra.mxu1 %v29168_v43  ;;  %19548 = vmatprep.subr.mxu0 %v24434_v48  ;;  %v29172_v43 = vld [vmem:[#allocation147_spill] sm:$0xff] }
 0x756   : > { %19584 = vmatprep.subr.mxu1 %v29169_v45  ;;  %19549 = vmatpush3.msra.mxu0 %v24434_v48 }
 0x757   : > { %19585 = vmatpush3.msra.mxu1 %v29169_v45  ;;  %19550 = vmatprep.subr.mxu0 %v24454_v33 }
 0x758   : > { %19586 = vmatprep.subr.mxu1 %v29170_v21  ;;  %19551 = vmatpush3.msra.mxu0 %v24454_v33 }
 0x759   : > { %19587 = vmatpush3.msra.mxu1 %v29170_v21  ;;  %19552 = vmatprep.subr.mxu0 %v24465_v13 }
 0x75a   : > { %19588 = vmatprep.subr.mxu1 %v29171_v41  ;;  %19553 = vmatpush3.msra.mxu0 %v24465_v13 }
 0x75b   : > { %19589 = vmatpush3.msra.mxu1 %v29171_v41  ;;  %19598 = vmatprep.subr.mxu0 %v24257_v31 }
 0x75c   : > { %19590 = vmatprep.subr.mxu1 %v29172_v43 }
 0x75d   : > { %19591 = vmatpush3.msra.mxu1 %v29172_v43 }
 0x75e   : > { %19636 = vmatprep.subr.mxu1 %v24254_v27 }
 0x7e4   : > { %v19468_v45 = vpop.f32.mrf.mxu0 }
 0x7e6   : > { %v5993_v60 = vpop.f32.mrf.mxu0 }
 0x7e8   : > { %v19471_v62 = vpop.f32.mrf.mxu0 }
 0x7ea   : > { %v6013_v21 = vpop.f32.mrf.mxu0 }
 0x7ec   : > { %v19478_v30 = vpop.f32.mrf.mxu1  ;;  %v19488_v4 = vpop.f32.mrf.mxu0 }
 0x7ed   : > { %v6111_v49 = vadd.f32 %v19478_v30, %v19468_v45 }
 0x7ee   : > { %v6104_v8 = vpop.f32.mrf.mxu1  ;;  %v6198_v26 = vpop.f32.mrf.mxu0 }
 0x7ef   : > { %v6105_v6 = vadd.f32 %v6104_v8, %v5993_v60  ;;  %v6206_v11 = vadd.f32 %v19488_v4, %v6111_v49  ;;  %v6509_v49 = vmul.f32 %v24724_v10, %v24512_v22  ;;  %v6510_v10 = vmul.f32 %v24719_v20, %v24524_v42 }
 0x7f1   : > { %v19491_v18 = vpop.f32.mrf.mxu0  ;;  %v6199_v15 = vadd.f32 %v6198_v26, %v6105_v6 }
 0x7f2   : > { %v19481_v3 = vpop.f32.mrf.mxu1 }
 0x7f3   : > { %v6212_v41 = vpop.f32.mrf.mxu0  ;;  %v6123_v43 = vadd.f32 %v19481_v3, %v19471_v62 }
 0x7f4   : > { %v6116_v55 = vpop.f32.mrf.mxu1 }
 0x7f5   : > { %v19508_v19 = vpop.f32.mrf.mxu0  ;;  %v6117_v37 = vadd.f32 %v6116_v55, %v6013_v21  ;;  %v6220_v54 = vadd.f32 %v19491_v18, %v6123_v43 }
 0x7f6   : > { %v19498_v7 = vpop.f32.mrf.mxu1 }
 0x7f7   : > { %v6303_v9 = vadd.f32 %v19498_v7, %v6206_v11  ;;  %v6395_v53 = vpop.f32.mrf.mxu0  ;;  %v6213_v5 = vadd.f32 %v6212_v41, %v6117_v37  ;;  %v6508_v7 = vmul.f32 %v24731_v59, %v24514_v35 }
 0x7f8   : > { %v6294_v1 = vpop.f32.mrf.mxu1 }
 0x7f9   : > { %v6295_v29 = vadd.f32 %v6294_v1, %v6199_v15  ;;  %v6402_v56 = vadd.f32 %v19508_v19, %v6303_v9  ;;  %v19511_v30 = vpop.f32.mrf.mxu0 }
 0x7fa   : > { %v19501_v24 = vpop.f32.mrf.mxu1 }
 0x7fb   : > { %v6319_v46 = vadd.f32 %v19501_v24, %v6220_v54  ;;  %v6396_v14 = vadd.f32 %v6395_v53, %v6295_v29  ;;  %v6407_v15 = vpop.f32.mrf.mxu0  ;;  %v6511_v54 = vmul.f32 %v24714_v23, %v24518_v36 }
 0x7fc   : > { %v6310_v51 = vpop.f32.mrf.mxu1 }
 0x7fd   : > { %v6311_v8 = vadd.f32 %v6310_v51, %v6213_v5  ;;  %v6414_v6 = vadd.f32 %v19511_v30, %v6319_v46 }
 0x7fe   : > { %v19518_v45 = vpop.f32.mrf.mxu1 }
 0x7ff   : > { %v6493_v60 = vadd.f32 %v19518_v45, %v6402_v56  ;;  %v6408_v24 = vadd.f32 %v6407_v15, %v6311_v8  ;;  %v29177_v15 = vld [vmem:[#allocation133_spill] sm:$0xff] }
 0x800   : > { %v6486_v3 = vpop.f32.mrf.mxu1 }
 0x801   : > { %v6513_v55 = vsub.f32 %v6493_v60, %v6509_v49  ;;  %v6487_v11 = vadd.f32 %v6486_v3, %v6396_v14 }
 0x802   : > { %v19521_v1 = vpop.f32.mrf.mxu1 }
 0x803   : > { %v24884_v9 = vand.u32 4294901760, %v6513_v55  ;;  %v6512_v5 = vsub.f32 %v6487_v11, %v6508_v7  ;;  %v6505_v56 = vadd.f32 %v19521_v1, %v6414_v6  ;;  %v29173_v6 = vld [vmem:[#allocation122_spill] sm:$0xff]  ;;  %v29175_v11 = vld [vmem:[#allocation127_spill] sm:$0xff]  ;;  %v29178_v1 = vld [vmem:[#allocation137_spill] sm:$0xff] }
 0x804   : > { %v6498_v51 = vpop.f32.mrf.mxu1  ;;  %v29176_v7 = vld [vmem:[#allocation131_spill] sm:$0xff] }
 0x805   : > { %v24889_v46 = vsub.f32 %v6513_v55, %v24884_v9  ;;  %v24891_v14 = vand.u32 4294901760, %v6512_v5  ;;  %v6515_v59 = vsub.f32 %v6505_v56, %v6511_v54  ;;  %v6499_v29 = vadd.f32 %v6498_v51, %v6408_v24  ;;  %v29174_v55 = vld [vmem:[#allocation125_spill] sm:$0xff]  ;;  %v29179_v54 = vld [vmem:[#allocation140_spill] sm:$0xff]  ;;  %v29180_v24 = vld [vmem:[#allocation142_spill] sm:$0xff] }
 0x806   : > { %v29182_v56 = vld [vmem:[#allocation109_spill] sm:$0xff]  ;;  %v29183_v51 = vld [vmem:[#allocation111_spill] sm:$0xff] }
 0x807   : > { %v6609_v53 = vand.u32 4294901760, %v24889_v46  ;;  %v6598_v23 = vsub.f32 %v6512_v5, %v24891_v14  ;;  %v24895_v37 = vand.u32 4294901760, %v6515_v59  ;;  %v6514_v19 = vsub.f32 %v6499_v29, %v6510_v10  ;;  %19592 = vmatprep.mubr.f32.mxu1 %v24891_v14  ;;  %v29181_v5 = vld [vmem:[#allocation108_spill] sm:$0xff]  ;;  %v29184_v10 = vld [vmem:[#allocation113_spill] sm:$0xff] }
 0x808   : > { %19593 = vmatmul.mubr.f32.vlgmr.msra.gmra.mxu1 %v24884_v9  ;;  %v29188_v29 = vld [vmem:[#allocation121_spill] sm:$0xff] }
 0x809   : > { %v24900_v20 = vsub.f32 %v6515_v59, %v24895_v37  ;;  %v24902_v18 = vand.u32 4294901760, %v6514_v19  ;;  %19637 = vmatpush3.msra.mxu1 %v24254_v27  ;;  %v6599_v26 = vand.u32 4294901760, %v6598_v23  ;;  %v6610_v4 = vsub.f32 %v24889_v46, %v6609_v53  ;;  %v29186_v59 = vld [vmem:[#allocation117_spill] sm:$0xff] }
 0x80a   : > { %19638 = vmatprep.subr.mxu1 %v24259_v47 }
 0x80b   : > { %v24910_v62 = vsub.f32 %v6514_v19, %v24902_v18  ;;  %19639 = vmatpush3.msra.mxu1 %v24259_v47  ;;  %19595 = vmatprep.mubr.f32.mxu1 %v24902_v18  ;;  %v6600_v43 = vsub.f32 %v6598_v23, %v6599_v26  ;;  %v6629_v21 = vand.u32 4294901760, %v24900_v20  ;;  %v6611_v45 = vand.u32 4294901760, %v6610_v4  ;;  %v29191_v19 = vld [vmem:[#allocation130_spill] sm:$0xff]  ;;  %v29194_v4 = vld [vmem:[#allocation139_spill] sm:$0xff] }
 0x80c   : > { %19640 = vmatprep.subr.mxu1 %v24269_v44  ;;  %19596 = vmatmul.mubr.f32.gmra.mxu1 %v24895_v37 }
 0x80d   : > { %19641 = vmatpush3.msra.mxu1 %v24269_v44  ;;  %19668 = vmatprep.mubr.f32.mxu1 %v6599_v26  ;;  %v6601_v41 = vand.u32 4294901760, %v6600_v43  ;;  %v6619_v30 = vand.u32 4294901760, %v24910_v62  ;;  %v6630_v60 = vsub.f32 %v24900_v20, %v6629_v21  ;;  %v29193_v26 = vld [vmem:[#allocation136_spill] sm:$0xff]  ;;  %v29196_v43 = vld [vmem:[#allocation145_spill] sm:$0xff] }
 0x80e   : > { %19642 = vmatprep.subr.mxu1 %v24281_v2 }
 0x80f   : > { %19643 = vmatpush3.msra.mxu1 %v24281_v2  ;;  %19554 = vmatprep.mubr.f32.mxu0 %v6601_v41  ;;  %v6620_v8 = vsub.f32 %v24910_v62, %v6619_v30  ;;  %v6631_v3 = vand.u32 4294901760, %v6630_v60 }
 0x810   : > { %19644 = vmatprep.subr.mxu1 %v24296_v57  ;;  %19555 = vmatmul.mubr.f32.vlgmr.msra.gmra.mxu0 %v6611_v45 }
 0x811   : > { %19599 = vmatpush3.msra.mxu0 %v24257_v31  ;;  %19645 = vmatpush3.msra.mxu1 %v24296_v57  ;;  %v6621_v49 = vand.u32 4294901760, %v6620_v8 }
 0x812   : > { %19600 = vmatprep.subr.mxu0 %v24267_v61  ;;  %19646 = vmatprep.subr.mxu1 %v24307_v0 }
 0x813   : > { %19601 = vmatpush3.msra.mxu0 %v24267_v61  ;;  %19647 = vmatpush3.msra.mxu1 %v24307_v0 }
 0x814   : > { %19557 = vmatprep.mubr.f32.mxu0 %v6621_v49  ;;  %19602 = vmatprep.subr.mxu0 %v24279_v58 }
 0x815   : > { %19648 = vmatprep.subr.mxu1 %v24322_v50  ;;  %19558 = vmatmul.mubr.f32.gmra.mxu0 %v6631_v3 }
 0x816   : > { %19603 = vmatpush3.msra.mxu0 %v24279_v58  ;;  %19649 = vmatpush3.msra.mxu1 %v24322_v50 }
 0x817   : > { %19604 = vmatprep.subr.mxu0 %v24293_v16  ;;  %19630 = vmatprep.mubr.f32.mxu0 %v6598_v23  ;;  %v29190_v23 = vld [vmem:[#allocation128_spill] sm:$0xff] }
 0x818   : > { %19650 = vmatprep.subr.mxu1 %v24339_v40  ;;  %19605 = vmatpush3.msra.mxu0 %v24293_v16 }
 0x819   : > { %19651 = vmatpush3.msra.mxu1 %v24339_v40  ;;  %19606 = vmatprep.subr.mxu0 %v24311_v38 }
 0x81a   : > { %19652 = vmatprep.subr.mxu1 %v24355_v32  ;;  %19607 = vmatpush3.msra.mxu0 %v24311_v38 }
 0x81b   : > { %19653 = vmatpush3.msra.mxu1 %v24355_v32  ;;  %19608 = vmatprep.subr.mxu0 %v24320_v34 }
 0x81c   : > { %19654 = vmatprep.subr.mxu1 %v24374_v39  ;;  %19609 = vmatpush3.msra.mxu0 %v24320_v34 }
 0x81d   : > { %19655 = vmatpush3.msra.mxu1 %v24374_v39  ;;  %19610 = vmatprep.subr.mxu0 %v24337_v12 }
 0x81e   : > { %19656 = vmatprep.subr.mxu1 %v24385_v52  ;;  %19611 = vmatpush3.msra.mxu0 %v24337_v12 }
 0x81f   : > { %19657 = vmatpush3.msra.mxu1 %v24385_v52  ;;  %19612 = vmatprep.subr.mxu0 %v24353_v63 }
 0x820   : > { %19658 = vmatprep.subr.mxu1 %v24401_v25  ;;  %19613 = vmatpush3.msra.mxu0 %v24353_v63 }
 0x821   : > { %19659 = vmatpush3.msra.mxu1 %v24401_v25  ;;  %19614 = vmatprep.subr.mxu0 %v29173_v6 }
 0x822   : > { %19660 = vmatprep.subr.mxu1 %v24418_v28  ;;  %19615 = vmatpush3.msra.mxu0 %v29173_v6 }
 0x823   : > { %19661 = vmatpush3.msra.mxu1 %v24418_v28  ;;  %19616 = vmatprep.subr.mxu0 %v29174_v55 }
 0x824   : > { %19662 = vmatprep.subr.mxu1 %v24434_v48  ;;  %19617 = vmatpush3.msra.mxu0 %v29174_v55 }
 0x825   : > { %19663 = vmatpush3.msra.mxu1 %v24434_v48  ;;  %19618 = vmatprep.subr.mxu0 %v29175_v11 }
 0x826   : > { %19664 = vmatprep.subr.mxu1 %v24454_v33  ;;  %19619 = vmatpush3.msra.mxu0 %v29175_v11 }
 0x827   : > { %19665 = vmatpush3.msra.mxu1 %v24454_v33  ;;  %19620 = vmatprep.subr.mxu0 %v29176_v7 }
 0x828   : > { %19666 = vmatprep.subr.mxu1 %v24465_v13  ;;  %19621 = vmatpush3.msra.mxu0 %v29176_v7 }
 0x829   : > { %19667 = vmatpush3.msra.mxu1 %v24465_v13  ;;  %19622 = vmatprep.subr.mxu0 %v29177_v15 }
 0x82a   : > { %19669 = vmatmul.mubr.f32.vlgmr.msra.gmra.mxu1 %v6609_v53  ;;  %19712 = vmatprep.subr.mxu1 %v24254_v27  ;;  %v29189_v53 = vld [vmem:[#allocation124_spill] sm:$0xff] }
 0x82b   : > { %19623 = vmatpush3.msra.mxu0 %v29177_v15  ;;  %19671 = vmatprep.mubr.f32.mxu1 %v6619_v30 }
 0x82c   : > { %19713 = vmatpush3.msra.mxu1 %v24254_v27  ;;  %19624 = vmatprep.subr.mxu0 %v29178_v1 }
 0x82d   : > { %19714 = vmatprep.subr.mxu1 %v24259_v47  ;;  %19625 = vmatpush3.msra.mxu0 %v29178_v1 }
 0x82e   : > { %19715 = vmatpush3.msra.mxu1 %v24259_v47  ;;  %19626 = vmatprep.subr.mxu0 %v29179_v54 }
 0x82f   : > { %19672 = vmatmul.mubr.f32.gmra.mxu1 %v6629_v21  ;;  %19716 = vmatprep.subr.mxu1 %v24269_v44  ;;  %v29197_v21 = vld [vmem:[#allocation103_spill] sm:$0xff] }
 0x830   : > { %19627 = vmatpush3.msra.mxu0 %v29179_v54  ;;  %19717 = vmatpush3.msra.mxu1 %v24269_v44 }
 0x831   : > { %19744 = vmatprep.mubr.f32.mxu1 %v24891_v14  ;;  %19628 = vmatprep.subr.mxu0 %v29180_v24 }
 0x832   : > { %19718 = vmatprep.subr.mxu1 %v24281_v2  ;;  %19629 = vmatpush3.msra.mxu0 %v29180_v24 }
 0x833   : > { %19719 = vmatpush3.msra.mxu1 %v24281_v2  ;;  %19631 = vmatmul.mubr.f32.vlgmr.msra.gmra.mxu0 %v24889_v46  ;;  %v29185_v46 = vld [vmem:[#allocation115_spill] sm:$0xff] }
 0x834   : > { %19674 = vmatprep.subr.mxu0 %v29181_v5  ;;  %19720 = vmatprep.subr.mxu1 %v24296_v57 }
 0x835   : > { %19633 = vmatprep.mubr.f32.mxu0 %v24910_v62  ;;  %19675 = vmatpush3.msra.mxu0 %v29181_v5  ;;  %v29195_v62 = vld [vmem:[#allocation143_spill] sm:$0xff] }
 0x836   : > { %19721 = vmatpush3.msra.mxu1 %v24296_v57  ;;  %19676 = vmatprep.subr.mxu0 %v29182_v56 }
 0x837   : > { %19722 = vmatprep.subr.mxu1 %v24307_v0  ;;  %19677 = vmatpush3.msra.mxu0 %v29182_v56 }
 0x838   : > { %19723 = vmatpush3.msra.mxu1 %v24307_v0  ;;  %19634 = vmatmul.mubr.f32.gmra.mxu0 %v24900_v20  ;;  %v29192_v20 = vld [vmem:[#allocation132_spill] sm:$0xff] }
 0x839   : > { %19678 = vmatprep.subr.mxu0 %v29183_v51  ;;  %19724 = vmatprep.subr.mxu1 %v24322_v50 }
 0x83a   : > { %19679 = vmatpush3.msra.mxu0 %v29183_v51  ;;  %19706 = vmatprep.mubr.f32.mxu0 %v24891_v14  ;;  %v29187_v14 = vld [vmem:[#allocation118_spill] sm:$0xff] }
 0x83b   : > { %19725 = vmatpush3.msra.mxu1 %v24322_v50  ;;  %19680 = vmatprep.subr.mxu0 %v29184_v10 }
 0x83c   : > { %19726 = vmatprep.subr.mxu1 %v24339_v40  ;;  %19681 = vmatpush3.msra.mxu0 %v29184_v10 }
 0x83d   : > { %19727 = vmatpush3.msra.mxu1 %v24339_v40  ;;  %19682 = vmatprep.subr.mxu0 %v29185_v46 }
 0x83e   : > { %19728 = vmatprep.subr.mxu1 %v24355_v32  ;;  %19683 = vmatpush3.msra.mxu0 %v29185_v46 }
 0x83f   : > { %19729 = vmatpush3.msra.mxu1 %v24355_v32  ;;  %19684 = vmatprep.subr.mxu0 %v29186_v59 }
 0x840   : > { %19730 = vmatprep.subr.mxu1 %v24374_v39  ;;  %19685 = vmatpush3.msra.mxu0 %v29186_v59 }
 0x841   : > { %19731 = vmatpush3.msra.mxu1 %v24374_v39  ;;  %19686 = vmatprep.subr.mxu0 %v29187_v14 }
 0x842   : > { %19732 = vmatprep.subr.mxu1 %v24385_v52  ;;  %19687 = vmatpush3.msra.mxu0 %v29187_v14 }
 0x843   : > { %19733 = vmatpush3.msra.mxu1 %v24385_v52  ;;  %19688 = vmatprep.subr.mxu0 %v29188_v29 }
 0x844   : > { %19734 = vmatprep.subr.mxu1 %v24401_v25  ;;  %19689 = vmatpush3.msra.mxu0 %v29188_v29 }
 0x845   : > { %19735 = vmatpush3.msra.mxu1 %v24401_v25  ;;  %19690 = vmatprep.subr.mxu0 %v29189_v53 }
 0x846   : > { %19736 = vmatprep.subr.mxu1 %v24418_v28  ;;  %19691 = vmatpush3.msra.mxu0 %v29189_v53 }
 0x847   : > { %19737 = vmatpush3.msra.mxu1 %v24418_v28  ;;  %19692 = vmatprep.subr.mxu0 %v29190_v23 }
 0x848   : > { %19738 = vmatprep.subr.mxu1 %v24434_v48  ;;  %19693 = vmatpush3.msra.mxu0 %v29190_v23 }
 0x849   : > { %19739 = vmatpush3.msra.mxu1 %v24434_v48  ;;  %19694 = vmatprep.subr.mxu0 %v29191_v19 }
 0x84a   : > { %19740 = vmatprep.subr.mxu1 %v24454_v33  ;;  %19695 = vmatpush3.msra.mxu0 %v29191_v19 }
 0x84b   : > { %19741 = vmatpush3.msra.mxu1 %v24454_v33  ;;  %19696 = vmatprep.subr.mxu0 %v29192_v20 }
 0x84c   : > { %19742 = vmatprep.subr.mxu1 %v24465_v13  ;;  %19697 = vmatpush3.msra.mxu0 %v29192_v20 }
 0x84d   : > { %19743 = vmatpush3.msra.mxu1 %v24465_v13  ;;  %19698 = vmatprep.subr.mxu0 %v29193_v26 }
 0x84e   : > { %19745 = vmatmul.mubr.f32.vlgmr.msra.gmra.mxu1 %v24884_v9  ;;  %19699 = vmatpush3.msra.mxu0 %v29193_v26 }
 0x84f   : > { %19747 = vmatprep.mubr.f32.mxu1 %v24902_v18  ;;  %19700 = vmatprep.subr.mxu0 %v29194_v4 }
 0x850   : > { %19701 = vmatpush3.msra.mxu0 %v29194_v4 }
 0x851   : > { %19702 = vmatprep.subr.mxu0 %v29195_v62 }
 0x852   : > { %19748 = vmatmul.mubr.f32.gmra.mxu1 %v24895_v37  ;;  %19703 = vmatpush3.msra.mxu0 %v29195_v62 }
 0x853   : > { %19704 = vmatprep.subr.mxu0 %v29196_v43  ;;  %19769 = vmatprep.mubr.f32.mxu1 %v29131_v17 }
 0x854   : > { %19705 = vmatpush3.msra.mxu0 %v29196_v43  ;;  %v29198_v43 = vld [vmem:[#allocation100_spill] sm:$0xff] }
 0x855   : > { %19707 = vmatmul.mubr.f32.vlgmr.msra.gmra.mxu0 %v24884_v9 }
 0x856   : > { %19709 = vmatprep.mubr.f32.mxu0 %v24902_v18 }
 0x859   : > { %19710 = vmatmul.mubr.f32.gmra.mxu0 %v24895_v37 }
 0x85a   : > { %19758 = vmatprep.mubr.f32.mxu0 %v29197_v21 }
 0x8c8   : > { %v19594_v41 = vpop.f32.mrf.mxu1 }
 0x8ca   : > { %v6784_v30 = vpop.f32.mrf.mxu1 }
 0x8cc   : > { %v19597_v8 = vpop.f32.mrf.mxu1 }
 0x8ce   : > { %v6796_v49 = vpop.f32.mrf.mxu1 }
 0x8d0   : > { %v19556_v45 = vpop.f32.mrf.mxu0 }
 0x8d1   : > { %v6614_v19 = vadd.f32 %v19556_v45, %v29198_v43 }
 0x8d2   : > { %v6603_v60 = vpop.f32.mrf.mxu0 }
 0x8d3   : > { %v6604_v18 = vadd.f32 %v29198_v43, %v6603_v60  ;;  %v6791_v21 = vadd.f32 %v19594_v41, %v6614_v19 }
 0x8d5   : > { %v19559_v3 = vpop.f32.mrf.mxu0  ;;  %v6785_v46 = vadd.f32 %v6784_v30, %v6604_v18 }
 0x8d6   : > { %v6634_v37 = vadd.f32 %v19559_v3, %v29198_v43 }
 0x8d7   : > { %v6623_v4 = vpop.f32.mrf.mxu0 }
 0x8d8   : > { %v6624_v14 = vadd.f32 %v29198_v43, %v6623_v4  ;;  %v6803_v56 = vadd.f32 %v19597_v8, %v6634_v37 }
 0x8da   : > { %v6797_v54 = vadd.f32 %v6796_v49, %v6624_v14 }
 0x8ea   : > { %v19670_v62 = vpop.f32.mrf.mxu1 }
 0x8ec   : > { %v7016_v26 = vpop.f32.mrf.mxu1 }
 0x8ef   : > { %v19673_v9 = vpop.f32.mrf.mxu1 }
 0x8f1   : > { %v7032_v53 = vpop.f32.mrf.mxu1 }
 0x8f3   : > { %v19632_v20 = vpop.f32.mrf.mxu0 }
 0x8f4   : > { %v6914_v59 = vadd.f32 %v19632_v20, %v6791_v21 }
 0x8f5   : > { %v6906_v23 = vpop.f32.mrf.mxu0 }
 0x8f6   : > { %v6907_v51 = vadd.f32 %v6906_v23, %v6785_v46  ;;  %v7025_v45 = vadd.f32 %v19670_v62, %v6914_v59 }
 0x8f8   : > { %v19635_v29 = vpop.f32.mrf.mxu0  ;;  %v7017_v11 = vadd.f32 %v7016_v26, %v6907_v51 }
 0x8f9   : > { %v6928_v24 = vadd.f32 %v19635_v29, %v6803_v56 }
 0x8fa   : > { %v6920_v5 = vpop.f32.mrf.mxu0 }
 0x8fb   : > { %v6921_v7 = vadd.f32 %v6920_v5, %v6797_v54  ;;  %v7041_v55 = vadd.f32 %v19673_v9, %v6928_v24 }
 0x8fd   : > { %v7033_v23 = vadd.f32 %v7032_v53, %v6921_v7 }
 0x90e   : > { %v19746_v10 = vpop.f32.mrf.mxu1 }
 0x910   : > { %v7264_v1 = vpop.f32.mrf.mxu1 }
 0x912   : > { %v19749_v6 = vpop.f32.mrf.mxu1 }
 0x914   : > { %v7276_v5 = vpop.f32.mrf.mxu1 }
 0x915   : > { %v19708_v15 = vpop.f32.mrf.mxu0 }
 0x916   : > { %v7166_v60 = vadd.f32 %v19708_v15, %v7025_v45 }
 0x917   : > { %v7159_v3 = vpop.f32.mrf.mxu0 }
 0x918   : > { %v7271_v19 = vadd.f32 %v19746_v10, %v7166_v60  ;;  %v7160_v41 = vadd.f32 %v7159_v3, %v7017_v11  ;;  %v29199_v60 = vld [vmem:[#allocation107_spill] sm:$0xff] }
 0x919   : > { %v19711_v4 = vpop.f32.mrf.mxu0 }
 0x91a   : > { %v25069_v20 = vmax.f32 %v7271_v19, 0.0  ;;  %v7265_v43 = vadd.f32 %v7264_v1, %v7160_v41  ;;  %v7178_v46 = vadd.f32 %v19711_v4, %v7041_v55  ;;  %v29200_v41 = vld [vmem:[#allocation101_spill] sm:$0xff]  ;;  %v29201_v4 = vld [vmem:[#allocation104_spill] sm:$0xff] }
 0x91b   : > { %v7171_v21 = vpop.f32.mrf.mxu0 }
 0x91c   : > { %v25072_v56 = vand.u32 4294901760, %v25069_v20  ;;  %v25074_v59 = vmax.f32 %v7265_v43, 0.0  ;;  %v7283_v54 = vadd.f32 %v19749_v6, %v7178_v46  ;;  %v7172_v15 = vadd.f32 %v7171_v21, %v7033_v23  ;;  %v29202_v43 = vld [vmem:[#allocation105_spill] sm:$0xff]  ;;  %v29203_v46 = vld [vmem:[#allocation102_spill] sm:$0xff]  ;;  %v29205_v21 = vld [vmem:[#allocation87_spill] sm:$0xff] }
 0x91d   : > { %v29204_v23 = vld [vmem:[#allocation106_spill] sm:$0xff] }
 0x91e   : > { %v25077_v51 = vand.u32 4294901760, %v25074_v59  ;;  %v25079_v11 = vmax.f32 %v7283_v54, 0.0  ;;  %v7277_v24 = vadd.f32 %v7276_v5, %v7172_v15  ;;  %v7419_v1 = vsub.f32 %v25069_v20, %v25072_v56  ;;  %v29206_v54 = vld [vmem:[#allocation85_spill] sm:$0xff] }
 0x920   : > { %v25084_v55 = vand.u32 4294901760, %v25079_v11  ;;  %v25086_v7 = vmax.f32 %v7277_v24, 0.0  ;;  %v7426_v10 = vsub.f32 %v25074_v59, %v25077_v51  ;;  %v7420_v26 = vand.u32 4294901760, %v7419_v1 }
 0x922   : > { %v7405_v6 = vsub.f32 %v25079_v11, %v25084_v55  ;;  %v25093_v14 = vand.u32 4294901760, %v25086_v7  ;;  %19750 = vmatprep.subr.mxu0 %v25084_v55  ;;  %v7427_v8 = vand.u32 4294901760, %v7426_v10  ;;  %v7421_v18 = vsub.f32 %v7419_v1, %v7420_v26 }
 0x923   : > { %19751 = vmatpush3.msra.mxu0 %v25084_v55 }
 0x924   : > { %v7412_v29 = vsub.f32 %v25086_v7, %v25093_v14  ;;  %19752 = vmatprep.subr.mxu0 %v25093_v14  ;;  %v7406_v53 = vand.u32 4294901760, %v7405_v6  ;;  %v7428_v45 = vsub.f32 %v7426_v10, %v7427_v8  ;;  %v7422_v3 = vand.u32 4294901760, %v7421_v18 }
 0x925   : > { %19753 = vmatpush3.msra.mxu0 %v25093_v14 }
 0x926   : > { %19754 = vmatprep.subr.mxu0 %v25072_v56  ;;  %v7407_v62 = vsub.f32 %v7405_v6, %v7406_v53  ;;  %v7413_v30 = vand.u32 4294901760, %v7412_v29  ;;  %v7429_v19 = vand.u32 4294901760, %v7428_v45 }
 0x927   : > { %19755 = vmatpush3.msra.mxu0 %v25072_v56 }
 0x928   : > { %19756 = vmatprep.subr.mxu0 %v25077_v51  ;;  %v7408_v49 = vand.u32 4294901760, %v7407_v62  ;;  %v7414_v9 = vsub.f32 %v7412_v29, %v7413_v30 }
 0x929   : > { %19757 = vmatpush3.msra.mxu0 %v25077_v51 }
 0x92a   : > { %19761 = vmatprep.subr.mxu1 %v7408_v49  ;;  %19772 = vmatprep.subr.mxu0 %v7405_v6  ;;  %v7415_v37 = vand.u32 4294901760, %v7414_v9 }
 0x92b   : > { %19759 = vmatmul.mubr.f32.vlgmr.msra.gmra.mxu0 %v29199_v60  ;;  %19762 = vmatpush3.msra.mxu1 %v7408_v49 }
 0x92c   : > { %19773 = vmatpush3.msra.mxu0 %v7405_v6  ;;  %19763 = vmatprep.subr.mxu1 %v7415_v37 }
 0x92d   : > { %19774 = vmatprep.subr.mxu0 %v7412_v29  ;;  %19764 = vmatpush3.msra.mxu1 %v7415_v37 }
 0x92e   : > { %19775 = vmatpush3.msra.mxu0 %v7412_v29  ;;  %19765 = vmatprep.subr.mxu1 %v7422_v3 }
 0x92f   : > { %19776 = vmatprep.subr.mxu0 %v7419_v1  ;;  %19766 = vmatpush3.msra.mxu1 %v7422_v3 }
 0x930   : > { %19777 = vmatpush3.msra.mxu0 %v7419_v1  ;;  %19767 = vmatprep.subr.mxu1 %v7429_v19 }
 0x931   : > { %19778 = vmatprep.subr.mxu0 %v7426_v10  ;;  %19768 = vmatpush3.msra.mxu1 %v7429_v19 }
 0x932   : > { %19779 = vmatpush3.msra.mxu0 %v7426_v10  ;;  %19780 = vmatprep.mubr.f32.mxu0 %v29200_v41 }
 0x933   : > { %19783 = vmatprep.subr.mxu1 %v25084_v55  ;;  %19794 = vmatprep.subr.mxu0 %v7406_v53 }
 0x934   : > { %19770 = vmatmul.mubr.f32.vlgmr.msra.gmra.mxu1 %v29201_v4  ;;  %19781 = vmatmul.mubr.f32.vlgmr.msra.gmra.mxu0 %v29202_v43 }
 0x935   : > { %19784 = vmatpush3.msra.mxu1 %v25084_v55  ;;  %19795 = vmatpush3.msra.mxu0 %v7406_v53 }
 0x936   : > { %19785 = vmatprep.subr.mxu1 %v25093_v14  ;;  %19796 = vmatprep.subr.mxu0 %v7413_v30 }
 0x937   : > { %19786 = vmatpush3.msra.mxu1 %v25093_v14  ;;  %19797 = vmatpush3.msra.mxu0 %v7413_v30 }
 0x938   : > { %19787 = vmatprep.subr.mxu1 %v25072_v56  ;;  %19798 = vmatprep.subr.mxu0 %v7420_v26 }
 0x939   : > { %19788 = vmatpush3.msra.mxu1 %v25072_v56  ;;  %19799 = vmatpush3.msra.mxu0 %v7420_v26 }
 0x93a   : > { %19789 = vmatprep.subr.mxu1 %v25077_v51  ;;  %19800 = vmatprep.subr.mxu0 %v7427_v8 }
 0x93b   : > { %19790 = vmatpush3.msra.mxu1 %v25077_v51  ;;  %19791 = vmatprep.mubr.f32.mxu1 %v29203_v46 }
 0x93c   : > { %19801 = vmatpush3.msra.mxu0 %v7427_v8  ;;  %19802 = vmatprep.mubr.f32.mxu0 %v29131_v17 }
 0x93d   : > { %19792 = vmatmul.mubr.f32.vlgmr.msra.gmra.mxu1 %v29204_v23  ;;  %19803 = vmatmul.mubr.f32.vlgmr.msra.gmra.mxu0 %v29201_v4 }
 0x93e   : > { %19805 = vmatprep.subr.mxu1 %v25084_v55  ;;  %19820 = vmatprep.mubr.f32.mxu0 %v29205_v21 }
 0x93f   : > { %19806 = vmatpush3.msra.mxu1 %v25084_v55  ;;  %19813 = vmatprep.mubr.f32.mxu1 %v29131_v17 }
 0x940   : > { %19807 = vmatprep.subr.mxu1 %v25093_v14 }
 0x941   : > { %19808 = vmatpush3.msra.mxu1 %v25093_v14 }
 0x942   : > { %19809 = vmatprep.subr.mxu1 %v25072_v56 }
 0x943   : > { %19810 = vmatpush3.msra.mxu1 %v25072_v56 }
 0x944   : > { %19811 = vmatprep.subr.mxu1 %v25077_v51 }
 0x945   : > { %19812 = vmatpush3.msra.mxu1 %v25077_v51 }
 0x946   : > { %19814 = vmatmul.mubr.f32.vlgmr.msra.gmra.mxu1 %v29201_v4 }
 0x947   : > { %19830 = vmatprep.mubr.msk.f32.mxu1 %vm2862_vm3, %v29206_v54 }
 0x9eb   : > { %v19760_v15 = vpop.f32.mrf.mxu0 }
 0x9ed   : > { %v7365_v5 = vpop.f32.mrf.mxu0 }
 0x9f4   : > { %v19771_v24 = vpop.f32.mrf.mxu1  ;;  %v19782_v55 = vpop.f32.mrf.mxu0 }
 0x9f5   : > { %v7473_v10 = vadd.f32 %v19771_v24, %v19760_v15  ;;  %v29207_v24 = vld [vmem:[#allocation97_spill] sm:$0xff] }
 0x9f6   : > { %v7466_v1 = vpop.f32.mrf.mxu1  ;;  %v7552_v29 = vpop.f32.mrf.mxu0 }
 0x9f7   : > { %v7467_v6 = vadd.f32 %v7466_v1, %v7365_v5  ;;  %v7560_v53 = vadd.f32 %v19782_v55, %v7473_v10  ;;  %v29208_v10 = vld [vmem:[#allocation98_spill] sm:$0xff] }
 0x9f9   : > { %v7553_v62 = vadd.f32 %v7552_v29, %v7467_v6  ;;  %v29209_v29 = vld [vmem:[#allocation99_spill] sm:$0xff] }
 0x9fd   : > { %v19793_v14 = vpop.f32.mrf.mxu1  ;;  %v19804_v26 = vpop.f32.mrf.mxu0 }
 0x9fe   : > { %v7645_v30 = vadd.f32 %v19793_v14, %v7560_v53 }
 0x9ff   : > { %v7636_v56 = vpop.f32.mrf.mxu1  ;;  %v7727_v8 = vpop.f32.mrf.mxu0 }
 0xa00   : > { %v7637_v51 = vadd.f32 %v7636_v56, %v7553_v62  ;;  %v7734_v49 = vadd.f32 %v19804_v26, %v7645_v30  ;;  %v29210_v56 = vld [vmem:[#allocation86_spill] sm:$0xff]  ;;  %v29211_v26 = vld [vmem:[#allocation88_spill] sm:$0xff]  ;;  %v29212_v62 = vld [vmem:[#allocation91_spill] sm:$0xff] }
 0xa01   : > { %v29213_v30 = vld [vmem:[#allocation89_spill] sm:$0xff] }
 0xa02   : > { %v7728_v18 = vadd.f32 %v7727_v8, %v7637_v51  ;;  %v29214_v51 = vld [vmem:[#allocation92_spill] sm:$0xff]  ;;  %v29215_v8 = vld [vmem:[#allocation94_spill] sm:$0xff] }
 0xa06   : > { %v19815_v9 = vpop.f32.mrf.mxu1 }
 0xa07   : > { %v7815_v37 = vadd.f32 %v19815_v9, %v7734_v49  ;;  %v29216_v49 = vld [vmem:[#allocation90_spill] sm:$0xff]  ;;  %v29217_v9 = vld [vmem:[#allocation79_spill] sm:$0xff] }
 0xa08   : > { %v7808_v45 = vpop.f32.mrf.mxu1 }
 0xa09   : > { %v7847_v3 = vand.u32 4294901760, %v7815_v37  ;;  %v7809_v19 = vadd.f32 %v7808_v45, %v7728_v18  ;;  %v29218_v18 = vld [vmem:[#allocation93_spill] sm:$0xff]  ;;  %v29220_v45 = vld [vmem:[#allocation96_spill] sm:$0xff] }
 0xa0b   : > { %v7955_v21 = vsub.f32 %v7815_v37, %v7847_v3  ;;  %v7850_v23 = vand.u32 4294901760, %v7809_v19  ;;  %19816 = vmatprep.subr.mxu0 %v7847_v3  ;;  %v29219_v37 = vld [vmem:[#allocation95_spill] sm:$0xff] }
 0xa0c   : > { %19817 = vmatpush3.msra.mxu0 %v7847_v3 }
 0xa0d   : > { %v7962_v15 = vsub.f32 %v7809_v19, %v7850_v23  ;;  %19818 = vmatprep.subr.mxu0 %v7850_v23  ;;  %v7956_v5 = vand.u32 4294901760, %v7955_v21  ;;  %v29221_v19 = vld [vmem:[#allocation110_spill] sm:$0xff] }
 0xa0e   : > { %19819 = vmatpush3.msra.mxu0 %v7850_v23 }
 0xa0f   : > { %19821 = vmatmul.mubr.f32.vlgmr.msra.gmra.mxu0 %v29207_v24  ;;  %19836 = vmatprep.subr.mxu0 %v7955_v21  ;;  %v7957_v1 = vsub.f32 %v7955_v21, %v7956_v5  ;;  %v7963_v55 = vand.u32 4294901760, %v7962_v15  ;;  %v29228_v24 = vld [vmem:[#allocation126_spill] sm:$0xff] }
 0xa10   : > { %19823 = vmatprep.mubr.f32.mxu0 %v29208_v10  ;;  %19837 = vmatpush3.msra.mxu0 %v7955_v21  ;;  %v29225_v21 = vld [vmem:[#allocation119_spill] sm:$0xff] }
 0xa11   : > { %19838 = vmatprep.subr.mxu0 %v7962_v15  ;;  %v7958_v6 = vand.u32 4294901760, %v7957_v1  ;;  %v7964_v14 = vsub.f32 %v7962_v15, %v7963_v55  ;;  %v29229_v1 = vld [vmem:[#allocation129_spill] sm:$0xff]  ;;  %v29231_v10 = vld [vmem:[#allocation135_spill] sm:$0xff] }
 0xa12   : > { %19839 = vmatpush3.msra.mxu0 %v7962_v15  ;;  %v29226_v15 = vld [vmem:[#allocation120_spill] sm:$0xff] }
 0xa13   : > { %19824 = vmatmul.mubr.f32.gmra.mxu0 %v29209_v29  ;;  %19826 = vmatprep.subr.mxu1 %v7958_v6  ;;  %v7965_v53 = vand.u32 4294901760, %v7964_v14  ;;  %v29233_v14 = vld [vmem:[#allocation141_spill] sm:$0xff]  ;;  %v29234_v29 = vld [vmem:[#allocation144_spill] sm:$0xff] }
 0xa14   : > { %19856 = vmatprep.subr.mxu0 %v7956_v5  ;;  %19827 = vmatpush3.msra.mxu1 %v7958_v6  ;;  %v29232_v6 = vld [vmem:[#allocation138_spill] sm:$0xff] }
 0xa15   : > { %19840 = vmatprep.mubr.f32.mxu0 %v29210_v56  ;;  %19828 = vmatprep.subr.mxu1 %v7965_v53  ;;  %v29236_v56 = vld [vmem:[#allocation147_spill] sm:$0xff] }
 0xa16   : > { %19829 = vmatpush3.msra.mxu1 %v7965_v53  ;;  %v29235_v53 = vld [vmem:[#allocation146_spill] sm:$0xff] }
 0xa17   : > { %19831 = vmatmul.mubr.msk.f32.vlgmr.msra.gmra.mxu1 %vm2862_vm3, %v29211_v26  ;;  %19841 = vmatmul.mubr.f32.vlgmr.msra.gmra.mxu0 %v29212_v62 }
 0xa18   : > { %19846 = vmatprep.subr.mxu1 %v7847_v3  ;;  %19857 = vmatpush3.msra.mxu0 %v7956_v5  ;;  %v29227_v5 = vld [vmem:[#allocation123_spill] sm:$0xff] }
 0xa19   : > { %19833 = vmatprep.mubr.msk.f32.mxu1 %vm2862_vm3, %v29213_v30  ;;  %19843 = vmatprep.mubr.f32.mxu0 %v29214_v51 }
 0xa1a   : > { %19847 = vmatpush3.msra.mxu1 %v7847_v3  ;;  %19858 = vmatprep.subr.mxu0 %v7963_v55 }
 0xa1b   : > { %19848 = vmatprep.subr.mxu1 %v7850_v23  ;;  %19859 = vmatpush3.msra.mxu0 %v7963_v55  ;;  %v29230_v55 = vld [vmem:[#allocation134_spill] sm:$0xff] }
 0xa1c   : > { %19849 = vmatpush3.msra.mxu1 %v7850_v23  ;;  %19844 = vmatmul.mubr.f32.gmra.mxu0 %v29215_v8 }
 0xa1d   : > { %19834 = vmatmul.mubr.msk.f32.gmra.mxu1 %vm2862_vm3, %v29216_v49  ;;  %19866 = vmatprep.subr.mxu1 %v7847_v3 }
 0xa1e   : > { %19850 = vmatprep.mubr.f32.mxu1 %v29217_v9  ;;  %19860 = vmatprep.mubr.msk.f32.mxu0 %vm2862_vm3, %v29206_v54 }
 0xa1f   : > { %19876 = vmatprep.subr.mxu0 %v24254_v27 }
 0xa20   : > { %19861 = vmatmul.mubr.msk.f32.vlgmr.msra.gmra.mxu0 %vm2862_vm3, %v29211_v26 }
 0xa21   : > { %19851 = vmatmul.mubr.f32.vlgmr.msra.gmra.mxu1 %v29218_v18  ;;  %19863 = vmatprep.mubr.msk.f32.mxu0 %vm2862_vm3, %v29213_v30 }
 0xa22   : > { %19867 = vmatpush3.msra.mxu1 %v7847_v3  ;;  %19853 = vmatprep.mubr.f32.mxu1 %v29219_v37  ;;  %v29224_v3 = vld [vmem:[#allocation116_spill] sm:$0xff] }
 0xa23   : > { %19868 = vmatprep.subr.mxu1 %v7850_v23  ;;  %19877 = vmatpush3.msra.mxu0 %v24254_v27 }
 0xa24   : > { %19869 = vmatpush3.msra.mxu1 %v7850_v23  ;;  %19864 = vmatmul.mubr.msk.f32.gmra.mxu0 %vm2862_vm3, %v29216_v49  ;;  %v29222_v23 = vld [vmem:[#allocation112_spill] sm:$0xff] }
 0xa25   : > { %19854 = vmatmul.mubr.f32.gmra.mxu1 %v29220_v45  ;;  %19914 = vmatprep.subr.mxu1 %v29221_v19 }
 0xa26   : > { %19870 = vmatprep.mubr.msk.f32.mxu1 %vm2862_vm3, %v29206_v54  ;;  %19878 = vmatprep.subr.mxu0 %v24259_v47  ;;  %v29223_v54 = vld [vmem:[#allocation114_spill] sm:$0xff] }
 0xa27   : > { %19879 = vmatpush3.msra.mxu0 %v24259_v47 }
 0xa28   : > { %19880 = vmatprep.subr.mxu0 %v24269_v44 }
 0xa29   : > { %19871 = vmatmul.mubr.msk.f32.vlgmr.msra.gmra.mxu1 %vm2862_vm3, %v29211_v26  ;;  %19881 = vmatpush3.msra.mxu0 %v24269_v44 }
 0xa2a   : > { %19873 = vmatprep.mubr.msk.f32.mxu1 %vm2862_vm3, %v29213_v30  ;;  %19915 = vmatpush3.msra.mxu1 %v29221_v19 }
 0xa2b   : > { %19916 = vmatprep.subr.mxu1 %v29222_v23  ;;  %19882 = vmatprep.subr.mxu0 %v24281_v2 }
 0xa2c   : > { %19917 = vmatpush3.msra.mxu1 %v29222_v23  ;;  %19883 = vmatpush3.msra.mxu0 %v24281_v2 }
 0xa2d   : > { %19874 = vmatmul.mubr.msk.f32.gmra.mxu1 %vm2862_vm3, %v29216_v49  ;;  %19918 = vmatprep.subr.mxu1 %v29223_v54 }
 0xa2e   : > { %19919 = vmatpush3.msra.mxu1 %v29223_v54  ;;  %19884 = vmatprep.subr.mxu0 %v24296_v57 }
 0xa2f   : > { %19920 = vmatprep.subr.mxu1 %v29224_v3  ;;  %19885 = vmatpush3.msra.mxu0 %v24296_v57 }
 0xa30   : > { %19921 = vmatpush3.msra.mxu1 %v29224_v3  ;;  %19886 = vmatprep.subr.mxu0 %v24307_v0 }
 0xa31   : > { %19922 = vmatprep.subr.mxu1 %v29225_v21  ;;  %19887 = vmatpush3.msra.mxu0 %v24307_v0 }
 0xa32   : > { %19923 = vmatpush3.msra.mxu1 %v29225_v21  ;;  %19888 = vmatprep.subr.mxu0 %v24322_v50 }
 0xa33   : > { %19924 = vmatprep.subr.mxu1 %v29226_v15  ;;  %19889 = vmatpush3.msra.mxu0 %v24322_v50 }
 0xa34   : > { %19925 = vmatpush3.msra.mxu1 %v29226_v15  ;;  %19890 = vmatprep.subr.mxu0 %v24339_v40 }
 0xa35   : > { %19926 = vmatprep.subr.mxu1 %v29227_v5  ;;  %19891 = vmatpush3.msra.mxu0 %v24339_v40 }
 0xa36   : > { %19927 = vmatpush3.msra.mxu1 %v29227_v5  ;;  %19892 = vmatprep.subr.mxu0 %v24355_v32 }
 0xa37   : > { %19928 = vmatprep.subr.mxu1 %v29228_v24  ;;  %19893 = vmatpush3.msra.mxu0 %v24355_v32 }
 0xa38   : > { %19929 = vmatpush3.msra.mxu1 %v29228_v24  ;;  %19894 = vmatprep.subr.mxu0 %v24374_v39 }
 0xa39   : > { %19930 = vmatprep.subr.mxu1 %v29229_v1  ;;  %19895 = vmatpush3.msra.mxu0 %v24374_v39 }
 0xa3a   : > { %19931 = vmatpush3.msra.mxu1 %v29229_v1  ;;  %19896 = vmatprep.subr.mxu0 %v24385_v52 }
 0xa3b   : > { %19932 = vmatprep.subr.mxu1 %v29230_v55  ;;  %19897 = vmatpush3.msra.mxu0 %v24385_v52 }
 0xa3c   : > { %19933 = vmatpush3.msra.mxu1 %v29230_v55  ;;  %19898 = vmatprep.subr.mxu0 %v24401_v25 }
 0xa3d   : > { %19934 = vmatprep.subr.mxu1 %v29231_v10  ;;  %19899 = vmatpush3.msra.mxu0 %v24401_v25 }
 0xa3e   : > { %19935 = vmatpush3.msra.mxu1 %v29231_v10  ;;  %19900 = vmatprep.subr.mxu0 %v24418_v28 }
 0xa3f   : > { %19936 = vmatprep.subr.mxu1 %v29232_v6  ;;  %19901 = vmatpush3.msra.mxu0 %v24418_v28 }
 0xa40   : > { %19937 = vmatpush3.msra.mxu1 %v29232_v6  ;;  %19902 = vmatprep.subr.mxu0 %v24434_v48 }
 0xa41   : > { %19938 = vmatprep.subr.mxu1 %v29233_v14  ;;  %19903 = vmatpush3.msra.mxu0 %v24434_v48 }
 0xa42   : > { %19939 = vmatpush3.msra.mxu1 %v29233_v14  ;;  %19904 = vmatprep.subr.mxu0 %v24454_v33 }
 0xa43   : > { %19940 = vmatprep.subr.mxu1 %v29234_v29  ;;  %19905 = vmatpush3.msra.mxu0 %v24454_v33 }
 0xa44   : > { %19941 = vmatpush3.msra.mxu1 %v29234_v29  ;;  %19906 = vmatprep.subr.mxu0 %v24465_v13 }
 0xa45   : > { %19942 = vmatprep.subr.mxu1 %v29235_v53  ;;  %19907 = vmatpush3.msra.mxu0 %v24465_v13 }
 0xa46   : > { %19943 = vmatpush3.msra.mxu1 %v29235_v53  ;;  %19952 = vmatprep.subr.mxu0 %v24257_v31 }
 0xa47   : > { %19944 = vmatprep.subr.mxu1 %v29236_v56 }
 0xa48   : > { %19945 = vmatpush3.msra.mxu1 %v29236_v56 }
 0xa49   : > { %19990 = vmatprep.subr.mxu1 %v24254_v27 }
 0xacf   : > { %v19822_v26 = vpop.f32.mrf.mxu0 }
 0xad1   : > { %v7891_v62 = vpop.f32.mrf.mxu0 }
 0xad3   : > { %v19825_v30 = vpop.f32.mrf.mxu0 }
 0xad5   : > { %v7911_v51 = vpop.f32.mrf.mxu0 }
 0xad7   : > { %v19832_v8 = vpop.f32.mrf.mxu1  ;;  %v19842_v49 = vpop.f32.mrf.mxu0 }
 0xad8   : > { %v8009_v19 = vadd.f32 %v19832_v8, %v19822_v26 }
 0xad9   : > { %v8002_v9 = vpop.f32.mrf.mxu1  ;;  %v8096_v18 = vpop.f32.mrf.mxu0 }
 0xada   : > { %v8003_v3 = vadd.f32 %v8002_v9, %v7891_v62  ;;  %v8104_v5 = vadd.f32 %v19842_v49, %v8009_v19 }
 0xadc   : > { %v19845_v37 = vpop.f32.mrf.mxu0  ;;  %v8097_v55 = vadd.f32 %v8096_v18, %v8003_v3 }
 0xadd   : > { %v19835_v45 = vpop.f32.mrf.mxu1 }
 0xade   : > { %v8110_v23 = vpop.f32.mrf.mxu0  ;;  %v8021_v24 = vadd.f32 %v19835_v45, %v19825_v30  ;;  %v8407_v30 = vmul.f32 %v25079_v11, %v24512_v22  ;;  %v8408_v22 = vmul.f32 %v25074_v59, %v24524_v42 }
 0xadf   : > { %v8014_v54 = vpop.f32.mrf.mxu1 }
 0xae0   : > { %v19862_v15 = vpop.f32.mrf.mxu0  ;;  %v8015_v10 = vadd.f32 %v8014_v54, %v7911_v51  ;;  %v8118_v53 = vadd.f32 %v19845_v37, %v8021_v24  ;;  %v8406_v37 = vmul.f32 %v25086_v7, %v24514_v35 }
 0xae1   : > { %v19852_v21 = vpop.f32.mrf.mxu1 }
 0xae2   : > { %v8201_v6 = vadd.f32 %v19852_v21, %v8104_v5  ;;  %v8293_v14 = vpop.f32.mrf.mxu0  ;;  %v8111_v43 = vadd.f32 %v8110_v23, %v8015_v10  ;;  %v8409_v23 = vmul.f32 %v25069_v20, %v24518_v36 }
 0xae3   : > { %v8192_v1 = vpop.f32.mrf.mxu1 }
 0xae4   : > { %v8193_v56 = vadd.f32 %v8192_v1, %v8097_v55  ;;  %v8300_v4 = vadd.f32 %v19862_v15, %v8201_v6  ;;  %v19865_v26 = vpop.f32.mrf.mxu0 }
 0xae5   : > { %v19855_v29 = vpop.f32.mrf.mxu1 }
 0xae6   : > { %v8217_v41 = vadd.f32 %v19855_v29, %v8118_v53  ;;  %v8294_v60 = vadd.f32 %v8293_v14, %v8193_v56  ;;  %v8305_v19 = vpop.f32.mrf.mxu0 }
 0xae7   : > { %v8208_v46 = vpop.f32.mrf.mxu1 }
 0xae8   : > { %v8209_v62 = vadd.f32 %v8208_v46, %v8111_v43  ;;  %v8312_v18 = vadd.f32 %v19865_v26, %v8217_v41 }
 0xae9   : > { %v19872_v8 = vpop.f32.mrf.mxu1 }
 0xaea   : > { %v8391_v9 = vadd.f32 %v19872_v8, %v8300_v4  ;;  %v8306_v3 = vadd.f32 %v8305_v19, %v8209_v62  ;;  %v29260_v62 = vld [vmem:[#allocation145_spill] sm:$0xff] }
 0xaeb   : > { %v8384_v49 = vpop.f32.mrf.mxu1 }
 0xaec   : > { %v8411_v51 = vsub.f32 %v8391_v9, %v8407_v30  ;;  %v8385_v45 = vadd.f32 %v8384_v49, %v8294_v60 }
 0xaed   : > { %v19875_v54 = vpop.f32.mrf.mxu1 }
 0xaee   : > { %v25239_v21 = vand.u32 4294901760, %v8411_v51  ;;  %v8410_v43 = vsub.f32 %v8385_v45, %v8406_v37  ;;  %v8403_v4 = vadd.f32 %v19875_v54, %v8312_v18 }
 0xaef   : > { %v8396_v46 = vpop.f32.mrf.mxu1 }
 0xaf0   : > { %v25244_v11 = vsub.f32 %v8411_v51, %v25239_v21  ;;  %v25246_v60 = vand.u32 4294901760, %v8410_v43  ;;  %v8413_v35 = vsub.f32 %v8403_v4, %v8409_v23  ;;  %v8397_v7 = vadd.f32 %v8396_v46, %v8306_v3 }
 0xaf2   : > { %v8507_v41 = vand.u32 4294901760, %v25244_v11  ;;  %v8496_v36 = vsub.f32 %v8410_v43, %v25246_v60  ;;  %v25250_v20 = vand.u32 4294901760, %v8413_v35  ;;  %v8412_v15 = vsub.f32 %v8397_v7, %v8408_v22  ;;  %19946 = vmatprep.mubr.f32.mxu1 %v25246_v60  ;;  %v22144_v43 = vld [vmem:[%s29132_s19] ss:$0 sm:$0xff] }
 0xaf3   : > { %19947 = vmatmul.mubr.f32.vlgmr.msra.gmra.mxu1 %v25239_v21 }
 0xaf4   : > { %v25255_v42 = vsub.f32 %v8413_v35, %v25250_v20  ;;  %v25257_v59 = vand.u32 4294901760, %v8412_v15  ;;  %19991 = vmatpush3.msra.mxu1 %v24254_v27  ;;  %v8497_v5 = vand.u32 4294901760, %v8496_v36  ;;  %v8508_v24 = vsub.f32 %v25244_v11, %v8507_v41 }
 0xaf5   : > { %19992 = vmatprep.subr.mxu1 %v24259_v47 }
 0xaf6   : > { %v25265_v1 = vsub.f32 %v8412_v15, %v25257_v59  ;;  %19993 = vmatpush3.msra.mxu1 %v24259_v47  ;;  %19949 = vmatprep.mubr.f32.mxu1 %v25257_v59  ;;  %v8498_v55 = vsub.f32 %v8496_v36, %v8497_v5  ;;  %v8527_v10 = vand.u32 4294901760, %v25255_v42  ;;  %v8509_v29 = vand.u32 4294901760, %v8508_v24 }
 0xaf7   : > { %19994 = vmatprep.subr.mxu1 %v24269_v44  ;;  %19950 = vmatmul.mubr.f32.gmra.mxu1 %v25250_v20 }
 0xaf8   : > { %19995 = vmatpush3.msra.mxu1 %v24269_v44  ;;  %20022 = vmatprep.mubr.f32.mxu1 %v8497_v5  ;;  %v8499_v6 = vand.u32 4294901760, %v8498_v55  ;;  %v8517_v14 = vand.u32 4294901760, %v25265_v1  ;;  %v8528_v56 = vsub.f32 %v25255_v42, %v8527_v10 }
 0xaf9   : > { %19996 = vmatprep.subr.mxu1 %v24281_v2 }
 0xafa   : > { %19997 = vmatpush3.msra.mxu1 %v24281_v2  ;;  %19908 = vmatprep.mubr.f32.mxu0 %v8499_v6  ;;  %v8518_v53 = vsub.f32 %v25265_v1, %v8517_v14  ;;  %v8529_v8 = vand.u32 4294901760, %v8528_v56 }
 0xafb   : > { %19998 = vmatprep.subr.mxu1 %v24296_v57  ;;  %19909 = vmatmul.mubr.f32.vlgmr.msra.gmra.mxu0 %v8509_v29 }
 0xafc   : > { %19953 = vmatpush3.msra.mxu0 %v24257_v31  ;;  %19999 = vmatpush3.msra.mxu1 %v24296_v57  ;;  %v8519_v26 = vand.u32 4294901760, %v8518_v53  ;;  %v29237_v31 = vld [vmem:[#allocation122_spill] sm:$0xff] }
 0xafd   : > { %19954 = vmatprep.subr.mxu0 %v24267_v61  ;;  %20000 = vmatprep.subr.mxu1 %v24307_v0 }
 0xafe   : > { %19955 = vmatpush3.msra.mxu0 %v24267_v61  ;;  %20001 = vmatpush3.msra.mxu1 %v24307_v0  ;;  %v29238_v61 = vld [vmem:[#allocation125_spill] sm:$0xff] }
 0xaff   : > { %19911 = vmatprep.mubr.f32.mxu0 %v8519_v26  ;;  %19956 = vmatprep.subr.mxu0 %v24279_v58 }
 0xb00   : > { %20002 = vmatprep.subr.mxu1 %v24322_v50  ;;  %19912 = vmatmul.mubr.f32.gmra.mxu0 %v8529_v8 }
 0xb01   : > { %19957 = vmatpush3.msra.mxu0 %v24279_v58  ;;  %20003 = vmatpush3.msra.mxu1 %v24322_v50  ;;  %v29239_v58 = vld [vmem:[#allocation127_spill] sm:$0xff] }
 0xb02   : > { %19958 = vmatprep.subr.mxu0 %v24293_v16  ;;  %19984 = vmatprep.mubr.f32.mxu0 %v8496_v36 }
 0xb03   : > { %20004 = vmatprep.subr.mxu1 %v24339_v40  ;;  %19959 = vmatpush3.msra.mxu0 %v24293_v16  ;;  %v29240_v16 = vld [vmem:[#allocation131_spill] sm:$0xff] }
 0xb04   : > { %20005 = vmatpush3.msra.mxu1 %v24339_v40  ;;  %19960 = vmatprep.subr.mxu0 %v24311_v38 }
 0xb05   : > { %20006 = vmatprep.subr.mxu1 %v24355_v32  ;;  %19961 = vmatpush3.msra.mxu0 %v24311_v38  ;;  %v29241_v38 = vld [vmem:[#allocation133_spill] sm:$0xff] }
 0xb06   : > { %20007 = vmatpush3.msra.mxu1 %v24355_v32  ;;  %19962 = vmatprep.subr.mxu0 %v24320_v34 }
 0xb07   : > { %20008 = vmatprep.subr.mxu1 %v24374_v39  ;;  %19963 = vmatpush3.msra.mxu0 %v24320_v34  ;;  %v29242_v34 = vld [vmem:[#allocation137_spill] sm:$0xff] }
 0xb08   : > { %20009 = vmatpush3.msra.mxu1 %v24374_v39  ;;  %19964 = vmatprep.subr.mxu0 %v24337_v12 }
 0xb09   : > { %20010 = vmatprep.subr.mxu1 %v24385_v52  ;;  %19965 = vmatpush3.msra.mxu0 %v24337_v12  ;;  %v29243_v12 = vld [vmem:[#allocation140_spill] sm:$0xff] }
 0xb0a   : > { %20011 = vmatpush3.msra.mxu1 %v24385_v52  ;;  %19966 = vmatprep.subr.mxu0 %v24353_v63 }
 0xb0b   : > { %20012 = vmatprep.subr.mxu1 %v24401_v25  ;;  %19967 = vmatpush3.msra.mxu0 %v24353_v63  ;;  %v29250_v63 = vld [vmem:[#allocation117_spill] sm:$0xff] }
 0xb0c   : > { %20013 = vmatpush3.msra.mxu1 %v24401_v25  ;;  %19968 = vmatprep.subr.mxu0 %v29237_v31 }
 0xb0d   : > { %20014 = vmatprep.subr.mxu1 %v24418_v28  ;;  %19969 = vmatpush3.msra.mxu0 %v29237_v31 }
 0xb0e   : > { %20015 = vmatpush3.msra.mxu1 %v24418_v28  ;;  %19970 = vmatprep.subr.mxu0 %v29238_v61 }
 0xb0f   : > { %20016 = vmatprep.subr.mxu1 %v24434_v48  ;;  %19971 = vmatpush3.msra.mxu0 %v29238_v61 }
 0xb10   : > { %20017 = vmatpush3.msra.mxu1 %v24434_v48  ;;  %19972 = vmatprep.subr.mxu0 %v29239_v58 }
 0xb11   : > { %20018 = vmatprep.subr.mxu1 %v24454_v33  ;;  %19973 = vmatpush3.msra.mxu0 %v29239_v58 }
 0xb12   : > { %20019 = vmatpush3.msra.mxu1 %v24454_v33  ;;  %19974 = vmatprep.subr.mxu0 %v29240_v16 }
 0xb13   : > { %20020 = vmatprep.subr.mxu1 %v24465_v13  ;;  %19975 = vmatpush3.msra.mxu0 %v29240_v16 }
 0xb14   : > { %20021 = vmatpush3.msra.mxu1 %v24465_v13  ;;  %19976 = vmatprep.subr.mxu0 %v29241_v38 }
 0xb15   : > { %20023 = vmatmul.mubr.f32.vlgmr.msra.gmra.mxu1 %v8507_v41  ;;  %20066 = vmatprep.subr.mxu1 %v24254_v27 }
 0xb16   : > { %19977 = vmatpush3.msra.mxu0 %v29241_v38  ;;  %20025 = vmatprep.mubr.f32.mxu1 %v8517_v14 }
 0xb17   : > { %20067 = vmatpush3.msra.mxu1 %v24254_v27  ;;  %19978 = vmatprep.subr.mxu0 %v29242_v34  ;;  %v29244_v27 = vld [vmem:[#allocation142_spill] sm:$0xff] }
 0xb18   : > { %20068 = vmatprep.subr.mxu1 %v24259_v47  ;;  %19979 = vmatpush3.msra.mxu0 %v29242_v34 }
 0xb19   : > { %20069 = vmatpush3.msra.mxu1 %v24259_v47  ;;  %19980 = vmatprep.subr.mxu0 %v29243_v12  ;;  %v29245_v47 = vld [vmem:[#allocation108_spill] sm:$0xff] }
 0xb1a   : > { %20026 = vmatmul.mubr.f32.gmra.mxu1 %v8527_v10  ;;  %20070 = vmatprep.subr.mxu1 %v24269_v44 }
 0xb1b   : > { %19981 = vmatpush3.msra.mxu0 %v29243_v12  ;;  %20071 = vmatpush3.msra.mxu1 %v24269_v44  ;;  %v29246_v44 = vld [vmem:[#allocation109_spill] sm:$0xff] }
 0xb1c   : > { %20098 = vmatprep.mubr.f32.mxu1 %v25246_v60  ;;  %19982 = vmatprep.subr.mxu0 %v29244_v27 }
 0xb1d   : > { %20072 = vmatprep.subr.mxu1 %v24281_v2  ;;  %19983 = vmatpush3.msra.mxu0 %v29244_v27 }
 0xb1e   : > { %20073 = vmatpush3.msra.mxu1 %v24281_v2  ;;  %19985 = vmatmul.mubr.f32.vlgmr.msra.gmra.mxu0 %v25244_v11  ;;  %v29247_v2 = vld [vmem:[#allocation111_spill] sm:$0xff] }
 0xb1f   : > { %20028 = vmatprep.subr.mxu0 %v29245_v47  ;;  %20074 = vmatprep.subr.mxu1 %v24296_v57 }
 0xb20   : > { %19987 = vmatprep.mubr.f32.mxu0 %v25265_v1  ;;  %20029 = vmatpush3.msra.mxu0 %v29245_v47 }
 0xb21   : > { %20075 = vmatpush3.msra.mxu1 %v24296_v57  ;;  %20030 = vmatprep.subr.mxu0 %v29246_v44  ;;  %v29248_v57 = vld [vmem:[#allocation113_spill] sm:$0xff] }
 0xb22   : > { %20076 = vmatprep.subr.mxu1 %v24307_v0  ;;  %20031 = vmatpush3.msra.mxu0 %v29246_v44 }
 0xb23   : > { %20077 = vmatpush3.msra.mxu1 %v24307_v0  ;;  %19988 = vmatmul.mubr.f32.gmra.mxu0 %v25255_v42  ;;  %v29249_v0 = vld [vmem:[#allocation115_spill] sm:$0xff] }
 0xb24   : > { %20032 = vmatprep.subr.mxu0 %v29247_v2  ;;  %20078 = vmatprep.subr.mxu1 %v24322_v50 }
 0xb25   : > { %20033 = vmatpush3.msra.mxu0 %v29247_v2  ;;  %20060 = vmatprep.mubr.f32.mxu0 %v25246_v60 }
 0xb26   : > { %20079 = vmatpush3.msra.mxu1 %v24322_v50  ;;  %20034 = vmatprep.subr.mxu0 %v29248_v57  ;;  %v29251_v50 = vld [vmem:[#allocation118_spill] sm:$0xff] }
 0xb27   : > { %20080 = vmatprep.subr.mxu1 %v24339_v40  ;;  %20035 = vmatpush3.msra.mxu0 %v29248_v57 }
 0xb28   : > { %20081 = vmatpush3.msra.mxu1 %v24339_v40  ;;  %20036 = vmatprep.subr.mxu0 %v29249_v0  ;;  %v29252_v40 = vld [vmem:[#allocation121_spill] sm:$0xff] }
 0xb29   : > { %20082 = vmatprep.subr.mxu1 %v24355_v32  ;;  %20037 = vmatpush3.msra.mxu0 %v29249_v0 }
 0xb2a   : > { %20083 = vmatpush3.msra.mxu1 %v24355_v32  ;;  %20038 = vmatprep.subr.mxu0 %v29250_v63  ;;  %v29253_v32 = vld [vmem:[#allocation124_spill] sm:$0xff] }
 0xb2b   : > { %20084 = vmatprep.subr.mxu1 %v24374_v39  ;;  %20039 = vmatpush3.msra.mxu0 %v29250_v63 }
 0xb2c   : > { %20085 = vmatpush3.msra.mxu1 %v24374_v39  ;;  %20040 = vmatprep.subr.mxu0 %v29251_v50  ;;  %v29254_v39 = vld [vmem:[#allocation128_spill] sm:$0xff] }
 0xb2d   : > { %20086 = vmatprep.subr.mxu1 %v24385_v52  ;;  %20041 = vmatpush3.msra.mxu0 %v29251_v50 }
 0xb2e   : > { %20087 = vmatpush3.msra.mxu1 %v24385_v52  ;;  %20042 = vmatprep.subr.mxu0 %v29252_v40  ;;  %v29255_v52 = vld [vmem:[#allocation130_spill] sm:$0xff] }
 0xb2f   : > { %20088 = vmatprep.subr.mxu1 %v24401_v25  ;;  %20043 = vmatpush3.msra.mxu0 %v29252_v40 }
 0xb30   : > { %20089 = vmatpush3.msra.mxu1 %v24401_v25  ;;  %20044 = vmatprep.subr.mxu0 %v29253_v32  ;;  %v29256_v25 = vld [vmem:[#allocation132_spill] sm:$0xff] }
 0xb31   : > { %20090 = vmatprep.subr.mxu1 %v24418_v28  ;;  %20045 = vmatpush3.msra.mxu0 %v29253_v32 }
 0xb32   : > { %20091 = vmatpush3.msra.mxu1 %v24418_v28  ;;  %20046 = vmatprep.subr.mxu0 %v29254_v39  ;;  %v29257_v28 = vld [vmem:[#allocation136_spill] sm:$0xff] }
 0xb33   : > { %20092 = vmatprep.subr.mxu1 %v24434_v48  ;;  %20047 = vmatpush3.msra.mxu0 %v29254_v39 }
 0xb34   : > { %20093 = vmatpush3.msra.mxu1 %v24434_v48  ;;  %20048 = vmatprep.subr.mxu0 %v29255_v52  ;;  %v29258_v48 = vld [vmem:[#allocation139_spill] sm:$0xff] }
 0xb35   : > { %20094 = vmatprep.subr.mxu1 %v24454_v33  ;;  %20049 = vmatpush3.msra.mxu0 %v29255_v52 }
 0xb36   : > { %20095 = vmatpush3.msra.mxu1 %v24454_v33  ;;  %20050 = vmatprep.subr.mxu0 %v29256_v25  ;;  %v29259_v33 = vld [vmem:[#allocation143_spill] sm:$0xff] }
 0xb37   : > { %20096 = vmatprep.subr.mxu1 %v24465_v13  ;;  %20051 = vmatpush3.msra.mxu0 %v29256_v25 }
 0xb38   : > { %20097 = vmatpush3.msra.mxu1 %v24465_v13  ;;  %20052 = vmatprep.subr.mxu0 %v29257_v28  ;;  %v29261_v13 = vld [vmem:[#allocation103_spill] sm:$0xff] }
 0xb39   : > { %20099 = vmatmul.mubr.f32.vlgmr.msra.gmra.mxu1 %v25239_v21  ;;  %20053 = vmatpush3.msra.mxu0 %v29257_v28 }
 0xb3a   : > { %20101 = vmatprep.mubr.f32.mxu1 %v25257_v59  ;;  %20054 = vmatprep.subr.mxu0 %v29258_v48 }
 0xb3b   : > { %20055 = vmatpush3.msra.mxu0 %v29258_v48 }
 0xb3c   : > { %20056 = vmatprep.subr.mxu0 %v29259_v33 }
 0xb3d   : > { %20102 = vmatmul.mubr.f32.gmra.mxu1 %v25250_v20  ;;  %20057 = vmatpush3.msra.mxu0 %v29259_v33 }
 0xb3e   : > { %20058 = vmatprep.subr.mxu0 %v29260_v62  ;;  %20123 = vmatprep.mubr.f32.mxu1 %v29131_v17 }
 0xb3f   : > { %20059 = vmatpush3.msra.mxu0 %v29260_v62 }
 0xb40   : > { %20061 = vmatmul.mubr.f32.vlgmr.msra.gmra.mxu0 %v25239_v21 }
 0xb41   : > { %20063 = vmatprep.mubr.f32.mxu0 %v25257_v59 }
 0xb44   : > { %20064 = vmatmul.mubr.f32.gmra.mxu0 %v25250_v20 }
 0xb45   : > { %20112 = vmatprep.mubr.f32.mxu0 %v29261_v13 }
 0xbb3   : > { %v19948_v9 = vpop.f32.mrf.mxu1 }
 0xbb5   : > { %v8682_v30 = vpop.f32.mrf.mxu1 }
 0xbb7   : > { %v19951_v18 = vpop.f32.mrf.mxu1 }
 0xbb9   : > { %v8694_v45 = vpop.f32.mrf.mxu1 }
 0xbbb   : > { %v19910_v49 = vpop.f32.mrf.mxu0 }
 0xbbc   : > { %v8512_v4 = vadd.f32 %v22144_v43, %v19910_v49 }
 0xbbd   : > { %v8501_v51 = vpop.f32.mrf.mxu0 }
 0xbbe   : > { %v8502_v22 = vadd.f32 %v22144_v43, %v8501_v51  ;;  %v8689_v60 = vadd.f32 %v19948_v9, %v8512_v4  ;;  %v9746_v4 = vld [vmem:[#allocation11 + $0x70] sm:$0xff] }
 0xbc0   : > { %v19913_v37 = vpop.f32.mrf.mxu0  ;;  %v8683_v20 = vadd.f32 %v8682_v30, %v8502_v22  ;;  %v9745_v22 = vld [vmem:[#allocation11 + $0x68] sm:$0xff] }
 0xbc1   : > { %v8532_v11 = vadd.f32 %v22144_v43, %v19913_v37 }
 0xbc2   : > { %v8521_v54 = vpop.f32.mrf.mxu0 }
 0xbc3   : > { %v8522_v41 = vadd.f32 %v22144_v43, %v8521_v54  ;;  %v8701_v59 = vadd.f32 %v19951_v18, %v8532_v11  ;;  %v29276_v54 = vld [vmem:[#allocation107_spill] sm:$0xff]  ;;  %v9747_v43 = vld [vmem:[#allocation11 + $0x78] sm:$0xff]  ;;  %v25506_v11 = vand.u32 4294901760, %v9746_v4 }
 0xbc5   : > { %v8695_v1 = vadd.f32 %v8694_v45, %v8522_v41 }
 0xbd5   : > { %v20024_v19 = vpop.f32.mrf.mxu1 }
 0xbd7   : > { %v8914_v23 = vpop.f32.mrf.mxu1 }
 0xbda   : > { %v20027_v21 = vpop.f32.mrf.mxu1 }
 0xbdc   : > { %v8930_v35 = vpop.f32.mrf.mxu1 }
 0xbde   : > { %v19986_v3 = vpop.f32.mrf.mxu0 }
 0xbdf   : > { %v8812_v36 = vadd.f32 %v19986_v3, %v8689_v60  ;;  %v29280_v60 = vld [vmem:[#allocation104_spill] sm:$0xff] }
 0xbe0   : > { %v8804_v46 = vpop.f32.mrf.mxu0 }
 0xbe1   : > { %v8805_v42 = vadd.f32 %v8804_v46, %v8683_v20  ;;  %v8923_v55 = vadd.f32 %v20024_v19, %v8812_v36  ;;  %v29279_v46 = vld [vmem:[#allocation101_spill] sm:$0xff]  ;;  %v25515_v36 = vand.u32 4294901760, %v9745_v22 }
 0xbe2   : > { %v9743_v20 = vld [vmem:[#allocation11 + $0x58] sm:$0xff] }
 0xbe3   : > { %v19989_v7 = vpop.f32.mrf.mxu0  ;;  %v8915_v53 = vadd.f32 %v8914_v23, %v8805_v42 }
 0xbe4   : > { %v8826_v24 = vadd.f32 %v19989_v7, %v8701_v59  ;;  %v9744_v7 = vld [vmem:[#allocation11 + $0x60] sm:$0xff] }
 0xbe5   : > { %v8818_v5 = vpop.f32.mrf.mxu0  ;;  %v25524_v42 = vand.u32 4294901760, %v9744_v7 }
 0xbe6   : > { %v8819_v14 = vadd.f32 %v8818_v5, %v8695_v1  ;;  %v8939_v31 = vadd.f32 %v20027_v21, %v8826_v24  ;;  %v25500_v21 = vand.u32 4294901760, %v9747_v43  ;;  %v25534_v5 = vsub.f32 %v9745_v22, %v25515_v36  ;;  %v29282_v1 = vld [vmem:[#allocation102_spill] sm:$0xff] }
 0xbe7   : > { %v25536_v24 = vand.u32 4294901760, %v9743_v20 }
 0xbe8   : > { %v8931_v12 = vadd.f32 %v8930_v35, %v8819_v14  ;;  %v29281_v35 = vld [vmem:[#allocation105_spill] sm:$0xff]  ;;  %v25513_v41 = vsub.f32 %v9747_v43, %v25500_v21 }
 0xbea   : > { %v25531_v59 = vand.u32 4294901760, %v25513_v41 }
 0xbec   : > { %v9853_v14 = vsub.f32 %v25513_v41, %v25531_v59 }
 0xbf9   : > { %v20100_v15 = vpop.f32.mrf.mxu1 }
 0xbfb   : > { %v9162_v10 = vpop.f32.mrf.mxu1 }
 0xbfd   : > { %v20103_v61 = vpop.f32.mrf.mxu1 }
 0xbff   : > { %v9174_v0 = vpop.f32.mrf.mxu1 }
 0xc00   : > { %v20062_v6 = vpop.f32.mrf.mxu0 }
 0xc01   : > { %v9064_v29 = vadd.f32 %v20062_v6, %v8923_v55  ;;  %v29283_v6 = vld [vmem:[#allocation106_spill] sm:$0xff] }
 0xc02   : > { %v9057_v56 = vpop.f32.mrf.mxu0 }
 0xc03   : > { %v9169_v26 = vadd.f32 %v20100_v15, %v9064_v29  ;;  %v9058_v8 = vadd.f32 %v9057_v56, %v8915_v53  ;;  %v25522_v15 = vsub.f32 %v9746_v4, %v25506_v11  ;;  %v25555_v29 = vand.u32 4294901760, %v25534_v5  ;;  %v9738_v4 = vld [vmem:[#allocation11 + $0x30] sm:$0xff] }
 0xc04   : > { %v20065_v58 = vpop.f32.mrf.mxu0  ;;  %v25558_v53 = vsub.f32 %v9743_v20, %v25536_v24  ;;  %v9737_v20 = vld [vmem:[#allocation11 + $0x28] sm:$0xff] }
 0xc05   : > { %v9185_v16 = vmax.f32 %v9169_v26, 0.0  ;;  %v9163_v38 = vadd.f32 %v9162_v10, %v9058_v8  ;;  %v9076_v34 = vadd.f32 %v20065_v58, %v8939_v31  ;;  %v25543_v55 = vand.u32 4294901760, %v25522_v15 }
 0xc06   : > { %v9069_v27 = vpop.f32.mrf.mxu0  ;;  %v25546_v10 = vsub.f32 %v9744_v7, %v25524_v42  ;;  %v9854_v8 = vand.u32 4294901760, %v9853_v14  ;;  %v9867_v31 = vsub.f32 %v25534_v5, %v25555_v29  ;;  %v25634_v7 = vand.u32 4294901760, %v9738_v4 }
 0xc07   : > { %v25421_v47 = vand.u32 4294901760, %v9185_v16  ;;  %16070 = vst [vmem:[%s25424_s12 + $0x8] sm:$0xff] %v9185_v16  ;;  %v9184_v44 = vmax.f32 %v9163_v38, 0.0  ;;  %v9181_v2 = vadd.f32 %v20103_v61, %v9076_v34  ;;  %v9070_v57 = vadd.f32 %v9069_v27, %v8931_v12  ;;  %v9742_v27 = vld [vmem:[#allocation11 + $0x50] sm:$0xff] }
 0xc08   : > { %v9860_v56 = vsub.f32 %v25522_v15, %v25543_v55  ;;  %v25567_v26 = vand.u32 4294901760, %v25546_v10  ;;  %v25575_v61 = vand.u32 4294901760, %v25558_v53 }
 0xc09   : > { %29262 = vst [vmem:[#allocation100_spill] sm:$0xff] %v25421_v47  ;;  %v25427_v63 = vand.u32 4294901760, %v9184_v44  ;;  %16069 = vst [vmem:[%s25424_s12] sm:$0xff] %v9184_v44  ;;  %v9187_v50 = vmax.f32 %v9181_v2, 0.0  ;;  %v9175_v40 = vadd.f32 %v9174_v0, %v9070_v57  ;;  %v25431_v32 = vsub.f32 %v9185_v16, %v25421_v47  ;;  %v9741_v2 = vld [vmem:[#allocation11 + $0x48] sm:$0xff] }
 0xc0a   : > { %v9874_v58 = vsub.f32 %v25546_v10, %v25567_v26  ;;  %v9868_v16 = vand.u32 4294901760, %v9867_v31  ;;  %v9881_v38 = vsub.f32 %v25558_v53, %v25575_v61  ;;  %v25599_v0 = vand.u32 4294901760, %v9741_v2  ;;  %v9736_v31 = vld [vmem:[#allocation11 + $0x20] sm:$0xff] }
 0xc0b   : > { %29263 = vst [vmem:[#allocation87_spill] sm:$0xff] %v25427_v63  ;;  %29264 = vst [vmem:[#allocation85_spill] sm:$0xff] %v25431_v32  ;;  %v25433_v39 = vand.u32 4294901760, %v9187_v50  ;;  %v9186_v52 = vmax.f32 %v9175_v40, 0.0  ;;  %v25437_v25 = vsub.f32 %v9184_v44, %v25427_v63  ;;  %v25455_v13 = vand.u32 4294901760, %v25431_v32 }
 0xc0c   : > { %16072 = vst [vmem:[%s25424_s12 + $0x18] sm:$0xff] %v9187_v50  ;;  %v9875_v34 = vand.u32 4294901760, %v9874_v58  ;;  %v9882_v12 = vand.u32 4294901760, %v9881_v38  ;;  %v25594_v44 = vand.u32 4294901760, %v9742_v27  ;;  %v25653_v38 = vand.u32 4294901760, %v9736_v31 }
 0xc0d   : > { %29265 = vst [vmem:[#allocation97_spill] sm:$0xff] %v25433_v39  ;;  %29266 = vst [vmem:[#allocation98_spill] sm:$0xff] %v25437_v25  ;;  %v25440_v28 = vsub.f32 %v9187_v50, %v25433_v39  ;;  %v25442_v48 = vand.u32 4294901760, %v9186_v52  ;;  %20104 = vmatprep.subr.mxu0 %v25433_v39  ;;  %v25465_v49 = vand.u32 4294901760, %v25437_v25  ;;  %v9319_v45 = vsub.f32 %v25431_v32, %v25455_v13  ;;  %v9740_v50 = vld [vmem:[#allocation11 + $0x40] sm:$0xff] }
 0xc0e   : > { %16071 = vst [vmem:[%s25424_s12 + $0x10] sm:$0xff] %v9186_v52  ;;  %20105 = vmatpush3.msra.mxu0 %v25433_v39  ;;  %29271 = vst [vmem:[#allocation89_spill] sm:$0xff] %v25455_v13  ;;  %v25597_v57 = vsub.f32 %v9742_v27, %v25594_v44 }
 0xc0f   : > { %29267 = vst [vmem:[#allocation99_spill] sm:$0xff] %v25440_v28  ;;  %29268 = vst [vmem:[#allocation86_spill] sm:$0xff] %v25442_v48  ;;  %v25448_v33 = vsub.f32 %v9186_v52, %v25442_v48  ;;  %20106 = vmatprep.subr.mxu0 %v25442_v48  ;;  %v25452_v62 = vand.u32 4294901760, %v25440_v28  ;;  %v9326_v19 = vsub.f32 %v25437_v25, %v25465_v49  ;;  %v25486_v23 = vand.u32 4294901760, %v9319_v45 }
 0xc10   : > { %20107 = vmatpush3.msra.mxu0 %v25442_v48  ;;  %29273 = vst [vmem:[#allocation94_spill] sm:$0xff] %v25465_v49  ;;  %v25604_v40 = vand.u32 4294901760, %v25597_v57  ;;  %v25607_v52 = vsub.f32 %v9741_v2, %v25599_v0 }
 0xc11   : > { %29269 = vst [vmem:[#allocation88_spill] sm:$0xff] %v25448_v33  ;;  %29270 = vst [vmem:[#allocation91_spill] sm:$0xff] %v25452_v62  ;;  %20108 = vmatprep.subr.mxu0 %v25421_v47  ;;  %v9305_v9 = vsub.f32 %v25440_v28, %v25452_v62  ;;  %v25462_v30 = vand.u32 4294901760, %v25448_v33  ;;  %v25492_v3 = vand.u32 4294901760, %v9326_v19 }
 0xc12   : > { %20109 = vmatpush3.msra.mxu0 %v25421_v47  ;;  %29277 = vst [vmem:[#allocation93_spill] sm:$0xff] %v25486_v23  ;;  %v9888_v45 = vsub.f32 %v25597_v57, %v25604_v40  ;;  %v25616_v19 = vand.u32 4294901760, %v25607_v52 }
 0xc13   : > { %29272 = vst [vmem:[#allocation92_spill] sm:$0xff] %v25462_v30  ;;  %20110 = vmatprep.subr.mxu0 %v25427_v63  ;;  %v25469_v18 = vand.u32 4294901760, %v9305_v9  ;;  %v9312_v51 = vsub.f32 %v25448_v33, %v25462_v30  ;;  %29278 = vst [vmem:[#allocation95_spill] sm:$0xff] %v25492_v3  ;;  %v25609_v9 = vand.u32 4294901760, %v9740_v50 }
 0xc14   : > { %20111 = vmatpush3.msra.mxu0 %v25427_v63  ;;  %v9895_v22 = vsub.f32 %v25607_v52, %v25616_v19 }
 0xc15   : > { %29274 = vst [vmem:[#allocation90_spill] sm:$0xff] %v25469_v18  ;;  %20115 = vmatprep.subr.mxu1 %v25469_v18  ;;  %20126 = vmatprep.subr.mxu0 %v25440_v28  ;;  %v25478_v37 = vand.u32 4294901760, %v9312_v51  ;;  %v9739_v51 = vld [vmem:[#allocation11 + $0x38] sm:$0xff] }
 0xc16   : > { %20113 = vmatmul.mubr.f32.vlgmr.msra.gmra.mxu0 %v29276_v54  ;;  %20116 = vmatpush3.msra.mxu1 %v25469_v18  ;;  %v25619_v54 = vsub.f32 %v9740_v50, %v25609_v9  ;;  %v25621_v43 = vand.u32 4294901760, %v9739_v51  ;;  %v25664_v50 = vsub.f32 %v9736_v31, %v25653_v38  ;;  %v9733_v31 = vld [vmem:[#allocation11 + $0x8] sm:$0xff] }
 0xc17   : > { %29275 = vst [vmem:[#allocation79_spill] sm:$0xff] %v25478_v37  ;;  %20127 = vmatpush3.msra.mxu0 %v25440_v28  ;;  %20117 = vmatprep.subr.mxu1 %v25478_v37 }
 0xc18   : > { %20128 = vmatprep.subr.mxu0 %v25448_v33  ;;  %20118 = vmatpush3.msra.mxu1 %v25478_v37 }
 0xc19   : > { %20129 = vmatpush3.msra.mxu0 %v25448_v33  ;;  %20119 = vmatprep.subr.mxu1 %v25486_v23 }
 0xc1a   : > { %20130 = vmatprep.subr.mxu0 %v25431_v32  ;;  %20120 = vmatpush3.msra.mxu1 %v25486_v23 }
 0xc1b   : > { %20131 = vmatpush3.msra.mxu0 %v25431_v32  ;;  %20121 = vmatprep.subr.mxu1 %v25492_v3 }
 0xc1c   : > { %20132 = vmatprep.subr.mxu0 %v25437_v25  ;;  %20122 = vmatpush3.msra.mxu1 %v25492_v3 }
 0xc1d   : > { %20133 = vmatpush3.msra.mxu0 %v25437_v25  ;;  %20134 = vmatprep.mubr.f32.mxu0 %v29279_v46  ;;  %v9889_v46 = vand.u32 4294901760, %v9888_v45 }
 0xc1e   : > { %20137 = vmatprep.subr.mxu1 %v25433_v39  ;;  %20148 = vmatprep.subr.mxu0 %v25452_v62 }
 0xc1f   : > { %20124 = vmatmul.mubr.f32.vlgmr.msra.gmra.mxu1 %v29280_v60  ;;  %20135 = vmatmul.mubr.f32.vlgmr.msra.gmra.mxu0 %v29281_v35  ;;  %v25631_v35 = vsub.f32 %v9739_v51, %v25621_v43 }
 0xc20   : > { %20138 = vmatpush3.msra.mxu1 %v25433_v39  ;;  %20149 = vmatpush3.msra.mxu0 %v25452_v62 }
 0xc21   : > { %20139 = vmatprep.subr.mxu1 %v25442_v48  ;;  %20150 = vmatprep.subr.mxu0 %v25462_v30  ;;  %v25640_v14 = vand.u32 4294901760, %v25631_v35 }
 0xc22   : > { %20140 = vmatpush3.msra.mxu1 %v25442_v48  ;;  %20151 = vmatpush3.msra.mxu0 %v25462_v30 }
 0xc23   : > { %20141 = vmatprep.subr.mxu1 %v25421_v47  ;;  %20152 = vmatprep.subr.mxu0 %v25455_v13  ;;  %v9909_v58 = vsub.f32 %v25631_v35, %v25640_v14 }
 0xc24   : > { %20142 = vmatpush3.msra.mxu1 %v25421_v47  ;;  %20153 = vmatpush3.msra.mxu0 %v25455_v13 }
 0xc25   : > { %20143 = vmatprep.subr.mxu1 %v25427_v63  ;;  %20154 = vmatprep.subr.mxu0 %v25465_v49  ;;  %v9910_v27 = vand.u32 4294901760, %v9909_v58 }
 0xc26   : > { %20144 = vmatpush3.msra.mxu1 %v25427_v63  ;;  %20145 = vmatprep.mubr.f32.mxu1 %v29282_v1  ;;  %v9896_v1 = vand.u32 4294901760, %v9895_v22  ;;  %v25675_v22 = vand.u32 4294901760, %v25664_v50 }
 0xc27   : > { %20155 = vmatpush3.msra.mxu0 %v25465_v49  ;;  %20146 = vmatmul.mubr.f32.vlgmr.msra.gmra.mxu1 %v29283_v6 }
 0xc28   : > { %20159 = vmatprep.subr.mxu1 %v25433_v39  ;;  %20156 = vmatprep.mubr.f32.mxu0 %v29131_v17  ;;  %29286 = vst [vmem:[#allocation112_spill] sm:$0xff] %v25675_v22  ;;  %v9930_v58 = vsub.f32 %v25664_v50, %v25675_v22 }
 0xc29   : > { %20160 = vmatpush3.msra.mxu1 %v25433_v39  ;;  %20157 = vmatmul.mubr.f32.vlgmr.msra.gmra.mxu0 %v29280_v60 }
 0xc2a   : > { %20161 = vmatprep.subr.mxu1 %v25442_v48  ;;  %20167 = vmatprep.mubr.f32.mxu1 %v29131_v17  ;;  %v9861_v17 = vand.u32 4294901760, %v9860_v56  ;;  %v25642_v56 = vand.u32 4294901760, %v9737_v20 }
 0xc2b   : > { %20162 = vmatpush3.msra.mxu1 %v25442_v48  ;;  %20170 = vmatprep.subr.mxu0 %v25500_v21 }
 0xc2c   : > { %20163 = vmatprep.subr.mxu1 %v25421_v47  ;;  %20171 = vmatpush3.msra.mxu0 %v25500_v21 }
 0xc2d   : > { %20164 = vmatpush3.msra.mxu1 %v25421_v47  ;;  %20172 = vmatprep.subr.mxu0 %v25506_v11 }
 0xc2e   : > { %20165 = vmatprep.subr.mxu1 %v25427_v63  ;;  %20173 = vmatpush3.msra.mxu0 %v25506_v11 }
 0xc2f   : > { %20166 = vmatpush3.msra.mxu1 %v25427_v63  ;;  %20174 = vmatprep.subr.mxu0 %v25515_v36 }
 0xc30   : > { %20168 = vmatmul.mubr.f32.vlgmr.msra.gmra.mxu1 %v29280_v60  ;;  %20205 = vmatprep.subr.mxu1 %v9854_v8  ;;  %v25628_v60 = vand.u32 4294901760, %v25619_v54 }
 0xc31   : > { %20206 = vmatpush3.msra.mxu1 %v9854_v8  ;;  %20175 = vmatpush3.msra.mxu0 %v25515_v36  ;;  %v25645_v8 = vsub.f32 %v9738_v4, %v25634_v7  ;;  %v9734_v4 = vld [vmem:[#allocation11 + $0x10] sm:$0xff] }
 0xc32   : > { %20207 = vmatprep.subr.mxu1 %v9861_v17  ;;  %20176 = vmatprep.subr.mxu0 %v25524_v42  ;;  %v9902_v6 = vsub.f32 %v25619_v54, %v25628_v60 }
 0xc33   : > { %20208 = vmatpush3.msra.mxu1 %v9861_v17  ;;  %20177 = vmatpush3.msra.mxu0 %v25524_v42 }
 0xc34   : > { %20209 = vmatprep.subr.mxu1 %v9868_v16  ;;  %20178 = vmatprep.subr.mxu0 %v25536_v24  ;;  %v9903_v17 = vand.u32 4294901760, %v9902_v6 }
 0xc35   : > { %20210 = vmatpush3.msra.mxu1 %v9868_v16  ;;  %20179 = vmatpush3.msra.mxu0 %v25536_v24  ;;  %v25651_v16 = vsub.f32 %v9737_v20, %v25642_v56 }
 0xc36   : > { %20211 = vmatprep.subr.mxu1 %v9875_v34  ;;  %20180 = vmatprep.subr.mxu0 %v25594_v44 }
 0xc37   : > { %20212 = vmatpush3.msra.mxu1 %v9875_v34  ;;  %20181 = vmatpush3.msra.mxu0 %v25594_v44  ;;  %v25657_v34 = vand.u32 4294901760, %v25645_v8  ;;  %v25661_v2 = vand.u32 4294901760, %v25651_v16 }
 0xc38   : > { %20213 = vmatprep.subr.mxu1 %v9882_v12  ;;  %20182 = vmatprep.subr.mxu0 %v25599_v0 }
 0xc39   : > { %20214 = vmatpush3.msra.mxu1 %v9882_v12  ;;  %20183 = vmatpush3.msra.mxu0 %v25599_v0  ;;  %29284 = vst [vmem:[#allocation96_spill] sm:$0xff] %v25657_v34  ;;  %v9735_v12 = vld [vmem:[#allocation11 + $0x18] sm:$0xff]  ;;  %29285 = vst [vmem:[#allocation110_spill] sm:$0xff] %v25661_v2  ;;  %v9916_v45 = vsub.f32 %v25645_v8, %v25657_v34 }
 0xc3a   : > { %20184 = vmatprep.subr.mxu0 %v25609_v9  ;;  %20215 = vmatprep.subr.mxu1 %v9889_v46  ;;  %v25666_v51 = vand.u32 4294901760, %v9735_v12 }
 0xc3b   : > { %20185 = vmatpush3.msra.mxu0 %v25609_v9  ;;  %20216 = vmatpush3.msra.mxu1 %v9889_v46  ;;  %v9923_v46 = vsub.f32 %v25651_v16, %v25661_v2  ;;  %v9917_v6 = vand.u32 4294901760, %v9916_v45  ;;  %v9931_v45 = vand.u32 4294901760, %v9930_v58 }
 0xc3c   : > { %20186 = vmatprep.subr.mxu0 %v25621_v43  ;;  %20217 = vmatprep.subr.mxu1 %v9896_v1  ;;  %v25678_v20 = vsub.f32 %v9735_v12, %v25666_v51  ;;  %v25693_v12 = vand.u32 4294901760, %v9733_v31 }
 0xc3d   : > { %20187 = vmatpush3.msra.mxu0 %v25621_v43  ;;  %20218 = vmatpush3.msra.mxu1 %v9896_v1  ;;  %v25680_v1 = vand.u32 4294901760, %v9734_v4 }
 0xc3e   : > { %20188 = vmatprep.subr.mxu0 %v25634_v7  ;;  %20219 = vmatprep.subr.mxu1 %v9903_v17  ;;  %v25687_v28 = vand.u32 4294901760, %v25678_v20 }
 0xc3f   : > { %20189 = vmatpush3.msra.mxu0 %v25634_v7  ;;  %20220 = vmatpush3.msra.mxu1 %v9903_v17  ;;  %v9924_v17 = vand.u32 4294901760, %v9923_v46  ;;  %v25690_v33 = vsub.f32 %v9734_v4, %v25680_v1  ;;  %v25705_v4 = vsub.f32 %v9733_v31, %v25693_v12 }
 0xc40   : > { %20190 = vmatprep.subr.mxu0 %v25642_v56  ;;  %20221 = vmatprep.subr.mxu1 %v9910_v27  ;;  %29287 = vst [vmem:[#allocation114_spill] sm:$0xff] %v25687_v28  ;;  %v9937_v46 = vsub.f32 %v25678_v20, %v25687_v28 }
 0xc41   : > { %20191 = vmatpush3.msra.mxu0 %v25642_v56  ;;  %20222 = vmatpush3.msra.mxu1 %v9910_v27  ;;  %v9732_v27 = vld [vmem:[#allocation11] sm:$0xff]  ;;  %v25699_v32 = vand.u32 4294901760, %v25690_v33  ;;  %v25715_v13 = vand.u32 4294901760, %v25705_v4 }
 0xc42   : > { %20192 = vmatprep.subr.mxu0 %v25653_v38  ;;  %20223 = vmatprep.subr.mxu1 %v9917_v6  ;;  %v25701_v62 = vand.u32 4294901760, %v9732_v27  ;;  %v9938_v30 = vand.u32 4294901760, %v9937_v46 }
 0xc43   : > { %20193 = vmatpush3.msra.mxu0 %v25653_v38  ;;  %20224 = vmatpush3.msra.mxu1 %v9917_v6  ;;  %29288 = vst [vmem:[#allocation116_spill] sm:$0xff] %v25699_v32  ;;  %v9944_v6 = vsub.f32 %v25690_v33, %v25699_v32  ;;  %29289 = vst [vmem:[#allocation119_spill] sm:$0xff] %v25715_v13 }
 0xc44   : > { %20194 = vmatprep.subr.mxu0 %v25666_v51  ;;  %20225 = vmatprep.subr.mxu1 %v9924_v17  ;;  %v25711_v58 = vsub.f32 %v9732_v27, %v25701_v62 }
 0xc45   : > { %20195 = vmatpush3.msra.mxu0 %v25666_v51  ;;  %20226 = vmatpush3.msra.mxu1 %v9924_v17  ;;  %v9945_v31 = vand.u32 4294901760, %v9944_v6  ;;  %v9951_v17 = vsub.f32 %v25705_v4, %v25715_v13 }
 0xc46   : > { %20196 = vmatprep.subr.mxu0 %v25680_v1  ;;  %20227 = vmatprep.subr.mxu1 %v9931_v45  ;;  %v25719_v25 = vand.u32 4294901760, %v25711_v58 }
 0xc47   : > { %20197 = vmatpush3.msra.mxu0 %v25680_v1  ;;  %20228 = vmatpush3.msra.mxu1 %v9931_v45  ;;  %v9952_v46 = vand.u32 4294901760, %v9951_v17 }
 0xc48   : > { %20198 = vmatprep.subr.mxu0 %v25693_v12  ;;  %29290 = vst [vmem:[#allocation120_spill] sm:$0xff] %v25719_v25  ;;  %20229 = vmatprep.subr.mxu1 %v9938_v30  ;;  %v9958_v27 = vsub.f32 %v25711_v58, %v25719_v25 }
 0xc49   : > { %20199 = vmatpush3.msra.mxu0 %v25693_v12  ;;  %20230 = vmatpush3.msra.mxu1 %v9938_v30 }
 0xc4a   : > { %20200 = vmatprep.subr.mxu0 %v25701_v62  ;;  %20231 = vmatprep.subr.mxu1 %v9945_v31  ;;  %v9959_v45 = vand.u32 4294901760, %v9958_v27 }
 0xc4b   : > { %20201 = vmatpush3.msra.mxu0 %v25701_v62  ;;  %20232 = vmatpush3.msra.mxu1 %v9945_v31 }
 0xc4c   : > { %20240 = vmatprep.subr.mxu0 %v25513_v41  ;;  %20233 = vmatprep.subr.mxu1 %v9952_v46 }
 0xc4d   : > { %20234 = vmatpush3.msra.mxu1 %v9952_v46 }
 0xc4e   : > { %20235 = vmatprep.subr.mxu1 %v9959_v45 }
 0xc4f   : > { %20236 = vmatpush3.msra.mxu1 %v9959_v45 }
 0xc50   : > { %20275 = vmatprep.subr.mxu1 %v25500_v21 }
 0xcd6   : > { %v20114_v6 = vpop.f32.mrf.mxu0 }
 0xcd8   : > { %v9263_v18 = vpop.f32.mrf.mxu0 }
 0xcdf   : > { %v20125_v37 = vpop.f32.mrf.mxu1  ;;  %v20136_v49 = vpop.f32.mrf.mxu0 }
 0xce0   : > { %v9371_v39 = vadd.f32 %v20125_v37, %v20114_v6 }
 0xce1   : > { %v9364_v23 = vpop.f32.mrf.mxu1  ;;  %v9450_v47 = vpop.f32.mrf.mxu0 }
 0xce2   : > { %v9365_v30 = vadd.f32 %v9364_v23, %v9263_v18  ;;  %v9458_v3 = vadd.f32 %v20136_v49, %v9371_v39  ;;  %v9729_v23 = vld [vmem:[#allocation10 + $0x68] sm:$0xff] }
 0xce4   : > { %v9451_v31 = vadd.f32 %v9450_v47, %v9365_v30  ;;  %v9720_v30 = vld [vmem:[#allocation10 + $0x20] sm:$0xff] }
 0xce7   : > { %v20147_v48 = vpop.f32.mrf.mxu1 }
 0xce8   : > { %v9543_v27 = vadd.f32 %v20147_v48, %v9458_v3 }
 0xce9   : > { %v9534_v63 = vpop.f32.mrf.mxu1  ;;  %v20158_v17 = vpop.f32.mrf.mxu0 }
 0xcea   : > { %v9535_v25 = vadd.f32 %v9534_v63, %v9451_v31  ;;  %v9632_v13 = vadd.f32 %v20158_v17, %v9543_v27 }
 0xceb   : > { %v9625_v46 = vpop.f32.mrf.mxu0 }
 0xcec   : > { %v9626_v32 = vadd.f32 %v9625_v46, %v9535_v25  ;;  %v29296_v46 = vld [vmem:[#allocation119_spill] sm:$0xff] }
 0xcf0   : > { %v20169_v45 = vpop.f32.mrf.mxu1 }
 0xcf1   : > { %v9713_v28 = vadd.f32 %v20169_v45, %v9632_v13  ;;  %v9730_v13 = vld [vmem:[#allocation10 + $0x70] sm:$0xff] }
 0xcf2   : > { %v9706_v22 = vpop.f32.mrf.mxu1  ;;  %v25836_v3 = vand.u32 4294901760, %v9730_v13 }
 0xcf3   : > { %v25728_v2 = vand.u32 4294901760, %v9713_v28  ;;  %v9707_v34 = vadd.f32 %v9706_v22, %v9626_v32 }
 0xcf5   : > { %v25731_v37 = vsub.f32 %v9713_v28, %v25728_v2  ;;  %v25733_v18 = vand.u32 4294901760, %v9707_v34 }
 0xcf7   : > { %v9841_v39 = vand.u32 4294901760, %v25731_v37  ;;  %v9830_v47 = vsub.f32 %v9707_v34, %v25733_v18  ;;  %20237 = vmatprep.mubr.f32.mxu1 %v25733_v18 }
 0xcf8   : > { %20238 = vmatmul.mubr.f32.vlgmr.msra.gmra.mxu1 %v25728_v2 }
 0xcf9   : > { %20276 = vmatpush3.msra.mxu1 %v25500_v21  ;;  %v9831_v63 = vand.u32 4294901760, %v9830_v47  ;;  %v9842_v32 = vsub.f32 %v25731_v37, %v9841_v39 }
 0xcfa   : > { %20277 = vmatprep.subr.mxu1 %v25506_v11 }
 0xcfb   : > { %20278 = vmatpush3.msra.mxu1 %v25506_v11  ;;  %20307 = vmatprep.mubr.f32.mxu1 %v9831_v63  ;;  %v9832_v25 = vsub.f32 %v9830_v47, %v9831_v63  ;;  %v9843_v48 = vand.u32 4294901760, %v9842_v32  ;;  %v25960_v63 = vand.u32 4294901760, %v9720_v30  ;;  %v29297_v32 = vld [vmem:[#allocation120_spill] sm:$0xff] }
 0xcfc   : > { %20279 = vmatprep.subr.mxu1 %v25515_v36 }
 0xcfd   : > { %20280 = vmatpush3.msra.mxu1 %v25515_v36  ;;  %v9833_v28 = vand.u32 4294901760, %v9832_v25 }
 0xcfe   : > { %20281 = vmatprep.subr.mxu1 %v25524_v42 }
 0xcff   : > { %20282 = vmatpush3.msra.mxu1 %v25524_v42  ;;  %20202 = vmatprep.mubr.f32.mxu0 %v9833_v28  ;;  %v9718_v28 = vld [vmem:[#allocation10 + $0x10] sm:$0xff] }
 0xd00   : > { %20283 = vmatprep.subr.mxu1 %v25536_v24  ;;  %20203 = vmatmul.mubr.f32.vlgmr.msra.gmra.mxu0 %v9843_v48 }
 0xd01   : > { %20241 = vmatpush3.msra.mxu0 %v25513_v41  ;;  %20284 = vmatpush3.msra.mxu1 %v25536_v24  ;;  %v9728_v41 = vld [vmem:[#allocation10 + $0x60] sm:$0xff] }
 0xd02   : > { %20242 = vmatprep.subr.mxu0 %v25522_v15  ;;  %20272 = vmatprep.mubr.f32.mxu0 %v9830_v47 }
 0xd03   : > { %20285 = vmatprep.subr.mxu1 %v25594_v44  ;;  %20243 = vmatpush3.msra.mxu0 %v25522_v15  ;;  %v9727_v15 = vld [vmem:[#allocation10 + $0x58] sm:$0xff] }
 0xd04   : > { %20286 = vmatpush3.msra.mxu1 %v25594_v44  ;;  %20244 = vmatprep.subr.mxu0 %v25534_v5 }
 0xd05   : > { %20287 = vmatprep.subr.mxu1 %v25599_v0  ;;  %20245 = vmatpush3.msra.mxu0 %v25534_v5 }
 0xd06   : > { %20288 = vmatpush3.msra.mxu1 %v25599_v0  ;;  %20246 = vmatprep.subr.mxu0 %v25546_v10 }
 0xd07   : > { %20289 = vmatprep.subr.mxu1 %v25609_v9  ;;  %20247 = vmatpush3.msra.mxu0 %v25546_v10  ;;  %v9725_v10 = vld [vmem:[#allocation10 + $0x48] sm:$0xff] }
 0xd08   : > { %20290 = vmatpush3.msra.mxu1 %v25609_v9  ;;  %20248 = vmatprep.subr.mxu0 %v25558_v53 }
 0xd09   : > { %20291 = vmatprep.subr.mxu1 %v25621_v43  ;;  %20249 = vmatpush3.msra.mxu0 %v25558_v53 }
 0xd0a   : > { %20292 = vmatpush3.msra.mxu1 %v25621_v43  ;;  %20250 = vmatprep.subr.mxu0 %v25597_v57 }
 0xd0b   : > { %20293 = vmatprep.subr.mxu1 %v25634_v7  ;;  %20251 = vmatpush3.msra.mxu0 %v25597_v57 }
 0xd0c   : > { %20294 = vmatpush3.msra.mxu1 %v25634_v7  ;;  %20252 = vmatprep.subr.mxu0 %v25607_v52 }
 0xd0d   : > { %20295 = vmatprep.subr.mxu1 %v25642_v56  ;;  %20253 = vmatpush3.msra.mxu0 %v25607_v52 }
 0xd0e   : > { %20296 = vmatpush3.msra.mxu1 %v25642_v56  ;;  %20254 = vmatprep.subr.mxu0 %v25619_v54 }
 0xd0f   : > { %20297 = vmatprep.subr.mxu1 %v25653_v38  ;;  %20255 = vmatpush3.msra.mxu0 %v25619_v54 }
 0xd10   : > { %20298 = vmatpush3.msra.mxu1 %v25653_v38  ;;  %20256 = vmatprep.subr.mxu0 %v25631_v35 }
 0xd11   : > { %20299 = vmatprep.subr.mxu1 %v25666_v51  ;;  %20257 = vmatpush3.msra.mxu0 %v25631_v35 }
 0xd12   : > { %20300 = vmatpush3.msra.mxu1 %v25666_v51  ;;  %20258 = vmatprep.subr.mxu0 %v25645_v8 }
 0xd13   : > { %20301 = vmatprep.subr.mxu1 %v25680_v1  ;;  %20259 = vmatpush3.msra.mxu0 %v25645_v8 }
 0xd14   : > { %20302 = vmatpush3.msra.mxu1 %v25680_v1  ;;  %20260 = vmatprep.subr.mxu0 %v25651_v16 }
 0xd15   : > { %20303 = vmatprep.subr.mxu1 %v25693_v12  ;;  %20261 = vmatpush3.msra.mxu0 %v25651_v16  ;;  %v9722_v16 = vld [vmem:[#allocation10 + $0x30] sm:$0xff] }
 0xd16   : > { %20304 = vmatpush3.msra.mxu1 %v25693_v12  ;;  %20262 = vmatprep.subr.mxu0 %v25664_v50 }
 0xd17   : > { %20305 = vmatprep.subr.mxu1 %v25701_v62  ;;  %20263 = vmatpush3.msra.mxu0 %v25664_v50  ;;  %v29294_v50 = vld [vmem:[#allocation114_spill] sm:$0xff] }
 0xd18   : > { %20306 = vmatpush3.msra.mxu1 %v25701_v62  ;;  %20264 = vmatprep.subr.mxu0 %v25678_v20 }
 0xd19   : > { %20308 = vmatmul.mubr.f32.vlgmr.msra.gmra.mxu1 %v9841_v39  ;;  %20345 = vmatprep.subr.mxu1 %v25500_v21 }
 0xd1a   : > { %20265 = vmatpush3.msra.mxu0 %v25678_v20  ;;  %20346 = vmatpush3.msra.mxu1 %v25500_v21  ;;  %v9721_v20 = vld [vmem:[#allocation10 + $0x28] sm:$0xff] }
 0xd1b   : > { %20377 = vmatprep.mubr.f32.mxu1 %v25733_v18  ;;  %20266 = vmatprep.subr.mxu0 %v25690_v33  ;;  %v25948_v27 = vand.u32 4294901760, %v9721_v20 }
 0xd1c   : > { %20347 = vmatprep.subr.mxu1 %v25506_v11  ;;  %20267 = vmatpush3.msra.mxu0 %v25690_v33  ;;  %v9731_v33 = vld [vmem:[#allocation10 + $0x78] sm:$0xff] }
 0xd1d   : > { %20348 = vmatpush3.msra.mxu1 %v25506_v11  ;;  %20268 = vmatprep.subr.mxu0 %v25705_v4  ;;  %v25830_v49 = vand.u32 4294901760, %v9731_v33  ;;  %v25845_v11 = vand.u32 4294901760, %v9729_v23 }
 0xd1e   : > { %20349 = vmatprep.subr.mxu1 %v25515_v36  ;;  %20269 = vmatpush3.msra.mxu0 %v25705_v4  ;;  %v25936_v4 = vand.u32 4294901760, %v9722_v16 }
 0xd1f   : > { %20350 = vmatpush3.msra.mxu1 %v25515_v36  ;;  %20270 = vmatprep.subr.mxu0 %v25711_v58  ;;  %v25843_v21 = vsub.f32 %v9731_v33, %v25830_v49  ;;  %v25852_v36 = vsub.f32 %v9730_v13, %v25836_v3  ;;  %v25970_v13 = vsub.f32 %v9721_v20, %v25948_v27 }
 0xd20   : > { %20351 = vmatprep.subr.mxu1 %v25524_v42  ;;  %20271 = vmatpush3.msra.mxu0 %v25711_v58  ;;  %v25958_v47 = vsub.f32 %v9722_v16, %v25936_v4 }
 0xd21   : > { %20352 = vmatpush3.msra.mxu1 %v25524_v42  ;;  %20273 = vmatmul.mubr.f32.vlgmr.msra.gmra.mxu0 %v25731_v37  ;;  %v25856_v42 = vand.u32 4294901760, %v9728_v41  ;;  %v25861_v5 = vand.u32 4294901760, %v25843_v21  ;;  %v9719_v37 = vld [vmem:[#allocation10 + $0x18] sm:$0xff] }
 0xd22   : > { %20310 = vmatprep.subr.mxu0 %v25531_v59  ;;  %20353 = vmatprep.subr.mxu1 %v25536_v24 }
 0xd23   : > { %20311 = vmatpush3.msra.mxu0 %v25531_v59  ;;  %20342 = vmatprep.mubr.f32.mxu0 %v25733_v18  ;;  %v9726_v59 = vld [vmem:[#allocation10 + $0x50] sm:$0xff] }
 0xd24   : > { %20354 = vmatpush3.msra.mxu1 %v25536_v24  ;;  %20312 = vmatprep.subr.mxu0 %v25543_v55  ;;  %v25864_v24 = vsub.f32 %v9729_v23, %v25845_v11  ;;  %v25875_v53 = vand.u32 4294901760, %v9726_v59  ;;  %v25972_v23 = vand.u32 4294901760, %v9719_v37 }
 0xd25   : > { %20355 = vmatprep.subr.mxu1 %v25594_v44  ;;  %20313 = vmatpush3.msra.mxu0 %v25543_v55  ;;  %v25868_v55 = vand.u32 4294901760, %v9727_v15 }
 0xd26   : > { %20356 = vmatpush3.msra.mxu1 %v25594_v44  ;;  %20314 = vmatprep.subr.mxu0 %v25555_v29  ;;  %v10537_v44 = vsub.f32 %v25843_v21, %v25861_v5  ;;  %v25887_v57 = vand.u32 4294901760, %v25864_v24  ;;  %v25901_v54 = vsub.f32 %v9726_v59, %v25875_v53 }
 0xd27   : > { %20357 = vmatprep.subr.mxu1 %v25599_v0  ;;  %20315 = vmatpush3.msra.mxu0 %v25555_v29  ;;  %v25873_v29 = vand.u32 4294901760, %v25852_v36  ;;  %v25894_v52 = vsub.f32 %v9727_v15, %v25868_v55  ;;  %v9717_v15 = vld [vmem:[#allocation10 + $0x8] sm:$0xff] }
 0xd28   : > { %20358 = vmatpush3.msra.mxu1 %v25599_v0  ;;  %20316 = vmatprep.subr.mxu0 %v25567_v26  ;;  %v25889_v0 = vand.u32 4294901760, %v9725_v10  ;;  %v25927_v22 = vand.u32 4294901760, %v25901_v54 }
 0xd29   : > { %20359 = vmatprep.subr.mxu1 %v25609_v9  ;;  %20317 = vmatpush3.msra.mxu0 %v25567_v26  ;;  %v25880_v26 = vsub.f32 %v9728_v41, %v25856_v42 }
 0xd2a   : > { %20360 = vmatpush3.msra.mxu1 %v25609_v9  ;;  %20318 = vmatprep.subr.mxu0 %v25575_v61  ;;  %v29292_v9 = vld [vmem:[#allocation110_spill] sm:$0xff]  ;;  %v25915_v8 = vsub.f32 %v9725_v10, %v25889_v0  ;;  %v10572_v45 = vsub.f32 %v25901_v54, %v25927_v22  ;;  %v25980_v10 = vand.u32 4294901760, %v25958_v47 }
 0xd2b   : > { %20361 = vmatprep.subr.mxu1 %v25621_v43  ;;  %20319 = vmatpush3.msra.mxu0 %v25575_v61  ;;  %v29291_v61 = vld [vmem:[#allocation96_spill] sm:$0xff] }
 0xd2c   : > { %20362 = vmatpush3.msra.mxu1 %v25621_v43  ;;  %20320 = vmatprep.subr.mxu0 %v25604_v40  ;;  %v9723_v43 = vld [vmem:[#allocation10 + $0x38] sm:$0xff]  ;;  %v25940_v6 = vand.u32 4294901760, %v25915_v8  ;;  %v10573_v41 = vand.u32 4294901760, %v10572_v45 }
 0xd2d   : > { %20363 = vmatprep.subr.mxu1 %v25634_v7  ;;  %20321 = vmatpush3.msra.mxu0 %v25604_v40  ;;  %v9724_v40 = vld [vmem:[#allocation10 + $0x40] sm:$0xff]  ;;  %v25922_v34 = vand.u32 4294901760, %v9723_v43 }
 0xd2e   : > { %20364 = vmatpush3.msra.mxu1 %v25634_v7  ;;  %20322 = vmatprep.subr.mxu0 %v25616_v19  ;;  %v25908_v35 = vand.u32 4294901760, %v9724_v40  ;;  %v29293_v7 = vld [vmem:[#allocation112_spill] sm:$0xff]  ;;  %v10579_v25 = vsub.f32 %v25915_v8, %v25940_v6 }
 0xd2f   : > { %20365 = vmatprep.subr.mxu1 %v25642_v56  ;;  %20323 = vmatpush3.msra.mxu0 %v25616_v19  ;;  %v10544_v19 = vsub.f32 %v25852_v36, %v25873_v29  ;;  %v25946_v31 = vsub.f32 %v9723_v43, %v25922_v34  ;;  %v25997_v43 = vand.u32 4294901760, %v9717_v15 }
 0xd30   : > { %20366 = vmatpush3.msra.mxu1 %v25642_v56  ;;  %20324 = vmatprep.subr.mxu0 %v25628_v60  ;;  %v10551_v56 = vsub.f32 %v25864_v24, %v25887_v57 }
 0xd31   : > { %20367 = vmatprep.subr.mxu1 %v25653_v38  ;;  %20325 = vmatpush3.msra.mxu0 %v25628_v60  ;;  %v25906_v60 = vand.u32 4294901760, %v25880_v26  ;;  %v25967_v33 = vand.u32 4294901760, %v25946_v31 }
 0xd32   : > { %20368 = vmatpush3.msra.mxu1 %v25653_v38  ;;  %20326 = vmatprep.subr.mxu0 %v25640_v14  ;;  %v25920_v38 = vand.u32 4294901760, %v25894_v52  ;;  %v10552_v58 = vand.u32 4294901760, %v10551_v56  ;;  %v10600_v56 = vsub.f32 %v25958_v47, %v25980_v10 }
 0xd33   : > { %20369 = vmatprep.subr.mxu1 %v25666_v51  ;;  %20327 = vmatpush3.msra.mxu0 %v25640_v14  ;;  %v10538_v14 = vand.u32 4294901760, %v10537_v44  ;;  %v25985_v44 = vand.u32 4294901760, %v9718_v28 }
 0xd34   : > { %20370 = vmatpush3.msra.mxu1 %v25666_v51  ;;  %20328 = vmatprep.subr.mxu0 %v29291_v61  ;;  %v10545_v51 = vand.u32 4294901760, %v10544_v19  ;;  %v10565_v17 = vsub.f32 %v25894_v52, %v25920_v38  ;;  %v25995_v19 = vsub.f32 %v9719_v37, %v25972_v23 }
 0xd35   : > { %20371 = vmatprep.subr.mxu1 %v25680_v1  ;;  %20329 = vmatpush3.msra.mxu0 %v29291_v61  ;;  %v25983_v61 = vsub.f32 %v9720_v30, %v25960_v63  ;;  %v10601_v30 = vand.u32 4294901760, %v10600_v56  ;;  %v29299_v56 = vld [vmem:[#allocation74_spill] sm:$0xff] }
 0xd36   : > { %20372 = vmatpush3.msra.mxu1 %v25680_v1  ;;  %20330 = vmatprep.subr.mxu0 %v29292_v9  ;;  %v10558_v1 = vsub.f32 %v25880_v26, %v25906_v60  ;;  %v10566_v48 = vand.u32 4294901760, %v10565_v17 }
 0xd37   : > { %20373 = vmatprep.subr.mxu1 %v25693_v12  ;;  %20331 = vmatpush3.msra.mxu0 %v29292_v9  ;;  %v25992_v9 = vand.u32 4294901760, %v25970_v13  ;;  %v26004_v16 = vand.u32 4294901760, %v25983_v61 }
 0xd38   : > { %20374 = vmatpush3.msra.mxu1 %v25693_v12  ;;  %20332 = vmatprep.subr.mxu0 %v29293_v7  ;;  %v25934_v12 = vsub.f32 %v9724_v40, %v25908_v35  ;;  %v10559_v18 = vand.u32 4294901760, %v10558_v1  ;;  %v10593_v40 = vsub.f32 %v25946_v31, %v25967_v33 }
 0xd39   : > { %20375 = vmatprep.subr.mxu1 %v25701_v62  ;;  %20333 = vmatpush3.msra.mxu0 %v29293_v7  ;;  %v9716_v7 = vld [vmem:[#allocation10] sm:$0xff]  ;;  %v10607_v1 = vsub.f32 %v25970_v13, %v25992_v9  ;;  %v10614_v17 = vsub.f32 %v25983_v61, %v26004_v16 }
 0xd3a   : > { %20376 = vmatpush3.msra.mxu1 %v25701_v62  ;;  %20334 = vmatprep.subr.mxu0 %v29294_v50  ;;  %v29295_v62 = vld [vmem:[#allocation116_spill] sm:$0xff]  ;;  %v25955_v39 = vand.u32 4294901760, %v25934_v12  ;;  %v10594_v20 = vand.u32 4294901760, %v10593_v40 }
 0xd3b   : > { %20378 = vmatmul.mubr.f32.vlgmr.msra.gmra.mxu1 %v25728_v2  ;;  %20335 = vmatpush3.msra.mxu0 %v29294_v50  ;;  %v26007_v50 = vsub.f32 %v9718_v28, %v25985_v44  ;;  %v10608_v37 = vand.u32 4294901760, %v10607_v1  ;;  %v29301_v1 = vld [vmem:[#allocation82_spill] sm:$0xff] }
 0xd3c   : > { %20336 = vmatprep.subr.mxu0 %v29295_v62  ;;  %20415 = vmatprep.subr.mxu1 %v10538_v14  ;;  %v10586_v59 = vsub.f32 %v25934_v12, %v25955_v39 }
 0xd3d   : > { %20337 = vmatpush3.msra.mxu0 %v29295_v62  ;;  %20416 = vmatpush3.msra.mxu1 %v10538_v14  ;;  %v26016_v62 = vand.u32 4294901760, %v25995_v19 }
 0xd3e   : > { %20338 = vmatprep.subr.mxu0 %v29296_v46  ;;  %20417 = vmatprep.subr.mxu1 %v10545_v51  ;;  %v10587_v14 = vand.u32 4294901760, %v10586_v59 }
 0xd3f   : > { %20339 = vmatpush3.msra.mxu0 %v29296_v46  ;;  %20418 = vmatpush3.msra.mxu1 %v10545_v51  ;;  %v26010_v51 = vand.u32 4294901760, %v9716_v7  ;;  %v26026_v46 = vand.u32 4294901760, %v26007_v50 }
 0xd40   : > { %20340 = vmatprep.subr.mxu0 %v29297_v32  ;;  %20419 = vmatprep.subr.mxu1 %v10552_v58 }
 0xd41   : > { %20341 = vmatpush3.msra.mxu0 %v29297_v32  ;;  %20420 = vmatpush3.msra.mxu1 %v10552_v58  ;;  %v26019_v58 = vsub.f32 %v9717_v15, %v25997_v43  ;;  %v26030_v45 = vsub.f32 %v9716_v7, %v26010_v51  ;;  %v10628_v28 = vsub.f32 %v26007_v50, %v26026_v46 }
 0xd42   : > { %20343 = vmatmul.mubr.f32.vlgmr.msra.gmra.mxu0 %v25728_v2  ;;  %20380 = vmatprep.subr.mxu0 %v25830_v49  ;;  %v10580_v2 = vand.u32 4294901760, %v10579_v25  ;;  %v10615_v25 = vand.u32 4294901760, %v10614_v17 }
 0xd43   : > { %20381 = vmatpush3.msra.mxu0 %v25830_v49  ;;  %20421 = vmatprep.subr.mxu1 %v10559_v18  ;;  %v26036_v32 = vand.u32 4294901760, %v26019_v58  ;;  %v10629_v59 = vand.u32 4294901760, %v10628_v28 }
 0xd44   : > { %20382 = vmatprep.subr.mxu0 %v25836_v3  ;;  %20422 = vmatpush3.msra.mxu1 %v10559_v18  ;;  %v10621_v18 = vsub.f32 %v25995_v19, %v26016_v62 }
 0xd45   : > { %20383 = vmatpush3.msra.mxu0 %v25836_v3  ;;  %20423 = vmatprep.subr.mxu1 %v10566_v48  ;;  %v10635_v15 = vsub.f32 %v26019_v58, %v26036_v32 }
 0xd46   : > { %20384 = vmatprep.subr.mxu0 %v25845_v11  ;;  %20424 = vmatpush3.msra.mxu1 %v10566_v48  ;;  %v26044_v48 = vand.u32 4294901760, %v26030_v45 }
 0xd47   : > { %20385 = vmatpush3.msra.mxu0 %v25845_v11  ;;  %20425 = vmatprep.subr.mxu1 %v10573_v41  ;;  %v10636_v40 = vand.u32 4294901760, %v10635_v15 }
 0xd48   : > { %20386 = vmatprep.subr.mxu0 %v25856_v42  ;;  %20426 = vmatpush3.msra.mxu1 %v10573_v41  ;;  %v10622_v41 = vand.u32 4294901760, %v10621_v18 }
 0xd49   : > { %20387 = vmatpush3.msra.mxu0 %v25856_v42  ;;  %20427 = vmatprep.subr.mxu1 %v10580_v2 }
 0xd4a   : > { %20388 = vmatprep.subr.mxu0 %v25868_v55  ;;  %20428 = vmatpush3.msra.mxu1 %v10580_v2  ;;  %v10642_v2 = vsub.f32 %v26030_v45, %v26044_v48 }
 0xd4b   : > { %20389 = vmatpush3.msra.mxu0 %v25868_v55  ;;  %20429 = vmatprep.subr.mxu1 %v10587_v14 }
 0xd4c   : > { %20390 = vmatprep.subr.mxu0 %v25875_v53  ;;  %20430 = vmatpush3.msra.mxu1 %v10587_v14  ;;  %v10643_v7 = vand.u32 4294901760, %v10642_v2  ;;  %v29298_v14 = vld [vmem:[#allocation81_spill] sm:$0xff] }
 0xd4d   : > { %20391 = vmatpush3.msra.mxu0 %v25875_v53  ;;  %20431 = vmatprep.subr.mxu1 %v10594_v20 }
 0xd4e   : > { %20392 = vmatprep.subr.mxu0 %v25889_v0  ;;  %20432 = vmatpush3.msra.mxu1 %v10594_v20  ;;  %v29300_v20 = vld [vmem:[#allocation75_spill] sm:$0xff] }
 0xd4f   : > { %20393 = vmatpush3.msra.mxu0 %v25889_v0  ;;  %20433 = vmatprep.subr.mxu1 %v10601_v30 }
 0xd50   : > { %20394 = vmatprep.subr.mxu0 %v25908_v35  ;;  %20434 = vmatpush3.msra.mxu1 %v10601_v30 }
 0xd51   : > { %20395 = vmatpush3.msra.mxu0 %v25908_v35  ;;  %20435 = vmatprep.subr.mxu1 %v10608_v37 }
 0xd52   : > { %20396 = vmatprep.subr.mxu0 %v25922_v34  ;;  %20436 = vmatpush3.msra.mxu1 %v10608_v37 }
 0xd53   : > { %20397 = vmatpush3.msra.mxu0 %v25922_v34  ;;  %20437 = vmatprep.subr.mxu1 %v10615_v25 }
 0xd54   : > { %20398 = vmatprep.subr.mxu0 %v25936_v4  ;;  %20438 = vmatpush3.msra.mxu1 %v10615_v25 }
 0xd55   : > { %20399 = vmatpush3.msra.mxu0 %v25936_v4  ;;  %20439 = vmatprep.subr.mxu1 %v10622_v41 }
 0xd56   : > { %20400 = vmatprep.subr.mxu0 %v25948_v27  ;;  %20440 = vmatpush3.msra.mxu1 %v10622_v41 }
 0xd57   : > { %20401 = vmatpush3.msra.mxu0 %v25948_v27  ;;  %20441 = vmatprep.subr.mxu1 %v10629_v59 }
 0xd58   : > { %20402 = vmatprep.subr.mxu0 %v25960_v63  ;;  %20442 = vmatpush3.msra.mxu1 %v10629_v59 }
 0xd59   : > { %20403 = vmatpush3.msra.mxu0 %v25960_v63  ;;  %20443 = vmatprep.subr.mxu1 %v10636_v40 }
 0xd5a   : > { %20404 = vmatprep.subr.mxu0 %v25972_v23  ;;  %20412 = vmatprep.mubr.f32.mxu0 %v29298_v14 }
 0xd5b   : > { %20405 = vmatpush3.msra.mxu0 %v25972_v23  ;;  %20444 = vmatpush3.msra.mxu1 %v10636_v40 }
 0xd5c   : > { %20406 = vmatprep.subr.mxu0 %v25985_v44  ;;  %20445 = vmatprep.subr.mxu1 %v10643_v7 }
 0xd5d   : > { %20407 = vmatpush3.msra.mxu0 %v25985_v44  ;;  %20446 = vmatpush3.msra.mxu1 %v10643_v7  ;;  %v16713_v7 = vld [vmem:[%s29310_s8] ss:$0 sm:$0xff]  ;;  %s16160_s8 = sshll.u32 %s26827_s20, 4  ;;  %s28413_s8 = int_to_ptr.vmem [resolvable:$true] %s16160_s8 }
 0xd5e   : > { %20408 = vmatprep.subr.mxu0 %v25997_v43  ;;  %20447 = vmatprep.mubr.f32.mxu1 %v29299_v56 }
 0xd5f   : > { %20409 = vmatpush3.msra.mxu0 %v25997_v43  ;;  %20448 = vmatmul.mubr.f32.vlgmr.msra.gmra.mxu1 %v29300_v20 }
 0xd60   : > { %20410 = vmatprep.subr.mxu0 %v26010_v51  ;;  %20485 = vmatprep.subr.mxu1 %v25830_v49 }
 0xd61   : > { %20411 = vmatpush3.msra.mxu0 %v26010_v51  ;;  %20486 = vmatpush3.msra.mxu1 %v25830_v49 }
 0xd62   : > { %20413 = vmatmul.mubr.f32.vlgmr.msra.gmra.mxu0 %v29301_v1  ;;  %20450 = vmatprep.subr.mxu0 %v25843_v21 }
 0xd63   : > { %20451 = vmatpush3.msra.mxu0 %v25843_v21  ;;  %20487 = vmatprep.subr.mxu1 %v25836_v3  ;;  %v29302_v21 = vld [vmem:[#allocation76_spill] sm:$0xff] }
 0xd64   : > { %20452 = vmatprep.subr.mxu0 %v25852_v36  ;;  %20488 = vmatpush3.msra.mxu1 %v25836_v3 }
 0xd65   : > { %20453 = vmatpush3.msra.mxu0 %v25852_v36  ;;  %20489 = vmatprep.subr.mxu1 %v25845_v11  ;;  %v29303_v36 = vld [vmem:[#allocation77_spill] sm:$0xff] }
 0xd66   : > { %20454 = vmatprep.subr.mxu0 %v25864_v24  ;;  %20490 = vmatpush3.msra.mxu1 %v25845_v11 }
 0xd67   : > { %20455 = vmatpush3.msra.mxu0 %v25864_v24  ;;  %20491 = vmatprep.subr.mxu1 %v25856_v42  ;;  %v29304_v24 = vld [vmem:[#allocation78_spill] sm:$0xff] }
 0xd68   : > { %20456 = vmatprep.subr.mxu0 %v25880_v26  ;;  %20492 = vmatpush3.msra.mxu1 %v25856_v42 }
 0xd69   : > { %20457 = vmatpush3.msra.mxu0 %v25880_v26  ;;  %20493 = vmatprep.subr.mxu1 %v25868_v55  ;;  %v29305_v26 = vld [vmem:[#allocation80_spill] sm:$0xff] }
 0xd6a   : > { %20458 = vmatprep.subr.mxu0 %v25894_v52  ;;  %20494 = vmatpush3.msra.mxu1 %v25868_v55 }
 0xd6b   : > { %20459 = vmatpush3.msra.mxu0 %v25894_v52  ;;  %20495 = vmatprep.subr.mxu1 %v25875_v53 }
 0xd6c   : > { %20460 = vmatprep.subr.mxu0 %v25901_v54  ;;  %20496 = vmatpush3.msra.mxu1 %v25875_v53 }
 0xd6d   : > { %20461 = vmatpush3.msra.mxu0 %v25901_v54  ;;  %20497 = vmatprep.subr.mxu1 %v25889_v0 }
 0xd6e   : > { %20462 = vmatprep.subr.mxu0 %v25915_v8  ;;  %20498 = vmatpush3.msra.mxu1 %v25889_v0 }
 0xd6f   : > { %20463 = vmatpush3.msra.mxu0 %v25915_v8  ;;  %20499 = vmatprep.subr.mxu1 %v25908_v35 }
 0xd70   : > { %20464 = vmatprep.subr.mxu0 %v25934_v12  ;;  %20500 = vmatpush3.msra.mxu1 %v25908_v35 }
 0xd71   : > { %20465 = vmatpush3.msra.mxu0 %v25934_v12  ;;  %20501 = vmatprep.subr.mxu1 %v25922_v34 }
 0xd72   : > { %20466 = vmatprep.subr.mxu0 %v25946_v31  ;;  %20502 = vmatpush3.msra.mxu1 %v25922_v34 }
 0xd73   : > { %20467 = vmatpush3.msra.mxu0 %v25946_v31  ;;  %20503 = vmatprep.subr.mxu1 %v25936_v4 }
 0xd74   : > { %20468 = vmatprep.subr.mxu0 %v25958_v47  ;;  %20504 = vmatpush3.msra.mxu1 %v25936_v4 }
 0xd75   : > { %20469 = vmatpush3.msra.mxu0 %v25958_v47  ;;  %20505 = vmatprep.subr.mxu1 %v25948_v27 }
 0xd76   : > { %20470 = vmatprep.subr.mxu0 %v25970_v13  ;;  %20506 = vmatpush3.msra.mxu1 %v25948_v27 }
 0xd77   : > { %20471 = vmatpush3.msra.mxu0 %v25970_v13  ;;  %20507 = vmatprep.subr.mxu1 %v25960_v63 }
 0xd78   : > { %20472 = vmatprep.subr.mxu0 %v25983_v61  ;;  %20508 = vmatpush3.msra.mxu1 %v25960_v63 }
 0xd79   : > { %20473 = vmatpush3.msra.mxu0 %v25983_v61  ;;  %20509 = vmatprep.subr.mxu1 %v25972_v23 }
 0xd7a   : > { %20474 = vmatprep.subr.mxu0 %v25995_v19  ;;  %20510 = vmatpush3.msra.mxu1 %v25972_v23 }
 0xd7b   : > { %20475 = vmatpush3.msra.mxu0 %v25995_v19  ;;  %20511 = vmatprep.subr.mxu1 %v25985_v44 }
 0xd7c   : > { %20476 = vmatprep.subr.mxu0 %v26007_v50  ;;  %20512 = vmatpush3.msra.mxu1 %v25985_v44 }
 0xd7d   : > { %20477 = vmatpush3.msra.mxu0 %v26007_v50  ;;  %20513 = vmatprep.subr.mxu1 %v25997_v43  ;;  %v29309_v50 = vld [vmem:[#allocation84_spill] sm:$0xff] }
 0xd7e   : > { %20478 = vmatprep.subr.mxu0 %v26019_v58  ;;  %20482 = vmatprep.mubr.f32.mxu0 %v29302_v21 }
 0xd7f   : > { %20479 = vmatpush3.msra.mxu0 %v26019_v58  ;;  %20514 = vmatpush3.msra.mxu1 %v25997_v43 }
 0xd80   : > { %20480 = vmatprep.subr.mxu0 %v26030_v45  ;;  %20515 = vmatprep.subr.mxu1 %v26010_v51 }
 0xd81   : > { %20481 = vmatpush3.msra.mxu0 %v26030_v45  ;;  %20516 = vmatpush3.msra.mxu1 %v26010_v51 }
 0xd82   : > { %20483 = vmatmul.mubr.f32.vlgmr.msra.gmra.mxu0 %v29303_v36  ;;  %20520 = vmatprep.subr.mxu0 %v25861_v5 }
 0xd83   : > { %20517 = vmatprep.mubr.f32.mxu1 %v29304_v24  ;;  %20521 = vmatpush3.msra.mxu0 %v25861_v5 }
 0xd84   : > { %20518 = vmatmul.mubr.f32.vlgmr.msra.gmra.mxu1 %v29305_v26  ;;  %20522 = vmatprep.subr.mxu0 %v25873_v29 }
 0xd85   : > { %20555 = vmatprep.subr.mxu1 %v25830_v49  ;;  %20523 = vmatpush3.msra.mxu0 %v25873_v29 }
 0xd86   : > { %20556 = vmatpush3.msra.mxu1 %v25830_v49  ;;  %20524 = vmatprep.subr.mxu0 %v25887_v57  ;;  %v16663_v49 = vld [vmem:[%s1288_s10] ss:$0 sm:$0xff]  ;;  %s16192_s10 = sshll.u32 %s25424_s12, 4  ;;  %s28410_s10 = int_to_ptr.vmem [resolvable:$true] %s16192_s10 }
 0xd87   : > { %20557 = vmatprep.subr.mxu1 %v25836_v3  ;;  %20525 = vmatpush3.msra.mxu0 %v25887_v57  ;;  %vm1350_vm9 = vcmp.eq.s32.totalorder %v29309_v50, %v16663_v49 }
 0xd88   : > { %20558 = vmatpush3.msra.mxu1 %v25836_v3  ;;  %20526 = vmatprep.subr.mxu0 %v25906_v60  ;;  %v29307_v3 = vld [vmem:[#allocation83_spill] sm:$0xff] }
 0xd89   : > { %20559 = vmatprep.subr.mxu1 %v25845_v11  ;;  %20527 = vmatpush3.msra.mxu0 %v25906_v60  ;;  %vm1349_vm8 = vcmp.eq.s32.totalorder %v29307_v3, %v16663_v49 }
 0xd8a   : > { %20560 = vmatpush3.msra.mxu1 %v25845_v11  ;;  %20528 = vmatprep.subr.mxu0 %v25920_v38  ;;  %v29308_v11 = vmov 0.0  }
 0xd8b   : > { %20561 = vmatprep.subr.mxu1 %v25856_v42  ;;  %20529 = vmatpush3.msra.mxu0 %v25920_v38  ;;  %v26225_v30 = vsel %vm1350_vm9, 1.0, %v29308_v11 }
 0xd8c   : > { %20562 = vmatpush3.msra.mxu1 %v25856_v42  ;;  %20530 = vmatprep.subr.mxu0 %v25927_v22  ;;  %v26211_v42 = vsel %vm1349_vm8, 1.0, %v29308_v11  ;;  %v11131_v18 = vsel %vm2862_vm3, %v26225_v30, 0 }
 0xd8d   : > { %20563 = vmatprep.subr.mxu1 %v25868_v55  ;;  %20531 = vmatpush3.msra.mxu0 %v25927_v22  ;;  %v11128_v5 = vsel %vm2862_vm3, %v26211_v42, 0 }
 0xd8e   : > { %20564 = vmatpush3.msra.mxu1 %v25868_v55  ;;  %20532 = vmatprep.subr.mxu0 %v25940_v6  ;;  %v26217_v55 = vsub.f32 %v11128_v5, %v11128_v5 }
 0xd8f   : > { %20565 = vmatprep.subr.mxu1 %v25875_v53  ;;  %20533 = vmatpush3.msra.mxu0 %v25940_v6 }
 0xd90   : > { %20566 = vmatpush3.msra.mxu1 %v25875_v53  ;;  %20534 = vmatprep.subr.mxu0 %v25955_v39  ;;  %v11202_v29 = vand.u32 4294901760, %v26217_v55 }
 0xd91   : > { %20567 = vmatprep.subr.mxu1 %v25889_v0  ;;  %20535 = vmatpush3.msra.mxu0 %v25955_v39 }
 0xd92   : > { %20568 = vmatpush3.msra.mxu1 %v25889_v0  ;;  %20536 = vmatprep.subr.mxu0 %v25967_v33  ;;  %v11203_v53 = vsub.f32 %v26217_v55, %v11202_v29 }
 0xd93   : > { %20569 = vmatprep.subr.mxu1 %v25908_v35  ;;  %20537 = vmatpush3.msra.mxu0 %v25967_v33 }
 0xd94   : > { %20570 = vmatpush3.msra.mxu1 %v25908_v35  ;;  %20538 = vmatprep.subr.mxu0 %v25980_v10  ;;  %v11204_v57 = vand.u32 4294901760, %v11203_v53 }
 0xd95   : > { %20571 = vmatprep.subr.mxu1 %v25922_v34  ;;  %20539 = vmatpush3.msra.mxu0 %v25980_v10 }
 0xd96   : > { %20572 = vmatpush3.msra.mxu1 %v25922_v34  ;;  %20540 = vmatprep.subr.mxu0 %v25992_v9 }
 0xd97   : > { %20573 = vmatprep.subr.mxu1 %v25936_v4  ;;  %20541 = vmatpush3.msra.mxu0 %v25992_v9 }
 0xd98   : > { %20574 = vmatpush3.msra.mxu1 %v25936_v4  ;;  %20542 = vmatprep.subr.mxu0 %v26004_v16 }
 0xd99   : > { %20575 = vmatprep.subr.mxu1 %v25948_v27  ;;  %20543 = vmatpush3.msra.mxu0 %v26004_v16 }
 0xd9a   : > { %20576 = vmatpush3.msra.mxu1 %v25948_v27  ;;  %20544 = vmatprep.subr.mxu0 %v26016_v62 }
 0xd9b   : > { %20577 = vmatprep.subr.mxu1 %v25960_v63  ;;  %20545 = vmatpush3.msra.mxu0 %v26016_v62 }
 0xd9c   : > { %20578 = vmatpush3.msra.mxu1 %v25960_v63  ;;  %20546 = vmatprep.subr.mxu0 %v26026_v46 }
 0xd9d   : > { %20579 = vmatprep.subr.mxu1 %v25972_v23  ;;  %20547 = vmatpush3.msra.mxu0 %v26026_v46 }
 0xd9e   : > { %20580 = vmatpush3.msra.mxu1 %v25972_v23  ;;  %20548 = vmatprep.subr.mxu0 %v26036_v32 }
 0xd9f   : > { %20581 = vmatprep.subr.mxu1 %v25985_v44  ;;  %20549 = vmatpush3.msra.mxu0 %v26036_v32 }
 0xda0   : > { %20582 = vmatpush3.msra.mxu1 %v25985_v44  ;;  %20550 = vmatprep.subr.mxu0 %v26044_v48 }
 0xda1   : > { %20583 = vmatprep.subr.mxu1 %v25997_v43  ;;  %20551 = vmatpush3.msra.mxu0 %v26044_v48  ;;  %v26229_v48 = vsub.f32 %v11131_v18, %v11131_v18 }
 0xda2   : > { %20552 = vmatprep.mubr.f32.mxu0 %v29299_v56  ;;  %20584 = vmatpush3.msra.mxu1 %v25997_v43 }
 0xda3   : > { %20553 = vmatmul.mubr.f32.vlgmr.msra.gmra.mxu0 %v29300_v20  ;;  %20585 = vmatprep.subr.mxu1 %v26010_v51 }
 0xda4   : > { %20586 = vmatpush3.msra.mxu1 %v26010_v51  ;;  %20587 = vmatprep.mubr.f32.mxu1 %v29299_v56 }
 0xda5   : > { %20588 = vmatmul.mubr.f32.vlgmr.msra.gmra.mxu1 %v29300_v20  ;;  %20594 = vmatprep.mubr.f32.mxu0 %v11204_v57  ;;  %v11212_v20 = vand.u32 4294901760, %v26229_v48 }
 0xda6   : > { %20601 = vmatprep.mubr.msk.f32.mxu1 %vm2862_vm3, %v26211_v42 }
 0xda7   : > { %v11213_v49 = vsub.f32 %v26229_v48, %v11212_v20 }
 0xda9   : > { %v11214_v57 = vand.u32 4294901760, %v11213_v49 }
 0xdb8   : > { %v20239_v52 = vpop.f32.mrf.mxu1 }
 0xdba   : > { %v9996_v35 = vpop.f32.mrf.mxu1 }
 0xdc0   : > { %v20204_v0 = vpop.f32.mrf.mxu0 }
 0xdc1   : > { %v10003_v8 = vadd.f32 %v20239_v52, %v20204_v0 }
 0xdc2   : > { %v9835_v54 = vpop.f32.mrf.mxu0 }
 0xdc3   : > { %v9997_v22 = vadd.f32 %v9996_v35, %v9835_v54  ;;  %v11650_v54 = vld [vmem:[#allocation13 + $0x78] sm:$0xff] }
 0xdd9   : > { %v20309_v38 = vpop.f32.mrf.mxu1 }
 0xddb   : > { %v10202_v31 = vpop.f32.mrf.mxu1 }
 0xde1   : > { %v20274_v60 = vpop.f32.mrf.mxu0 }
 0xde2   : > { %v10114_v12 = vadd.f32 %v20274_v60, %v10003_v8  ;;  %v11649_v8 = vld [vmem:[#allocation13 + $0x70] sm:$0xff] }
 0xde3   : > { %v10106_v34 = vpop.f32.mrf.mxu0 }
 0xde4   : > { %v10107_v6 = vadd.f32 %v10106_v34, %v9997_v22  ;;  %v10211_v27 = vadd.f32 %v20309_v38, %v10114_v12  ;;  %v26266_v38 = vand.u32 4294901760, %v11650_v54  ;;  %v11648_v12 = vld [vmem:[#allocation13 + $0x68] sm:$0xff] }
 0xde6   : > { %v10203_v33 = vadd.f32 %v10202_v31, %v10107_v6  ;;  %v11647_v6 = vld [vmem:[#allocation13 + $0x60] sm:$0xff] }
 0xdfb   : > { %v20379_v39 = vpop.f32.mrf.mxu1 }
 0xdfd   : > { %v10422_v10 = vpop.f32.mrf.mxu1 }
 0xe02   : > { %v20344_v4 = vpop.f32.mrf.mxu0 }
 0xe03   : > { %v10336_v63 = vadd.f32 %v20344_v4, %v10211_v27  ;;  %v26274_v4 = vand.u32 4294901760, %v11649_v8  ;;  %v26280_v27 = vand.u32 4294901760, %v11648_v12 }
 0xe04   : > { %v10329_v47 = vpop.f32.mrf.mxu0 }
 0xe05   : > { %v10330_v23 = vadd.f32 %v10329_v47, %v10203_v33  ;;  %v10429_v61 = vadd.f32 %v20379_v39, %v10336_v63  ;;  %v11646_v39 = vld [vmem:[#allocation13 + $0x58] sm:$0xff]  ;;  %v26283_v47 = vsub.f32 %v11650_v54, %v26266_v38  ;;  %v26286_v63 = vand.u32 4294901760, %v11647_v6 }
 0xe06   : > { %v26290_v33 = vsub.f32 %v11649_v8, %v26274_v4 }
 0xe07   : > { %v10423_v43 = vadd.f32 %v10422_v10, %v10330_v23  ;;  %v11645_v23 = vld [vmem:[#allocation13 + $0x50] sm:$0xff]  ;;  %v26301_v10 = vand.u32 4294901760, %v26283_v47 }
 0xe1f   : > { %v20449_v9 = vpop.f32.mrf.mxu1 }
 0xe21   : > { %v10680_v62 = vpop.f32.mrf.mxu1 }
 0xe22   : > { %v20414_v13 = vpop.f32.mrf.mxu0 }
 0xe23   : > { %v10530_v19 = vadd.f32 %v20414_v13, %v10429_v61  ;;  %v26295_v13 = vand.u32 4294901760, %v11646_v39  ;;  %v26304_v61 = vsub.f32 %v11648_v12, %v26280_v27 }
 0xe24   : > { %v10519_v44 = vpop.f32.mrf.mxu0 }
 0xe25   : > { %v10520_v51 = vadd.f32 %v10519_v44, %v10423_v43  ;;  %v10687_v58 = vadd.f32 %v20449_v9, %v10530_v19  ;;  %v11644_v44 = vld [vmem:[#allocation13 + $0x48] sm:$0xff]  ;;  %v26310_v9 = vsub.f32 %v11647_v6, %v26286_v63  ;;  %v26314_v19 = vand.u32 4294901760, %v11645_v23 }
 0xe26   : > { %v26317_v43 = vand.u32 4294901760, %v26290_v33  ;;  %v26321_v50 = vsub.f32 %v11646_v39, %v26295_v13 }
 0xe27   : > { %v10681_v45 = vadd.f32 %v10680_v62, %v10520_v51  ;;  %v11763_v51 = vsub.f32 %v26283_v47, %v26301_v10  ;;  %v26327_v62 = vand.u32 4294901760, %v11644_v44  ;;  %v26346_v18 = vsub.f32 %v11645_v23, %v26314_v19  ;;  %v11636_v23 = vld [vmem:[#allocation13 + $0x8] sm:$0xff] }
 0xe42   : > { %v20484_v16 = vpop.f32.mrf.mxu0 }
 0xe43   : > { %v10798_v37 = vadd.f32 %v20484_v16, %v10687_v58  ;;  %v11643_v16 = vld [vmem:[#allocation13 + $0x40] sm:$0xff]  ;;  %v26330_v58 = vand.u32 4294901760, %v26304_v61 }
 0xe44   : > { %v10790_v17 = vpop.f32.mrf.mxu0  ;;  %v20519_v46 = vpop.f32.mrf.mxu1 }
 0xe45   : > { %v10791_v32 = vadd.f32 %v10790_v17, %v10681_v45  ;;  %v10895_v28 = vadd.f32 %v20519_v46, %v10798_v37  ;;  %v26336_v17 = vand.u32 4294901760, %v26310_v9  ;;  %v11642_v46 = vld [vmem:[#allocation13 + $0x38] sm:$0xff]  ;;  %v11770_v45 = vsub.f32 %v26290_v33, %v26317_v43 }
 0xe46   : > { %v10886_v25 = vpop.f32.mrf.mxu1  ;;  %v26343_v37 = vand.u32 4294901760, %v11643_v16 }
 0xe47   : > { %v10887_v15 = vadd.f32 %v10886_v25, %v10791_v32  ;;  %v11764_v32 = vand.u32 4294901760, %v11763_v51  ;;  %v11777_v25 = vsub.f32 %v26304_v61, %v26330_v58 }
 0xe63   : > { %v20554_v41 = vpop.f32.mrf.mxu0 }
 0xe64   : > { %v11020_v59 = vadd.f32 %v20554_v41, %v10895_v28  ;;  %v26357_v28 = vand.u32 4294901760, %v11642_v46  ;;  %v11784_v41 = vsub.f32 %v26310_v9, %v26336_v17 }
 0xe65   : > { %v11013_v2 = vpop.f32.mrf.mxu0  ;;  %v20589_v40 = vpop.f32.mrf.mxu1 }
 0xe66   : > { %v11014_v14 = vadd.f32 %v11013_v2, %v10887_v15  ;;  %v11113_v56 = vadd.f32 %v20589_v40, %v11020_v59  ;;  %v11640_v15 = vld [vmem:[#allocation13 + $0x28] sm:$0xff]  ;;  %v11771_v59 = vand.u32 4294901760, %v11770_v45  ;;  %v26372_v40 = vand.u32 4294901760, %v26346_v18 }
 0xe67   : > { %v11106_v1 = vpop.f32.mrf.mxu1 }
 0xe68   : > { %v11124_v21 = vadd.f32 %v16713_v7, %v11113_v56  ;;  %v11107_v36 = vadd.f32 %v11106_v1, %v11014_v14  ;;  %v11778_v56 = vand.u32 4294901760, %v11777_v25  ;;  %v26438_v25 = vand.u32 4294901760, %v11636_v23 }
 0xe6a   : > { %v11126_v24 = vmax.f32 %v11124_v21, 0.0  ;;  %v11123_v26 = vadd.f32 %v16713_v7, %v11107_v36  ;;  %v26375_v7 = vsub.f32 %v11643_v16, %v26343_v37  ;;  %v26389_v21 = vsub.f32 %v11642_v46, %v26357_v28  ;;  %v11638_v36 = vld [vmem:[#allocation13 + $0x18] sm:$0xff] }
 0xe6c   : > { %v26236_v3 = vand.u32 4294901760, %v11126_v24  ;;  %16068 = vst [vmem:[%s26239_s15 + $0x8] sm:$0xff] %v11126_v24  ;;  %v11125_v11 = vmax.f32 %v11123_v26, 0.0  ;;  %v26398_v49 = vand.u32 4294901760, %v26375_v7  ;;  %v26410_v8 = vand.u32 4294901760, %v26389_v21 }
 0xe6e   : > { %v26243_v5 = vsub.f32 %v11126_v24, %v26236_v3  ;;  %v26245_v53 = vand.u32 4294901760, %v11125_v11  ;;  %16067 = vst [vmem:[%s26239_s15] sm:$0xff] %v11125_v11  ;;  %20590 = vmatprep.subr.mxu0 %v26236_v3  ;;  %v11798_v24 = vsub.f32 %v26346_v18, %v26372_v40  ;;  %v11819_v46 = vsub.f32 %v26389_v21, %v26410_v8 }
 0xe6f   : > { %20591 = vmatpush3.msra.mxu0 %v26236_v3 }
 0xe70   : > { %v26251_v0 = vsub.f32 %v11125_v11, %v26245_v53  ;;  %20592 = vmatprep.subr.mxu0 %v26245_v53  ;;  %v26255_v52 = vand.u32 4294901760, %v26243_v5  ;;  %v11799_v6 = vand.u32 4294901760, %v11798_v24  ;;  %v26460_v24 = vsub.f32 %v11636_v23, %v26438_v25 }
 0xe71   : > { %20593 = vmatpush3.msra.mxu0 %v26245_v53 }
 0xe72   : > { %20595 = vmatmul.mubr.f32.vlgmr.msra.gmra.mxu0 %v11214_v57  ;;  %20604 = vmatprep.subr.mxu0 %v26243_v5  ;;  %v11252_v60 = vsub.f32 %v26243_v5, %v26255_v52  ;;  %v26262_v35 = vand.u32 4294901760, %v26251_v0 }
 0xe73   : > { %20605 = vmatpush3.msra.mxu0 %v26243_v5  ;;  %20608 = vmatprep.mubr.f32.mxu0 %v26217_v55  ;;  %v26351_v55 = vand.u32 4294901760, %v26321_v50 }
 0xe74   : > { %20606 = vmatprep.subr.mxu0 %v26251_v0  ;;  %v26269_v34 = vand.u32 4294901760, %v11252_v60  ;;  %v11259_v22 = vsub.f32 %v26251_v0, %v26262_v35  ;;  %v26407_v60 = vand.u32 4294901760, %v11638_v36 }
 0xe75   : > { %20607 = vmatpush3.msra.mxu0 %v26251_v0  ;;  %v11791_v14 = vsub.f32 %v26321_v50, %v26351_v55 }
 0xe76   : > { %20597 = vmatprep.subr.mxu1 %v26269_v34  ;;  %20609 = vmatmul.mubr.f32.vlgmr.msra.gmra.mxu0 %v26229_v48  ;;  %v11260_v31 = vand.u32 4294901760, %v11259_v22  ;;  %v26360_v48 = vsub.f32 %v11644_v44, %v26327_v62  ;;  %v11637_v22 = vld [vmem:[#allocation13 + $0x10] sm:$0xff] }
 0xe77   : > { %20618 = vmatprep.subr.mxu0 %v26255_v52  ;;  %20598 = vmatpush3.msra.mxu1 %v26269_v34  ;;  %v11792_v57 = vand.u32 4294901760, %v11791_v14  ;;  %v26426_v16 = vand.u32 4294901760, %v11637_v22 }
 0xe78   : > { %20619 = vmatpush3.msra.mxu0 %v26255_v52  ;;  %20599 = vmatprep.subr.mxu1 %v11260_v31  ;;  %v26386_v1 = vand.u32 4294901760, %v26360_v48 }
 0xe79   : > { %20620 = vmatprep.subr.mxu0 %v26262_v35  ;;  %20600 = vmatpush3.msra.mxu1 %v11260_v31 }
 0xe7a   : > { %20621 = vmatpush3.msra.mxu0 %v26262_v35  ;;  %20622 = vmatprep.mubr.msk.f32.mxu0 %vm2862_vm3, %v26211_v42  ;;  %v11805_v54 = vsub.f32 %v26360_v48, %v26386_v1 }
 0xe7b   : > { %20602 = vmatmul.mubr.msk.f32.vlgmr.msra.gmra.mxu1 %vm2862_vm3, %v26225_v30  ;;  %20611 = vmatprep.subr.mxu1 %v26236_v3 }
 0xe7c   : > { %20623 = vmatmul.mubr.msk.f32.vlgmr.msra.gmra.mxu0 %vm2862_vm3, %v26225_v30  ;;  %20632 = vmatprep.subr.mxu0 %v26266_v38  ;;  %v11806_v51 = vand.u32 4294901760, %v11805_v54 }
 0xe7d   : > { %20612 = vmatpush3.msra.mxu1 %v26236_v3  ;;  %20633 = vmatpush3.msra.mxu0 %v26266_v38 }
 0xe7e   : > { %20664 = vmatprep.mubr.f32.mxu0 %v11260_v31  ;;  %20613 = vmatprep.subr.mxu1 %v26245_v53  ;;  %v11812_v31 = vsub.f32 %v26375_v7, %v26398_v49 }
 0xe7f   : > { %20634 = vmatprep.subr.mxu0 %v26274_v4  ;;  %20614 = vmatpush3.msra.mxu1 %v26245_v53 }
 0xe80   : > { %20615 = vmatprep.mubr.f32.mxu1 %v11202_v29  ;;  %20635 = vmatpush3.msra.mxu0 %v26274_v4  ;;  %v11641_v29 = vld [vmem:[#allocation13 + $0x30] sm:$0xff] }
 0xe81   : > { %20616 = vmatmul.mubr.f32.vlgmr.msra.gmra.mxu1 %v11212_v20  ;;  %20625 = vmatprep.subr.mxu1 %v26236_v3  ;;  %v26369_v2 = vand.u32 4294901760, %v11641_v29  ;;  %v26383_v20 = vand.u32 4294901760, %v11640_v15 }
 0xe82   : > { %20636 = vmatprep.subr.mxu0 %v26280_v27  ;;  %20626 = vmatpush3.msra.mxu1 %v26236_v3 }
 0xe83   : > { %20637 = vmatpush3.msra.mxu0 %v26280_v27  ;;  %20627 = vmatprep.subr.mxu1 %v26245_v53  ;;  %v26401_v11 = vsub.f32 %v11641_v29, %v26369_v2  ;;  %v26413_v12 = vsub.f32 %v11640_v15, %v26383_v20  ;;  %v11635_v29 = vld [vmem:[#allocation13] sm:$0xff] }
 0xe84   : > { %20638 = vmatprep.subr.mxu0 %v26286_v63  ;;  %20628 = vmatpush3.msra.mxu1 %v26245_v53  ;;  %v26447_v14 = vand.u32 4294901760, %v11635_v29 }
 0xe85   : > { %20629 = vmatprep.mubr.msk.f32.mxu1 %vm2862_vm3, %v26211_v42  ;;  %20639 = vmatpush3.msra.mxu0 %v26286_v63  ;;  %v11639_v42 = vld [vmem:[#allocation13 + $0x20] sm:$0xff]  ;;  %v26420_v39 = vand.u32 4294901760, %v26401_v11  ;;  %v26432_v45 = vand.u32 4294901760, %v26413_v12 }
 0xe86   : > { %20630 = vmatmul.mubr.msk.f32.vlgmr.msra.gmra.mxu1 %vm2862_vm3, %v26225_v30  ;;  %20640 = vmatprep.subr.mxu0 %v26295_v13  ;;  %v11785_v30 = vand.u32 4294901760, %v11784_v41  ;;  %v26395_v26 = vand.u32 4294901760, %v11639_v42  ;;  %v11813_v41 = vand.u32 4294901760, %v11812_v31 }
 0xe87   : > { %20667 = vmatprep.subr.mxu1 %v11764_v32  ;;  %20641 = vmatpush3.msra.mxu0 %v26295_v13  ;;  %v11826_v15 = vsub.f32 %v26401_v11, %v26420_v39 }
 0xe88   : > { %20668 = vmatpush3.msra.mxu1 %v11764_v32  ;;  %20699 = vmatprep.mubr.f32.mxu1 %v26245_v53  ;;  %v26423_v44 = vsub.f32 %v11639_v42, %v26395_v26  ;;  %v26435_v32 = vsub.f32 %v11638_v36, %v26407_v60  ;;  %v26450_v42 = vsub.f32 %v11637_v22, %v26426_v16 }
 0xe89   : > { %20642 = vmatprep.subr.mxu0 %v26314_v19  ;;  %20669 = vmatprep.subr.mxu1 %v11771_v59 }
 0xe8a   : > { %20643 = vmatpush3.msra.mxu0 %v26314_v19  ;;  %20670 = vmatpush3.msra.mxu1 %v11771_v59  ;;  %v26444_v59 = vand.u32 4294901760, %v26423_v44  ;;  %v26456_v36 = vand.u32 4294901760, %v26435_v32  ;;  %v26467_v22 = vand.u32 4294901760, %v26450_v42 }
 0xe8b   : > { %20644 = vmatprep.subr.mxu0 %v26327_v62  ;;  %20671 = vmatprep.subr.mxu1 %v11778_v56 }
 0xe8c   : > { %20645 = vmatpush3.msra.mxu0 %v26327_v62  ;;  %20672 = vmatpush3.msra.mxu1 %v11778_v56  ;;  %v11820_v56 = vand.u32 4294901760, %v11819_v46  ;;  %v11840_v54 = vsub.f32 %v26423_v44, %v26444_v59  ;;  %v11847_v23 = vsub.f32 %v26435_v32, %v26456_v36 }
 0xe8d   : > { %20646 = vmatprep.subr.mxu0 %v26343_v37  ;;  %20673 = vmatprep.subr.mxu1 %v11785_v30 }
 0xe8e   : > { %20647 = vmatpush3.msra.mxu0 %v26343_v37  ;;  %20674 = vmatpush3.msra.mxu1 %v11785_v30  ;;  %v11833_v30 = vsub.f32 %v26413_v12, %v26432_v45  ;;  %v11841_v46 = vand.u32 4294901760, %v11840_v54 }
 0xe8f   : > { %20648 = vmatprep.subr.mxu0 %v26357_v28  ;;  %20675 = vmatprep.subr.mxu1 %v11792_v57 }
 0xe90   : > { %20649 = vmatpush3.msra.mxu0 %v26357_v28  ;;  %20676 = vmatpush3.msra.mxu1 %v11792_v57  ;;  %v11827_v57 = vand.u32 4294901760, %v11826_v15  ;;  %v11834_v31 = vand.u32 4294901760, %v11833_v30  ;;  %v11848_v15 = vand.u32 4294901760, %v11847_v23 }
 0xe91   : > { %20650 = vmatprep.subr.mxu0 %v26369_v2  ;;  %20677 = vmatprep.subr.mxu1 %v11799_v6 }
 0xe92   : > { %20651 = vmatpush3.msra.mxu0 %v26369_v2  ;;  %20678 = vmatpush3.msra.mxu1 %v11799_v6  ;;  %v26470_v6 = vsub.f32 %v11635_v29, %v26447_v14  ;;  %v11854_v29 = vsub.f32 %v26450_v42, %v26467_v22 }
 0xe93   : > { %20652 = vmatprep.subr.mxu0 %v26383_v20  ;;  %20679 = vmatprep.subr.mxu1 %v11806_v51 }
 0xe94   : > { %20653 = vmatpush3.msra.mxu0 %v26383_v20  ;;  %20680 = vmatpush3.msra.mxu1 %v11806_v51  ;;  %v26477_v51 = vand.u32 4294901760, %v26460_v24  ;;  %v11855_v30 = vand.u32 4294901760, %v11854_v29 }
 0xe95   : > { %20654 = vmatprep.subr.mxu0 %v26395_v26  ;;  %20681 = vmatprep.subr.mxu1 %v11813_v41 }
 0xe96   : > { %20655 = vmatpush3.msra.mxu0 %v26395_v26  ;;  %20682 = vmatpush3.msra.mxu1 %v11813_v41  ;;  %v26484_v41 = vand.u32 4294901760, %v26470_v6 }
 0xe97   : > { %20656 = vmatprep.subr.mxu0 %v26407_v60  ;;  %20683 = vmatprep.subr.mxu1 %v11820_v56 }
 0xe98   : > { %20657 = vmatpush3.msra.mxu0 %v26407_v60  ;;  %20684 = vmatpush3.msra.mxu1 %v11820_v56  ;;  %v11861_v56 = vsub.f32 %v26460_v24, %v26477_v51 }
 0xe99   : > { %20658 = vmatprep.subr.mxu0 %v26426_v16  ;;  %20685 = vmatprep.subr.mxu1 %v11827_v57 }
 0xe9a   : > { %20659 = vmatpush3.msra.mxu0 %v26426_v16  ;;  %20686 = vmatpush3.msra.mxu1 %v11827_v57  ;;  %v11868_v57 = vsub.f32 %v26470_v6, %v26484_v41  ;;  %v11862_v54 = vand.u32 4294901760, %v11861_v56 }
 0xe9b   : > { %20660 = vmatprep.subr.mxu0 %v26438_v25  ;;  %20687 = vmatprep.subr.mxu1 %v11834_v31 }
 0xe9c   : > { %20661 = vmatpush3.msra.mxu0 %v26438_v25  ;;  %20688 = vmatpush3.msra.mxu1 %v11834_v31  ;;  %v11869_v31 = vand.u32 4294901760, %v11868_v57 }
 0xe9d   : > { %20662 = vmatprep.subr.mxu0 %v26447_v14  ;;  %20689 = vmatprep.subr.mxu1 %v11841_v46 }
 0xe9e   : > { %20663 = vmatpush3.msra.mxu0 %v26447_v14  ;;  %20690 = vmatpush3.msra.mxu1 %v11841_v46 }
 0xe9f   : > { %20665 = vmatmul.mubr.f32.vlgmr.msra.gmra.mxu0 %v26269_v34  ;;  %20691 = vmatprep.subr.mxu1 %v11848_v15  ;;  %v12356_v34 = vld [vmem:[#allocation14 + $0x60] sm:$0xff] }
 0xea0   : > { %20702 = vmatprep.subr.mxu0 %v26283_v47  ;;  %20692 = vmatpush3.msra.mxu1 %v11848_v15 }
 0xea1   : > { %20703 = vmatpush3.msra.mxu0 %v26283_v47  ;;  %20734 = vmatprep.mubr.f32.mxu0 %v26251_v0  ;;  %v12358_v0 = vld [vmem:[#allocation14 + $0x70] sm:$0xff] }
 0xea2   : > { %20693 = vmatprep.subr.mxu1 %v11855_v30  ;;  %20704 = vmatprep.subr.mxu0 %v26290_v33 }
 0xea3   : > { %20694 = vmatpush3.msra.mxu1 %v11855_v30  ;;  %20705 = vmatpush3.msra.mxu0 %v26290_v33  ;;  %v12354_v33 = vld [vmem:[#allocation14 + $0x50] sm:$0xff] }
 0xea4   : > { %20695 = vmatprep.subr.mxu1 %v11862_v54  ;;  %20706 = vmatprep.subr.mxu0 %v26304_v61 }
 0xea5   : > { %20696 = vmatpush3.msra.mxu1 %v11862_v54  ;;  %20707 = vmatpush3.msra.mxu0 %v26304_v61  ;;  %v12347_v54 = vld [vmem:[#allocation14 + $0x18] sm:$0xff] }
 0xea6   : > { %20697 = vmatprep.subr.mxu1 %v11869_v31  ;;  %20708 = vmatprep.subr.mxu0 %v26310_v9 }
 0xea7   : > { %20698 = vmatpush3.msra.mxu1 %v11869_v31  ;;  %20709 = vmatpush3.msra.mxu0 %v26310_v9  ;;  %v26654_v9 = vand.u32 4294901760, %v12354_v33 }
 0xea8   : > { %20700 = vmatmul.mubr.f32.vlgmr.msra.gmra.mxu1 %v26236_v3  ;;  %20710 = vmatprep.subr.mxu0 %v26321_v50 }
 0xea9   : > { %20737 = vmatprep.subr.mxu1 %v26266_v38  ;;  %20711 = vmatpush3.msra.mxu0 %v26321_v50 }
 0xeaa   : > { %20738 = vmatpush3.msra.mxu1 %v26266_v38  ;;  %20769 = vmatprep.mubr.f32.mxu1 %v26262_v35  ;;  %v26637_v35 = vand.u32 4294901760, %v12358_v0 }
 0xeab   : > { %20712 = vmatprep.subr.mxu0 %v26346_v18  ;;  %20739 = vmatprep.subr.mxu1 %v26274_v4 }
 0xeac   : > { %20713 = vmatpush3.msra.mxu0 %v26346_v18  ;;  %20740 = vmatpush3.msra.mxu1 %v26274_v4  ;;  %v26677_v18 = vsub.f32 %v12354_v33, %v26654_v9 }
 0xead   : > { %20714 = vmatprep.subr.mxu0 %v26360_v48  ;;  %20741 = vmatprep.subr.mxu1 %v26280_v27 }
 0xeae   : > { %20715 = vmatpush3.msra.mxu0 %v26360_v48  ;;  %20742 = vmatpush3.msra.mxu1 %v26280_v27 }
 0xeaf   : > { %20716 = vmatprep.subr.mxu0 %v26375_v7  ;;  %20743 = vmatprep.subr.mxu1 %v26286_v63 }
 0xeb0   : > { %20717 = vmatpush3.msra.mxu0 %v26375_v7  ;;  %20744 = vmatpush3.msra.mxu1 %v26286_v63 }
 0xeb1   : > { %20718 = vmatprep.subr.mxu0 %v26389_v21  ;;  %20745 = vmatprep.subr.mxu1 %v26295_v13 }
 0xeb2   : > { %20719 = vmatpush3.msra.mxu0 %v26389_v21  ;;  %20746 = vmatpush3.msra.mxu1 %v26295_v13 }
 0xeb3   : > { %20720 = vmatprep.subr.mxu0 %v26401_v11  ;;  %20747 = vmatprep.subr.mxu1 %v26314_v19 }
 0xeb4   : > { %20721 = vmatpush3.msra.mxu0 %v26401_v11  ;;  %20748 = vmatpush3.msra.mxu1 %v26314_v19 }
 0xeb5   : > { %20722 = vmatprep.subr.mxu0 %v26413_v12  ;;  %20749 = vmatprep.subr.mxu1 %v26327_v62 }
 0xeb6   : > { %20723 = vmatpush3.msra.mxu0 %v26413_v12  ;;  %20750 = vmatpush3.msra.mxu1 %v26327_v62 }
 0xeb7   : > { %20724 = vmatprep.subr.mxu0 %v26423_v44  ;;  %20751 = vmatprep.subr.mxu1 %v26343_v37 }
 0xeb8   : > { %20725 = vmatpush3.msra.mxu0 %v26423_v44  ;;  %20752 = vmatpush3.msra.mxu1 %v26343_v37 }
 0xeb9   : > { %20726 = vmatprep.subr.mxu0 %v26435_v32  ;;  %20753 = vmatprep.subr.mxu1 %v26357_v28 }
 0xeba   : > { %20727 = vmatpush3.msra.mxu0 %v26435_v32  ;;  %20754 = vmatpush3.msra.mxu1 %v26357_v28  ;;  %v12351_v32 = vld [vmem:[#allocation14 + $0x38] sm:$0xff] }
 0xebb   : > { %20728 = vmatprep.subr.mxu0 %v26450_v42  ;;  %20755 = vmatprep.subr.mxu1 %v26369_v2 }
 0xebc   : > { %20729 = vmatpush3.msra.mxu0 %v26450_v42  ;;  %20756 = vmatpush3.msra.mxu1 %v26369_v2  ;;  %v12350_v42 = vld [vmem:[#allocation14 + $0x30] sm:$0xff] }
 0xebd   : > { %20730 = vmatprep.subr.mxu0 %v26460_v24  ;;  %20757 = vmatprep.subr.mxu1 %v26383_v20 }
 0xebe   : > { %20731 = vmatpush3.msra.mxu0 %v26460_v24  ;;  %20758 = vmatpush3.msra.mxu1 %v26383_v20 }
 0xebf   : > { %20732 = vmatprep.subr.mxu0 %v26470_v6  ;;  %20759 = vmatprep.subr.mxu1 %v26395_v26 }
 0xec0   : > { %20733 = vmatpush3.msra.mxu0 %v26470_v6  ;;  %20760 = vmatpush3.msra.mxu1 %v26395_v26  ;;  %v12349_v6 = vld [vmem:[#allocation14 + $0x28] sm:$0xff] }
 0xec1   : > { %20735 = vmatmul.mubr.f32.vlgmr.msra.gmra.mxu0 %v26243_v5  ;;  %20761 = vmatprep.subr.mxu1 %v26407_v60  ;;  %v12359_v5 = vld [vmem:[#allocation14 + $0x78] sm:$0xff]  ;;  %v26742_v29 = vand.u32 4294901760, %v12349_v6 }
 0xec2   : > { %20772 = vmatprep.subr.mxu0 %v26301_v10  ;;  %20762 = vmatpush3.msra.mxu1 %v26407_v60 }
 0xec3   : > { %20773 = vmatpush3.msra.mxu0 %v26301_v10  ;;  %20804 = vmatprep.mubr.f32.mxu0 %v26245_v53  ;;  %v12352_v10 = vld [vmem:[#allocation14 + $0x40] sm:$0xff]  ;;  %v26752_v30 = vsub.f32 %v12349_v6, %v26742_v29 }
 0xec4   : > { %20763 = vmatprep.subr.mxu1 %v26426_v16  ;;  %20774 = vmatprep.subr.mxu0 %v26317_v43 }
 0xec5   : > { %20764 = vmatpush3.msra.mxu1 %v26426_v16  ;;  %20775 = vmatpush3.msra.mxu0 %v26317_v43  ;;  %v26659_v43 = vand.u32 4294901760, %v12352_v10 }
 0xec6   : > { %20765 = vmatprep.subr.mxu1 %v26438_v25  ;;  %20776 = vmatprep.subr.mxu0 %v26330_v58 }
 0xec7   : > { %20766 = vmatpush3.msra.mxu1 %v26438_v25  ;;  %20777 = vmatpush3.msra.mxu0 %v26330_v58 }
 0xec8   : > { %20767 = vmatprep.subr.mxu1 %v26447_v14  ;;  %20778 = vmatprep.subr.mxu0 %v26336_v17 }
 0xec9   : > { %20768 = vmatpush3.msra.mxu1 %v26447_v14  ;;  %20779 = vmatpush3.msra.mxu0 %v26336_v17 }
 0xeca   : > { %20770 = vmatmul.mubr.f32.vlgmr.msra.gmra.mxu1 %v26255_v52  ;;  %20780 = vmatprep.subr.mxu0 %v26351_v55 }
 0xecb   : > { %20807 = vmatprep.subr.mxu1 %v26266_v38  ;;  %20781 = vmatpush3.msra.mxu0 %v26351_v55 }
 0xecc   : > { %20808 = vmatpush3.msra.mxu1 %v26266_v38  ;;  %20839 = vmatprep.mubr.f32.mxu1 %v26245_v53  ;;  %v26632_v53 = vand.u32 4294901760, %v12359_v5  ;;  %v12357_v38 = vld [vmem:[#allocation14 + $0x68] sm:$0xff] }
 0xecd   : > { %20782 = vmatprep.subr.mxu0 %v26372_v40  ;;  %20809 = vmatprep.subr.mxu1 %v26274_v4  ;;  %v26647_v47 = vand.u32 4294901760, %v12357_v38 }
 0xece   : > { %20783 = vmatpush3.msra.mxu0 %v26372_v40  ;;  %20810 = vmatpush3.msra.mxu1 %v26274_v4  ;;  %v26635_v52 = vsub.f32 %v12359_v5, %v26632_v53  ;;  %v12355_v4 = vld [vmem:[#allocation14 + $0x58] sm:$0xff] }
 0xecf   : > { %20784 = vmatprep.subr.mxu0 %v26386_v1  ;;  %20811 = vmatprep.subr.mxu1 %v26280_v27  ;;  %v26652_v61 = vand.u32 4294901760, %v12355_v4  ;;  %v26667_v58 = vsub.f32 %v12357_v38, %v26647_v47 }
 0xed0   : > { %20785 = vmatpush3.msra.mxu0 %v26386_v1  ;;  %20812 = vmatpush3.msra.mxu1 %v26280_v27  ;;  %v26642_v27 = vand.u32 4294901760, %v26635_v52  ;;  %v26699_v1 = vand.u32 4294901760, %v26677_v18 }
 0xed1   : > { %20786 = vmatprep.subr.mxu0 %v26398_v49  ;;  %20813 = vmatprep.subr.mxu1 %v26286_v63  ;;  %v26689_v40 = vand.u32 4294901760, %v26667_v58 }
 0xed2   : > { %20787 = vmatpush3.msra.mxu0 %v26398_v49  ;;  %20814 = vmatpush3.msra.mxu1 %v26286_v63  ;;  %v26649_v63 = vand.u32 4294901760, %v12356_v34  ;;  %v12472_v50 = vsub.f32 %v26635_v52, %v26642_v27  ;;  %29311 = vst [vmem:[#allocation123_spill] sm:$0xff] %v26699_v1 }
 0xed3   : > { %20788 = vmatprep.subr.mxu0 %v26410_v8  ;;  %20815 = vmatprep.subr.mxu1 %v26295_v13 }
 0xed4   : > { %20789 = vmatpush3.msra.mxu0 %v26410_v8  ;;  %20816 = vmatpush3.msra.mxu1 %v26295_v13  ;;  %v12353_v13 = vld [vmem:[#allocation14 + $0x48] sm:$0xff]  ;;  %v26670_v17 = vsub.f32 %v12356_v34, %v26649_v63  ;;  %v12473_v48 = vand.u32 4294901760, %v12472_v50  ;;  %v26767_v34 = vand.u32 4294901760, %v12347_v54 }
 0xed5   : > { %20790 = vmatprep.subr.mxu0 %v26420_v39  ;;  %20817 = vmatprep.subr.mxu1 %v26314_v19 }
 0xed6   : > { %20791 = vmatpush3.msra.mxu0 %v26420_v39  ;;  %20818 = vmatpush3.msra.mxu1 %v26314_v19  ;;  %v26657_v19 = vand.u32 4294901760, %v12353_v13  ;;  %v26692_v7 = vand.u32 4294901760, %v26670_v17  ;;  %v12507_v39 = vsub.f32 %v26677_v18, %v26699_v1 }
 0xed7   : > { %20792 = vmatprep.subr.mxu0 %v26432_v45  ;;  %20819 = vmatprep.subr.mxu1 %v26327_v62 }
 0xed8   : > { %20793 = vmatpush3.msra.mxu0 %v26432_v45  ;;  %20820 = vmatpush3.msra.mxu1 %v26327_v62  ;;  %v26680_v55 = vsub.f32 %v12353_v13, %v26657_v19  ;;  %v12493_v49 = vsub.f32 %v26670_v17, %v26692_v7 }
 0xed9   : > { %20794 = vmatprep.subr.mxu0 %v26444_v59  ;;  %20821 = vmatprep.subr.mxu1 %v26343_v37 }
 0xeda   : > { %20795 = vmatpush3.msra.mxu0 %v26444_v59  ;;  %20822 = vmatpush3.msra.mxu1 %v26343_v37  ;;  %v26674_v37 = vsub.f32 %v12355_v4, %v26652_v61  ;;  %v26707_v11 = vand.u32 4294901760, %v26680_v55  ;;  %v12494_v12 = vand.u32 4294901760, %v12493_v49  ;;  %v12346_v4 = vld [vmem:[#allocation14 + $0x10] sm:$0xff] }
 0xedb   : > { %20796 = vmatprep.subr.mxu0 %v26456_v36  ;;  %20823 = vmatprep.subr.mxu1 %v26357_v28  ;;  %v26775_v50 = vand.u32 4294901760, %v12346_v4 }
 0xedc   : > { %20797 = vmatpush3.msra.mxu0 %v26456_v36  ;;  %20824 = vmatpush3.msra.mxu1 %v26357_v28  ;;  %v26684_v28 = vsub.f32 %v12352_v10, %v26659_v43  ;;  %29312 = vst [vmem:[#allocation126_spill] sm:$0xff] %v26707_v11  ;;  %v12514_v45 = vsub.f32 %v26680_v55, %v26707_v11 }
 0xedd   : > { %20798 = vmatprep.subr.mxu0 %v26467_v22  ;;  %20825 = vmatprep.subr.mxu1 %v26369_v2  ;;  %v26785_v49 = vsub.f32 %v12346_v4, %v26775_v50 }
 0xede   : > { %20799 = vmatpush3.msra.mxu0 %v26467_v22  ;;  %20826 = vmatpush3.msra.mxu1 %v26369_v2  ;;  %v26715_v44 = vand.u32 4294901760, %v26684_v28  ;;  %v12515_v36 = vand.u32 4294901760, %v12514_v45  ;;  %v26732_v22 = vand.u32 4294901760, %v12350_v42 }
 0xedf   : > { %20800 = vmatprep.subr.mxu0 %v26477_v51  ;;  %20827 = vmatprep.subr.mxu1 %v26383_v20 }
 0xee0   : > { %20801 = vmatpush3.msra.mxu0 %v26477_v51  ;;  %20828 = vmatpush3.msra.mxu1 %v26383_v20  ;;  %v26696_v20 = vand.u32 4294901760, %v26674_v37  ;;  %29313 = vst [vmem:[#allocation129_spill] sm:$0xff] %v26715_v44  ;;  %v12521_v59 = vsub.f32 %v26684_v28, %v26715_v44  ;;  %v26740_v46 = vsub.f32 %v12350_v42, %v26732_v22 }
 0xee1   : > { %20802 = vmatprep.subr.mxu0 %v26484_v41  ;;  %20829 = vmatprep.subr.mxu1 %v26395_v26 }
 0xee2   : > { %20803 = vmatpush3.msra.mxu0 %v26484_v41  ;;  %20830 = vmatpush3.msra.mxu1 %v26395_v26  ;;  %v12486_v26 = vsub.f32 %v26667_v58, %v26689_v40  ;;  %v12522_v23 = vand.u32 4294901760, %v12521_v59  ;;  %v12348_v41 = vld [vmem:[#allocation14 + $0x20] sm:$0xff]  ;;  %v26749_v56 = vand.u32 4294901760, %v26740_v46 }
 0xee3   : > { %20805 = vmatmul.mubr.f32.vlgmr.msra.gmra.mxu0 %v26236_v3  ;;  %20831 = vmatprep.subr.mxu1 %v26407_v60  ;;  %v26754_v57 = vand.u32 4294901760, %v12348_v41 }
 0xee4   : > { %20832 = vmatpush3.msra.mxu1 %v26407_v60  ;;  %20842 = vmatprep.subr.mxu0 %v26632_v53  ;;  %v12500_v60 = vsub.f32 %v26674_v37, %v26696_v20  ;;  %v12487_v8 = vand.u32 4294901760, %v12486_v26  ;;  %29315 = vst [vmem:[#allocation135_spill] sm:$0xff] %v26749_v56  ;;  %v12535_v5 = vsub.f32 %v26740_v46, %v26749_v56 }
 0xee5   : > { %20833 = vmatprep.subr.mxu1 %v26426_v16  ;;  %20843 = vmatpush3.msra.mxu0 %v26632_v53  ;;  %v26764_v38 = vsub.f32 %v12348_v41, %v26754_v57 }
 0xee6   : > { %20834 = vmatpush3.msra.mxu1 %v26426_v16  ;;  %20844 = vmatprep.subr.mxu0 %v26637_v35  ;;  %v12501_v16 = vand.u32 4294901760, %v12500_v60  ;;  %v12536_v33 = vand.u32 4294901760, %v12535_v5 }
 0xee7   : > { %20835 = vmatprep.subr.mxu1 %v26438_v25  ;;  %20845 = vmatpush3.msra.mxu0 %v26637_v35  ;;  %v26773_v10 = vand.u32 4294901760, %v26764_v38 }
 0xee8   : > { %20836 = vmatpush3.msra.mxu1 %v26438_v25  ;;  %20846 = vmatprep.subr.mxu0 %v26647_v47  ;;  %v12508_v25 = vand.u32 4294901760, %v12507_v39 }
 0xee9   : > { %20837 = vmatprep.subr.mxu1 %v26447_v14  ;;  %20847 = vmatpush3.msra.mxu0 %v26647_v47  ;;  %29317 = vst [vmem:[#allocation141_spill] sm:$0xff] %v26773_v10  ;;  %v12549_v26 = vsub.f32 %v26764_v38, %v26773_v10 }
 0xeea   : > { %20838 = vmatpush3.msra.mxu1 %v26447_v14  ;;  %20848 = vmatprep.subr.mxu0 %v26649_v63  ;;  %v26725_v14 = vand.u32 4294901760, %v12351_v32 }
 0xeeb   : > { %20840 = vmatmul.mubr.f32.vlgmr.msra.gmra.mxu1 %v26236_v3  ;;  %v26645_v3 = vsub.f32 %v12358_v0, %v26637_v35  ;;  %20849 = vmatpush3.msra.mxu0 %v26649_v63  ;;  %v26761_v0 = vand.u32 4294901760, %v26752_v30  ;;  %v12550_v39 = vand.u32 4294901760, %v12549_v26 }
 0xeec   : > { %20877 = vmatprep.subr.mxu1 %v12473_v48  ;;  %20850 = vmatprep.subr.mxu0 %v26652_v61  ;;  %v26730_v24 = vsub.f32 %v12351_v32, %v26725_v14 }
 0xeed   : > { %v26664_v62 = vand.u32 4294901760, %v26645_v3  ;;  %20878 = vmatpush3.msra.mxu1 %v12473_v48  ;;  %20851 = vmatpush3.msra.mxu0 %v26652_v61  ;;  %29316 = vst [vmem:[#allocation138_spill] sm:$0xff] %v26761_v0  ;;  %v12542_v13 = vsub.f32 %v26752_v30, %v26761_v0  ;;  %v26779_v48 = vsub.f32 %v12347_v54, %v26767_v34 }
 0xeee   : > { %20852 = vmatprep.subr.mxu0 %v26654_v9  ;;  %v26737_v51 = vand.u32 4294901760, %v26730_v24 }
 0xeef   : > { %v12479_v2 = vsub.f32 %v26645_v3, %v26664_v62  ;;  %20853 = vmatpush3.msra.mxu0 %v26654_v9 }
 0xef0   : > { %20854 = vmatprep.subr.mxu0 %v26657_v19  ;;  %29314 = vst [vmem:[#allocation134_spill] sm:$0xff] %v26737_v51  ;;  %v12528_v15 = vsub.f32 %v26730_v24, %v26737_v51 }
 0xef1   : > { %v12480_v21 = vand.u32 4294901760, %v12479_v2  ;;  %20855 = vmatpush3.msra.mxu0 %v26657_v19  ;;  %v12345_v2 = vld [vmem:[#allocation14 + $0x8] sm:$0xff] }
 0xef2   : > { %20856 = vmatprep.subr.mxu0 %v26659_v43  ;;  %v12529_v31 = vand.u32 4294901760, %v12528_v15  ;;  %v26787_v60 = vand.u32 4294901760, %v12345_v2 }
 0xef3   : > { %20879 = vmatprep.subr.mxu1 %v12480_v21  ;;  %20857 = vmatpush3.msra.mxu0 %v26659_v43 }
 0xef4   : > { %20880 = vmatpush3.msra.mxu1 %v12480_v21  ;;  %20858 = vmatprep.subr.mxu0 %v26725_v14  ;;  %v12543_v21 = vand.u32 4294901760, %v12542_v13  ;;  %v26798_v45 = vsub.f32 %v12345_v2, %v26787_v60 }
 0xef5   : > { %20881 = vmatprep.subr.mxu1 %v12487_v8  ;;  %20859 = vmatpush3.msra.mxu0 %v26725_v14 }
 0xef6   : > { %20882 = vmatpush3.msra.mxu1 %v12487_v8  ;;  %20860 = vmatprep.subr.mxu0 %v26732_v22  ;;  %v26791_v8 = vand.u32 4294901760, %v26779_v48  ;;  %v26809_v42 = vand.u32 4294901760, %v26798_v45 }
 0xef7   : > { %20883 = vmatprep.subr.mxu1 %v12494_v12  ;;  %20861 = vmatpush3.msra.mxu0 %v26732_v22 }
 0xef8   : > { %20884 = vmatpush3.msra.mxu1 %v12494_v12  ;;  %20862 = vmatprep.subr.mxu0 %v26742_v29  ;;  %29318 = vst [vmem:[#allocation144_spill] sm:$0xff] %v26791_v8  ;;  %v12344_v12 = vld [vmem:[#allocation14] sm:$0xff]  ;;  %29320 = vst [vmem:[#allocation147_spill] sm:$0xff] %v26809_v42  ;;  %v12570_v41 = vsub.f32 %v26798_v45, %v26809_v42 }
 0xef9   : > { %20885 = vmatprep.subr.mxu1 %v12501_v16  ;;  %20863 = vmatpush3.msra.mxu0 %v26742_v29  ;;  %v26800_v32 = vand.u32 4294901760, %v12344_v12 }
 0xefa   : > { %20886 = vmatpush3.msra.mxu1 %v12501_v16  ;;  %20864 = vmatprep.subr.mxu0 %v26754_v57  ;;  %v26795_v16 = vand.u32 4294901760, %v26785_v49  ;;  %v12571_v54 = vand.u32 4294901760, %v12570_v41 }
 0xefb   : > { %20887 = vmatprep.subr.mxu1 %v12508_v25  ;;  %20865 = vmatpush3.msra.mxu0 %v26754_v57 }
 0xefc   : > { %20888 = vmatpush3.msra.mxu1 %v12508_v25  ;;  %20866 = vmatprep.subr.mxu0 %v26767_v34  ;;  %29319 = vst [vmem:[#allocation146_spill] sm:$0xff] %v26795_v16  ;;  %v12556_v25 = vsub.f32 %v26779_v48, %v26791_v8  ;;  %v12563_v59 = vsub.f32 %v26785_v49, %v26795_v16 }
 0xefd   : > { %20889 = vmatprep.subr.mxu1 %v12515_v36  ;;  %20867 = vmatpush3.msra.mxu0 %v26767_v34 }
 0xefe   : > { %20890 = vmatpush3.msra.mxu1 %v12515_v36  ;;  %20868 = vmatprep.subr.mxu0 %v26775_v50  ;;  %v26812_v36 = vsub.f32 %v12344_v12, %v26800_v32  ;;  %v12557_v6 = vand.u32 4294901760, %v12556_v25 }
 0xeff   : > { %20891 = vmatprep.subr.mxu1 %v12522_v23  ;;  %20869 = vmatpush3.msra.mxu0 %v26775_v50 }
 0xf00   : > { %20892 = vmatpush3.msra.mxu1 %v12522_v23  ;;  %20870 = vmatprep.subr.mxu0 %v26787_v60  ;;  %v12564_v23 = vand.u32 4294901760, %v12563_v59  ;;  %v26819_v15 = vand.u32 4294901760, %v26812_v36 }
 0xf01   : > { %20893 = vmatprep.subr.mxu1 %v12529_v31  ;;  %20871 = vmatpush3.msra.mxu0 %v26787_v60 }
 0xf02   : > { %20894 = vmatpush3.msra.mxu1 %v12529_v31  ;;  %20872 = vmatprep.subr.mxu0 %v26800_v32  ;;  %29321 = vst [vmem:[#allocation122_spill] sm:$0xff] %v26819_v15  ;;  %v12577_v31 = vsub.f32 %v26812_v36, %v26819_v15 }
 0xf03   : > { %20895 = vmatprep.subr.mxu1 %v12536_v33  ;;  %20873 = vmatpush3.msra.mxu0 %v26800_v32 }
 0xf04   : > { %20896 = vmatpush3.msra.mxu1 %v12536_v33  ;;  %20912 = vmatprep.subr.mxu0 %v26635_v52  ;;  %v12578_v5 = vand.u32 4294901760, %v12577_v31 }
 0xf05   : > { %20897 = vmatprep.subr.mxu1 %v12543_v21 }
 0xf06   : > { %20898 = vmatpush3.msra.mxu1 %v12543_v21 }
 0xf07   : > { %20899 = vmatprep.subr.mxu1 %v12550_v39 }
 0xf08   : > { %20900 = vmatpush3.msra.mxu1 %v12550_v39 }
 0xf09   : > { %20901 = vmatprep.subr.mxu1 %v12557_v6 }
 0xf0a   : > { %20902 = vmatpush3.msra.mxu1 %v12557_v6 }
 0xf0b   : > { %20903 = vmatprep.subr.mxu1 %v12564_v23 }
 0xf0c   : > { %20904 = vmatpush3.msra.mxu1 %v12564_v23 }
 0xf0d   : > { %20905 = vmatprep.subr.mxu1 %v12571_v54 }
 0xf0e   : > { %20906 = vmatpush3.msra.mxu1 %v12571_v54 }
 0xf0f   : > { %20907 = vmatprep.subr.mxu1 %v12578_v5 }
 0xf10   : > { %20908 = vmatpush3.msra.mxu1 %v12578_v5 }
 0xf11   : > { %20947 = vmatprep.subr.mxu1 %v26632_v53 }
 0xf32   : > { %v20596_v4 = vpop.f32.mrf.mxu0 }
 0xf34   : > { %v11206_v33 = vpop.f32.mrf.mxu0 }
 0xf36   : > { %v20610_v13 = vpop.f32.mrf.mxu0 }
 0xf38   : > { %v11379_v21 = vpop.f32.mrf.mxu0 }
 0xf3b   : > { %v20603_v2 = vpop.f32.mrf.mxu1 }
 0xf3c   : > { %v11304_v26 = vadd.f32 %v20603_v2, %v20596_v4  ;;  %v20624_v59 = vpop.f32.mrf.mxu0 }
 0xf3d   : > { %v11297_v12 = vpop.f32.mrf.mxu1 }
 0xf3e   : > { %v11298_v39 = vadd.f32 %v11297_v12, %v11206_v33  ;;  %v11387_v25 = vadd.f32 %v20610_v13, %v11304_v26  ;;  %v11546_v54 = vpop.f32.mrf.mxu0 }
 0xf40   : > { %v11380_v6 = vadd.f32 %v11379_v21, %v11298_v39  ;;  %v16720_v21 = vld [vmem:[%s29322_s1] ss:$0 sm:$0xff]  ;;  %s16112_s1 = sshll.u32 %s27519_s5, 4  ;;  %s28415_s1 = int_to_ptr.vmem [resolvable:$true] %s16112_s1 }
 0xf41   : > { %v20617_v23 = vpop.f32.mrf.mxu1 }
 0xf42   : > { %v11470_v41 = vadd.f32 %v20617_v23, %v11387_v25 }
 0xf43   : > { %v11461_v31 = vpop.f32.mrf.mxu1 }
 0xf44   : > { %v11462_v15 = vadd.f32 %v11461_v31, %v11380_v6  ;;  %v11553_v42 = vadd.f32 %v20624_v59, %v11470_v41 }
 0xf46   : > { %v11547_v5 = vadd.f32 %v11546_v54, %v11462_v15  ;;  %v20631_v16 = vpop.f32.mrf.mxu1 }
 0xf47   : > { %v11632_v8 = vadd.f32 %v20631_v16, %v11553_v42 }
 0xf48   : > { %v11625_v10 = vpop.f32.mrf.mxu1 }
 0xf49   : > { %16066 = vst [vmem:[%s26827_s20 + $0x8] sm:$0xff] %v11632_v8  ;;  %v11626_v4 = vadd.f32 %v11625_v10, %v11547_v5 }
 0xf4b   : > { %16065 = vst [vmem:[%s26827_s20] sm:$0xff] %v11626_v4 }
 0xf5f   : > { %v20666_v33 = vpop.f32.mrf.mxu0 }
 0xf60   : > { %v11756_v39 = vadd.f32 %v20666_v33, %v16720_v21 }
 0xf61   : > { %v11745_v13 = vpop.f32.mrf.mxu0 }
 0xf62   : > { %v11746_v15 = vadd.f32 %v16720_v21, %v11745_v13 }
 0xf68   : > { %v20701_v2 = vpop.f32.mrf.mxu1 }
 0xf69   : > { %v11913_v6 = vadd.f32 %v20701_v2, %v11756_v39 }
 0xf6a   : > { %v11906_v12 = vpop.f32.mrf.mxu1 }
 0xf6b   : > { %v11907_v42 = vadd.f32 %v11906_v12, %v11746_v15  ;;  %v13059_v15 = vld [vmem:[#allocation16 + $0x30] sm:$0xff] }
 0xf81   : > { %v20736_v26 = vpop.f32.mrf.mxu0 }
 0xf82   : > { %v12024_v23 = vadd.f32 %v20736_v26, %v11913_v6 }
 0xf83   : > { %v12016_v25 = vpop.f32.mrf.mxu0 }
 0xf84   : > { %v12017_v31 = vadd.f32 %v12016_v25, %v11907_v42 }
 0xf8a   : > { %v20771_v59 = vpop.f32.mrf.mxu1 }
 0xf8b   : > { %v12121_v54 = vadd.f32 %v20771_v59, %v12024_v23 }
 0xf8c   : > { %v12112_v41 = vpop.f32.mrf.mxu1 }
 0xf8d   : > { %v12113_v10 = vadd.f32 %v12112_v41, %v12017_v31  ;;  %v13058_v41 = vld [vmem:[#allocation16 + $0x28] sm:$0xff] }
 0xfa3   : > { %v20806_v16 = vpop.f32.mrf.mxu0 }
 0xfa4   : > { %v12246_v5 = vadd.f32 %v20806_v16, %v12121_v54  ;;  %v27039_v54 = vand.u32 4294901760, %v13059_v15 }
 0xfa5   : > { %v12239_v8 = vpop.f32.mrf.mxu0 }
 0xfa6   : > { %v12240_v0 = vadd.f32 %v12239_v8, %v12113_v10 }
 0xfab   : > { %v20841_v4 = vpop.f32.mrf.mxu1 }
 0xfac   : > { %v12339_v56 = vadd.f32 %v20841_v4, %v12246_v5  ;;  %v13057_v5 = vld [vmem:[#allocation16 + $0x20] sm:$0xff]  ;;  %v29331_v4 = vld [vmem:[#allocation87_spill] sm:$0xff] }
 0xfad   : > { %v12332_v51 = vpop.f32.mrf.mxu1 }
 0xfae   : > { %v12343_v44 = vmax.f32 %v12339_v56, 0.0  ;;  %v12333_v11 = vadd.f32 %v12332_v51, %v12240_v0 }
 0xfb0   : > { %v26832_v33 = vand.u32 4294901760, %v12343_v44  ;;  %v12342_v1 = vmax.f32 %v12333_v11, 0.0 }
 0xfb2   : > { %v26835_v13 = vsub.f32 %v12343_v44, %v26832_v33  ;;  %v26837_v2 = vand.u32 4294901760, %v12342_v1 }
 0xfb4   : > { %v12460_v21 = vand.u32 4294901760, %v26835_v13  ;;  %v12449_v26 = vsub.f32 %v12342_v1, %v26837_v2  ;;  %20909 = vmatprep.mubr.f32.mxu1 %v26837_v2 }
 0xfb5   : > { %20910 = vmatmul.mubr.f32.vlgmr.msra.gmra.mxu1 %v26832_v33 }
 0xfb6   : > { %20948 = vmatpush3.msra.mxu1 %v26632_v53  ;;  %v12450_v56 = vand.u32 4294901760, %v12449_v26  ;;  %v12461_v11 = vsub.f32 %v26835_v13, %v12460_v21 }
 0xfb7   : > { %20949 = vmatprep.subr.mxu1 %v26637_v35 }
 0xfb8   : > { %20950 = vmatpush3.msra.mxu1 %v26637_v35  ;;  %20979 = vmatprep.mubr.f32.mxu1 %v12450_v56  ;;  %v12451_v44 = vsub.f32 %v12449_v26, %v12450_v56  ;;  %v12462_v51 = vand.u32 4294901760, %v12461_v11  ;;  %v13056_v11 = vld [vmem:[#allocation16 + $0x18] sm:$0xff] }
 0xfb9   : > { %20951 = vmatprep.subr.mxu1 %v26647_v47 }
 0xfba   : > { %20952 = vmatpush3.msra.mxu1 %v26647_v47  ;;  %v12452_v1 = vand.u32 4294901760, %v12451_v44  ;;  %v29333_v44 = vld [vmem:[#allocation147_spill] sm:$0xff] }
 0xfbb   : > { %20953 = vmatprep.subr.mxu1 %v26649_v63 }
 0xfbc   : > { %20954 = vmatpush3.msra.mxu1 %v26649_v63  ;;  %20874 = vmatprep.mubr.f32.mxu0 %v12452_v1 }
 0xfbd   : > { %20955 = vmatprep.subr.mxu1 %v26652_v61  ;;  %20875 = vmatmul.mubr.f32.vlgmr.msra.gmra.mxu0 %v12462_v51  ;;  %v27062_v51 = vsub.f32 %v13059_v15, %v27039_v54 }
 0xfbe   : > { %20913 = vmatpush3.msra.mxu0 %v26635_v52  ;;  %20956 = vmatpush3.msra.mxu1 %v26652_v61 }
 0xfbf   : > { %20914 = vmatprep.subr.mxu0 %v26645_v3  ;;  %20944 = vmatprep.mubr.f32.mxu0 %v12449_v26 }
 0xfc0   : > { %20957 = vmatprep.subr.mxu1 %v26654_v9  ;;  %20915 = vmatpush3.msra.mxu0 %v26645_v3 }
 0xfc1   : > { %20958 = vmatpush3.msra.mxu1 %v26654_v9  ;;  %20916 = vmatprep.subr.mxu0 %v26667_v58 }
 0xfc2   : > { %20959 = vmatprep.subr.mxu1 %v26657_v19  ;;  %20917 = vmatpush3.msra.mxu0 %v26667_v58 }
 0xfc3   : > { %20960 = vmatpush3.msra.mxu1 %v26657_v19  ;;  %20918 = vmatprep.subr.mxu0 %v26670_v17 }
 0xfc4   : > { %20961 = vmatprep.subr.mxu1 %v26659_v43  ;;  %20919 = vmatpush3.msra.mxu0 %v26670_v17 }
 0xfc5   : > { %20962 = vmatpush3.msra.mxu1 %v26659_v43  ;;  %20920 = vmatprep.subr.mxu0 %v26674_v37 }
 0xfc6   : > { %20963 = vmatprep.subr.mxu1 %v26725_v14  ;;  %20921 = vmatpush3.msra.mxu0 %v26674_v37  ;;  %v29325_v37 = vld [vmem:[#allocation129_spill] sm:$0xff] }
 0xfc7   : > { %20964 = vmatpush3.msra.mxu1 %v26725_v14  ;;  %20922 = vmatprep.subr.mxu0 %v26677_v18 }
 0xfc8   : > { %20965 = vmatprep.subr.mxu1 %v26732_v22  ;;  %20923 = vmatpush3.msra.mxu0 %v26677_v18 }
 0xfc9   : > { %20966 = vmatpush3.msra.mxu1 %v26732_v22  ;;  %20924 = vmatprep.subr.mxu0 %v26680_v55 }
 0xfca   : > { %20967 = vmatprep.subr.mxu1 %v26742_v29  ;;  %20925 = vmatpush3.msra.mxu0 %v26680_v55 }
 0xfcb   : > { %20968 = vmatpush3.msra.mxu1 %v26742_v29  ;;  %20926 = vmatprep.subr.mxu0 %v26684_v28 }
 0xfcc   : > { %20969 = vmatprep.subr.mxu1 %v26754_v57  ;;  %20927 = vmatpush3.msra.mxu0 %v26684_v28  ;;  %v13063_v28 = vld [vmem:[#allocation16 + $0x50] sm:$0xff] }
 0xfcd   : > { %20970 = vmatpush3.msra.mxu1 %v26754_v57  ;;  %20928 = vmatprep.subr.mxu0 %v26730_v24 }
 0xfce   : > { %20971 = vmatprep.subr.mxu1 %v26767_v34  ;;  %20929 = vmatpush3.msra.mxu0 %v26730_v24 }
 0xfcf   : > { %20972 = vmatpush3.msra.mxu1 %v26767_v34  ;;  %20930 = vmatprep.subr.mxu0 %v26740_v46 }
 0xfd0   : > { %20973 = vmatprep.subr.mxu1 %v26775_v50  ;;  %20931 = vmatpush3.msra.mxu0 %v26740_v46  ;;  %v13061_v46 = vld [vmem:[#allocation16 + $0x40] sm:$0xff] }
 0xfd1   : > { %20974 = vmatpush3.msra.mxu1 %v26775_v50  ;;  %20932 = vmatprep.subr.mxu0 %v26752_v30 }
 0xfd2   : > { %20975 = vmatprep.subr.mxu1 %v26787_v60  ;;  %20933 = vmatpush3.msra.mxu0 %v26752_v30 }
 0xfd3   : > { %20976 = vmatpush3.msra.mxu1 %v26787_v60  ;;  %20934 = vmatprep.subr.mxu0 %v26764_v38 }
 0xfd4   : > { %20977 = vmatprep.subr.mxu1 %v26800_v32  ;;  %20935 = vmatpush3.msra.mxu0 %v26764_v38  ;;  %v29328_v38 = vld [vmem:[#allocation138_spill] sm:$0xff] }
 0xfd5   : > { %20978 = vmatpush3.msra.mxu1 %v26800_v32  ;;  %20936 = vmatprep.subr.mxu0 %v26779_v48 }
 0xfd6   : > { %20980 = vmatmul.mubr.f32.vlgmr.msra.gmra.mxu1 %v12460_v21  ;;  %21017 = vmatprep.subr.mxu1 %v26632_v53  ;;  %v27052_v21 = vand.u32 4294901760, %v13058_v41 }
 0xfd7   : > { %20937 = vmatpush3.msra.mxu0 %v26779_v48  ;;  %21018 = vmatpush3.msra.mxu1 %v26632_v53  ;;  %v13068_v53 = vld [vmem:[#allocation16 + $0x78] sm:$0xff] }
 0xfd8   : > { %21049 = vmatprep.mubr.f32.mxu1 %v26837_v2  ;;  %20938 = vmatprep.subr.mxu0 %v26785_v49  ;;  %v26932_v52 = vand.u32 4294901760, %v13068_v53 }
 0xfd9   : > { %21019 = vmatprep.subr.mxu1 %v26637_v35  ;;  %20939 = vmatpush3.msra.mxu0 %v26785_v49  ;;  %v27007_v49 = vand.u32 4294901760, %v13061_v46 }
 0xfda   : > { %21020 = vmatpush3.msra.mxu1 %v26637_v35  ;;  %20940 = vmatprep.subr.mxu0 %v26798_v45  ;;  %v13067_v35 = vld [vmem:[#allocation16 + $0x70] sm:$0xff] }
 0xfdb   : > { %21021 = vmatprep.subr.mxu1 %v26647_v47  ;;  %20941 = vmatpush3.msra.mxu0 %v26798_v45  ;;  %v26940_v3 = vand.u32 4294901760, %v13067_v35  ;;  %v13060_v45 = vld [vmem:[#allocation16 + $0x38] sm:$0xff]  ;;  %v27033_v23 = vsub.f32 %v13061_v46, %v27007_v49 }
 0xfdc   : > { %21022 = vmatpush3.msra.mxu1 %v26647_v47  ;;  %20942 = vmatprep.subr.mxu0 %v26812_v36  ;;  %v26945_v47 = vsub.f32 %v13068_v53, %v26932_v52  ;;  %v27026_v6 = vand.u32 4294901760, %v13060_v45  ;;  %v27064_v53 = vand.u32 4294901760, %v13057_v5 }
 0xfdd   : > { %21023 = vmatprep.subr.mxu1 %v26649_v63  ;;  %20943 = vmatpush3.msra.mxu0 %v26812_v36  ;;  %v27056_v56 = vand.u32 4294901760, %v27033_v23 }
 0xfde   : > { %21024 = vmatpush3.msra.mxu1 %v26649_v63  ;;  %20945 = vmatmul.mubr.f32.vlgmr.msra.gmra.mxu0 %v26835_v13  ;;  %v13065_v63 = vld [vmem:[#allocation16 + $0x60] sm:$0xff]  ;;  %v26963_v17 = vand.u32 4294901760, %v26945_v47  ;;  %v27086_v46 = vsub.f32 %v13057_v5, %v27064_v53 }
 0xfdf   : > { %20982 = vmatprep.subr.mxu0 %v26642_v27  ;;  %21025 = vmatprep.subr.mxu1 %v26652_v61  ;;  %v26958_v58 = vand.u32 4294901760, %v13065_v63  ;;  %v29332_v13 = vld [vmem:[#allocation146_spill] sm:$0xff] }
 0xfe0   : > { %20983 = vmatpush3.msra.mxu0 %v26642_v27  ;;  %21014 = vmatprep.mubr.f32.mxu0 %v26837_v2  ;;  %v13066_v27 = vld [vmem:[#allocation16 + $0x68] sm:$0xff]  ;;  %v13201_v24 = vsub.f32 %v26945_v47, %v26963_v17  ;;  %v27050_v2 = vsub.f32 %v13060_v45, %v27026_v6 }
 0xfe1   : > { %21026 = vmatpush3.msra.mxu1 %v26652_v61  ;;  %20984 = vmatprep.subr.mxu0 %v26664_v62  ;;  %v29323_v61 = vld [vmem:[#allocation123_spill] sm:$0xff] }
 0xfe2   : > { %21027 = vmatprep.subr.mxu1 %v26654_v9  ;;  %20985 = vmatpush3.msra.mxu0 %v26664_v62  ;;  %v26956_v62 = vsub.f32 %v13067_v35, %v26940_v3  ;;  %v13202_v36 = vand.u32 4294901760, %v13201_v24  ;;  %v27083_v24 = vand.u32 4294901760, %v27062_v51  ;;  %v29335_v45 = vld [vmem:[#allocation95_spill] sm:$0xff] }
 0xfe3   : > { %21028 = vmatpush3.msra.mxu1 %v26654_v9  ;;  %20986 = vmatprep.subr.mxu0 %v26689_v40  ;;  %v26949_v9 = vand.u32 4294901760, %v13066_v27 }
 0xfe4   : > { %21029 = vmatprep.subr.mxu1 %v26657_v19  ;;  %20987 = vmatpush3.msra.mxu0 %v26689_v40  ;;  %v13062_v40 = vld [vmem:[#allocation16 + $0x48] sm:$0xff] }
 0xfe5   : > { %21030 = vmatpush3.msra.mxu1 %v26657_v19  ;;  %20988 = vmatprep.subr.mxu0 %v26692_v7  ;;  %v13064_v19 = vld [vmem:[#allocation16 + $0x58] sm:$0xff]  ;;  %v26968_v18 = vsub.f32 %v13066_v27, %v26949_v9  ;;  %v26996_v0 = vand.u32 4294901760, %v13062_v40 }
 0xfe6   : > { %21031 = vmatprep.subr.mxu1 %v26659_v43  ;;  %20989 = vmatpush3.msra.mxu0 %v26692_v7  ;;  %v26970_v55 = vand.u32 4294901760, %v13064_v19  ;;  %v29326_v7 = vld [vmem:[#allocation134_spill] sm:$0xff] }
 0xfe7   : > { %21032 = vmatpush3.msra.mxu1 %v26659_v43  ;;  %20990 = vmatprep.subr.mxu0 %v26696_v20  ;;  %v29324_v43 = vld [vmem:[#allocation126_spill] sm:$0xff]  ;;  %v26991_v30 = vand.u32 4294901760, %v26968_v18  ;;  %v27022_v59 = vsub.f32 %v13062_v40, %v26996_v0  ;;  %v13054_v40 = vld [vmem:[#allocation16 + $0x8] sm:$0xff] }
 0xfe8   : > { %21033 = vmatprep.subr.mxu1 %v26725_v14  ;;  %20991 = vmatpush3.msra.mxu0 %v26696_v20  ;;  %v26977_v20 = vand.u32 4294901760, %v26956_v62 }
 0xfe9   : > { %21034 = vmatpush3.msra.mxu1 %v26725_v14  ;;  %20992 = vmatprep.subr.mxu0 %v29323_v61  ;;  %v26980_v14 = vsub.f32 %v13065_v63, %v26958_v58  ;;  %v13215_v39 = vsub.f32 %v26968_v18, %v26991_v30  ;;  %v27045_v10 = vand.u32 4294901760, %v27022_v59  ;;  %v13055_v63 = vld [vmem:[#allocation16 + $0x10] sm:$0xff] }
 0xfea   : > { %21035 = vmatprep.subr.mxu1 %v26732_v22  ;;  %20993 = vmatpush3.msra.mxu0 %v29323_v61  ;;  %v29334_v61 = vld [vmem:[#allocation122_spill] sm:$0xff] }
 0xfeb   : > { %21036 = vmatpush3.msra.mxu1 %v26732_v22  ;;  %20994 = vmatprep.subr.mxu0 %v29324_v43  ;;  %v26986_v22 = vand.u32 4294901760, %v13063_v28  ;;  %v27005_v48 = vand.u32 4294901760, %v26980_v14  ;;  %v13243_v27 = vsub.f32 %v27022_v59, %v27045_v10 }
 0xfec   : > { %21037 = vmatprep.subr.mxu1 %v26742_v29  ;;  %20995 = vmatpush3.msra.mxu0 %v29324_v43  ;;  %v27074_v43 = vsub.f32 %v13058_v41, %v27052_v21 }
 0xfed   : > { %21038 = vmatpush3.msra.mxu1 %v26742_v29  ;;  %20996 = vmatprep.subr.mxu0 %v29325_v37  ;;  %v29327_v29 = vld [vmem:[#allocation135_spill] sm:$0xff]  ;;  %v27012_v12 = vsub.f32 %v13063_v28, %v26986_v22  ;;  %v13222_v42 = vsub.f32 %v26980_v14, %v27005_v48  ;;  %v13250_v28 = vsub.f32 %v27033_v23, %v27056_v56 }
 0xfee   : > { %21039 = vmatprep.subr.mxu1 %v26754_v57  ;;  %20997 = vmatpush3.msra.mxu0 %v29325_v37  ;;  %v27076_v37 = vand.u32 4294901760, %v13056_v11 }
 0xfef   : > { %21040 = vmatpush3.msra.mxu1 %v26754_v57  ;;  %20998 = vmatprep.subr.mxu0 %v29326_v7  ;;  %v26994_v57 = vsub.f32 %v13064_v19, %v26970_v55  ;;  %v27037_v31 = vand.u32 4294901760, %v27012_v12  ;;  %v13223_v26 = vand.u32 4294901760, %v13222_v42  ;;  %v27071_v19 = vand.u32 4294901760, %v27050_v2 }
 0xff0   : > { %21041 = vmatprep.subr.mxu1 %v26767_v34  ;;  %20999 = vmatpush3.msra.mxu0 %v29326_v7  ;;  %v13251_v15 = vand.u32 4294901760, %v13250_v28 }
 0xff1   : > { %21042 = vmatpush3.msra.mxu1 %v26767_v34  ;;  %21000 = vmatprep.subr.mxu0 %v29327_v29  ;;  %v13208_v34 = vsub.f32 %v26956_v62, %v26977_v20  ;;  %v27019_v25 = vand.u32 4294901760, %v26994_v57  ;;  %v13236_v1 = vsub.f32 %v27012_v12, %v27037_v31 }
 0xff2   : > { %21043 = vmatprep.subr.mxu1 %v26775_v50  ;;  %21001 = vmatpush3.msra.mxu0 %v29327_v29  ;;  %v27088_v29 = vand.u32 4294901760, %v13055_v63 }
 0xff3   : > { %21044 = vmatpush3.msra.mxu1 %v26775_v50  ;;  %21002 = vmatprep.subr.mxu0 %v29328_v38  ;;  %v29329_v50 = vld [vmem:[#allocation141_spill] sm:$0xff]  ;;  %v13209_v16 = vand.u32 4294901760, %v13208_v34  ;;  %v13229_v8 = vsub.f32 %v26994_v57, %v27019_v25  ;;  %v13237_v7 = vand.u32 4294901760, %v13236_v1  ;;  %v13053_v34 = vld [vmem:[#allocation16] sm:$0xff] }
 0xff4   : > { %21045 = vmatprep.subr.mxu1 %v26787_v60  ;;  %21003 = vmatpush3.msra.mxu0 %v29328_v38  ;;  %v13244_v38 = vand.u32 4294901760, %v13243_v27  ;;  %v27111_v42 = vsub.f32 %v13055_v63, %v27088_v29  ;;  %v27113_v41 = vand.u32 4294901760, %v13053_v34 }
 0xff5   : > { %21046 = vmatpush3.msra.mxu1 %v26787_v60  ;;  %21004 = vmatprep.subr.mxu0 %v29329_v50  ;;  %v29330_v60 = vld [vmem:[#allocation144_spill] sm:$0xff]  ;;  %v13230_v35 = vand.u32 4294901760, %v13229_v8 }
 0xff6   : > { %21047 = vmatprep.subr.mxu1 %v26800_v32  ;;  %21005 = vmatpush3.msra.mxu0 %v29329_v50  ;;  %v27099_v50 = vsub.f32 %v13056_v11, %v27076_v37  ;;  %v27133_v1 = vsub.f32 %v13053_v34, %v27113_v41 }
 0xff7   : > { %21048 = vmatpush3.msra.mxu1 %v26800_v32  ;;  %21006 = vmatprep.subr.mxu0 %v29330_v60  ;;  %v13216_v32 = vand.u32 4294901760, %v13215_v39  ;;  %v27101_v39 = vand.u32 4294901760, %v13054_v40 }
 0xff8   : > { %21050 = vmatmul.mubr.f32.vlgmr.msra.gmra.mxu1 %v26832_v33  ;;  %21090 = vmatprep.subr.mxu1 %v13202_v36  ;;  %v27120_v5 = vand.u32 4294901760, %v27099_v50 }
 0xff9   : > { %21007 = vmatpush3.msra.mxu0 %v29330_v60  ;;  %21091 = vmatpush3.msra.mxu1 %v13202_v36  ;;  %v27096_v36 = vand.u32 4294901760, %v27074_v43  ;;  %v13264_v60 = vsub.f32 %v27062_v51, %v27083_v24 }
 0xffa   : > { %21122 = vmatprep.mubr.f32.mxu1 %v29331_v4  ;;  %21008 = vmatprep.subr.mxu0 %v29332_v13  ;;  %v13285_v27 = vsub.f32 %v27099_v50, %v27120_v5 }
 0xffb   : > { %21092 = vmatprep.subr.mxu1 %v13209_v16  ;;  %21009 = vmatpush3.msra.mxu0 %v29332_v13  ;;  %v13271_v8 = vsub.f32 %v27074_v43, %v27096_v36  ;;  %v27123_v13 = vsub.f32 %v13054_v40, %v27101_v39  ;;  %v27147_v40 = vand.u32 4294901760, %v27133_v1 }
 0xffc   : > { %21093 = vmatpush3.msra.mxu1 %v13209_v16  ;;  %21010 = vmatprep.subr.mxu0 %v29333_v44  ;;  %v27108_v16 = vand.u32 4294901760, %v27086_v46 }
 0xffd   : > { %21094 = vmatprep.subr.mxu1 %v13216_v32  ;;  %21011 = vmatpush3.msra.mxu0 %v29333_v44  ;;  %v27130_v44 = vand.u32 4294901760, %v27111_v42  ;;  %v27140_v63 = vand.u32 4294901760, %v27123_v13 }
 0xffe   : > { %21095 = vmatpush3.msra.mxu1 %v13216_v32  ;;  %21012 = vmatprep.subr.mxu0 %v29334_v61  ;;  %v13278_v11 = vsub.f32 %v27086_v46, %v27108_v16 }
 0xfff   : > { %21096 = vmatprep.subr.mxu1 %v13223_v26  ;;  %21013 = vmatpush3.msra.mxu0 %v29334_v61  ;;  %v13292_v28 = vsub.f32 %v27111_v42, %v27130_v44 }
0x1000   : > { %21097 = vmatpush3.msra.mxu1 %v13223_v26  ;;  %21015 = vmatmul.mubr.f32.vlgmr.msra.gmra.mxu0 %v26832_v33  ;;  %v13257_v33 = vsub.f32 %v27050_v2, %v27071_v19  ;;  %v13265_v26 = vand.u32 4294901760, %v13264_v60  ;;  %v13279_v61 = vand.u32 4294901760, %v13278_v11  ;;  %v29336_v60 = vld [vmem:[#allocation100_spill] sm:$0xff]  ;;  %v29340_v11 = vld [vmem:[#allocation93_spill] sm:$0xff] }
0x1001   : > { %21052 = vmatprep.subr.mxu0 %v26932_v52  ;;  %21098 = vmatprep.subr.mxu1 %v13230_v35  ;;  %v13293_v34 = vand.u32 4294901760, %v13292_v28  ;;  %v13857_v28 = vld [vmem:[#allocation17 + $0x38] sm:$0xff] }
0x1002   : > { %21053 = vmatpush3.msra.mxu0 %v26932_v52  ;;  %21084 = vmatprep.mubr.f32.mxu0 %v29335_v45  ;;  %v13258_v32 = vand.u32 4294901760, %v13257_v33  ;;  %v13306_v45 = vsub.f32 %v27133_v1, %v27147_v40 }
0x1003   : > { %21099 = vmatpush3.msra.mxu1 %v13230_v35  ;;  %21054 = vmatprep.subr.mxu0 %v26940_v3  ;;  %v13272_v35 = vand.u32 4294901760, %v13271_v8  ;;  %v29338_v8 = vld [vmem:[#allocation97_spill] sm:$0xff] }
0x1004   : > { %21100 = vmatprep.subr.mxu1 %v13237_v7  ;;  %21055 = vmatpush3.msra.mxu0 %v26940_v3 }
0x1005   : > { %21101 = vmatpush3.msra.mxu1 %v13237_v7  ;;  %21056 = vmatprep.subr.mxu0 %v26949_v9  ;;  %v13286_v7 = vand.u32 4294901760, %v13285_v27  ;;  %v29342_v27 = vld [vmem:[#allocation90_spill] sm:$0xff] }
0x1006   : > { %21102 = vmatprep.subr.mxu1 %v13244_v38  ;;  %21057 = vmatpush3.msra.mxu0 %v26949_v9 }
0x1007   : > { %21103 = vmatpush3.msra.mxu1 %v13244_v38  ;;  %21058 = vmatprep.subr.mxu0 %v26958_v58  ;;  %v13299_v38 = vsub.f32 %v27123_v13, %v27140_v63 }
0x1008   : > { %21104 = vmatprep.subr.mxu1 %v13251_v15  ;;  %21059 = vmatpush3.msra.mxu0 %v26958_v58 }
0x1009   : > { %21105 = vmatpush3.msra.mxu1 %v13251_v15  ;;  %21060 = vmatprep.subr.mxu0 %v26970_v55  ;;  %v13300_v33 = vand.u32 4294901760, %v13299_v38  ;;  %v13307_v15 = vand.u32 4294901760, %v13306_v45  ;;  %v27412_v38 = vand.u32 4294901760, %v13857_v28 }
0x100a   : > { %21106 = vmatprep.subr.mxu1 %v13258_v32  ;;  %21061 = vmatpush3.msra.mxu0 %v26970_v55 }
0x100b   : > { %21107 = vmatpush3.msra.mxu1 %v13258_v32  ;;  %21062 = vmatprep.subr.mxu0 %v26986_v22  ;;  %v29337_v32 = vld [vmem:[#allocation86_spill] sm:$0xff] }
0x100c   : > { %21108 = vmatprep.subr.mxu1 %v13265_v26  ;;  %21063 = vmatpush3.msra.mxu0 %v26986_v22 }
0x100d   : > { %21109 = vmatpush3.msra.mxu1 %v13265_v26  ;;  %21064 = vmatprep.subr.mxu0 %v26996_v0  ;;  %v29339_v26 = vld [vmem:[#allocation94_spill] sm:$0xff] }
0x100e   : > { %21110 = vmatprep.subr.mxu1 %v13272_v35  ;;  %21065 = vmatpush3.msra.mxu0 %v26996_v0 }
0x100f   : > { %21111 = vmatpush3.msra.mxu1 %v13272_v35  ;;  %21066 = vmatprep.subr.mxu0 %v27007_v49  ;;  %v29341_v35 = vld [vmem:[#allocation79_spill] sm:$0xff] }
0x1010   : > { %21112 = vmatprep.subr.mxu1 %v13279_v61  ;;  %21067 = vmatpush3.msra.mxu0 %v27007_v49 }
0x1011   : > { %21113 = vmatpush3.msra.mxu1 %v13279_v61  ;;  %21068 = vmatprep.subr.mxu0 %v27026_v6  ;;  %v29343_v61 = vld [vmem:[#allocation98_spill] sm:$0xff] }
0x1012   : > { %21114 = vmatprep.subr.mxu1 %v13286_v7  ;;  %21069 = vmatpush3.msra.mxu0 %v27026_v6 }
0x1013   : > { %21115 = vmatpush3.msra.mxu1 %v13286_v7  ;;  %21070 = vmatprep.subr.mxu0 %v27039_v54 }
0x1014   : > { %21116 = vmatprep.subr.mxu1 %v13293_v34  ;;  %21071 = vmatpush3.msra.mxu0 %v27039_v54 }
0x1015   : > { %21117 = vmatpush3.msra.mxu1 %v13293_v34  ;;  %21072 = vmatprep.subr.mxu0 %v27052_v21  ;;  %v13856_v34 = vld [vmem:[#allocation17 + $0x30] sm:$0xff] }
0x1016   : > { %21118 = vmatprep.subr.mxu1 %v13300_v33  ;;  %21073 = vmatpush3.msra.mxu0 %v27052_v21 }
0x1017   : > { %21119 = vmatpush3.msra.mxu1 %v13300_v33  ;;  %21074 = vmatprep.subr.mxu0 %v27064_v53 }
0x1018   : > { %21120 = vmatprep.subr.mxu1 %v13307_v15  ;;  %21075 = vmatpush3.msra.mxu0 %v27064_v53 }
0x1019   : > { %21121 = vmatpush3.msra.mxu1 %v13307_v15  ;;  %21076 = vmatprep.subr.mxu0 %v27076_v37  ;;  %v27420_v15 = vsub.f32 %v13857_v28, %v27412_v38 }
0x101a   : > { %21123 = vmatmul.mubr.f32.vlgmr.msra.gmra.mxu1 %v29336_v60  ;;  %21166 = vmatprep.subr.mxu1 %v26932_v52 }
0x101b   : > { %21077 = vmatpush3.msra.mxu0 %v27076_v37  ;;  %21125 = vmatprep.mubr.f32.mxu1 %v29337_v32 }
0x101c   : > { %21167 = vmatpush3.msra.mxu1 %v26932_v52  ;;  %21078 = vmatprep.subr.mxu0 %v27088_v29 }
0x101d   : > { %21168 = vmatprep.subr.mxu1 %v26940_v3  ;;  %21079 = vmatpush3.msra.mxu0 %v27088_v29 }
0x101e   : > { %21169 = vmatpush3.msra.mxu1 %v26940_v3  ;;  %21080 = vmatprep.subr.mxu0 %v27101_v39 }
0x101f   : > { %21126 = vmatmul.mubr.f32.gmra.mxu1 %v29338_v8  ;;  %21170 = vmatprep.subr.mxu1 %v26949_v9 }
0x1020   : > { %21081 = vmatpush3.msra.mxu0 %v27101_v39  ;;  %21171 = vmatpush3.msra.mxu1 %v26949_v9 }
0x1021   : > { %21198 = vmatprep.mubr.f32.mxu1 %v29339_v26  ;;  %21082 = vmatprep.subr.mxu0 %v27113_v41  ;;  %v27429_v26 = vand.u32 4294901760, %v27420_v15 }
0x1022   : > { %21172 = vmatprep.subr.mxu1 %v26958_v58  ;;  %21083 = vmatpush3.msra.mxu0 %v27113_v41 }
0x1023   : > { %21173 = vmatpush3.msra.mxu1 %v26958_v58  ;;  %21085 = vmatmul.mubr.f32.vlgmr.msra.gmra.mxu0 %v29340_v11  ;;  %29358 = vst [vmem:[#allocation109_spill] sm:$0xff] %v27429_v26 }
0x1024   : > { %21128 = vmatprep.subr.mxu0 %v26945_v47  ;;  %21174 = vmatprep.subr.mxu1 %v26970_v55 }
0x1025   : > { %21087 = vmatprep.mubr.f32.mxu0 %v29341_v35  ;;  %21129 = vmatpush3.msra.mxu0 %v26945_v47  ;;  %v29344_v47 = vld [vmem:[#allocation89_spill] sm:$0xff] }
0x1026   : > { %21175 = vmatpush3.msra.mxu1 %v26970_v55  ;;  %21130 = vmatprep.subr.mxu0 %v26956_v62 }
0x1027   : > { %21176 = vmatprep.subr.mxu1 %v26986_v22  ;;  %21131 = vmatpush3.msra.mxu0 %v26956_v62  ;;  %v29345_v62 = vld [vmem:[#allocation92_spill] sm:$0xff] }
0x1028   : > { %21177 = vmatpush3.msra.mxu1 %v26986_v22  ;;  %21088 = vmatmul.mubr.f32.gmra.mxu0 %v29342_v27  ;;  %v13854_v27 = vld [vmem:[#allocation17 + $0x20] sm:$0xff] }
0x1029   : > { %21132 = vmatprep.subr.mxu0 %v26968_v18  ;;  %21178 = vmatprep.subr.mxu1 %v26996_v0 }
0x102a   : > { %21133 = vmatpush3.msra.mxu0 %v26968_v18  ;;  %21160 = vmatprep.mubr.f32.mxu0 %v29343_v61  ;;  %v29346_v18 = vld [vmem:[#allocation91_spill] sm:$0xff] }
0x102b   : > { %21179 = vmatpush3.msra.mxu1 %v26996_v0  ;;  %21134 = vmatprep.subr.mxu0 %v26980_v14 }
0x102c   : > { %21180 = vmatprep.subr.mxu1 %v27007_v49  ;;  %21135 = vmatpush3.msra.mxu0 %v26980_v14 }
0x102d   : > { %21181 = vmatpush3.msra.mxu1 %v27007_v49  ;;  %21136 = vmatprep.subr.mxu0 %v26994_v57 }
0x102e   : > { %21182 = vmatprep.subr.mxu1 %v27026_v6  ;;  %21137 = vmatpush3.msra.mxu0 %v26994_v57 }
0x102f   : > { %21183 = vmatpush3.msra.mxu1 %v27026_v6  ;;  %21138 = vmatprep.subr.mxu0 %v27012_v12 }
0x1030   : > { %21184 = vmatprep.subr.mxu1 %v27039_v54  ;;  %21139 = vmatpush3.msra.mxu0 %v27012_v12  ;;  %v13860_v12 = vld [vmem:[#allocation17 + $0x50] sm:$0xff] }
0x1031   : > { %21185 = vmatpush3.msra.mxu1 %v27039_v54  ;;  %21140 = vmatprep.subr.mxu0 %v27022_v59 }
0x1032   : > { %21186 = vmatprep.subr.mxu1 %v27052_v21  ;;  %21141 = vmatpush3.msra.mxu0 %v27022_v59 }
0x1033   : > { %21187 = vmatpush3.msra.mxu1 %v27052_v21  ;;  %21142 = vmatprep.subr.mxu0 %v27033_v23 }
0x1034   : > { %21188 = vmatprep.subr.mxu1 %v27064_v53  ;;  %21143 = vmatpush3.msra.mxu0 %v27033_v23  ;;  %v13859_v23 = vld [vmem:[#allocation17 + $0x48] sm:$0xff] }
0x1035   : > { %21189 = vmatpush3.msra.mxu1 %v27064_v53  ;;  %21144 = vmatprep.subr.mxu0 %v27050_v2 }
0x1036   : > { %21190 = vmatprep.subr.mxu1 %v27076_v37  ;;  %21145 = vmatpush3.msra.mxu0 %v27050_v2 }
0x1037   : > { %21191 = vmatpush3.msra.mxu1 %v27076_v37  ;;  %21146 = vmatprep.subr.mxu0 %v27062_v51 }
0x1038   : > { %21192 = vmatprep.subr.mxu1 %v27088_v29  ;;  %21147 = vmatpush3.msra.mxu0 %v27062_v51 }
0x1039   : > { %21193 = vmatpush3.msra.mxu1 %v27088_v29  ;;  %21148 = vmatprep.subr.mxu0 %v27074_v43 }
0x103a   : > { %21194 = vmatprep.subr.mxu1 %v27101_v39  ;;  %21149 = vmatpush3.msra.mxu0 %v27074_v43 }
0x103b   : > { %21195 = vmatpush3.msra.mxu1 %v27101_v39  ;;  %21150 = vmatprep.subr.mxu0 %v27086_v46 }
0x103c   : > { %21196 = vmatprep.subr.mxu1 %v27113_v41  ;;  %21151 = vmatpush3.msra.mxu0 %v27086_v46 }
0x103d   : > { %21197 = vmatpush3.msra.mxu1 %v27113_v41  ;;  %21152 = vmatprep.subr.mxu0 %v27099_v50 }
0x103e   : > { %21199 = vmatmul.mubr.f32.vlgmr.msra.gmra.mxu1 %v29344_v47  ;;  %21242 = vmatprep.subr.mxu1 %v26932_v52  ;;  %v14054_v47 = vsub.f32 %v27420_v15, %v27429_v26 }
0x103f   : > { %21153 = vmatpush3.msra.mxu0 %v27099_v50  ;;  %21201 = vmatprep.mubr.f32.mxu1 %v29345_v62 }
0x1040   : > { %21243 = vmatpush3.msra.mxu1 %v26932_v52  ;;  %21154 = vmatprep.subr.mxu0 %v27111_v42  ;;  %v29347_v52 = vld [vmem:[#allocation85_spill] sm:$0xff] }
0x1041   : > { %21244 = vmatprep.subr.mxu1 %v26940_v3  ;;  %21155 = vmatpush3.msra.mxu0 %v27111_v42 }
0x1042   : > { %21245 = vmatpush3.msra.mxu1 %v26940_v3  ;;  %21156 = vmatprep.subr.mxu0 %v27123_v13  ;;  %v29348_v3 = vld [vmem:[#allocation88_spill] sm:$0xff] }
0x1043   : > { %21202 = vmatmul.mubr.f32.gmra.mxu1 %v29346_v18  ;;  %21246 = vmatprep.subr.mxu1 %v26949_v9 }
0x1044   : > { %21157 = vmatpush3.msra.mxu0 %v27123_v13  ;;  %21247 = vmatpush3.msra.mxu1 %v26949_v9  ;;  %v29349_v9 = vld [vmem:[#allocation99_spill] sm:$0xff]  ;;  %v13858_v13 = vld [vmem:[#allocation17 + $0x40] sm:$0xff] }
0x1045   : > { %21274 = vmatprep.mubr.f32.mxu1 %v29331_v4  ;;  %21158 = vmatprep.subr.mxu0 %v27133_v1 }
0x1046   : > { %21248 = vmatprep.subr.mxu1 %v26958_v58  ;;  %21159 = vmatpush3.msra.mxu0 %v27133_v1 }
0x1047   : > { %21249 = vmatpush3.msra.mxu1 %v26958_v58  ;;  %21161 = vmatmul.mubr.f32.vlgmr.msra.gmra.mxu0 %v29347_v52  ;;  %v13865_v58 = vld [vmem:[#allocation17 + $0x78] sm:$0xff]  ;;  %v27446_v52 = vand.u32 4294901760, %v13854_v27 }
0x1048   : > { %21204 = vmatprep.subr.mxu0 %v26963_v17  ;;  %21250 = vmatprep.subr.mxu1 %v26970_v55 }
0x1049   : > { %21163 = vmatprep.mubr.f32.mxu0 %v29348_v3  ;;  %21205 = vmatpush3.msra.mxu0 %v26963_v17  ;;  %v27323_v17 = vand.u32 4294901760, %v13865_v58  ;;  %v13853_v3 = vld [vmem:[#allocation17 + $0x18] sm:$0xff] }
0x104a   : > { %21251 = vmatpush3.msra.mxu1 %v26970_v55  ;;  %21206 = vmatprep.subr.mxu0 %v26977_v20  ;;  %v13864_v55 = vld [vmem:[#allocation17 + $0x70] sm:$0xff] }
0x104b   : > { %21252 = vmatprep.subr.mxu1 %v26986_v22  ;;  %21207 = vmatpush3.msra.mxu0 %v26977_v20  ;;  %v27326_v20 = vsub.f32 %v13865_v58, %v27323_v17  ;;  %v27328_v14 = vand.u32 4294901760, %v13864_v55  ;;  %v27449_v58 = vand.u32 4294901760, %v13853_v3 }
0x104c   : > { %21253 = vmatpush3.msra.mxu1 %v26986_v22  ;;  %21164 = vmatmul.mubr.f32.gmra.mxu0 %v29349_v9  ;;  %v13863_v22 = vld [vmem:[#allocation17 + $0x68] sm:$0xff]  ;;  %v14055_v9 = vand.u32 4294901760, %v14054_v47 }
0x104d   : > { %21208 = vmatprep.subr.mxu0 %v26991_v30  ;;  %21254 = vmatprep.subr.mxu1 %v26996_v0  ;;  %v27336_v57 = vsub.f32 %v13864_v55, %v27328_v14 }
0x104e   : > { %21209 = vmatpush3.msra.mxu0 %v26991_v30  ;;  %21236 = vmatprep.mubr.f32.mxu0 %v29331_v4  ;;  %v27333_v30 = vand.u32 4294901760, %v27326_v20  ;;  %v27357_v4 = vand.u32 4294901760, %v13859_v23 }
0x104f   : > { %21255 = vmatpush3.msra.mxu1 %v26996_v0  ;;  %21210 = vmatprep.subr.mxu0 %v27005_v48  ;;  %v27338_v0 = vand.u32 4294901760, %v13863_v22 }
0x1050   : > { %21256 = vmatprep.subr.mxu1 %v27007_v49  ;;  %21211 = vmatpush3.msra.mxu0 %v27005_v48  ;;  %29350 = vst [vmem:[#allocation125_spill] sm:$0xff] %v27333_v30  ;;  %v13862_v48 = vld [vmem:[#allocation17 + $0x60] sm:$0xff]  ;;  %v27375_v43 = vsub.f32 %v13859_v23, %v27357_v4 }
0x1051   : > { %21257 = vmatpush3.msra.mxu1 %v27007_v49  ;;  %21212 = vmatprep.subr.mxu0 %v27019_v25  ;;  %v13861_v49 = vld [vmem:[#allocation17 + $0x58] sm:$0xff] }
0x1052   : > { %21258 = vmatprep.subr.mxu1 %v27026_v6  ;;  %21213 = vmatpush3.msra.mxu0 %v27019_v25  ;;  %v27341_v25 = vand.u32 4294901760, %v13862_v48  ;;  %v27343_v59 = vand.u32 4294901760, %v13861_v49  ;;  %v27391_v50 = vand.u32 4294901760, %v27375_v43 }
0x1053   : > { %21259 = vmatpush3.msra.mxu1 %v27026_v6  ;;  %21214 = vmatprep.subr.mxu0 %v27037_v31  ;;  %v27345_v6 = vand.u32 4294901760, %v13860_v12 }
0x1054   : > { %21260 = vmatprep.subr.mxu1 %v27039_v54  ;;  %21215 = vmatpush3.msra.mxu0 %v27037_v31  ;;  %v13998_v31 = vsub.f32 %v27326_v20, %v27333_v30  ;;  %v27360_v2 = vsub.f32 %v13862_v48, %v27341_v25  ;;  %29356 = vst [vmem:[#allocation142_spill] sm:$0xff] %v27391_v50 }
0x1055   : > { %21261 = vmatpush3.msra.mxu1 %v27039_v54  ;;  %21216 = vmatprep.subr.mxu0 %v27045_v10  ;;  %v27351_v54 = vand.u32 4294901760, %v27336_v57  ;;  %v14040_v1 = vsub.f32 %v27375_v43, %v27391_v50  ;;  %v27458_v48 = vsub.f32 %v13854_v27, %v27446_v52 }
0x1056   : > { %21262 = vmatprep.subr.mxu1 %v27052_v21  ;;  %21217 = vmatpush3.msra.mxu0 %v27045_v10  ;;  %v27354_v10 = vsub.f32 %v13863_v22, %v27338_v0  ;;  %v13999_v51 = vand.u32 4294901760, %v13998_v31 }
0x1057   : > { %21263 = vmatpush3.msra.mxu1 %v27052_v21  ;;  %21218 = vmatprep.subr.mxu0 %v27056_v56  ;;  %29351 = vst [vmem:[#allocation127_spill] sm:$0xff] %v27351_v54  ;;  %v27363_v21 = vsub.f32 %v13861_v49, %v27343_v59  ;;  %v14041_v45 = vand.u32 4294901760, %v14040_v1  ;;  %v13852_v49 = vld [vmem:[#allocation17 + $0x10] sm:$0xff] }
0x1058   : > { %21264 = vmatprep.subr.mxu1 %v27064_v53  ;;  %21219 = vmatpush3.msra.mxu0 %v27056_v56  ;;  %v27366_v56 = vsub.f32 %v13860_v12, %v27345_v6  ;;  %v27462_v12 = vsub.f32 %v13853_v3, %v27449_v58  ;;  %v27464_v23 = vand.u32 4294901760, %v13852_v49 }
0x1059   : > { %21265 = vmatpush3.msra.mxu1 %v27064_v53  ;;  %21220 = vmatprep.subr.mxu0 %v27071_v19  ;;  %v14005_v53 = vsub.f32 %v27336_v57, %v27351_v54 }
0x105a   : > { %21266 = vmatprep.subr.mxu1 %v27076_v37  ;;  %21221 = vmatpush3.msra.mxu0 %v27071_v19  ;;  %v27372_v19 = vand.u32 4294901760, %v27354_v10  ;;  %v27385_v46 = vand.u32 4294901760, %v27366_v56 }
0x105b   : > { %21267 = vmatpush3.msra.mxu1 %v27076_v37  ;;  %21222 = vmatprep.subr.mxu0 %v27083_v24  ;;  %v27379_v37 = vand.u32 4294901760, %v27360_v2 }
0x105c   : > { %21268 = vmatprep.subr.mxu1 %v27088_v29  ;;  %21223 = vmatpush3.msra.mxu0 %v27083_v24  ;;  %29352 = vst [vmem:[#allocation131_spill] sm:$0xff] %v27372_v19  ;;  %v27382_v24 = vand.u32 4294901760, %v27363_v21  ;;  %29355 = vst [vmem:[#allocation140_spill] sm:$0xff] %v27385_v46 }
0x105d   : > { %21269 = vmatpush3.msra.mxu1 %v27088_v29  ;;  %21224 = vmatprep.subr.mxu0 %v27096_v36  ;;  %29353 = vst [vmem:[#allocation133_spill] sm:$0xff] %v27379_v37  ;;  %v14006_v29 = vand.u32 4294901760, %v14005_v53  ;;  %v27470_v53 = vand.u32 4294901760, %v27458_v48 }
0x105e   : > { %21270 = vmatprep.subr.mxu1 %v27101_v39  ;;  %21225 = vmatpush3.msra.mxu0 %v27096_v36  ;;  %29354 = vst [vmem:[#allocation137_spill] sm:$0xff] %v27382_v24  ;;  %v14012_v36 = vsub.f32 %v27354_v10, %v27372_v19 }
0x105f   : > { %21271 = vmatpush3.msra.mxu1 %v27101_v39  ;;  %21226 = vmatprep.subr.mxu0 %v27108_v16  ;;  %v14019_v39 = vsub.f32 %v27360_v2, %v27379_v37  ;;  %29361 = vst [vmem:[#allocation115_spill] sm:$0xff] %v27470_v53 }
0x1060   : > { %21272 = vmatprep.subr.mxu1 %v27113_v41  ;;  %21227 = vmatpush3.msra.mxu0 %v27108_v16  ;;  %v14026_v16 = vsub.f32 %v27363_v21, %v27382_v24  ;;  %v14013_v42 = vand.u32 4294901760, %v14012_v36  ;;  %v27474_v36 = vand.u32 4294901760, %v27462_v12 }
0x1061   : > { %21273 = vmatpush3.msra.mxu1 %v27113_v41  ;;  %21228 = vmatprep.subr.mxu0 %v27120_v5  ;;  %v14033_v41 = vsub.f32 %v27366_v56, %v27385_v46 }
0x1062   : > { %21275 = vmatmul.mubr.f32.vlgmr.msra.gmra.mxu1 %v29336_v60  ;;  %21229 = vmatpush3.msra.mxu0 %v27120_v5  ;;  %v14020_v5 = vand.u32 4294901760, %v14019_v39  ;;  %29362 = vst [vmem:[#allocation117_spill] sm:$0xff] %v27474_v36  ;;  %v27477_v39 = vsub.f32 %v13852_v49, %v27464_v23 }
0x1063   : > { %21277 = vmatprep.mubr.f32.mxu1 %v29337_v32  ;;  %21230 = vmatprep.subr.mxu0 %v27130_v44 }
0x1064   : > { %21231 = vmatpush3.msra.mxu0 %v27130_v44  ;;  %21318 = vmatprep.subr.mxu1 %v13999_v51  ;;  %v14027_v44 = vand.u32 4294901760, %v14026_v16  ;;  %29363 = vst [vmem:[#allocation118_spill] sm:$0xff] %v27477_v39 }
0x1065   : > { %21232 = vmatprep.subr.mxu0 %v27140_v63  ;;  %21319 = vmatpush3.msra.mxu1 %v13999_v51 }
0x1066   : > { %21278 = vmatmul.mubr.f32.gmra.mxu1 %v29338_v8  ;;  %21233 = vmatpush3.msra.mxu0 %v27140_v63  ;;  %v27405_v63 = vand.u32 4294901760, %v13858_v13 }
0x1067   : > { %21234 = vmatprep.subr.mxu0 %v27147_v40  ;;  %21320 = vmatprep.subr.mxu1 %v14006_v29 }
0x1068   : > { %21235 = vmatpush3.msra.mxu0 %v27147_v40  ;;  %21321 = vmatpush3.msra.mxu1 %v14006_v29  ;;  %v14034_v40 = vand.u32 4294901760, %v14033_v41  ;;  %v27410_v7 = vsub.f32 %v13858_v13, %v27405_v63  ;;  %v13851_v29 = vld [vmem:[#allocation17 + $0x8] sm:$0xff]  ;;  %v14075_v41 = vsub.f32 %v27458_v48, %v27470_v53  ;;  %v14082_v13 = vsub.f32 %v27462_v12, %v27474_v36 }
0x1069   : > { %21237 = vmatmul.mubr.f32.vlgmr.msra.gmra.mxu0 %v29336_v60  ;;  %21280 = vmatprep.subr.mxu0 %v27323_v17  ;;  %v27422_v60 = vand.u32 4294901760, %v13856_v34  ;;  %v27479_v16 = vand.u32 4294901760, %v13851_v29 }
0x106a   : > { %21239 = vmatprep.mubr.f32.mxu0 %v29337_v32  ;;  %21281 = vmatpush3.msra.mxu0 %v27323_v17  ;;  %v27417_v33 = vand.u32 4294901760, %v27410_v7  ;;  %v13855_v32 = vld [vmem:[#allocation17 + $0x28] sm:$0xff] }
0x106b   : > { %21282 = vmatprep.subr.mxu0 %v27328_v14  ;;  %21322 = vmatprep.subr.mxu1 %v14013_v42  ;;  %v27432_v11 = vsub.f32 %v13856_v34, %v27422_v60  ;;  %v27435_v35 = vand.u32 4294901760, %v13855_v32  ;;  %v27491_v1 = vsub.f32 %v13851_v29, %v27479_v16  ;;  %v14083_v34 = vand.u32 4294901760, %v14082_v13 }
0x106c   : > { %21283 = vmatpush3.msra.mxu0 %v27328_v14  ;;  %21323 = vmatpush3.msra.mxu1 %v14013_v42  ;;  %29357 = vst [vmem:[#allocation108_spill] sm:$0xff] %v27417_v33 }
0x106d   : > { %21240 = vmatmul.mubr.f32.gmra.mxu0 %v29338_v8  ;;  %21284 = vmatprep.subr.mxu0 %v27338_v0  ;;  %v14047_v8 = vsub.f32 %v27410_v7, %v27417_v33  ;;  %v27441_v62 = vand.u32 4294901760, %v27432_v11  ;;  %v27444_v18 = vsub.f32 %v13855_v32, %v27435_v35  ;;  %29365 = vst [vmem:[#allocation124_spill] sm:$0xff] %v27491_v1  ;;  %v27500_v32 = vand.u32 4294901760, %v27491_v1 }
0x106e   : > { %21285 = vmatpush3.msra.mxu0 %v27338_v0  ;;  %21324 = vmatprep.subr.mxu1 %v14020_v5 }
0x106f   : > { %21286 = vmatprep.subr.mxu0 %v27341_v25  ;;  %21325 = vmatpush3.msra.mxu1 %v14020_v5  ;;  %v14048_v61 = vand.u32 4294901760, %v14047_v8  ;;  %29359 = vst [vmem:[#allocation111_spill] sm:$0xff] %v27441_v62  ;;  %v14061_v55 = vsub.f32 %v27432_v11, %v27441_v62  ;;  %v27455_v22 = vand.u32 4294901760, %v27444_v18  ;;  %v13850_v5 = vld [vmem:[#allocation17] sm:$0xff]  ;;  %29366 = vst [vmem:[#allocation128_spill] sm:$0xff] %v27500_v32 }
0x1070   : > { %21287 = vmatpush3.msra.mxu0 %v27341_v25  ;;  %21326 = vmatprep.subr.mxu1 %v14027_v44  ;;  %v27493_v28 = vand.u32 4294901760, %v13850_v5 }
0x1071   : > { %21288 = vmatprep.subr.mxu0 %v27343_v59  ;;  %21327 = vmatpush3.msra.mxu1 %v14027_v44  ;;  %29360 = vst [vmem:[#allocation113_spill] sm:$0xff] %v27455_v22  ;;  %v14062_v31 = vand.u32 4294901760, %v14061_v55  ;;  %v14068_v51 = vsub.f32 %v27444_v18, %v27455_v22  ;;  %v27488_v44 = vand.u32 4294901760, %v27477_v39 }
0x1072   : > { %21289 = vmatpush3.msra.mxu0 %v27343_v59  ;;  %21328 = vmatprep.subr.mxu1 %v14034_v40  ;;  %v27503_v8 = vsub.f32 %v13850_v5, %v27493_v28 }
0x1073   : > { %21290 = vmatprep.subr.mxu0 %v27345_v6  ;;  %21329 = vmatpush3.msra.mxu1 %v14034_v40  ;;  %v14069_v42 = vand.u32 4294901760, %v14068_v51  ;;  %29364 = vst [vmem:[#allocation121_spill] sm:$0xff] %v27488_v44  ;;  %v14076_v40 = vand.u32 4294901760, %v14075_v41 }
0x1074   : > { %21291 = vmatpush3.msra.mxu0 %v27345_v6  ;;  %21330 = vmatprep.subr.mxu1 %v14041_v45  ;;  %29367 = vst [vmem:[#allocation130_spill] sm:$0xff] %v27503_v8  ;;  %v27510_v47 = vand.u32 4294901760, %v27503_v8 }
0x1075   : > { %21292 = vmatprep.subr.mxu0 %v27357_v4  ;;  %21331 = vmatpush3.msra.mxu1 %v14041_v45  ;;  %v14089_v45 = vsub.f32 %v27477_v39, %v27488_v44  ;;  %v20911_v51 = vpop.f32.mrf.mxu1 }
0x1076   : > { %21293 = vmatpush3.msra.mxu0 %v27357_v4  ;;  %21332 = vmatprep.subr.mxu1 %v14048_v61  ;;  %29369 = vst [vmem:[#allocation132_spill] sm:$0xff] %v27510_v47 }
0x1077   : > { %21294 = vmatprep.subr.mxu0 %v27405_v63  ;;  %21333 = vmatpush3.msra.mxu1 %v14048_v61  ;;  %v14090_v27 = vand.u32 4294901760, %v14089_v45  ;;  %v14096_v61 = vsub.f32 %v27491_v1, %v27500_v32  ;;  %v12615_v13 = vpop.f32.mrf.mxu1 }
0x1078   : > { %21295 = vmatpush3.msra.mxu0 %v27405_v63  ;;  %21334 = vmatprep.subr.mxu1 %v14055_v9 }
0x1079   : > { %21296 = vmatprep.subr.mxu0 %v27412_v38  ;;  %21335 = vmatpush3.msra.mxu1 %v14055_v9  ;;  %v14097_v3 = vand.u32 4294901760, %v14096_v61  ;;  %v14103_v9 = vsub.f32 %v27503_v8, %v27510_v47 }
0x107a   : > { %21297 = vmatpush3.msra.mxu0 %v27412_v38  ;;  %21336 = vmatprep.subr.mxu1 %v14062_v31 }
0x107b   : > { %21298 = vmatprep.subr.mxu0 %v27422_v60  ;;  %21337 = vmatpush3.msra.mxu1 %v14062_v31  ;;  %v14104_v49 = vand.u32 4294901760, %v14103_v9  ;;  %v16721_v31 = vld [vmem:[%s29368_s24] ss:$0 sm:$0xff]  ;;  %s16128_s24 = sshll.u32 %s28252_s27, 4  ;;  %s28417_s24 = int_to_ptr.vmem [resolvable:$true] %s16128_s24 }
0x107c   : > { %21299 = vmatpush3.msra.mxu0 %v27422_v60  ;;  %21338 = vmatprep.subr.mxu1 %v14069_v42 }
0x107d   : > { %21300 = vmatprep.subr.mxu0 %v27435_v35  ;;  %21339 = vmatpush3.msra.mxu1 %v14069_v42  ;;  %v20876_v55 = vpop.f32.mrf.mxu0 }
0x107e   : > { %21301 = vmatpush3.msra.mxu0 %v27435_v35  ;;  %21340 = vmatprep.subr.mxu1 %v14076_v40  ;;  %v12465_v42 = vadd.f32 %v20876_v55, %v16721_v31 }
0x107f   : > { %21302 = vmatprep.subr.mxu0 %v27446_v52  ;;  %21341 = vmatpush3.msra.mxu1 %v14076_v40  ;;  %v12454_v29 = vpop.f32.mrf.mxu0 }
0x1080   : > { %21303 = vmatpush3.msra.mxu0 %v27446_v52  ;;  %21342 = vmatprep.subr.mxu1 %v14083_v34  ;;  %v12455_v5 = vadd.f32 %v16721_v31, %v12454_v29  ;;  %v12622_v40 = vadd.f32 %v20911_v51, %v12465_v42 }
0x1081   : > { %21304 = vmatprep.subr.mxu0 %v27449_v58  ;;  %21343 = vmatpush3.msra.mxu1 %v14083_v34 }
0x1082   : > { %21305 = vmatpush3.msra.mxu0 %v27449_v58  ;;  %21344 = vmatprep.subr.mxu1 %v14090_v27 }
0x1083   : > { %21306 = vmatprep.subr.mxu0 %v27464_v23  ;;  %21345 = vmatpush3.msra.mxu1 %v14090_v27  ;;  %v12616_v27 = vadd.f32 %v12615_v13, %v12455_v5 }
0x1084   : > { %21307 = vmatpush3.msra.mxu0 %v27464_v23  ;;  %21346 = vmatprep.subr.mxu1 %v14097_v3 }
0x1085   : > { %21308 = vmatprep.subr.mxu0 %v27479_v16  ;;  %21347 = vmatpush3.msra.mxu1 %v14097_v3 }
0x1086   : > { %21309 = vmatpush3.msra.mxu0 %v27479_v16  ;;  %21348 = vmatprep.subr.mxu1 %v14104_v49 }
0x1087   : > { %21310 = vmatprep.subr.mxu0 %v27493_v28  ;;  %21349 = vmatpush3.msra.mxu1 %v14104_v49 }
0x1088   : > { %21311 = vmatpush3.msra.mxu0 %v27493_v28  ;;  %21394 = vmatprep.subr.mxu1 %v27323_v17 }
0x1089   : > { %21356 = vmatprep.subr.mxu0 %v27326_v20 }
0x1096   : > { %v20981_v34 = vpop.f32.mrf.mxu1 }
0x1098   : > { %v12821_v47 = vpop.f32.mrf.mxu1 }
0x109e   : > { %v20946_v41 = vpop.f32.mrf.mxu0 }
0x109f   : > { %v12733_v61 = vadd.f32 %v20946_v41, %v12622_v40 }
0x10a0   : > { %v12725_v45 = vpop.f32.mrf.mxu0 }
0x10a1   : > { %v12726_v9 = vadd.f32 %v12725_v45, %v12616_v27  ;;  %v12830_v32 = vadd.f32 %v20981_v34, %v12733_v61 }
0x10a3   : > { %v12822_v53 = vadd.f32 %v12821_v47, %v12726_v9 }
0x10b8   : > { %v21051_v3 = vpop.f32.mrf.mxu1 }
0x10ba   : > { %v13041_v62 = vpop.f32.mrf.mxu1 }
0x10c0   : > { %v21016_v44 = vpop.f32.mrf.mxu0 }
0x10c1   : > { %v12955_v36 = vadd.f32 %v21016_v44, %v12830_v32 }
0x10c2   : > { %v12948_v55 = vpop.f32.mrf.mxu0 }
0x10c3   : > { %v13048_v49 = vadd.f32 %v21051_v3, %v12955_v36  ;;  %v12949_v22 = vadd.f32 %v12948_v55, %v12822_v53  ;;  %v16722_v36 = vld [vmem:[%s29370_s21] ss:$0 sm:$0xff] }
0x10c5   : > { %13052 = vst [vmem:[%s27519_s5 + $0x8] sm:$0xff] %v13048_v49  ;;  %v13042_v31 = vadd.f32 %v13041_v62, %v12949_v22 }
0x10c7   : > { %13051 = vst [vmem:[%s27519_s5] sm:$0xff] %v13042_v31  ;;  %s22746_s5 = smov [#allocation23]  }
0x10da   : > { %v21124_v51 = vpop.f32.mrf.mxu1 }
0x10dc   : > { %v13344_v29 = vpop.f32.mrf.mxu1 }
0x10df   : > { %v21127_v41 = vpop.f32.mrf.mxu1 }
0x10e1   : > { %v13356_v13 = vpop.f32.mrf.mxu1 }
0x10e3   : > { %v21086_v42 = vpop.f32.mrf.mxu0 }
0x10e4   : > { %v13174_v34 = vadd.f32 %v21086_v42, %v16722_v36 }
0x10e5   : > { %v13163_v5 = vpop.f32.mrf.mxu0 }
0x10e6   : > { %v13164_v27 = vadd.f32 %v16722_v36, %v13163_v5  ;;  %v13351_v3 = vadd.f32 %v21124_v51, %v13174_v34 }
0x10e8   : > { %v21089_v44 = vpop.f32.mrf.mxu0  ;;  %v13345_v31 = vadd.f32 %v13344_v29, %v13164_v27 }
0x10e9   : > { %v13194_v9 = vadd.f32 %v21089_v44, %v16722_v36 }
0x10ea   : > { %v13183_v47 = vpop.f32.mrf.mxu0 }
0x10eb   : > { %v13184_v55 = vadd.f32 %v16722_v36, %v13183_v47  ;;  %v13363_v50 = vadd.f32 %v21127_v41, %v13194_v9 }
0x10ed   : > { %v13357_v37 = vadd.f32 %v13356_v13, %v13184_v55 }
0x10fe   : > { %v21200_v32 = vpop.f32.mrf.mxu1 }
0x1100   : > { %v13576_v40 = vpop.f32.mrf.mxu1 }
0x1103   : > { %v21203_v45 = vpop.f32.mrf.mxu1 }
0x1105   : > { %v13592_v62 = vpop.f32.mrf.mxu1 }
0x1107   : > { %v21162_v53 = vpop.f32.mrf.mxu0 }
0x1108   : > { %v13474_v49 = vadd.f32 %v21162_v53, %v13351_v3 }
0x1109   : > { %v13466_v61 = vpop.f32.mrf.mxu0 }
0x110a   : > { %v13467_v33 = vadd.f32 %v13466_v61, %v13345_v31  ;;  %v13585_v19 = vadd.f32 %v21200_v32, %v13474_v49 }
0x110c   : > { %v21165_v22 = vpop.f32.mrf.mxu0  ;;  %v13577_v1 = vadd.f32 %v13576_v40, %v13467_v33 }
0x110d   : > { %v13488_v24 = vadd.f32 %v21165_v22, %v13363_v50 }
0x110e   : > { %v13480_v46 = vpop.f32.mrf.mxu0 }
0x110f   : > { %v13481_v42 = vadd.f32 %v13480_v46, %v13357_v37  ;;  %v13601_v34 = vadd.f32 %v21203_v45, %v13488_v24 }
0x1111   : > { %v13593_v61 = vadd.f32 %v13592_v62, %v13481_v42 }
0x1122   : > { %v21276_v26 = vpop.f32.mrf.mxu1 }
0x1124   : > { %v13824_v54 = vpop.f32.mrf.mxu1 }
0x1126   : > { %v21279_v39 = vpop.f32.mrf.mxu1 }
0x1128   : > { %v13836_v9 = vpop.f32.mrf.mxu1 }
0x1129   : > { %v21238_v30 = vpop.f32.mrf.mxu0 }
0x112a   : > { %v13726_v8 = vadd.f32 %v21238_v30, %v13585_v19 }
0x112b   : > { %v13719_v5 = vpop.f32.mrf.mxu0 }
0x112c   : > { %v13831_v44 = vadd.f32 %v21276_v26, %v13726_v8  ;;  %v13720_v51 = vadd.f32 %v13719_v5, %v13577_v1 }
0x112d   : > { %v21241_v47 = vpop.f32.mrf.mxu0 }
0x112e   : > { %v13847_v36 = vmax.f32 %v13831_v44, 0.0  ;;  %v13825_v29 = vadd.f32 %v13824_v54, %v13720_v51  ;;  %v13738_v53 = vadd.f32 %v21241_v47, %v13601_v34  ;;  %v29381_v51 = vld [vmem:[#allocation108_spill] sm:$0xff] }
0x112f   : > { %v13731_v41 = vpop.f32.mrf.mxu0  ;;  %v14657_v47 = vld [vmem:[#allocation19 + $0x50] sm:$0xff] }
0x1130   : > { %v27524_v27 = vand.u32 4294901760, %v13847_v36  ;;  %v13846_v50 = vmax.f32 %v13825_v29, 0.0  ;;  %v13843_v13 = vadd.f32 %v21279_v39, %v13738_v53  ;;  %v13732_v32 = vadd.f32 %v13731_v41, %v13593_v61  ;;  %v14656_v61 = vld [vmem:[#allocation19 + $0x48] sm:$0xff] }
0x1131   : > { %v29383_v41 = vld [vmem:[#allocation111_spill] sm:$0xff] }
0x1132   : > { %v27527_v30 = vsub.f32 %v13847_v36, %v27524_v27  ;;  %v27529_v19 = vand.u32 4294901760, %v13846_v50  ;;  %v13849_v37 = vmax.f32 %v13843_v13, 0.0  ;;  %v13837_v24 = vadd.f32 %v13836_v9, %v13732_v32  ;;  %v29382_v36 = vld [vmem:[#allocation109_spill] sm:$0xff]  ;;  %v14655_v32 = vld [vmem:[#allocation19 + $0x40] sm:$0xff] }
0x1133   : > { %v29384_v9 = vld [vmem:[#allocation113_spill] sm:$0xff] }
0x1134   : > { %v13966_v46 = vand.u32 4294901760, %v27527_v30  ;;  %v13955_v54 = vsub.f32 %v13846_v50, %v27529_v19  ;;  %v27533_v33 = vand.u32 4294901760, %v13849_v37  ;;  %v13848_v26 = vmax.f32 %v13837_v24, 0.0  ;;  %21350 = vmatprep.mubr.f32.mxu1 %v27529_v19  ;;  %v22145_v24 = vld [vmem:[%s26827_s20] sm:$0xff] }
0x1135   : > { %21351 = vmatmul.mubr.f32.vlgmr.msra.gmra.mxu1 %v27524_v27  ;;  %v27709_v50 = vand.u32 4294901760, %v14657_v47 }
0x1136   : > { %v27538_v39 = vsub.f32 %v13849_v37, %v27533_v33  ;;  %v27540_v1 = vand.u32 4294901760, %v13848_v26  ;;  %21395 = vmatpush3.msra.mxu1 %v27323_v17  ;;  %v13956_v8 = vand.u32 4294901760, %v13955_v54  ;;  %v13967_v40 = vsub.f32 %v27527_v30, %v13966_v46 }
0x1137   : > { %21396 = vmatprep.subr.mxu1 %v27328_v14 }
0x1138   : > { %v13986_v45 = vand.u32 4294901760, %v27538_v39  ;;  %v27549_v3 = vsub.f32 %v13848_v26, %v27540_v1  ;;  %21397 = vmatpush3.msra.mxu1 %v27328_v14  ;;  %21353 = vmatprep.mubr.f32.mxu1 %v27540_v1  ;;  %v13957_v62 = vsub.f32 %v13955_v54, %v13956_v8  ;;  %v13968_v49 = vand.u32 4294901760, %v13967_v40 }
0x1139   : > { %21398 = vmatprep.subr.mxu1 %v27338_v0  ;;  %21354 = vmatmul.mubr.f32.gmra.mxu1 %v27533_v33  ;;  %v27735_v26 = vsub.f32 %v14657_v47, %v27709_v50 }
0x113a   : > { %21399 = vmatpush3.msra.mxu1 %v27338_v0  ;;  %21426 = vmatprep.mubr.f32.mxu1 %v13956_v8  ;;  %v13958_v22 = vand.u32 4294901760, %v13957_v62  ;;  %v13976_v55 = vand.u32 4294901760, %v27549_v3  ;;  %v13987_v42 = vsub.f32 %v27538_v39, %v13986_v45  ;;  %v14654_v8 = vld [vmem:[#allocation19 + $0x38] sm:$0xff]  ;;  %v14653_v62 = vld [vmem:[#allocation19 + $0x30] sm:$0xff] }
0x113b   : > { %21400 = vmatprep.subr.mxu1 %v27341_v25 }
0x113c   : > { %21401 = vmatpush3.msra.mxu1 %v27341_v25  ;;  %21312 = vmatprep.mubr.f32.mxu0 %v13958_v22  ;;  %v13977_v31 = vsub.f32 %v27549_v3, %v13976_v55  ;;  %v13988_v44 = vand.u32 4294901760, %v13987_v42 }
0x113d   : > { %21402 = vmatprep.subr.mxu1 %v27343_v59  ;;  %21313 = vmatmul.mubr.f32.vlgmr.msra.gmra.mxu0 %v13968_v49 }
0x113e   : > { %21357 = vmatpush3.msra.mxu0 %v27326_v20  ;;  %21403 = vmatpush3.msra.mxu1 %v27343_v59  ;;  %v13978_v5 = vand.u32 4294901760, %v13977_v31  ;;  %v29371_v20 = vld [vmem:[#allocation118_spill] sm:$0xff]  ;;  %v27760_v31 = vand.u32 4294901760, %v27735_v26 }
0x113f   : > { %21358 = vmatprep.subr.mxu0 %v27336_v57  ;;  %21404 = vmatprep.subr.mxu1 %v27345_v6 }
0x1140   : > { %21359 = vmatpush3.msra.mxu0 %v27336_v57  ;;  %21405 = vmatpush3.msra.mxu1 %v27345_v6  ;;  %v29372_v57 = vld [vmem:[#allocation124_spill] sm:$0xff] }
0x1141   : > { %21315 = vmatprep.mubr.f32.mxu0 %v13978_v5  ;;  %21360 = vmatprep.subr.mxu0 %v27354_v10  ;;  %v14652_v5 = vld [vmem:[#allocation19 + $0x28] sm:$0xff] }
0x1142   : > { %21406 = vmatprep.subr.mxu1 %v27357_v4  ;;  %21316 = vmatmul.mubr.f32.gmra.mxu0 %v13988_v44  ;;  %v29387_v44 = vld [vmem:[#allocation121_spill] sm:$0xff] }
0x1143   : > { %21361 = vmatpush3.msra.mxu0 %v27354_v10  ;;  %21407 = vmatpush3.msra.mxu1 %v27357_v4  ;;  %v14662_v10 = vld [vmem:[#allocation19 + $0x78] sm:$0xff] }
0x1144   : > { %21362 = vmatprep.subr.mxu0 %v27360_v2  ;;  %21388 = vmatprep.mubr.f32.mxu0 %v13955_v54 }
0x1145   : > { %21408 = vmatprep.subr.mxu1 %v27405_v63  ;;  %21363 = vmatpush3.msra.mxu0 %v27360_v2  ;;  %v14661_v2 = vld [vmem:[#allocation19 + $0x70] sm:$0xff] }
0x1146   : > { %21409 = vmatpush3.msra.mxu1 %v27405_v63  ;;  %21364 = vmatprep.subr.mxu0 %v27363_v21 }
0x1147   : > { %21410 = vmatprep.subr.mxu1 %v27412_v38  ;;  %21365 = vmatpush3.msra.mxu0 %v27363_v21  ;;  %v29377_v21 = vld [vmem:[#allocation133_spill] sm:$0xff] }
0x1148   : > { %21411 = vmatpush3.msra.mxu1 %v27412_v38  ;;  %21366 = vmatprep.subr.mxu0 %v27366_v56 }
0x1149   : > { %21412 = vmatprep.subr.mxu1 %v27422_v60  ;;  %21367 = vmatpush3.msra.mxu0 %v27366_v56  ;;  %v29378_v56 = vld [vmem:[#allocation137_spill] sm:$0xff] }
0x114a   : > { %21413 = vmatpush3.msra.mxu1 %v27422_v60  ;;  %21368 = vmatprep.subr.mxu0 %v27375_v43 }
0x114b   : > { %21414 = vmatprep.subr.mxu1 %v27435_v35  ;;  %21369 = vmatpush3.msra.mxu0 %v27375_v43  ;;  %v27658_v43 = vand.u32 4294901760, %v14661_v2 }
0x114c   : > { %21415 = vmatpush3.msra.mxu1 %v27435_v35  ;;  %21370 = vmatprep.subr.mxu0 %v27410_v7 }
0x114d   : > { %21416 = vmatprep.subr.mxu1 %v27446_v52  ;;  %21371 = vmatpush3.msra.mxu0 %v27410_v7 }
0x114e   : > { %21417 = vmatpush3.msra.mxu1 %v27446_v52  ;;  %21372 = vmatprep.subr.mxu0 %v27420_v15 }
0x114f   : > { %21418 = vmatprep.subr.mxu1 %v27449_v58  ;;  %21373 = vmatpush3.msra.mxu0 %v27420_v15 }
0x1150   : > { %21419 = vmatpush3.msra.mxu1 %v27449_v58  ;;  %21374 = vmatprep.subr.mxu0 %v27432_v11 }
0x1151   : > { %21420 = vmatprep.subr.mxu1 %v27464_v23  ;;  %21375 = vmatpush3.msra.mxu0 %v27432_v11  ;;  %v14659_v11 = vld [vmem:[#allocation19 + $0x60] sm:$0xff] }
0x1152   : > { %21421 = vmatpush3.msra.mxu1 %v27464_v23  ;;  %21376 = vmatprep.subr.mxu0 %v27444_v18 }
0x1153   : > { %21422 = vmatprep.subr.mxu1 %v27479_v16  ;;  %21377 = vmatpush3.msra.mxu0 %v27444_v18  ;;  %v27674_v18 = vsub.f32 %v14661_v2, %v27658_v43  ;;  %v27778_v2 = vand.u32 4294901760, %v14652_v5 }
0x1154   : > { %21423 = vmatpush3.msra.mxu1 %v27479_v16  ;;  %21378 = vmatprep.subr.mxu0 %v27458_v48 }
0x1155   : > { %21424 = vmatprep.subr.mxu1 %v27493_v28  ;;  %21379 = vmatpush3.msra.mxu0 %v27458_v48  ;;  %v14658_v48 = vld [vmem:[#allocation19 + $0x58] sm:$0xff]  ;;  %v27695_v29 = vand.u32 4294901760, %v27674_v18 }
0x1156   : > { %21425 = vmatpush3.msra.mxu1 %v27493_v28  ;;  %21380 = vmatprep.subr.mxu0 %v27462_v12  ;;  %v27690_v34 = vand.u32 4294901760, %v14658_v48 }
0x1157   : > { %21427 = vmatmul.mubr.f32.vlgmr.msra.gmra.mxu1 %v13966_v46  ;;  %21470 = vmatprep.subr.mxu1 %v27323_v17  ;;  %v27728_v46 = vand.u32 4294901760, %v22145_v24 }
0x1158   : > { %21381 = vmatpush3.msra.mxu0 %v27462_v12  ;;  %21429 = vmatprep.mubr.f32.mxu1 %v13976_v55  ;;  %v27681_v12 = vand.u32 4294901760, %v14659_v11  ;;  %v27714_v13 = vsub.f32 %v14658_v48, %v27690_v34  ;;  %v27752_v55 = vand.u32 4294901760, %v14654_v8 }
0x1159   : > { %21471 = vmatpush3.msra.mxu1 %v27323_v17  ;;  %21382 = vmatprep.subr.mxu0 %v29371_v20  ;;  %v29373_v17 = vld [vmem:[#allocation130_spill] sm:$0xff]  ;;  %v27755_v49 = vsub.f32 %v22145_v24, %v27728_v46 }
0x115a   : > { %21472 = vmatprep.subr.mxu1 %v27328_v14  ;;  %21383 = vmatpush3.msra.mxu0 %v29371_v20  ;;  %v27702_v53 = vsub.f32 %v14659_v11, %v27681_v12  ;;  %v27742_v40 = vand.u32 4294901760, %v27714_v13 }
0x115b   : > { %21473 = vmatpush3.msra.mxu1 %v27328_v14  ;;  %21384 = vmatprep.subr.mxu0 %v29372_v57  ;;  %v29374_v14 = vld [vmem:[#allocation125_spill] sm:$0xff] }
0x115c   : > { %21430 = vmatmul.mubr.f32.gmra.mxu1 %v13986_v45  ;;  %21474 = vmatprep.subr.mxu1 %v27338_v0  ;;  %v27725_v37 = vand.u32 4294901760, %v27702_v53  ;;  %v14803_v20 = vsub.f32 %v27714_v13, %v27742_v40 }
0x115d   : > { %21385 = vmatpush3.msra.mxu0 %v29372_v57  ;;  %21475 = vmatpush3.msra.mxu1 %v27338_v0  ;;  %v29375_v0 = vld [vmem:[#allocation127_spill] sm:$0xff]  ;;  %v27768_v57 = vand.u32 4294901760, %v14653_v62 }
0x115e   : > { %21502 = vmatprep.mubr.f32.mxu1 %v27529_v19  ;;  %21386 = vmatprep.subr.mxu0 %v29373_v17  ;;  %v14796_v22 = vsub.f32 %v27702_v53, %v27725_v37  ;;  %v14804_v11 = vand.u32 4294901760, %v14803_v20 }
0x115f   : > { %21476 = vmatprep.subr.mxu1 %v27341_v25  ;;  %21387 = vmatpush3.msra.mxu0 %v29373_v17 }
0x1160   : > { %21477 = vmatpush3.msra.mxu1 %v27341_v25  ;;  %21389 = vmatmul.mubr.f32.vlgmr.msra.gmra.mxu0 %v27527_v30  ;;  %v29376_v25 = vld [vmem:[#allocation131_spill] sm:$0xff]  ;;  %v27720_v30 = vand.u32 4294901760, %v14656_v61 }
0x1161   : > { %21432 = vmatprep.subr.mxu0 %v29374_v14  ;;  %21478 = vmatprep.subr.mxu1 %v27343_v59 }
0x1162   : > { %21391 = vmatprep.mubr.f32.mxu0 %v27549_v3  ;;  %21433 = vmatpush3.msra.mxu0 %v29374_v14  ;;  %v27747_v3 = vsub.f32 %v14656_v61, %v27720_v30  ;;  %v14651_v14 = vld [vmem:[#allocation19 + $0x20] sm:$0xff]  ;;  %v27802_v61 = vsub.f32 %v14652_v5, %v27778_v2 }
0x1163   : > { %21479 = vmatpush3.msra.mxu1 %v27343_v59  ;;  %21434 = vmatprep.subr.mxu0 %v29375_v0  ;;  %v27650_v59 = vand.u32 4294901760, %v14662_v10  ;;  %v27791_v48 = vand.u32 4294901760, %v14651_v14 }
0x1164   : > { %21480 = vmatprep.subr.mxu1 %v27345_v6  ;;  %21435 = vmatpush3.msra.mxu0 %v29375_v0  ;;  %v27772_v17 = vand.u32 4294901760, %v27747_v3  ;;  %v29388_v0 = vld [vmem:[#allocation128_spill] sm:$0xff] }
0x1165   : > { %21481 = vmatpush3.msra.mxu1 %v27345_v6  ;;  %21392 = vmatmul.mubr.f32.gmra.mxu0 %v27538_v39  ;;  %v14660_v6 = vld [vmem:[#allocation19 + $0x68] sm:$0xff]  ;;  %v27663_v7 = vsub.f32 %v14662_v10, %v27650_v59  ;;  %v27737_v39 = vand.u32 4294901760, %v14655_v32  ;;  %v14797_v10 = vand.u32 4294901760, %v14796_v22 }
0x1166   : > { %21436 = vmatprep.subr.mxu0 %v29376_v25  ;;  %21482 = vmatprep.subr.mxu1 %v27357_v4  ;;  %v27667_v15 = vand.u32 4294901760, %v14660_v6  ;;  %v14817_v47 = vsub.f32 %v27747_v3, %v27772_v17 }
0x1167   : > { %21437 = vmatpush3.msra.mxu0 %v29376_v25  ;;  %21464 = vmatprep.mubr.f32.mxu0 %v27529_v19  ;;  %v27763_v42 = vsub.f32 %v14655_v32, %v27737_v39  ;;  %v27776_v25 = vsub.f32 %v14654_v8, %v27752_v55  ;;  %v14647_v8 = vld [vmem:[#allocation19] sm:$0xff] }
0x1168   : > { %21483 = vmatpush3.msra.mxu1 %v27357_v4  ;;  %21438 = vmatprep.subr.mxu0 %v29377_v21  ;;  %v29379_v4 = vld [vmem:[#allocation140_spill] sm:$0xff] }
0x1169   : > { %21484 = vmatprep.subr.mxu1 %v27405_v63  ;;  %21439 = vmatpush3.msra.mxu0 %v29377_v21  ;;  %v14810_v21 = vsub.f32 %v27735_v26, %v27760_v31 }
0x116a   : > { %21485 = vmatpush3.msra.mxu1 %v27405_v63  ;;  %21440 = vmatprep.subr.mxu0 %v29378_v56  ;;  %v29380_v63 = vld [vmem:[#allocation142_spill] sm:$0xff] }
0x116b   : > { %21486 = vmatprep.subr.mxu1 %v27412_v38  ;;  %21441 = vmatpush3.msra.mxu0 %v29378_v56  ;;  %v27785_v56 = vand.u32 4294901760, %v27763_v42  ;;  %v14811_v32 = vand.u32 4294901760, %v14810_v21 }
0x116c   : > { %21487 = vmatpush3.msra.mxu1 %v27412_v38  ;;  %21442 = vmatprep.subr.mxu0 %v29379_v4  ;;  %v27679_v38 = vand.u32 4294901760, %v27663_v7 }
0x116d   : > { %21488 = vmatprep.subr.mxu1 %v27422_v60  ;;  %21443 = vmatpush3.msra.mxu0 %v29379_v4  ;;  %v14650_v4 = vld [vmem:[#allocation19 + $0x18] sm:$0xff] }
0x116e   : > { %21489 = vmatpush3.msra.mxu1 %v27422_v60  ;;  %21444 = vmatprep.subr.mxu0 %v29380_v63  ;;  %v27686_v60 = vsub.f32 %v14660_v6, %v27667_v15  ;;  %v14753_v6 = vand.u32 4294901760, %v27755_v49 }
0x116f   : > { %21490 = vmatprep.subr.mxu1 %v27435_v35  ;;  %21445 = vmatpush3.msra.mxu0 %v29380_v63  ;;  %v27789_v63 = vsub.f32 %v14653_v62, %v27768_v57 }
0x1170   : > { %21491 = vmatpush3.msra.mxu1 %v27435_v35  ;;  %21446 = vmatprep.subr.mxu0 %v29381_v51  ;;  %v14775_v35 = vsub.f32 %v27663_v7, %v27679_v38 }
0x1171   : > { %21492 = vmatprep.subr.mxu1 %v27446_v52  ;;  %21447 = vmatpush3.msra.mxu0 %v29381_v51  ;;  %v29389_v51 = vld [vmem:[#allocation132_spill] sm:$0xff]  ;;  %v27814_v24 = vand.u32 4294901760, %v27789_v63 }
0x1172   : > { %21493 = vmatpush3.msra.mxu1 %v27446_v52  ;;  %21448 = vmatprep.subr.mxu0 %v29382_v36  ;;  %v27707_v52 = vand.u32 4294901760, %v27686_v60  ;;  %v14776_v19 = vand.u32 4294901760, %v14775_v35  ;;  %v27799_v35 = vand.u32 4294901760, %v27776_v25 }
0x1173   : > { %21494 = vmatprep.subr.mxu1 %v27449_v58  ;;  %21449 = vmatpush3.msra.mxu0 %v29382_v36  ;;  %v14649_v36 = vld [vmem:[#allocation19 + $0x10] sm:$0xff]  ;;  %v14838_v5 = vsub.f32 %v27789_v63, %v27814_v24 }
0x1174   : > { %21495 = vmatpush3.msra.mxu1 %v27449_v58  ;;  %21450 = vmatprep.subr.mxu0 %v29383_v41  ;;  %v14782_v58 = vsub.f32 %v27674_v18, %v27695_v29  ;;  %v14789_v54 = vsub.f32 %v27686_v60, %v27707_v52 }
0x1175   : > { %21496 = vmatprep.subr.mxu1 %v27464_v23  ;;  %21451 = vmatpush3.msra.mxu0 %v29383_v41  ;;  %v27804_v41 = vand.u32 4294901760, %v14650_v4 }
0x1176   : > { %21497 = vmatpush3.msra.mxu1 %v27464_v23  ;;  %21452 = vmatprep.subr.mxu0 %v29384_v9  ;;  %v29385_v23 = vld [vmem:[#allocation115_spill] sm:$0xff]  ;;  %v14783_v45 = vand.u32 4294901760, %v14782_v58  ;;  %v14824_v58 = vsub.f32 %v27763_v42, %v27785_v56 }
0x1177   : > { %21498 = vmatprep.subr.mxu1 %v27479_v16  ;;  %21453 = vmatpush3.msra.mxu0 %v29384_v9  ;;  %v14754_v9 = vsub.f32 %v27755_v49, %v14753_v6  ;;  %v27830_v62 = vsub.f32 %v14650_v4, %v27804_v41  ;;  %v14839_v4 = vand.u32 4294901760, %v14838_v5 }
0x1178   : > { %21499 = vmatpush3.msra.mxu1 %v27479_v16  ;;  %21454 = vmatprep.subr.mxu0 %v29385_v23  ;;  %v29386_v16 = vld [vmem:[#allocation117_spill] sm:$0xff] }
0x1179   : > { %21500 = vmatprep.subr.mxu1 %v27493_v28  ;;  %21455 = vmatpush3.msra.mxu0 %v29385_v23  ;;  %v27817_v23 = vsub.f32 %v14651_v14, %v27791_v48  ;;  %v27844_v14 = vand.u32 4294901760, %v14647_v8 }
0x117a   : > { %21501 = vmatpush3.msra.mxu1 %v27493_v28  ;;  %21456 = vmatprep.subr.mxu0 %v29386_v16  ;;  %v14790_v28 = vand.u32 4294901760, %v14789_v54  ;;  %v27819_v54 = vand.u32 4294901760, %v14649_v36 }
0x117b   : > { %21503 = vmatmul.mubr.f32.vlgmr.msra.gmra.mxu1 %v27524_v27  ;;  %21543 = vmatprep.subr.mxu1 %v14776_v19 }
0x117c   : > { %21457 = vmatpush3.msra.mxu0 %v29386_v16  ;;  %21505 = vmatprep.mubr.f32.mxu1 %v27540_v1  ;;  %v14831_v16 = vsub.f32 %v27776_v25, %v27799_v35  ;;  %v27842_v20 = vsub.f32 %v14649_v36, %v27819_v54 }
0x117d   : > { %21544 = vmatpush3.msra.mxu1 %v14776_v19  ;;  %21458 = vmatprep.subr.mxu0 %v29387_v44  ;;  %v14648_v19 = vld [vmem:[#allocation19 + $0x8] sm:$0xff] }
0x117e   : > { %21545 = vmatprep.subr.mxu1 %v14783_v45  ;;  %21459 = vmatpush3.msra.mxu0 %v29387_v44  ;;  %v27832_v22 = vand.u32 4294901760, %v14648_v19  ;;  %v27839_v44 = vand.u32 4294901760, %v27817_v23 }
0x117f   : > { %21546 = vmatpush3.msra.mxu1 %v14783_v45  ;;  %21460 = vmatprep.subr.mxu0 %v29388_v0  ;;  %v27827_v45 = vand.u32 4294901760, %v27802_v61 }
0x1180   : > { %21506 = vmatmul.mubr.f32.gmra.mxu1 %v27533_v33  ;;  %21547 = vmatprep.subr.mxu1 %v14790_v28  ;;  %v27854_v21 = vsub.f32 %v14648_v19, %v27832_v22 }
0x1181   : > { %21461 = vmatpush3.msra.mxu0 %v29388_v0  ;;  %21548 = vmatpush3.msra.mxu1 %v14790_v28  ;;  %v14825_v28 = vand.u32 4294901760, %v14824_v58  ;;  %v14832_v0 = vand.u32 4294901760, %v14831_v16 }
0x1182   : > { %21575 = vmatprep.mubr.f32.mxu1 %v27728_v46  ;;  %21462 = vmatprep.subr.mxu0 %v29389_v51 }
0x1183   : > { %21549 = vmatprep.subr.mxu1 %v14797_v10  ;;  %21463 = vmatpush3.msra.mxu0 %v29389_v51  ;;  %v27861_v51 = vand.u32 4294901760, %v27842_v20 }
0x1184   : > { %21550 = vmatpush3.msra.mxu1 %v14797_v10  ;;  %21465 = vmatmul.mubr.f32.vlgmr.msra.gmra.mxu0 %v27524_v27  ;;  %v14818_v27 = vand.u32 4294901760, %v14817_v47  ;;  %v27851_v10 = vand.u32 4294901760, %v27830_v62  ;;  %v27864_v47 = vsub.f32 %v14647_v8, %v27844_v14 }
0x1185   : > { %21508 = vmatprep.subr.mxu0 %v27650_v59  ;;  %21551 = vmatprep.subr.mxu1 %v14804_v11  ;;  %v14866_v19 = vsub.f32 %v27842_v20, %v27861_v51 }
0x1186   : > { %21467 = vmatprep.mubr.f32.mxu0 %v27540_v1  ;;  %21509 = vmatpush3.msra.mxu0 %v27650_v59  ;;  %v14755_v1 = vand.u32 4294901760, %v14754_v9  ;;  %v27871_v9 = vand.u32 4294901760, %v27854_v21 }
0x1187   : > { %21552 = vmatpush3.msra.mxu1 %v14804_v11  ;;  %21510 = vmatprep.subr.mxu0 %v27658_v43  ;;  %v14852_v11 = vsub.f32 %v27817_v23, %v27839_v44  ;;  %v14867_v5 = vand.u32 4294901760, %v14866_v19 }
0x1188   : > { %21553 = vmatprep.subr.mxu1 %v14811_v32  ;;  %21511 = vmatpush3.msra.mxu0 %v27658_v43  ;;  %v14873_v16 = vsub.f32 %v27854_v21, %v27871_v9 }
0x1189   : > { %21554 = vmatpush3.msra.mxu1 %v14811_v32  ;;  %21468 = vmatmul.mubr.f32.gmra.mxu0 %v27533_v33  ;;  %v14845_v33 = vsub.f32 %v27802_v61, %v27827_v45  ;;  %v14859_v32 = vsub.f32 %v27830_v62, %v27851_v10  ;;  %v14853_v58 = vand.u32 4294901760, %v14852_v11 }
0x118a   : > { %21512 = vmatprep.subr.mxu0 %v27667_v15  ;;  %21555 = vmatprep.subr.mxu1 %v14818_v27 }
0x118b   : > { %21513 = vmatpush3.msra.mxu0 %v27667_v15  ;;  %21540 = vmatprep.mubr.f32.mxu0 %v14755_v1  ;;  %v14846_v36 = vand.u32 4294901760, %v14845_v33  ;;  %v14860_v8 = vand.u32 4294901760, %v14859_v32  ;;  %v22146_v1 = vld [vmem:[%s26827_s20 + $0x8] sm:$0xff]  ;;  %v14874_v33 = vand.u32 4294901760, %v14873_v16  ;;  %s22463_s20 = scalar_lea.vmem %s28417_s24, 512 }
0x118c   : > { %21556 = vmatpush3.msra.mxu1 %v14818_v27  ;;  %21514 = vmatprep.subr.mxu0 %v27681_v12  ;;  %v27878_v27 = vand.u32 4294901760, %v27864_v47  ;;  %p22464_p1 = scmp.ne.s32.totalorder %s28417_s24, %s22463_s20 }
0x118d   : > { %21557 = vmatprep.subr.mxu1 %v14825_v28  ;;  %21515 = vmatpush3.msra.mxu0 %v27681_v12 }
0x118e   : > { %21558 = vmatpush3.msra.mxu1 %v14825_v28  ;;  %21516 = vmatprep.subr.mxu0 %v27690_v34  ;;  %v27886_v28 = vand.u32 4294901760, %v22146_v1  ;;  %p22465_p2 = pnand %p22464_p1, %p29429_p3 }
0x118f   : > { %21559 = vmatprep.subr.mxu1 %v14832_v0  ;;  %21517 = vmatpush3.msra.mxu0 %v27690_v34 }
0x1190   : > { %21560 = vmatpush3.msra.mxu1 %v14832_v0  ;;  %21518 = vmatprep.subr.mxu0 %v27709_v50  ;;  %v14880_v0 = vsub.f32 %v27864_v47, %v27878_v27  ;;  %p22466_p13 = pneg %p22465_p2 }
0x1191   : > { %21561 = vmatprep.subr.mxu1 %v14839_v4  ;;  %21519 = vmatpush3.msra.mxu0 %v27709_v50 }
0x1192   : > { %21562 = vmatpush3.msra.mxu1 %v14839_v4  ;;  %21520 = vmatprep.subr.mxu0 %v27720_v30  ;;  %v27895_v4 = vsub.f32 %v22146_v1, %v27886_v28  ;;  %v14881_v11 = vand.u32 4294901760, %v14880_v0 }
0x1193   : > { %21563 = vmatprep.subr.mxu1 %v14846_v36  ;;  %21521 = vmatpush3.msra.mxu0 %v27720_v30 }
0x1194   : > { %21564 = vmatpush3.msra.mxu1 %v14846_v36  ;;  %21522 = vmatprep.subr.mxu0 %v27737_v39  ;;  %v14763_v36 = vand.u32 4294901760, %v27895_v4 }
0x1195   : > { %21565 = vmatprep.subr.mxu1 %v14853_v58  ;;  %21523 = vmatpush3.msra.mxu0 %v27737_v39 }
0x1196   : > { %21566 = vmatpush3.msra.mxu1 %v14853_v58  ;;  %21524 = vmatprep.subr.mxu0 %v27752_v55  ;;  %v14764_v32 = vsub.f32 %v27895_v4, %v14763_v36 }
0x1197   : > { %21567 = vmatprep.subr.mxu1 %v14860_v8  ;;  %21525 = vmatpush3.msra.mxu0 %v27752_v55 }
0x1198   : > { %21568 = vmatpush3.msra.mxu1 %v14860_v8  ;;  %21526 = vmatprep.subr.mxu0 %v27768_v57  ;;  %v14765_v58 = vand.u32 4294901760, %v14764_v32  ;;  %v15359_v32 = vld [vmem:[#allocation20 + $0x18] sm:$0xff] }
0x1199   : > { %21569 = vmatprep.subr.mxu1 %v14867_v5  ;;  %21527 = vmatpush3.msra.mxu0 %v27768_v57 }
0x119a   : > { %21570 = vmatpush3.msra.mxu1 %v14867_v5  ;;  %21528 = vmatprep.subr.mxu0 %v27778_v2  ;;  %v15360_v5 = vld [vmem:[#allocation20 + $0x20] sm:$0xff] }
0x119b   : > { %21571 = vmatprep.subr.mxu1 %v14874_v33  ;;  %21529 = vmatpush3.msra.mxu0 %v27778_v2 }
0x119c   : > { %21572 = vmatpush3.msra.mxu1 %v14874_v33  ;;  %21530 = vmatprep.subr.mxu0 %v27791_v48 }
0x119d   : > { %21573 = vmatprep.subr.mxu1 %v14881_v11  ;;  %21531 = vmatpush3.msra.mxu0 %v27791_v48 }
0x119e   : > { %21574 = vmatpush3.msra.mxu1 %v14881_v11  ;;  %21532 = vmatprep.subr.mxu0 %v27804_v41 }
0x119f   : > { %21576 = vmatmul.mubr.f32.vlgmr.msra.gmra.mxu1 %v27886_v28  ;;  %21613 = vmatprep.subr.mxu1 %v27650_v59 }
0x11a0   : > { %21533 = vmatpush3.msra.mxu0 %v27804_v41  ;;  %21614 = vmatpush3.msra.mxu1 %v27650_v59 }
0x11a1   : > { %21645 = vmatprep.mubr.f32.mxu1 %v14753_v6  ;;  %21534 = vmatprep.subr.mxu0 %v27819_v54 }
0x11a2   : > { %21615 = vmatprep.subr.mxu1 %v27658_v43  ;;  %21535 = vmatpush3.msra.mxu0 %v27819_v54 }
0x11a3   : > { %21616 = vmatpush3.msra.mxu1 %v27658_v43  ;;  %21536 = vmatprep.subr.mxu0 %v27832_v22 }
0x11a4   : > { %21617 = vmatprep.subr.mxu1 %v27667_v15  ;;  %21537 = vmatpush3.msra.mxu0 %v27832_v22 }
0x11a5   : > { %21618 = vmatpush3.msra.mxu1 %v27667_v15  ;;  %21538 = vmatprep.subr.mxu0 %v27844_v14 }
0x11a6   : > { %21619 = vmatprep.subr.mxu1 %v27681_v12  ;;  %21539 = vmatpush3.msra.mxu0 %v27844_v14 }
0x11a7   : > { %21620 = vmatpush3.msra.mxu1 %v27681_v12  ;;  %21541 = vmatmul.mubr.f32.vlgmr.msra.gmra.mxu0 %v14765_v58 }
0x11a8   : > { %21578 = vmatprep.subr.mxu0 %v27663_v7  ;;  %21621 = vmatprep.subr.mxu1 %v27690_v34 }
0x11a9   : > { %21579 = vmatpush3.msra.mxu0 %v27663_v7  ;;  %21610 = vmatprep.mubr.f32.mxu0 %v27755_v49  ;;  %v15370_v7 = vld [vmem:[#allocation20 + $0x70] sm:$0xff] }
0x11aa   : > { %21622 = vmatpush3.msra.mxu1 %v27690_v34  ;;  %21580 = vmatprep.subr.mxu0 %v27674_v18 }
0x11ab   : > { %21623 = vmatprep.subr.mxu1 %v27709_v50  ;;  %21581 = vmatpush3.msra.mxu0 %v27674_v18  ;;  %v15368_v18 = vld [vmem:[#allocation20 + $0x60] sm:$0xff] }
0x11ac   : > { %21624 = vmatpush3.msra.mxu1 %v27709_v50  ;;  %21582 = vmatprep.subr.mxu0 %v27686_v60 }
0x11ad   : > { %21625 = vmatprep.subr.mxu1 %v27720_v30  ;;  %21583 = vmatpush3.msra.mxu0 %v27686_v60  ;;  %v28059_v60 = vand.u32 4294901760, %v15368_v18 }
0x11ae   : > { %21626 = vmatpush3.msra.mxu1 %v27720_v30  ;;  %21584 = vmatprep.subr.mxu0 %v27702_v53 }
0x11af   : > { %21627 = vmatprep.subr.mxu1 %v27737_v39  ;;  %21585 = vmatpush3.msra.mxu0 %v27702_v53  ;;  %v15365_v53 = vld [vmem:[#allocation20 + $0x48] sm:$0xff] }
0x11b0   : > { %21628 = vmatpush3.msra.mxu1 %v27737_v39  ;;  %21586 = vmatprep.subr.mxu0 %v27714_v13 }
0x11b1   : > { %21629 = vmatprep.subr.mxu1 %v27752_v55  ;;  %21587 = vmatpush3.msra.mxu0 %v27714_v13 }
0x11b2   : > { %21630 = vmatpush3.msra.mxu1 %v27752_v55  ;;  %21588 = vmatprep.subr.mxu0 %v27735_v26 }
0x11b3   : > { %21631 = vmatprep.subr.mxu1 %v27768_v57  ;;  %21589 = vmatpush3.msra.mxu0 %v27735_v26  ;;  %v28078_v26 = vsub.f32 %v15368_v18, %v28059_v60 }
0x11b4   : > { %21632 = vmatpush3.msra.mxu1 %v27768_v57  ;;  %21590 = vmatprep.subr.mxu0 %v27747_v3 }
0x11b5   : > { %21633 = vmatprep.subr.mxu1 %v27778_v2  ;;  %21591 = vmatpush3.msra.mxu0 %v27747_v3 }
0x11b6   : > { %21634 = vmatpush3.msra.mxu1 %v27778_v2  ;;  %21592 = vmatprep.subr.mxu0 %v27763_v42 }
0x11b7   : > { %21635 = vmatprep.subr.mxu1 %v27791_v48  ;;  %21593 = vmatpush3.msra.mxu0 %v27763_v42 }
0x11b8   : > { %21636 = vmatpush3.msra.mxu1 %v27791_v48  ;;  %21594 = vmatprep.subr.mxu0 %v27776_v25 }
0x11b9   : > { %21637 = vmatprep.subr.mxu1 %v27804_v41  ;;  %21595 = vmatpush3.msra.mxu0 %v27776_v25 }
0x11ba   : > { %21638 = vmatpush3.msra.mxu1 %v27804_v41  ;;  %21596 = vmatprep.subr.mxu0 %v27789_v63 }
0x11bb   : > { %21639 = vmatprep.subr.mxu1 %v27819_v54  ;;  %21597 = vmatpush3.msra.mxu0 %v27789_v63 }
0x11bc   : > { %21640 = vmatpush3.msra.mxu1 %v27819_v54  ;;  %21598 = vmatprep.subr.mxu0 %v27802_v61 }
0x11bd   : > { %21641 = vmatprep.subr.mxu1 %v27832_v22  ;;  %21599 = vmatpush3.msra.mxu0 %v27802_v61 }
0x11be   : > { %21642 = vmatpush3.msra.mxu1 %v27832_v22  ;;  %21600 = vmatprep.subr.mxu0 %v27817_v23 }
0x11bf   : > { %21643 = vmatprep.subr.mxu1 %v27844_v14  ;;  %21601 = vmatpush3.msra.mxu0 %v27817_v23 }
0x11c0   : > { %21644 = vmatpush3.msra.mxu1 %v27844_v14  ;;  %21602 = vmatprep.subr.mxu0 %v27830_v62 }
0x11c1   : > { %21646 = vmatmul.mubr.f32.vlgmr.msra.gmra.mxu1 %v14763_v36  ;;  %21683 = vmatprep.subr.mxu1 %v27650_v59  ;;  %v28177_v36 = vand.u32 4294901760, %v15360_v5 }
0x11c2   : > { %21603 = vmatpush3.msra.mxu0 %v27830_v62  ;;  %21684 = vmatpush3.msra.mxu1 %v27650_v59  ;;  %v15371_v59 = vld [vmem:[#allocation20 + $0x78] sm:$0xff] }
0x11c3   : > { %21715 = vmatprep.mubr.f32.mxu1 %v27728_v46  ;;  %21604 = vmatprep.subr.mxu0 %v27842_v20 }
0x11c4   : > { %21685 = vmatprep.subr.mxu1 %v27658_v43  ;;  %21605 = vmatpush3.msra.mxu0 %v27842_v20 }
0x11c5   : > { %21686 = vmatpush3.msra.mxu1 %v27658_v43  ;;  %21606 = vmatprep.subr.mxu0 %v27854_v21  ;;  %v28053_v43 = vand.u32 4294901760, %v15371_v59 }
0x11c6   : > { %21687 = vmatprep.subr.mxu1 %v27667_v15  ;;  %21607 = vmatpush3.msra.mxu0 %v27854_v21  ;;  %v15362_v21 = vld [vmem:[#allocation20 + $0x30] sm:$0xff] }
0x11c7   : > { %21688 = vmatpush3.msra.mxu1 %v27667_v15  ;;  %21608 = vmatprep.subr.mxu0 %v27864_v47  ;;  %v15369_v15 = vld [vmem:[#allocation20 + $0x68] sm:$0xff]  ;;  %v28152_v19 = vand.u32 4294901760, %v15362_v21 }
0x11c8   : > { %21689 = vmatprep.subr.mxu1 %v27681_v12  ;;  %21609 = vmatpush3.msra.mxu0 %v27864_v47 }
0x11c9   : > { %21690 = vmatpush3.msra.mxu1 %v27681_v12  ;;  %21611 = vmatmul.mubr.f32.vlgmr.msra.gmra.mxu0 %v27895_v4  ;;  %v28057_v12 = vand.u32 4294901760, %v15369_v15  ;;  %v28162_v1 = vsub.f32 %v15362_v21, %v28152_v19 }
0x11ca   : > { %21648 = vmatprep.subr.mxu0 %v27679_v38  ;;  %21691 = vmatprep.subr.mxu1 %v27690_v34 }
0x11cb   : > { %21649 = vmatpush3.msra.mxu0 %v27679_v38  ;;  %21680 = vmatprep.mubr.f32.mxu0 %v27728_v46  ;;  %v28055_v38 = vand.u32 4294901760, %v15370_v7  ;;  %v28075_v46 = vsub.f32 %v15369_v15, %v28057_v12  ;;  %v28171_v4 = vand.u32 4294901760, %v28162_v1  ;;  %v28185_v15 = vand.u32 4294901760, %v15359_v32 }
0x11cc   : > { %21692 = vmatpush3.msra.mxu1 %v27690_v34  ;;  %21650 = vmatprep.subr.mxu0 %v27695_v29  ;;  %v15367_v34 = vld [vmem:[#allocation20 + $0x58] sm:$0xff] }
0x11cd   : > { %21693 = vmatprep.subr.mxu1 %v27709_v50  ;;  %21651 = vmatpush3.msra.mxu0 %v27695_v29  ;;  %v15366_v29 = vld [vmem:[#allocation20 + $0x50] sm:$0xff]  ;;  %v28095_v49 = vand.u32 4294901760, %v28075_v46  ;;  %29399 = vst [vmem:[#allocation102_spill] sm:$0xff] %v28171_v4 }
0x11ce   : > { %21694 = vmatpush3.msra.mxu1 %v27709_v50  ;;  %21652 = vmatprep.subr.mxu0 %v27707_v52  ;;  %v28065_v50 = vand.u32 4294901760, %v15367_v34  ;;  %v28067_v13 = vand.u32 4294901760, %v15366_v29 }
0x11cf   : > { %21695 = vmatprep.subr.mxu1 %v27720_v30  ;;  %21653 = vmatpush3.msra.mxu0 %v27707_v52  ;;  %v28062_v52 = vsub.f32 %v15371_v59, %v28053_v43  ;;  %29392 = vst [vmem:[#allocation143_spill] sm:$0xff] %v28095_v49  ;;  %v15547_v59 = vsub.f32 %v28162_v1, %v28171_v4 }
0x11d0   : > { %21696 = vmatpush3.msra.mxu1 %v27720_v30  ;;  %21654 = vmatprep.subr.mxu0 %v27725_v37  ;;  %v28069_v30 = vand.u32 4294901760, %v15365_v53  ;;  %v28089_v3 = vsub.f32 %v15366_v29, %v28067_v13  ;;  %v15358_v29 = vld [vmem:[#allocation20 + $0x10] sm:$0xff] }
0x11d1   : > { %21697 = vmatprep.subr.mxu1 %v27737_v39  ;;  %21655 = vmatpush3.msra.mxu0 %v27725_v37  ;;  %v28072_v37 = vsub.f32 %v15370_v7, %v28055_v38 }
0x11d2   : > { %21698 = vmatpush3.msra.mxu1 %v27737_v39  ;;  %21656 = vmatprep.subr.mxu0 %v27742_v40  ;;  %v28082_v39 = vand.u32 4294901760, %v28062_v52  ;;  %v28118_v63 = vand.u32 4294901760, %v28089_v3 }
0x11d3   : > { %21699 = vmatprep.subr.mxu1 %v27752_v55  ;;  %21657 = vmatpush3.msra.mxu0 %v27742_v40  ;;  %v28085_v40 = vsub.f32 %v15367_v34, %v28065_v50  ;;  %v28190_v34 = vsub.f32 %v15360_v5, %v28177_v36 }
0x11d4   : > { %21700 = vmatpush3.msra.mxu1 %v27752_v55  ;;  %21658 = vmatprep.subr.mxu0 %v27760_v31  ;;  %29390 = vst [vmem:[#allocation136_spill] sm:$0xff] %v28082_v39  ;;  %v28092_v55 = vand.u32 4294901760, %v28072_v37  ;;  %v15484_v42 = vsub.f32 %v28062_v52, %v28082_v39  ;;  %29395 = vst [vmem:[#allocation107_spill] sm:$0xff] %v28118_v63  ;;  %v15519_v23 = vsub.f32 %v28089_v3, %v28118_v63 }
0x11d5   : > { %21701 = vmatprep.subr.mxu1 %v27768_v57  ;;  %21659 = vmatpush3.msra.mxu0 %v27760_v31  ;;  %v28098_v31 = vand.u32 4294901760, %v28078_v26 }
0x11d6   : > { %21702 = vmatpush3.msra.mxu1 %v27768_v57  ;;  %21660 = vmatprep.subr.mxu0 %v27772_v17  ;;  %29391 = vst [vmem:[#allocation139_spill] sm:$0xff] %v28092_v55  ;;  %v28104_v57 = vand.u32 4294901760, %v28085_v40  ;;  %v15491_v25 = vsub.f32 %v28072_v37, %v28092_v55  ;;  %v15485_v6 = vand.u32 4294901760, %v15484_v42  ;;  %v15520_v20 = vand.u32 4294901760, %v15519_v23 }
0x11d7   : > { %21703 = vmatprep.subr.mxu1 %v27778_v2  ;;  %21661 = vmatpush3.msra.mxu0 %v27772_v17  ;;  %29393 = vst [vmem:[#allocation145_spill] sm:$0xff] %v28098_v31  ;;  %v28108_v17 = vsub.f32 %v15365_v53, %v28069_v30  ;;  %v15548_v53 = vand.u32 4294901760, %v15547_v59 }
0x11d8   : > { %21704 = vmatpush3.msra.mxu1 %v27778_v2  ;;  %21662 = vmatprep.subr.mxu0 %v27785_v56  ;;  %29394 = vst [vmem:[#allocation103_spill] sm:$0xff] %v28104_v57  ;;  %v15498_v2 = vsub.f32 %v28075_v46, %v28095_v49  ;;  %v15512_v61 = vsub.f32 %v28085_v40, %v28104_v57 }
0x11d9   : > { %21705 = vmatprep.subr.mxu1 %v27791_v48  ;;  %21663 = vmatpush3.msra.mxu0 %v27785_v56  ;;  %v15505_v56 = vsub.f32 %v28078_v26, %v28098_v31 }
0x11da   : > { %21706 = vmatpush3.msra.mxu1 %v27791_v48  ;;  %21664 = vmatprep.subr.mxu0 %v27799_v35  ;;  %v15492_v48 = vand.u32 4294901760, %v15491_v25  ;;  %v28196_v25 = vsub.f32 %v15359_v32, %v28185_v15 }
0x11db   : > { %21707 = vmatprep.subr.mxu1 %v27804_v41  ;;  %21665 = vmatpush3.msra.mxu0 %v27799_v35  ;;  %v15499_v35 = vand.u32 4294901760, %v15498_v2  ;;  %v28200_v2 = vand.u32 4294901760, %v28190_v34 }
0x11dc   : > { %21708 = vmatpush3.msra.mxu1 %v27804_v41  ;;  %21666 = vmatprep.subr.mxu0 %v27814_v24  ;;  %v28125_v41 = vand.u32 4294901760, %v28108_v17 }
0x11dd   : > { %21709 = vmatprep.subr.mxu1 %v27819_v54  ;;  %21667 = vmatpush3.msra.mxu0 %v27814_v24  ;;  %v15506_v24 = vand.u32 4294901760, %v15505_v56  ;;  %29401 = vst [vmem:[#allocation96_spill] sm:$0xff] %v28200_v2  ;;  %v15357_v56 = vld [vmem:[#allocation20 + $0x8] sm:$0xff]  ;;  %v15561_v23 = vsub.f32 %v28190_v34, %v28200_v2 }
0x11de   : > { %21710 = vmatpush3.msra.mxu1 %v27819_v54  ;;  %21668 = vmatprep.subr.mxu0 %v27827_v45  ;;  %29396 = vst [vmem:[#allocation101_spill] sm:$0xff] %v28125_v41  ;;  %v15364_v54 = vld [vmem:[#allocation20 + $0x40] sm:$0xff]  ;;  %v15526_v62 = vsub.f32 %v28108_v17, %v28125_v41 }
0x11df   : > { %21711 = vmatprep.subr.mxu1 %v27832_v22  ;;  %21669 = vmatpush3.msra.mxu0 %v27827_v45  ;;  %v15513_v45 = vand.u32 4294901760, %v15512_v61  ;;  %v28206_v61 = vand.u32 4294901760, %v28196_v25  ;;  %v15562_v21 = vand.u32 4294901760, %v15561_v23 }
0x11e0   : > { %21712 = vmatpush3.msra.mxu1 %v27832_v22  ;;  %21670 = vmatprep.subr.mxu0 %v27839_v44  ;;  %v28135_v22 = vand.u32 4294901760, %v15364_v54 }
0x11e1   : > { %21713 = vmatprep.subr.mxu1 %v27844_v14  ;;  %21671 = vmatpush3.msra.mxu0 %v27839_v44  ;;  %v15363_v44 = vld [vmem:[#allocation20 + $0x38] sm:$0xff]  ;;  %29402 = vst [vmem:[#allocation110_spill] sm:$0xff] %v28206_v61 }
0x11e2   : > { %21714 = vmatpush3.msra.mxu1 %v27844_v14  ;;  %21672 = vmatprep.subr.mxu0 %v27851_v10  ;;  %v28140_v14 = vsub.f32 %v15364_v54, %v28135_v22 }
0x11e3   : > { %21716 = vmatmul.mubr.f32.vlgmr.msra.gmra.mxu1 %v27886_v28  ;;  %21673 = vmatpush3.msra.mxu0 %v27851_v10  ;;  %v28142_v10 = vand.u32 4294901760, %v15363_v44 }
0x11e4   : > { %21674 = vmatprep.subr.mxu0 %v27861_v51  ;;  %21753 = vmatprep.subr.mxu1 %v15485_v6  ;;  %v28147_v47 = vand.u32 4294901760, %v28140_v14 }
0x11e5   : > { %21675 = vmatpush3.msra.mxu0 %v27861_v51  ;;  %21754 = vmatpush3.msra.mxu1 %v15485_v6  ;;  %v15527_v51 = vand.u32 4294901760, %v15526_v62  ;;  %v28202_v6 = vand.u32 4294901760, %v15358_v29  ;;  %v15356_v62 = vld [vmem:[#allocation20] sm:$0xff] }
0x11e6   : > { %21676 = vmatprep.subr.mxu0 %v27871_v9  ;;  %21755 = vmatprep.subr.mxu1 %v15492_v48  ;;  %29397 = vst [vmem:[#allocation104_spill] sm:$0xff] %v28147_v47  ;;  %v15533_v8 = vsub.f32 %v28140_v14, %v28147_v47 }
0x11e7   : > { %21677 = vmatpush3.msra.mxu0 %v27871_v9  ;;  %21756 = vmatpush3.msra.mxu1 %v15492_v48  ;;  %v28150_v9 = vsub.f32 %v15363_v44, %v28142_v10  ;;  %v28212_v54 = vsub.f32 %v15358_v29, %v28202_v6  ;;  %v15568_v44 = vsub.f32 %v28196_v25, %v28206_v61 }
0x11e8   : > { %21678 = vmatprep.subr.mxu0 %v27878_v27  ;;  %21757 = vmatprep.subr.mxu1 %v15499_v35  ;;  %v15534_v0 = vand.u32 4294901760, %v15533_v8 }
0x11e9   : > { %21679 = vmatpush3.msra.mxu0 %v27878_v27  ;;  %21758 = vmatpush3.msra.mxu1 %v15499_v35  ;;  %v15361_v27 = vld [vmem:[#allocation20 + $0x28] sm:$0xff]  ;;  %v28159_v16 = vand.u32 4294901760, %v28150_v9  ;;  %v15569_v5 = vand.u32 4294901760, %v15568_v44 }
0x11ea   : > { %21681 = vmatmul.mubr.f32.vlgmr.msra.gmra.mxu0 %v27886_v28  ;;  %21718 = vmatprep.subr.mxu0 %v28053_v43  ;;  %v28164_v28 = vand.u32 4294901760, %v15361_v27 }
0x11eb   : > { %21719 = vmatpush3.msra.mxu0 %v28053_v43  ;;  %21759 = vmatprep.subr.mxu1 %v15506_v24  ;;  %29398 = vst [vmem:[#allocation105_spill] sm:$0xff] %v28159_v16  ;;  %v15540_v33 = vsub.f32 %v28150_v9, %v28159_v16 }
0x11ec   : > { %21720 = vmatprep.subr.mxu0 %v28055_v38  ;;  %21760 = vmatpush3.msra.mxu1 %v15506_v24  ;;  %v28174_v11 = vsub.f32 %v15361_v27, %v28164_v28 }
0x11ed   : > { %21721 = vmatpush3.msra.mxu0 %v28055_v38  ;;  %21761 = vmatprep.subr.mxu1 %v15513_v45  ;;  %v15541_v58 = vand.u32 4294901760, %v15540_v33 }
0x11ee   : > { %21722 = vmatprep.subr.mxu0 %v28057_v12  ;;  %21762 = vmatpush3.msra.mxu1 %v15513_v45  ;;  %v28183_v7 = vand.u32 4294901760, %v28174_v11  ;;  %v28214_v45 = vand.u32 4294901760, %v15357_v56 }
0x11ef   : > { %21723 = vmatpush3.msra.mxu0 %v28057_v12  ;;  %21763 = vmatprep.subr.mxu1 %v15520_v20 }
0x11f0   : > { %21724 = vmatprep.subr.mxu0 %v28059_v60  ;;  %21764 = vmatpush3.msra.mxu1 %v15520_v20  ;;  %29400 = vst [vmem:[#allocation106_spill] sm:$0xff] %v28183_v7  ;;  %v15554_v42 = vsub.f32 %v28174_v11, %v28183_v7  ;;  %v28219_v20 = vand.u32 4294901760, %v15356_v62  ;;  %v28226_v27 = vsub.f32 %v15357_v56, %v28214_v45 }
0x11f1   : > { %21725 = vmatpush3.msra.mxu0 %v28059_v60  ;;  %21765 = vmatprep.subr.mxu1 %v15527_v51 }
0x11f2   : > { %21726 = vmatprep.subr.mxu0 %v28065_v50  ;;  %21766 = vmatpush3.msra.mxu1 %v15527_v51  ;;  %v15555_v35 = vand.u32 4294901760, %v15554_v42  ;;  %v28223_v51 = vand.u32 4294901760, %v28212_v54  ;;  %29404 = vst [vmem:[#allocation114_spill] sm:$0xff] %v28226_v27 }
0x11f3   : > { %21727 = vmatpush3.msra.mxu0 %v28065_v50  ;;  %21767 = vmatprep.subr.mxu1 %v15534_v0 }
0x11f4   : > { %21728 = vmatprep.subr.mxu0 %v28067_v13  ;;  %21768 = vmatpush3.msra.mxu1 %v15534_v0  ;;  %29403 = vst [vmem:[#allocation112_spill] sm:$0xff] %v28223_v51  ;;  %v28230_v0 = vsub.f32 %v15356_v62, %v28219_v20  ;;  %v15575_v32 = vsub.f32 %v28212_v54, %v28223_v51 }
0x11f5   : > { %21729 = vmatpush3.msra.mxu0 %v28067_v13  ;;  %v28187_v18 = vpop.f32.mrf.mxu1  ;;  %21769 = vmatprep.subr.mxu1 %v15541_v58 }
0x11f6   : > { %21730 = vmatprep.subr.mxu0 %v28069_v30  ;;  %21770 = vmatpush3.msra.mxu1 %v15541_v58  ;;  %29405 = vst [vmem:[#allocation116_spill] sm:$0xff] %v28230_v0  ;;  %v28236_v58 = vand.u32 4294901760, %v28226_v27  ;;  %v28240_v59 = vand.u32 4294901760, %v28230_v0  ;;  %v15576_v29 = vand.u32 4294901760, %v15575_v32  ;;  %v16723_v32 = vld [vmem:[%s29408_s6] ss:$0 sm:$0xff] }
0x11f7   : > { %21731 = vmatpush3.msra.mxu0 %v28069_v30  ;;  %21771 = vmatprep.subr.mxu1 %v15548_v53  ;;  %v14141_v24 = vpop.f32.mrf.mxu1  ;;  %s28954_s6 = sshll.u32 %s22940_s2, 9 }
0x11f8   : > { %21732 = vmatprep.subr.mxu0 %v28135_v22  ;;  %21772 = vmatpush3.msra.mxu1 %v15548_v53  ;;  %29406 = vst [vmem:[#allocation119_spill] sm:$0xff] %v28236_v58  ;;  %29407 = vst [vmem:[#allocation120_spill] sm:$0xff] %v28240_v59  ;;  %v15582_v53 = vsub.f32 %v28226_v27, %v28236_v58  ;;  %v15589_v56 = vsub.f32 %v28230_v0, %v28240_v59 }
0x11f9   : > { %21733 = vmatpush3.msra.mxu0 %v28135_v22  ;;  %21773 = vmatprep.subr.mxu1 %v15555_v35  ;;  %v21355_v33 = vpop.f32.mrf.mxu1 }
0x11fa   : > { %21734 = vmatprep.subr.mxu0 %v28142_v10  ;;  %21774 = vmatpush3.msra.mxu1 %v15555_v35  ;;  %v15583_v23 = vand.u32 4294901760, %v15582_v53  ;;  %v15590_v62 = vand.u32 4294901760, %v15589_v56 }
0x11fb   : > { %21735 = vmatpush3.msra.mxu0 %v28142_v10  ;;  %21775 = vmatprep.subr.mxu1 %v15562_v21  ;;  %v14153_v35 = vpop.f32.mrf.mxu1 }
0x11fc   : > { %21736 = vmatprep.subr.mxu0 %v28152_v19  ;;  %21776 = vmatpush3.msra.mxu1 %v15562_v21 }
0x11fd   : > { %21737 = vmatpush3.msra.mxu0 %v28152_v19  ;;  %v21314_v48 = vpop.f32.mrf.mxu0  ;;  %21777 = vmatprep.subr.mxu1 %v15569_v5 }
0x11fe   : > { %21738 = vmatprep.subr.mxu0 %v28164_v28  ;;  %21778 = vmatpush3.msra.mxu1 %v15569_v5  ;;  %v13971_v5 = vadd.f32 %v21314_v48, %v16723_v32 }
0x11ff   : > { %21739 = vmatpush3.msra.mxu0 %v28164_v28  ;;  %v13960_v8 = vpop.f32.mrf.mxu0  ;;  %21779 = vmatprep.subr.mxu1 %v15576_v29 }
0x1200   : > { %21740 = vmatprep.subr.mxu0 %v28177_v36  ;;  %21780 = vmatpush3.msra.mxu1 %v15576_v29  ;;  %v13961_v2 = vadd.f32 %v16723_v32, %v13960_v8  ;;  %v14148_v7 = vadd.f32 %v28187_v18, %v13971_v5 }
0x1201   : > { %21741 = vmatpush3.msra.mxu0 %v28177_v36  ;;  %21781 = vmatprep.subr.mxu1 %v15583_v23 }
0x1202   : > { %21742 = vmatprep.subr.mxu0 %v28185_v15  ;;  %v21317_v42 = vpop.f32.mrf.mxu0  ;;  %21782 = vmatpush3.msra.mxu1 %v15583_v23  ;;  %v14142_v16 = vadd.f32 %v14141_v24, %v13961_v2 }
0x1203   : > { %21743 = vmatpush3.msra.mxu0 %v28185_v15  ;;  %21783 = vmatprep.subr.mxu1 %v15590_v62  ;;  %v13991_v53 = vadd.f32 %v21317_v42, %v16723_v32 }
0x1204   : > { %21744 = vmatprep.subr.mxu0 %v28202_v6  ;;  %v13980_v21 = vpop.f32.mrf.mxu0  ;;  %21784 = vmatpush3.msra.mxu1 %v15590_v62 }
0x1205   : > { %21745 = vmatpush3.msra.mxu0 %v28202_v6  ;;  %21823 = vmatprep.subr.mxu1 %v28053_v43  ;;  %v13981_v47 = vadd.f32 %v16723_v32, %v13980_v21  ;;  %v14160_v63 = vadd.f32 %v21355_v33, %v13991_v53 }
0x1206   : > { %21746 = vmatprep.subr.mxu0 %v28214_v45 }
0x1207   : > { %21747 = vmatpush3.msra.mxu0 %v28214_v45  ;;  %v14154_v49 = vadd.f32 %v14153_v35, %v13981_v47 }
0x1208   : > { %21748 = vmatprep.subr.mxu0 %v28219_v20 }
0x1209   : > { %21749 = vmatpush3.msra.mxu0 %v28219_v20 }
0x120a   : > { %21788 = vmatprep.subr.mxu0 %v28062_v52 }
0x1217   : > { %v21428_v44 = vpop.f32.mrf.mxu1 }
0x1219   : > { %v14373_v58 = vpop.f32.mrf.mxu1 }
0x121c   : > { %v21431_v59 = vpop.f32.mrf.mxu1 }
0x121e   : > { %v14389_v56 = vpop.f32.mrf.mxu1 }
0x1220   : > { %v21390_v51 = vpop.f32.mrf.mxu0 }
0x1221   : > { %v14271_v4 = vadd.f32 %v21390_v51, %v14148_v7 }
0x1222   : > { %v14263_v61 = vpop.f32.mrf.mxu0 }
0x1223   : > { %v14264_v23 = vadd.f32 %v14263_v61, %v14142_v16  ;;  %v14382_v57 = vadd.f32 %v21428_v44, %v14271_v4  ;;  %v16724_v61 = vld [vmem:[%s29409_s16] ss:$0 sm:$0xff]  ;;  %s28423_s16 = scalar_lea.hbm %s29427_s7, %s28954_s6 }
0x1225   : > { %v21393_v29 = vpop.f32.mrf.mxu0  ;;  %v14374_v39 = vadd.f32 %v14373_v58, %v14264_v23 }
0x1226   : > { %v14285_v31 = vadd.f32 %v21393_v29, %v14160_v63 }
0x1227   : > { %v14277_v62 = vpop.f32.mrf.mxu0 }
0x1228   : > { %v14278_v0 = vadd.f32 %v14277_v62, %v14154_v49  ;;  %v14398_v27 = vadd.f32 %v21431_v59, %v14285_v31 }
0x122a   : > { %v14390_v4 = vadd.f32 %v14389_v56, %v14278_v0 }
0x123b   : > { %v21504_v41 = vpop.f32.mrf.mxu1 }
0x123d   : > { %v14621_v55 = vpop.f32.mrf.mxu1 }
0x1240   : > { %v21507_v7 = vpop.f32.mrf.mxu1 }
0x1244   : > { %v21466_v48 = vpop.f32.mrf.mxu0 }
0x1245   : > { %v14523_v8 = vadd.f32 %v21466_v48, %v14382_v57 }
0x1246   : > { %v14516_v18 = vpop.f32.mrf.mxu0 }
0x1247   : > { %v14628_v42 = vadd.f32 %v21504_v41, %v14523_v8  ;;  %v14517_v5 = vadd.f32 %v14516_v18, %v14374_v39  ;;  %v14633_v41 = vpop.f32.mrf.mxu1 }
0x1249   : > { %14644 = vst [vmem:[%s28252_s27 + $0x8] sm:$0xff] %v14628_v42  ;;  %v14622_v63 = vadd.f32 %v14621_v55, %v14517_v5  ;;  %v21469_v47 = vpop.f32.mrf.mxu0 }
0x124a   : > { %v14535_v16 = vadd.f32 %v21469_v47, %v14398_v27 }
0x124b   : > { %14643 = vst [vmem:[%s28252_s27] sm:$0xff] %v14622_v63  ;;  %v14528_v57 = vpop.f32.mrf.mxu0 }
0x124c   : > { %v14640_v49 = vadd.f32 %v21507_v7, %v14535_v16  ;;  %v14529_v2 = vadd.f32 %v14528_v57, %v14390_v4 }
0x124e   : > { %14646 = vst [vmem:[%s28252_s27 + $0x18] sm:$0xff] %v14640_v49  ;;  %v14634_v39 = vadd.f32 %v14633_v41, %v14529_v2 }
0x1250   : > { %14645 = vst [vmem:[%s28252_s27 + $0x10] sm:$0xff] %v14634_v39  ;;  %s22467_s27 = sshll.u32 %s22746_s5, 4  ;;  %s22468_s27 = int_to_ptr.vmem [resolvable:$false] %s22467_s27 }
0x1251   : > { %s22469_s21 = scalar_lea.vmem %s22468_s27, 1024  ;;  %p22470_p10 = scmp.lt.s32.totalorder %s28417_s24, %s22468_s27 }
0x1252   : > { %p22471_p9 = scmp.lt.s32.totalorder %s22469_s21, %s22463_s20 }
0x1254   : > { %p22472_p11 = por %p22471_p9, %p22470_p10 }
0x1256   : > { %p22473_p12 = pnand %p22472_p11, %p22466_p13 }
0x125f   : > { %v21577_v24 = vpop.f32.mrf.mxu1 }
0x1261   : > { %v14918_v35 = vpop.f32.mrf.mxu1 }
0x1267   : > { %v21542_v31 = vpop.f32.mrf.mxu0 }
0x1268   : > { %v14768_v33 = vadd.f32 %v21542_v31, %v16724_v61 }
0x1269   : > { %v14757_v51 = vpop.f32.mrf.mxu0 }
0x126a   : > { %v14758_v59 = vadd.f32 %v16724_v61, %v14757_v51  ;;  %v14925_v55 = vadd.f32 %v21577_v24, %v14768_v33 }
0x126c   : > { %v14919_v21 = vadd.f32 %v14918_v35, %v14758_v59 }
0x1281   : > { %v21647_v44 = vpop.f32.mrf.mxu1 }
0x1283   : > { %v15124_v53 = vpop.f32.mrf.mxu1 }
0x1289   : > { %v21612_v58 = vpop.f32.mrf.mxu0 }
0x128a   : > { %v15036_v0 = vadd.f32 %v21612_v58, %v14925_v55 }
0x128b   : > { %v15028_v27 = vpop.f32.mrf.mxu0 }
0x128c   : > { %v15029_v32 = vadd.f32 %v15028_v27, %v14919_v21  ;;  %v15133_v29 = vadd.f32 %v21647_v44, %v15036_v0 }
0x128e   : > { %v15125_v48 = vadd.f32 %v15124_v53, %v15029_v32 }
0x12a3   : > { %v21717_v56 = vpop.f32.mrf.mxu1 }
0x12a5   : > { %v15344_v5 = vpop.f32.mrf.mxu1 }
0x12aa   : > { %v21682_v23 = vpop.f32.mrf.mxu0 }
0x12ab   : > { %v15258_v62 = vadd.f32 %v21682_v23, %v15133_v29 }
0x12ac   : > { %v15251_v8 = vpop.f32.mrf.mxu0 }
0x12ad   : > { %v15351_v18 = vadd.f32 %v21717_v56, %v15258_v62  ;;  %v15252_v42 = vadd.f32 %v15251_v8, %v15125_v48 }
0x12af   : > { %v15355_v7 = vmax.f32 %v15351_v18, 0.0  ;;  %v15345_v63 = vadd.f32 %v15344_v5, %v15252_v42 }
0x12b1   : > { %v28259_v47 = vand.u32 4294901760, %v15355_v7  ;;  %v15354_v16 = vmax.f32 %v15345_v63, 0.0 }
0x12b3   : > { %v28262_v4 = vsub.f32 %v15355_v7, %v28259_v47  ;;  %v28264_v57 = vand.u32 4294901760, %v15354_v16 }
0x12b5   : > { %v15472_v49 = vand.u32 4294901760, %v28262_v4  ;;  %v15461_v2 = vsub.f32 %v15354_v16, %v28264_v57  ;;  %21785 = vmatprep.mubr.f32.mxu1 %v28264_v57 }
0x12b6   : > { %21786 = vmatmul.mubr.f32.vlgmr.msra.gmra.mxu1 %v28259_v47 }
0x12b7   : > { %21824 = vmatpush3.msra.mxu1 %v28053_v43  ;;  %v15462_v41 = vand.u32 4294901760, %v15461_v2  ;;  %v15473_v39 = vsub.f32 %v28262_v4, %v15472_v49 }
0x12b8   : > { %21825 = vmatprep.subr.mxu1 %v28055_v38 }
0x12b9   : > { %21826 = vmatpush3.msra.mxu1 %v28055_v38  ;;  %21855 = vmatprep.mubr.f32.mxu1 %v15462_v41  ;;  %v15463_v31 = vsub.f32 %v15461_v2, %v15462_v41  ;;  %v15474_v24 = vand.u32 4294901760, %v15473_v39 }
0x12ba   : > { %21827 = vmatprep.subr.mxu1 %v28057_v12 }
0x12bb   : > { %21828 = vmatpush3.msra.mxu1 %v28057_v12  ;;  %v15464_v61 = vand.u32 4294901760, %v15463_v31 }
0x12bc   : > { %21829 = vmatprep.subr.mxu1 %v28059_v60 }
0x12bd   : > { %21830 = vmatpush3.msra.mxu1 %v28059_v60  ;;  %21750 = vmatprep.mubr.f32.mxu0 %v15464_v61 }
0x12be   : > { %21831 = vmatprep.subr.mxu1 %v28065_v50  ;;  %21751 = vmatmul.mubr.f32.vlgmr.msra.gmra.mxu0 %v15474_v24 }
0x12bf   : > { %21789 = vmatpush3.msra.mxu0 %v28062_v52  ;;  %21832 = vmatpush3.msra.mxu1 %v28065_v50  ;;  %v29410_v52 = vld [vmem:[#allocation114_spill] sm:$0xff] }
0x12c0   : > { %21790 = vmatprep.subr.mxu0 %v28072_v37  ;;  %21820 = vmatprep.mubr.f32.mxu0 %v15461_v2 }
0x12c1   : > { %21833 = vmatprep.subr.mxu1 %v28067_v13  ;;  %21791 = vmatpush3.msra.mxu0 %v28072_v37  ;;  %v29411_v37 = vld [vmem:[#allocation116_spill] sm:$0xff] }
0x12c2   : > { %21834 = vmatpush3.msra.mxu1 %v28067_v13  ;;  %21792 = vmatprep.subr.mxu0 %v28075_v46 }
0x12c3   : > { %21835 = vmatprep.subr.mxu1 %v28069_v30  ;;  %21793 = vmatpush3.msra.mxu0 %v28075_v46  ;;  %v29419_v46 = vld [vmem:[#allocation104_spill] sm:$0xff] }
0x12c4   : > { %21836 = vmatpush3.msra.mxu1 %v28069_v30  ;;  %21794 = vmatprep.subr.mxu0 %v28078_v26 }
0x12c5   : > { %21837 = vmatprep.subr.mxu1 %v28135_v22  ;;  %21795 = vmatpush3.msra.mxu0 %v28078_v26  ;;  %v29420_v26 = vld [vmem:[#allocation105_spill] sm:$0xff] }
0x12c6   : > { %21838 = vmatpush3.msra.mxu1 %v28135_v22  ;;  %21796 = vmatprep.subr.mxu0 %v28085_v40 }
0x12c7   : > { %21839 = vmatprep.subr.mxu1 %v28142_v10  ;;  %21797 = vmatpush3.msra.mxu0 %v28085_v40  ;;  %v29421_v40 = vld [vmem:[#allocation102_spill] sm:$0xff] }
0x12c8   : > { %21840 = vmatpush3.msra.mxu1 %v28142_v10  ;;  %21798 = vmatprep.subr.mxu0 %v28089_v3 }
0x12c9   : > { %21841 = vmatprep.subr.mxu1 %v28152_v19  ;;  %21799 = vmatpush3.msra.mxu0 %v28089_v3  ;;  %v29422_v3 = vld [vmem:[#allocation106_spill] sm:$0xff] }
0x12ca   : > { %21842 = vmatpush3.msra.mxu1 %v28152_v19  ;;  %21800 = vmatprep.subr.mxu0 %v28108_v17 }
0x12cb   : > { %21843 = vmatprep.subr.mxu1 %v28164_v28  ;;  %21801 = vmatpush3.msra.mxu0 %v28108_v17  ;;  %v29423_v17 = vld [vmem:[#allocation96_spill] sm:$0xff] }
0x12cc   : > { %21844 = vmatpush3.msra.mxu1 %v28164_v28  ;;  %21802 = vmatprep.subr.mxu0 %v28140_v14 }
0x12cd   : > { %21845 = vmatprep.subr.mxu1 %v28177_v36  ;;  %21803 = vmatpush3.msra.mxu0 %v28140_v14  ;;  %v29425_v14 = vld [vmem:[#allocation112_spill] sm:$0xff] }
0x12ce   : > { %21846 = vmatpush3.msra.mxu1 %v28177_v36  ;;  %21804 = vmatprep.subr.mxu0 %v28150_v9 }
0x12cf   : > { %21847 = vmatprep.subr.mxu1 %v28185_v15  ;;  %21805 = vmatpush3.msra.mxu0 %v28150_v9  ;;  %v29428_v9 = vld [vmem:[#allocation120_spill] sm:$0xff] }
0x12d0   : > { %21848 = vmatpush3.msra.mxu1 %v28185_v15  ;;  %21806 = vmatprep.subr.mxu0 %v28162_v1 }
0x12d1   : > { %21849 = vmatprep.subr.mxu1 %v28202_v6  ;;  %21807 = vmatpush3.msra.mxu0 %v28162_v1 }
0x12d2   : > { %21850 = vmatpush3.msra.mxu1 %v28202_v6  ;;  %21808 = vmatprep.subr.mxu0 %v28174_v11 }
0x12d3   : > { %21851 = vmatprep.subr.mxu1 %v28214_v45  ;;  %21809 = vmatpush3.msra.mxu0 %v28174_v11 }
0x12d4   : > { %21852 = vmatpush3.msra.mxu1 %v28214_v45  ;;  %21810 = vmatprep.subr.mxu0 %v28190_v34 }
0x12d5   : > { %21853 = vmatprep.subr.mxu1 %v28219_v20  ;;  %21811 = vmatpush3.msra.mxu0 %v28190_v34 }
0x12d6   : > { %21854 = vmatpush3.msra.mxu1 %v28219_v20  ;;  %21812 = vmatprep.subr.mxu0 %v28196_v25 }
0x12d7   : > { %21856 = vmatmul.mubr.f32.vlgmr.msra.gmra.mxu1 %v15472_v49  ;;  %21893 = vmatprep.subr.mxu1 %v28053_v43 }
0x12d8   : > { %21813 = vmatpush3.msra.mxu0 %v28196_v25  ;;  %21894 = vmatpush3.msra.mxu1 %v28053_v43  ;;  %v29412_v43 = vld [vmem:[#allocation136_spill] sm:$0xff] }
0x12d9   : > { %21925 = vmatprep.mubr.f32.mxu1 %v28264_v57  ;;  %21814 = vmatprep.subr.mxu0 %v28212_v54 }
0x12da   : > { %21895 = vmatprep.subr.mxu1 %v28055_v38  ;;  %21815 = vmatpush3.msra.mxu0 %v28212_v54 }
0x12db   : > { %21896 = vmatpush3.msra.mxu1 %v28055_v38  ;;  %21816 = vmatprep.subr.mxu0 %v29410_v52  ;;  %v29413_v38 = vld [vmem:[#allocation139_spill] sm:$0xff] }
0x12dc   : > { %21897 = vmatprep.subr.mxu1 %v28057_v12  ;;  %21817 = vmatpush3.msra.mxu0 %v29410_v52 }
0x12dd   : > { %21898 = vmatpush3.msra.mxu1 %v28057_v12  ;;  %21818 = vmatprep.subr.mxu0 %v29411_v37  ;;  %v29414_v12 = vld [vmem:[#allocation143_spill] sm:$0xff] }
0x12de   : > { %21899 = vmatprep.subr.mxu1 %v28059_v60  ;;  %21819 = vmatpush3.msra.mxu0 %v29411_v37 }
0x12df   : > { %21900 = vmatpush3.msra.mxu1 %v28059_v60  ;;  %21821 = vmatmul.mubr.f32.vlgmr.msra.gmra.mxu0 %v28262_v4  ;;  %v29415_v60 = vld [vmem:[#allocation145_spill] sm:$0xff] }
0x12e0   : > { %21858 = vmatprep.subr.mxu0 %v29412_v43  ;;  %21901 = vmatprep.subr.mxu1 %v28065_v50 }
0x12e1   : > { %21859 = vmatpush3.msra.mxu0 %v29412_v43  ;;  %21890 = vmatprep.mubr.f32.mxu0 %v28264_v57 }
0x12e2   : > { %21902 = vmatpush3.msra.mxu1 %v28065_v50  ;;  %21860 = vmatprep.subr.mxu0 %v29413_v38  ;;  %v29416_v50 = vld [vmem:[#allocation103_spill] sm:$0xff] }
0x12e3   : > { %21903 = vmatprep.subr.mxu1 %v28067_v13  ;;  %21861 = vmatpush3.msra.mxu0 %v29413_v38 }
0x12e4   : > { %21904 = vmatpush3.msra.mxu1 %v28067_v13  ;;  %21862 = vmatprep.subr.mxu0 %v29414_v12  ;;  %v29417_v13 = vld [vmem:[#allocation107_spill] sm:$0xff] }
0x12e5   : > { %21905 = vmatprep.subr.mxu1 %v28069_v30  ;;  %21863 = vmatpush3.msra.mxu0 %v29414_v12 }
0x12e6   : > { %21906 = vmatpush3.msra.mxu1 %v28069_v30  ;;  %21864 = vmatprep.subr.mxu0 %v29415_v60  ;;  %v29418_v30 = vld [vmem:[#allocation101_spill] sm:$0xff] }
0x12e7   : > { %21907 = vmatprep.subr.mxu1 %v28135_v22  ;;  %21865 = vmatpush3.msra.mxu0 %v29415_v60 }
0x12e8   : > { %21908 = vmatpush3.msra.mxu1 %v28135_v22  ;;  %21866 = vmatprep.subr.mxu0 %v29416_v50  ;;  %v29424_v22 = vld [vmem:[#allocation110_spill] sm:$0xff] }
0x12e9   : > { %21909 = vmatprep.subr.mxu1 %v28142_v10  ;;  %21867 = vmatpush3.msra.mxu0 %v29416_v50 }
0x12ea   : > { %21910 = vmatpush3.msra.mxu1 %v28142_v10  ;;  %21868 = vmatprep.subr.mxu0 %v29417_v13  ;;  %v29426_v10 = vld [vmem:[#allocation119_spill] sm:$0xff] }
0x12eb   : > { %21911 = vmatprep.subr.mxu1 %v28152_v19  ;;  %21869 = vmatpush3.msra.mxu0 %v29417_v13 }
0x12ec   : > { %21912 = vmatpush3.msra.mxu1 %v28152_v19  ;;  %21870 = vmatprep.subr.mxu0 %v29418_v30 }
0x12ed   : > { %21913 = vmatprep.subr.mxu1 %v28164_v28  ;;  %21871 = vmatpush3.msra.mxu0 %v29418_v30 }
0x12ee   : > { %21914 = vmatpush3.msra.mxu1 %v28164_v28  ;;  %21872 = vmatprep.subr.mxu0 %v29419_v46 }
0x12ef   : > { %21915 = vmatprep.subr.mxu1 %v28177_v36  ;;  %21873 = vmatpush3.msra.mxu0 %v29419_v46 }
0x12f0   : > { %21916 = vmatpush3.msra.mxu1 %v28177_v36  ;;  %21874 = vmatprep.subr.mxu0 %v29420_v26 }
0x12f1   : > { %21917 = vmatprep.subr.mxu1 %v28185_v15  ;;  %21875 = vmatpush3.msra.mxu0 %v29420_v26 }
0x12f2   : > { %21918 = vmatpush3.msra.mxu1 %v28185_v15  ;;  %21876 = vmatprep.subr.mxu0 %v29421_v40 }
0x12f3   : > { %21919 = vmatprep.subr.mxu1 %v28202_v6  ;;  %21877 = vmatpush3.msra.mxu0 %v29421_v40 }
0x12f4   : > { %21920 = vmatpush3.msra.mxu1 %v28202_v6  ;;  %21878 = vmatprep.subr.mxu0 %v29422_v3 }
0x12f5   : > { %21921 = vmatprep.subr.mxu1 %v28214_v45  ;;  %21879 = vmatpush3.msra.mxu0 %v29422_v3 }
0x12f6   : > { %21922 = vmatpush3.msra.mxu1 %v28214_v45  ;;  %21880 = vmatprep.subr.mxu0 %v29423_v17 }
0x12f7   : > { %21923 = vmatprep.subr.mxu1 %v28219_v20  ;;  %21881 = vmatpush3.msra.mxu0 %v29423_v17 }
0x12f8   : > { %21924 = vmatpush3.msra.mxu1 %v28219_v20  ;;  %21882 = vmatprep.subr.mxu0 %v29424_v22 }
0x12f9   : > { %21926 = vmatmul.mubr.f32.vlgmr.msra.gmra.mxu1 %v28259_v47  ;;  %21883 = vmatpush3.msra.mxu0 %v29424_v22 }
0x12fa   : > { %21884 = vmatprep.subr.mxu0 %v29425_v14 }
0x12fb   : > { %21885 = vmatpush3.msra.mxu0 %v29425_v14 }
0x12fc   : > { %21886 = vmatprep.subr.mxu0 %v29426_v10 }
0x12fd   : > { %21887 = vmatpush3.msra.mxu0 %v29426_v10 }
0x12fe   : > { %21888 = vmatprep.subr.mxu0 %v29428_v9 }
0x12ff   : > { %21889 = vmatpush3.msra.mxu0 %v29428_v9 }
0x1300   : > { %21891 = vmatmul.mubr.f32.vlgmr.msra.gmra.mxu0 %v28259_v47 }
0x1301   : > { %22476 = shalt.err (!%p22473_p12)
}
0x1302   : > { %s22477_s6 = scalar_lea.hbm %s28423_s16, 512  ;;  %s22481_s12 = scalar_lea.hbm %s29427_s7, 1024 }
0x1303   : > { %p22478_p7 = scmp.ne.s32.totalorder %s28423_s16, %s22477_s6  ;;  %p22482_p8 = scmp.lt.s32.totalorder %s28423_s16, %s29427_s7 }
0x1304   : > { %p22483_p0 = scmp.lt.s32.totalorder %s22481_s12, %s22477_s6 }
0x1305   : > { %p22479_p4 = pnand %p22478_p7, %p29429_p3 }
0x1306   : > { %p22484_p5 = por %p22483_p0, %p22482_p8 }
0x1307   : > { %p22480_p6 = pneg %p22479_p4 }
0x1309   : > { %p22485_p1 = pnand %p22484_p5, %p22480_p6 }
0x130b   : > { %22488 = shalt.err (!%p22485_p1)
}
0x130c   : > { %s22747_s21 = smov 128   ;;  %s22748_s20 = smov 8  }
0x130d   : > { %s29430_s6 = scalar_lea.sflag [#allocation24], %s23185_s29  ;;  %s28448_s12 = sshll.u32 %s22940_s2, 8 }
0x130e   : > { %21973 = dma.vmem_to_hbm [thread:$0]  (%p29429_p3), %s28417_s24, 512, %s28423_s16, %s29430_s6, %s22747_s21, %s22747_s21, %s22748_s20  }
0x130f   : > { %s28452_s5 = scalar_lea.hbm %s28990_s4, %s28448_s12  ;;  %s16089_s27 = scalar_lea.sflag [#allocation27], %s23185_s29 }
0x1310   : > { %s22489_s3 = scalar_lea.vmem %s28413_s8, 256  ;;  %s22749_s7 = smov [#allocation26]  }
0x1311   : > { %p22490_p2 = scmp.ne.s32.totalorder %s28413_s8, %s22489_s3  ;;  %s22493_s9 = sshll.u32 %s22749_s7, 4  ;;  %s22494_s9 = int_to_ptr.vmem [resolvable:$false] %s22493_s9 }
0x1312   : > { %s22495_s13 = scalar_lea.vmem %s22494_s9, 512  ;;  %p22496_p9 = scmp.lt.s32.totalorder %s28413_s8, %s22494_s9 }
0x1313   : > { %p22491_p13 = pnand %p22490_p2, %p29429_p3  ;;  %p22497_p11 = scmp.lt.s32.totalorder %s22495_s13, %s22489_s3 }
0x1315   : > { %p22492_p10 = pneg %p22491_p13  ;;  %p22498_p12 = por %p22497_p11, %p22496_p9 }
0x1317   : > { %p22499_p7 = pnand %p22498_p12, %p22492_p10 }
0x1319   : > { %22502 = shalt.err (!%p22499_p7)
}
0x131a   : > { %s22503_s24 = scalar_lea.hbm %s28452_s5, 256  ;;  %s22507_s16 = scalar_lea.hbm %s28990_s4, 512 }
0x131b   : > { %p22504_p4 = scmp.ne.s32.totalorder %s28452_s5, %s22503_s24  ;;  %p22508_p0 = scmp.lt.s32.totalorder %s28452_s5, %s28990_s4 }
0x131c   : > { %p22509_p5 = scmp.lt.s32.totalorder %s22507_s16, %s22503_s24 }
0x131d   : > { %p22505_p6 = pnand %p22504_p4, %p29429_p3 }
0x131e   : > { %p22510_p1 = por %p22509_p5, %p22508_p0 }
0x131f   : > { %p22506_p8 = pneg %p22505_p6 }
0x1321   : > { %p22511_p2 = pnand %p22510_p1, %p22506_p8 }
0x1323   : > { %22514 = shalt.err (!%p22511_p2)
}
0x1324   : > { %s29431_s9 = sld [smem:[#allocation69_spill]]  ;;  %s29432_s13 = sshll.u32 %s26239_s15, 4  ;;  %s28478_s13 = int_to_ptr.vmem [resolvable:$true] %s29432_s13 }
0x1325   : > { %21975 = dma.vmem_to_hbm [thread:$0]  (%p29429_p3), %s28413_s8, 256, %s28452_s5, %s16089_s27, %s22747_s21, %s22747_s21, %s22748_s20  }
0x1326   : > { %s16074_s7 = scalar_lea.sflag [#allocation4], %s23173_s30  ;;  %s22515_s6 = scalar_lea.vmem %s28415_s1, 256 }
0x1327   : > { %p22516_p13 = scmp.ne.s32.totalorder %s28415_s1, %s22515_s6  ;;  %s22750_s24 = smov [#allocation22]  }
0x1328   : > { %s22519_s16 = sshll.u32 %s22750_s24, 4  ;;  %s22520_s16 = int_to_ptr.vmem [resolvable:$false] %s22519_s16 }
0x1329   : > { %p22517_p10 = pnand %p22516_p13, %p29429_p3  ;;  %s22521_s4 = scalar_lea.vmem %s22520_s16, 512 }
0x132a   : > { %s28482_s3 = scalar_lea.hbm %s29431_s9, %s28448_s12  ;;  %p22522_p11 = scmp.lt.s32.totalorder %s28415_s1, %s22520_s16 }
0x132b   : > { %p22518_p9 = pneg %p22517_p10  ;;  %p22523_p12 = scmp.lt.s32.totalorder %s22521_s4, %s22515_s6 }
0x132d   : > { %p22524_p7 = por %p22523_p12, %p22522_p11 }
0x132f   : > { %p22525_p4 = pnand %p22524_p7, %p22518_p9 }
0x1331   : > { %22528 = shalt.err (!%p22525_p4)
}
0x1332   : > { %s22529_s15 = scalar_lea.hbm %s28482_s3, 256  ;;  %s22533_s8 = scalar_lea.hbm %s29431_s9, 512 }
0x1333   : > { %p22530_p6 = scmp.ne.s32.totalorder %s28482_s3, %s22529_s15  ;;  %p22534_p5 = scmp.lt.s32.totalorder %s28482_s3, %s29431_s9 }
0x1334   : > { %p22535_p1 = scmp.lt.s32.totalorder %s22533_s8, %s22529_s15 }
0x1335   : > { %p22531_p8 = pnand %p22530_p6, %p29429_p3 }
0x1336   : > { %p22536_p2 = por %p22535_p1, %p22534_p5 }
0x1337   : > { %p22532_p0 = pneg %p22531_p8 }
0x1339   : > { %p22537_p13 = pnand %p22536_p2, %p22532_p0 }
0x133b   : > { %22540 = shalt.err (!%p22537_p13)
}
0x133c   : > { %21972 = dma.vmem_to_hbm [thread:$0]  (%p29429_p3), %s28415_s1, 256, %s28482_s3, %s16074_s7, %s22747_s21, %s22747_s21, %s22748_s20  }
0x133d   : > { %s16175_s4 = scalar_lea.hbm %s22912_s17, %s28448_s12  ;;  %s22541_s5 = scalar_lea.vmem %s28478_s13, 256 }
0x133e   : > { %p22542_p10 = scmp.ne.s32.totalorder %s28478_s13, %s22541_s5  ;;  %s22751_s6 = smov [#allocation28]  }
0x133f   : > { %s22545_s24 = sshll.u32 %s22751_s6, 4  ;;  %s22546_s24 = int_to_ptr.vmem [resolvable:$false] %s22545_s24 }
0x1340   : > { %p22543_p9 = pnand %p22542_p10, %p29429_p3  ;;  %s22547_s16 = scalar_lea.vmem %s22546_s24, 512 }
0x1341   : > { %p22548_p12 = scmp.lt.s32.totalorder %s28478_s13, %s22546_s24  ;;  %p22549_p7 = scmp.lt.s32.totalorder %s22547_s16, %s22541_s5 }
0x1342   : > { %p22544_p11 = pneg %p22543_p9 }
0x1343   : > { %p22550_p4 = por %p22549_p7, %p22548_p12 }
0x1345   : > { %p22551_p6 = pnand %p22550_p4, %p22544_p11 }
0x1347   : > { %22554 = shalt.err (!%p22551_p6)
}
0x1348   : > { %s22555_s15 = scalar_lea.hbm %s16175_s4, 256  ;;  %s22559_s1 = scalar_lea.hbm %s22912_s17, 512 }
0x1349   : > { %p22556_p8 = scmp.ne.s32.totalorder %s16175_s4, %s22555_s15  ;;  %p22560_p1 = scmp.lt.s32.totalorder %s16175_s4, %s22912_s17 }
0x134a   : > { %p22561_p2 = scmp.lt.s32.totalorder %s22559_s1, %s22555_s15 }
0x134b   : > { %p22557_p0 = pnand %p22556_p8, %p29429_p3 }
0x134c   : > { %p22562_p13 = por %p22561_p2, %p22560_p1 }
0x134d   : > { %p22558_p5 = pneg %p22557_p0 }
0x134f   : > { %p22563_p10 = pnand %p22562_p13, %p22558_p5 }
0x1351   : > { %22566 = shalt.err (!%p22563_p10)
}
0x1352   : > { %s29433_s3 = sld [smem:[#allocation73_spill]]  ;;  %s29434_s7 = sshll.u32 %s22940_s2, 9 }
0x1353   : > { %21976 = dma.vmem_to_hbm [thread:$0]  (%p29429_p3), %s28478_s13, 256, %s16175_s4, %s16089_s27, %s22747_s21, %s22747_s21, %s22748_s20  }
0x1354   : > { %s16099_s5 = scalar_lea.sflag [#allocation30], %s23173_s30  ;;  %s22567_s6 = scalar_lea.vmem %s28410_s10, 512 }
0x1355   : > { %p22568_p9 = scmp.ne.s32.totalorder %s28410_s10, %s22567_s6  ;;  %s22752_s24 = smov [#allocation29]  }
0x1356   : > { %s22571_s16 = sshll.u32 %s22752_s24, 4  ;;  %s22572_s16 = int_to_ptr.vmem [resolvable:$false] %s22571_s16 }
0x1357   : > { %p22569_p11 = pnand %p22568_p9, %p29429_p3  ;;  %s22573_s15 = scalar_lea.vmem %s22572_s16, 1024 }
0x1358   : > { %s28526_s8 = scalar_lea.hbm %s29433_s3, %s29434_s7  ;;  %p22574_p7 = scmp.lt.s32.totalorder %s28410_s10, %s22572_s16 }
0x1359   : > { %p22570_p12 = pneg %p22569_p11  ;;  %p22575_p4 = scmp.lt.s32.totalorder %s22573_s15, %s22567_s6 }
0x135b   : > { %p22576_p6 = por %p22575_p4, %p22574_p7 }
0x135d   : > { %p22577_p8 = pnand %p22576_p6, %p22570_p12 }
0x135f   : > { %22580 = shalt.err (!%p22577_p8)
}
0x1360   : > { %s22581_s2 = scalar_lea.hbm %s28526_s8, 512  ;;  %s22585_s30 = scalar_lea.hbm %s29433_s3, 1024 }
0x1361   : > { %p22582_p0 = scmp.ne.s32.totalorder %s28526_s8, %s22581_s2  ;;  %p22586_p2 = scmp.lt.s32.totalorder %s28526_s8, %s29433_s3 }
0x1362   : > { %p22587_p13 = scmp.lt.s32.totalorder %s22585_s30, %s22581_s2 }
0x1363   : > { %p22583_p5 = pnand %p22582_p0, %p29429_p3 }
0x1364   : > { %p22588_p10 = por %p22587_p13, %p22586_p2 }
0x1365   : > { %p22584_p1 = pneg %p22583_p5 }
0x1367   : > { %p22589_p9 = pnand %p22588_p10, %p22584_p1 }
0x1369   : > { %22592 = shalt.err (!%p22589_p9)
}
0x136a   : > { %s29435_s27 = sld [smem:[#allocation68_spill]] }
0x136b   : > { %21977 = dma.vmem_to_hbm [thread:$0]  (%p29429_p3), %s28410_s10, 512, %s28526_s8, %s16099_s5, %s22747_s21, %s22747_s21, %s22748_s20  }
0x136c   : > { %s29436_s13 = sld [smem:[#allocation71_spill]]  ;;  %s1248_s10 = scalar_lea.vmem [#allocation25], %s23176_s18 }
0x136d   : > { %s16144_s4 = sshll.u32 %s1248_s10, 4  ;;  %s22753_s18 = smov [#allocation25]   ;;  %s28550_s4 = int_to_ptr.vmem [resolvable:$true] %s16144_s4 }
0x136e   : > { %s22593_s7 = scalar_lea.vmem %s28550_s4, 256  ;;  %s22597_s8 = sshll.u32 %s22753_s18, 4  ;;  %s22598_s8 = int_to_ptr.vmem [resolvable:$false] %s22597_s8 }
0x136f   : > { %p22594_p11 = scmp.ne.s32.totalorder %s28550_s4, %s22593_s7  ;;  %s22599_s5 = scalar_lea.vmem %s22598_s8, 512 }
0x1370   : > { %v16725_v1 = vld [vmem:[%s29435_s27] ss:$0 sm:$0xff]  ;;  %p22600_p4 = scmp.lt.s32.totalorder %s28550_s4, %s22598_s8  ;;  %p22601_p6 = scmp.lt.s32.totalorder %s22599_s5, %s22593_s7 }
0x1371   : > { %p22595_p12 = pnand %p22594_p11, %p29429_p3 }
0x1372   : > { %s28554_s1 = scalar_lea.hbm %s29436_s13, %s28448_s12  ;;  %p22602_p8 = por %p22601_p6, %p22600_p4 }
0x1373   : > { %p22596_p7 = pneg %p22595_p12 }
0x1375   : > { %p22603_p0 = pnand %p22602_p8, %p22596_p7 }
0x1376   : > { %v21787_v28 = vpop.f32.mrf.mxu1 }
0x1378   : > { %v15627_v25 = vpop.f32.mrf.mxu1 }
0x137e   : > { %v21752_v19 = vpop.f32.mrf.mxu0 }
0x137f   : > { %v15477_v36 = vadd.f32 %v21752_v19, %v16725_v1 }
0x1380   : > { %v15466_v11 = vpop.f32.mrf.mxu0 }
0x1381   : > { %v15467_v34 = vadd.f32 %v16725_v1, %v15466_v11  ;;  %v15634_v6 = vadd.f32 %v21787_v28, %v15477_v36 }
0x1383   : > { %v15628_v51 = vadd.f32 %v15627_v25, %v15467_v34 }
0x1397   : > { %v21857_v54 = vpop.f32.mrf.mxu1 }
0x1399   : > { %v15833_v58 = vpop.f32.mrf.mxu1 }
0x139f   : > { %v21822_v15 = vpop.f32.mrf.mxu0 }
0x13a0   : > { %v15745_v20 = vadd.f32 %v21822_v15, %v15634_v6 }
0x13a1   : > { %v15737_v45 = vpop.f32.mrf.mxu0 }
0x13a2   : > { %v15738_v33 = vadd.f32 %v15737_v45, %v15628_v51  ;;  %v15842_v59 = vadd.f32 %v21857_v54, %v15745_v20 }
0x13a4   : > { %v15834_v27 = vadd.f32 %v15833_v58, %v15738_v33 }
0x13b9   : > { %v21927_v35 = vpop.f32.mrf.mxu1 }
0x13bb   : > { %v16053_v53 = vpop.f32.mrf.mxu1 }
0x13c0   : > { %v21892_v55 = vpop.f32.mrf.mxu0 }
0x13c1   : > { %v15967_v44 = vadd.f32 %v21892_v55, %v15842_v59 }
0x13c2   : > { %v15960_v0 = vpop.f32.mrf.mxu0 }
0x13c3   : > { %v16060_v21 = vadd.f32 %v21927_v35, %v15967_v44  ;;  %v15961_v32 = vadd.f32 %v15960_v0, %v15834_v27 }
0x13c5   : > { %16064 = vst [vmem:[%s1248_s10 + $0x8] sm:$0xff] %v16060_v21  ;;  %v16054_v29 = vadd.f32 %v16053_v53, %v15961_v32 }
0x13c7   : > { %16063 = vst [vmem:[%s1248_s10] sm:$0xff] %v16054_v29 }
0x13c8   : > { %22606 = shalt.err (!%p22603_p0)
}
0x13c9   : > { %s22607_s12 = scalar_lea.hbm %s28554_s1, 256  ;;  %s22611_s6 = scalar_lea.hbm %s29436_s13, 512 }
0x13ca   : > { %p22608_p5 = scmp.ne.s32.totalorder %s28554_s1, %s22607_s12  ;;  %p22612_p13 = scmp.lt.s32.totalorder %s28554_s1, %s29436_s13 }
0x13cb   : > { %p22613_p10 = scmp.lt.s32.totalorder %s22611_s6, %s22607_s12 }
0x13cc   : > { %p22609_p1 = pnand %p22608_p5, %p29429_p3 }
0x13cd   : > { %p22614_p9 = por %p22613_p10, %p22612_p13 }
0x13ce   : > { %p22610_p2 = pneg %p22609_p1 }
0x13d0   : > { %p22615_p11 = pnand %p22614_p9, %p22610_p2 }
0x13d2   : > { %22618 = shalt.err (!%p22615_p11)
}
0x13d3   : > { %s29437_s24 = scalar_lea.sflag [#allocation24], %s23185_s29 }
0x13d4   : > { %21974 = dma.vmem_to_hbm [thread:$0]  (%p29429_p3), %s28550_s4, 256, %s28554_s1, %s29437_s24, %s22747_s21, %s22747_s21, %s22748_s20  }
0x13d5 PF: > { %s16207_s16 = sand.u32 1, %s22685_s22   ;;  %p29438_p12 = scmp.ne.s32.totalorder %s29011_s25, 0 }
0x13d6   : > { %p29439_p7 = scmp.ge.s32.totalorder %s22697_s26, 2  ;;  %s16208_s15 = scalar_lea.sflag [#allocation4], %s16207_s16 }
0x13d8   : > { %p22023_p4 = pnand %p29439_p7, %p29438_p12 }
0x13da   : > { %p22024_p6 = pneg %p22023_p4 }
0x13dc   : > { %22668 = dma.done.wait (%p22024_p6), %s16208_s15, 256  }
0x13dd   : > { %22670 = vsyncadd (%p22024_p6), %s16208_s15, 4294967040  ;;  %s29440_s14 = sadd.s32 4294967294, %s22697_s26  }
0x13de   : > { %s16216_s2 = sand.u32 1, %s29440_s14  }
0x13df   : > { %s16217_s30 = scalar_lea.sflag [#allocation24], %s16216_s2 }
0x13e0   : > { %22672 = dma.done.wait (%p22024_p6), %s16217_s30, 768  }
0x13e1   : > { %22674 = vsyncadd (%p22024_p6), %s16217_s30, 4294966528  ;;  %s16235_s29 = scalar_lea.sflag [#allocation27], %s16216_s2 }
0x13e2   : > { %22676 = dma.done.wait (%p22024_p6), %s16235_s29, 512  }
0x13e3   : > { %22678 = vsyncadd (%p22024_p6), %s16235_s29, 4294966784  ;;  %s16253_s21 = scalar_lea.sflag [#allocation30], %s16207_s16 }
0x13e4   : > { %22680 = dma.done.wait (%p22024_p6), %s16253_s21, 512  }
0x13e5   : > { %22682 = vsyncadd (%p22024_p6), %s16253_s21, 4294966784  ;;  %p94_p3 = scmp.ge.s32.totalorder %s23060_s28, 4   ;;  %s29441_s22 = smov %s22689_s0 }
0x13e6   : > { %s29442_s0 = smov %s22693_s23  ;;  %s29443_s23 = smov %s23071_s11 }
0x13e7   : > { %s29444_s26 = smov %s23060_s28  ;;  %96 = sbr.rel (!%p94_p3) target bundleno = 87 (0x57), region = 349 }
0x13ec   :  { %16258 = vsyncpa [#allocation3], 1 }
0x13ed   :  { %16260 = vsyncpa [#allocation3 + $0x1], 1 }
0x13ee   :  { %16261 = vsyncpa [#allocation6], 1 }
0x13ef   :  { %16263 = vsyncpa [#allocation6 + $0x1], 1 }
0x13f0   :  { %16264 = vsyncpa [#allocation9], 1 }
0x13f1   :  { %16265 = vsyncpa [#allocation12], 1 }
0x13f2   :  { %16266 = vsyncpa [#allocation15], 1 }
0x13f3   :  { %16267 = vsyncpa [#allocation18], 1 }
0x13f4   :  { %16268 = vsyncpa [#allocation21], 1 }
0x13f5   :  { %16269 = vsyncpa [#allocation4], 1 }
0x13f6   :  { %16271 = vsyncpa [#allocation4 + $0x1], 1 }
0x13f7   :  { %16272 = vsyncpa [#allocation24], 1 }
0x13f8   :  { %16274 = vsyncpa [#allocation24 + $0x1], 1 }
0x13f9   :  { %16275 = vsyncpa [#allocation27], 1 }
0x13fa   :  { %16277 = vsyncpa [#allocation27 + $0x1], 1 }
0x13fb   :  { %16278 = vsyncpa [#allocation30], 1 }
0x13fc   :  { %16280 = vsyncpa [#allocation30 + $0x1], 1 }

</bundles_post_ra>
